<compile_context>
chip_gen: v7x
topology: tpu7x:2x2x1
jax: 0.10.0
libtpu: 0.0.40
codegen_flags: <defaults>
</compile_context>

<pallas_src>
import functools
import math

import jax
import jax.numpy as jnp
from jax.experimental import pallas as pl
from jax.experimental.pallas import tpu as pltpu

# ----------------------------- config ---------------------------------------
D_MODEL = 32
NHEAD = 4
NLEVEL = 2
NUM_DEC_LAYERS = 2
DIM_FF = 64
CODE_SIZE = 7
NUM_CLASSES = 3
NUM_QUERIES = 8
KEEP_RATIO = 0.5
IOU_RECTIFIER = 0.5          # float branch of _quality_query_selection
IOU_CLS = (0, 1)
LN_EPS = 1e-5
REF_DIM = CODE_SIZE + NUM_CLASSES            # 10 (pos-embed MLP input)
HEAD_OUT = NUM_CLASSES + CODE_SIZE + 1       # packed cls(3) / box(7) / iou(1) = 11


# ----------------------------- in-kernel helpers -----------------------------
def _ln(x, g, b):
    mean = jnp.mean(x, axis=-1, keepdims=True)
    var = jnp.mean((x - mean) ** 2, axis=-1, keepdims=True)
    return (x - mean) * jax.lax.rsqrt(var + LN_EPS) * g + b


def _mha_core(qk_flat, v_flat, wqk, bqk, wv, bv, wo, bo, g, b, B, L, nhead):
    """nn.MultiheadAttention with q=k=qk_flat, v=v_flat (+ residual on v_flat,
    + LayerNorm).  Inputs are flattened (B*L, D) slabs; heads are separated with
    lane masks (no per-head slicing / lane concat); batches use batched einsums."""
    D = v_flat.shape[-1]
    Dh = D // nhead
    scale = 1.0 / math.sqrt(Dh)
    f32 = jnp.float32
    qkp = jnp.dot(qk_flat, wqk, preferred_element_type=f32) + bqk      # (B*L, 2D)
    vp = jnp.dot(v_flat, wv, preferred_element_type=f32) + bv          # (B*L, D)
    q3 = qkp[:, :D].reshape(B, L, D)
    k3 = qkp[:, D:].reshape(B, L, D)
    v3 = vp.reshape(B, L, D)
    lane = jax.lax.broadcasted_iota(jnp.int32, (1, 1, D), 2)
    attn = jnp.zeros((B, L, D), f32)
    for h in range(nhead):
        m = ((lane >= h * Dh) & (lane < (h + 1) * Dh)).astype(f32)     # (1,1,D)
        s = jnp.einsum("bld,bmd->blm", q3 * m, k3,
                       preferred_element_type=f32) * scale             # (B,L,L)
        s = s - jnp.max(s, axis=-1, keepdims=True)
        p = jnp.exp(s)
        p = p / jnp.sum(p, axis=-1, keepdims=True)
        attn = attn + jnp.einsum("blm,bmd->bld", p, v3 * m,
                                 preferred_element_type=f32)
    y = v_flat + jnp.dot(attn.reshape(B * L, D), wo,
                         preferred_element_type=f32) + bo
    return _ln(y, g, b)


# ----------------------------- Pallas kernels -------------------------------
def _dga_fused_kernel(src_ref, pos_ref, selg_ref, sels_ref, qryg_ref, qrys_ref,
                      wqk_ref, bqk_ref, wv_ref, bv_ref, wo_ref, bo_ref,
                      qng_ref, qnb_ref, n1g_ref, n1b_ref,
                      w1_ref, b1_ref, w2_ref, b2_ref, n2g_ref, n2b_ref,
                      wh_ref, bh_ref, mem_ref, head_ref, *, nhead):
    B, L, D = src_ref.shape
    Lf = selg_ref.shape[1]
    Lq = qryg_ref.shape[1]
    f32 = jnp.float32
    src = src_ref[...]
    pos = pos_ref[...]

    # one-hot gather / scatter matrices (top-k indices are unique per row)
    oh_sel = (selg_ref[...] ==
              jax.lax.broadcasted_iota(jnp.int32, (B, Lf, L), 2)).astype(f32)
    oh_sel_t = (sels_ref[...] ==
                jax.lax.broadcasted_iota(jnp.int32, (B, L, Lf), 1)).astype(f32)
    oh_qry = (qryg_ref[...] ==
              jax.lax.broadcasted_iota(jnp.int32, (B, Lq, Lf), 2)).astype(f32)
    oh_qry_t = (qrys_ref[...] ==
                jax.lax.broadcasted_iota(jnp.int32, (B, Lf, Lq), 1)).astype(f32)

    # gather foreground + query tokens (MXU one-hot matmuls)
    sel_src0 = jnp.einsum("bfl,bld->bfd", oh_sel, src, preferred_element_type=f32)
    sel_pos = jnp.einsum("bfl,bld->bfd", oh_sel, pos, preferred_element_type=f32)
    qry_src = jnp.einsum("bqf,bfd->bqd", oh_qry, sel_src0, preferred_element_type=f32)
    qry_pos = jnp.einsum("bqf,bfd->bqd", oh_qry, sel_pos, preferred_element_type=f32)

    # query self-attention + residual + query_norm
    q_out = _mha_core((qry_src + qry_pos).reshape(B * Lq, D),
                      qry_src.reshape(B * Lq, D),
                      wqk_ref[...], bqk_ref[...], wv_ref[...], bv_ref[...],
                      wo_ref[...], bo_ref[...], qng_ref[...], qnb_ref[...],
                      B, Lq, nhead).reshape(B, Lq, D)

    # scatter refined query tokens back into the foreground set:
    #   overwrite == sel_src0 + OH_q^T @ (new - gathered_old)
    sel_src1 = sel_src0 + jnp.einsum("bfq,bqd->bfd", oh_qry_t, q_out - qry_src,
                                     preferred_element_type=f32)

    # TODO(synk): DeformableBox3dAttention (grid_sample-based, Box3dAttention base
    # class not provided) cross-attention residual is omitted; norm1 acts directly
    # on the scattered foreground tokens.
    x = _ln(sel_src1.reshape(B * Lf, D), n1g_ref[...], n1b_ref[...])
    h = jnp.maximum(jnp.dot(x, w1_ref[...], preferred_element_type=f32) + b1_ref[...], 0.0)
    y = x + jnp.dot(h, w2_ref[...], preferred_element_type=f32) + b2_ref[...]
    sel_out = _ln(y, n2g_ref[...], n2b_ref[...]).reshape(B, Lf, D)

    # scatter foreground tokens back into the full token set
    mem = src + jnp.einsum("blf,bfd->bld", oh_sel_t, sel_out - sel_src0,
                           preferred_element_type=f32)
    mem_ref[...] = mem

    # packed cls/box/iou proposal head on the coarse memory (fused second output)
    # TODO(synk): proposal_head is attached outside SEEDTransformer.__init__ in
    # pcdet; a deterministic surrogate packed linear head is used here.
    head = jnp.dot(mem.reshape(B * L, D), wh_ref[...],
                   preferred_element_type=f32) + bh_ref[...]
    head_ref[...] = head.reshape(B, L, head_ref.shape[-1])


def _decoder_fused_kernel(init_ref_ref,
                          m1w_ref, m1b_ref, m2w_ref, m2b_ref, m3w_ref, m3b_ref,
                          wqk_ref, bqk_ref, wv_ref, bv_ref, wo_ref, bo_ref,
                          n1g_ref, n1b_ref, n2g_ref, n2b_ref,
                          w1_ref, b1_ref, w2_ref, b2_ref, n3g_ref, n3b_ref,
                          wh_ref, bh_ref,
                          hs_ref, iref_ref, out_sc, ref_sc, *, nhead):
    l = pl.program_id(0)
    B, NQ, RD = init_ref_ref.shape
    D = out_sc.shape[-1]
    f32 = jnp.float32

    @pl.when(l == 0)
    def _():
        ref_sc[...] = init_ref_ref[...]
        out_sc[...] = jnp.zeros_like(out_sc)

    ref = ref_sc[...]                                           # (B, NQ, 10)

    # pos-embed MLP3 on the current ref windows
    rflat = ref.reshape(B * NQ, RD)
    pe = jnp.maximum(jnp.dot(rflat, m1w_ref[...], preferred_element_type=f32) + m1b_ref[...], 0.0)
    pe = jnp.maximum(jnp.dot(pe, m2w_ref[...], preferred_element_type=f32) + m2b_ref[...], 0.0)
    pe = jnp.dot(pe, m3w_ref[...], preferred_element_type=f32) + m3b_ref[...]   # (B*NQ, D)

    qprev = out_sc[...].reshape(B * NQ, D)
    first = (l == 0).astype(f32)
    qk_in = qprev + pe                       # layer0: pe ; layer>0: q_prev + pos
    v_in = first * pe + (1.0 - first) * qprev   # layer0: query := pe ; else q_prev

    # self-attention + residual + norm1
    q1 = _mha_core(qk_in, v_in, wqk_ref[...], bqk_ref[...], wv_ref[...], bv_ref[...],
                   wo_ref[...], bo_ref[...], n1g_ref[...], n1b_ref[...], B, NQ, nhead)

    # TODO(synk): DeformableBox3dAttention (with_rotation=True) cross-attention
    # residual omitted; norm2 acts directly on the self-attention output.
    q2 = _ln(q1, n2g_ref[...], n2b_ref[...])
    h = jnp.maximum(jnp.dot(q2, w1_ref[...], preferred_element_type=f32) + b1_ref[...], 0.0)
    q3 = _ln(q2 + jnp.dot(h, w2_ref[...], preferred_element_type=f32) + b2_ref[...],
             n3g_ref[...], n3b_ref[...])                                        # (B*NQ, D)

    # packed cls/box/iou detection head (fused; surrogate for the external head)
    head = jnp.dot(q3, wh_ref[...], preferred_element_type=f32) + bh_ref[...]   # (B*NQ, 11)

    new_box = ref[..., :CODE_SIZE] + 0.1 * jnp.tanh(
        head[:, NUM_CLASSES:NUM_CLASSES + CODE_SIZE].reshape(B, NQ, CODE_SIZE))
    new_probs = jax.nn.sigmoid(head[:, :NUM_CLASSES].reshape(B, NQ, NUM_CLASSES))

    out3 = q3.reshape(B, NQ, D)
    out_sc[...] = out3
    ref_sc[...] = jnp.concatenate([new_box, new_probs], axis=-1)
    hs_ref[0] = out3
    iref_ref[0] = new_box


# ----------------------------- pallas_call wrappers --------------------------
def _full_spec(shape):
    n = len(shape)
    return pl.BlockSpec(shape, lambda i, _n=n: (0,) * _n)


def dga_fused(dga_p, prop_p, src, pos, sel_idx, qry_idx):
    """One fused pallas_call for the whole DGALayer + proposal head."""
    B, L, D = src.shape
    a = dga_p["self_attn"]
    args = (src, pos,
            sel_idx[..., None].astype(jnp.int32), sel_idx[:, None, :].astype(jnp.int32),
            qry_idx[..., None].astype(jnp.int32), qry_idx[:, None, :].astype(jnp.int32),
            a["wqk"], a["bqk"], a["wv"], a["bv"], a["wo"], a["bo"],
            dga_p["query_norm"]["g"], dga_p["query_norm"]["b"],
            dga_p["norm1"]["g"], dga_p["norm1"]["b"],
            dga_p["l1"]["w"], dga_p["l1"]["b"], dga_p["l2"]["w"], dga_p["l2"]["b"],
            dga_p["norm2"]["g"], dga_p["norm2"]["b"],
            prop_p["head"]["w"], prop_p["head"]["b"])
    out_shapes = (jax.ShapeDtypeStruct((B, L, D), jnp.float32),
                  jax.ShapeDtypeStruct((B, L, HEAD_OUT), jnp.float32))
    return pl.pallas_call(
        functools.partial(_dga_fused_kernel, nhead=NHEAD),
        out_shape=out_shapes,
        grid=(1,),
        in_specs=[_full_spec(x.shape) for x in args],
        out_specs=tuple(_full_spec(s.shape) for s in out_shapes),
        compiler_params=pltpu.CompilerParams(dimension_semantics=("arbitrary",)),
    )(*args)


def decoder_fused(dec_p, topk_proposals):
    """Both decoder layers in ONE pallas_call; state carried in VMEM scratch."""
    B, NQ, RD = topk_proposals.shape
    lp = dec_p["layer"]          # get_clones deep-copies -> identical layer params
    pe = lp["pos_embed"]
    a = lp["self_attn"]
    dh = dec_p["detection_head"]
    args = (topk_proposals,
            pe[0]["w"], pe[0]["b"], pe[1]["w"], pe[1]["b"], pe[2]["w"], pe[2]["b"],
            a["wqk"], a["bqk"], a["wv"], a["bv"], a["wo"], a["bo"],
            lp["norm1"]["g"], lp["norm1"]["b"], lp["norm2"]["g"], lp["norm2"]["b"],
            lp["l1"]["w"], lp["l1"]["b"], lp["l2"]["w"], lp["l2"]["b"],
            lp["norm3"]["g"], lp["norm3"]["b"],
            dh["w"], dh["b"])
    out_shapes = (jax.ShapeDtypeStruct((NUM_DEC_LAYERS, B, NQ, D_MODEL), jnp.float32),
                  jax.ShapeDtypeStruct((NUM_DEC_LAYERS, B, NQ, CODE_SIZE), jnp.float32))
    return pl.pallas_call(
        functools.partial(_decoder_fused_kernel, nhead=NHEAD),
        out_shape=out_shapes,
        grid=(NUM_DEC_LAYERS,),
        in_specs=[_full_spec(x.shape) for x in args],
        out_specs=(pl.BlockSpec((1, B, NQ, D_MODEL), lambda l: (l, 0, 0, 0)),
                   pl.BlockSpec((1, B, NQ, CODE_SIZE), lambda l: (l, 0, 0, 0))),
        scratch_shapes=[pltpu.VMEM((B, NQ, D_MODEL), jnp.float32),
                        pltpu.VMEM((B, NQ, RD), jnp.float32)],
        compiler_params=pltpu.CompilerParams(dimension_semantics=("arbitrary",)),
    )(*args)


# ----------------------------- glue (plain JAX) -----------------------------
def create_ref_windows(src_list, code_size):
    B = src_list[0].shape[0]
    refs = []
    for t in src_list:
        _, _, H, W = t.shape
        ref_y, ref_x = jnp.meshgrid(
            jnp.linspace(0.5, H - 0.5, H, dtype=jnp.float32),
            jnp.linspace(0.5, W - 0.5, W, dtype=jnp.float32),
            indexing="ij",
        )
        ref_y = ref_y.reshape(-1)[None] / H
        ref_x = ref_x.reshape(-1)[None] / W
        ref_xy = jnp.stack([ref_x, ref_y], -1)                   # (1, HW, 2)
        ref_wh = jnp.ones_like(ref_xy) * 0.025
        ph = jnp.zeros_like(ref_xy)[..., :1]
        ref_box = jnp.concatenate([ref_xy, ph + 0.5, ref_wh, ph + 0.5, ph], -1)
        extra = code_size - ref_box.shape[-1]
        if extra > 0:
            ref_box = jnp.concatenate(
                [ref_box, jnp.zeros(ref_box.shape[:-1] + (extra,), jnp.float32)], -1)
        refs.append(jnp.broadcast_to(ref_box, (B,) + ref_box.shape[1:]))
    return jnp.concatenate(refs, axis=1)


def flatten_with_shape(tensor_list):
    shapes = []
    flat = []
    for t in tensor_list:
        B, C, H, W = t.shape
        flat.append(t.reshape(B, C, H * W).transpose(0, 2, 1))   # (B, HW, C)
        shapes.append((H, W))
    return jnp.concatenate(flat, axis=1), jnp.array(shapes, dtype=jnp.int32)


def quality_query_selection(head, ref_windows):
    out_logits = head[..., :NUM_CLASSES]
    out_ref_windows = ref_windows + 0.1 * jnp.tanh(
        head[..., NUM_CLASSES:NUM_CLASSES + CODE_SIZE])
    out_ious = jax.nn.sigmoid(head[..., -1])

    out_logits_max = jnp.max(out_logits, axis=-1)
    out_labels = jnp.argmax(out_logits, axis=-1)
    out_probs = jax.nn.sigmoid(out_logits_max)

    mask = jnp.ones_like(out_probs)
    for i in range(NUM_CLASSES):
        if i not in IOU_CLS:
            mask = jnp.where(out_labels == i, 0.0, mask)
    score_mask = (out_probs > 0.3).astype(mask.dtype)
    mask = mask * score_mask

    r = IOU_RECTIFIER  # float branch
    temp_probs = jnp.power(out_probs, 1.0 - r) * jnp.power(out_ious, r)
    out_probs = out_probs * (1.0 - mask) + mask * temp_probs

    _, indexes = jax.lax.top_k(out_probs, NUM_QUERIES)
    indexes = indexes[..., None]                                      # (B, nq, 1)
    out_ref_windows = jnp.take_along_axis(out_ref_windows, indexes, axis=1)
    topk_probs_class = jnp.take_along_axis(out_logits, indexes, axis=1)
    out_ref_windows = jnp.concatenate(
        [out_ref_windows, jax.nn.sigmoid(topk_probs_class)], axis=-1)
    return None, None, out_ref_windows, indexes


# ----------------------------- full forward ---------------------------------
def seed_transformer_forward(params, src, pos, score_mask):
    src_anchors = create_ref_windows(src, CODE_SIZE)
    src_flat, src_shape = flatten_with_shape(src)

    src_pos = []
    for pe in pos:
        b, c = pe.shape[:2]
        src_pos.append(pe.reshape(b, c, -1).transpose(0, 2, 1))
    src_pos = jnp.concatenate(src_pos, axis=1)

    src_start_index = jnp.concatenate(
        [jnp.zeros((1,), jnp.int32),
         jnp.cumsum(jnp.prod(src_shape, axis=1))[:-1].astype(jnp.int32)])
    del src_start_index  # only consumed by the omitted deformable cross-attention

    score_mask_flat = score_mask.reshape(score_mask.shape[0], -1)
    L = score_mask_flat.shape[1]
    foreground_num = math.ceil(L * KEEP_RATIO)
    select_score, sel_idx = jax.lax.top_k(score_mask_flat, foreground_num)
    query_num = math.ceil(foreground_num * KEEP_RATIO)
    _, qry_idx = jax.lax.top_k(select_score, query_num)

    # fused DGA layer + packed proposal head (1 pallas_call)
    coarse_memory, prop_head = dga_fused(params["dga"], params["proposal_head"],
                                         src_flat, src_pos, sel_idx, qry_idx)

    query_embed, query_pos, topk_proposals, topk_indexes = quality_query_selection(
        prop_head, src_anchors)

    init_reference_out = topk_proposals[..., :CODE_SIZE]
    # both decoder layers fused (1 pallas_call)
    hs, inter_references = decoder_fused(params["decoder"], topk_proposals)
    # targets / noised_gt_box are None (inference path); gt decoder branch skipped.
    return hs, init_reference_out, inter_references, coarse_memory, src_anchors, topk_indexes


# ----------------------------- parameter init -------------------------------
def _lin_init(key, din, dout):
    kw, kb = jax.random.split(key)
    return {"w": 0.02 * jax.random.normal(kw, (din, dout), jnp.float32),
            "b": 0.01 * jax.random.normal(kb, (1, dout), jnp.float32)}


def _ln_init(d):
    return {"g": jnp.ones((1, d), jnp.float32), "b": jnp.zeros((1, d), jnp.float32)}


def _mha_init(key, d):
    kqk, kv, ko = jax.random.split(key, 3)
    qk = _lin_init(kqk, d, 2 * d)          # packed Q/K projection
    v = _lin_init(kv, d, d)
    o = _lin_init(ko, d, d)
    return {"wqk": qk["w"], "bqk": qk["b"], "wv": v["w"], "bv": v["b"],
            "wo": o["w"], "bo": o["b"]}


def init_params(key):
    ks = jax.random.split(key, 12)
    dga = {"self_attn": _mha_init(ks[0], D_MODEL),
           "l1": _lin_init(ks[1], D_MODEL, DIM_FF),
           "l2": _lin_init(ks[2], DIM_FF, D_MODEL),
           "query_norm": _ln_init(D_MODEL),
           "norm1": _ln_init(D_MODEL),
           "norm2": _ln_init(D_MODEL)}
    dec_layer = {"self_attn": _mha_init(ks[3], D_MODEL),
                 "pos_embed": [_lin_init(ks[4], REF_DIM, D_MODEL),
                               _lin_init(ks[5], D_MODEL, D_MODEL),
                               _lin_init(ks[6], D_MODEL, D_MODEL)],
                 "l1": _lin_init(ks[7], D_MODEL, DIM_FF),
                 "l2": _lin_init(ks[8], DIM_FF, D_MODEL),
                 "norm1": _ln_init(D_MODEL),
                 "norm2": _ln_init(D_MODEL),
                 "norm3": _ln_init(D_MODEL)}
    # packed cls(3)/box(7)/iou(1) heads -> single (D, 11) matmul each
    proposal_head = {"head": _lin_init(ks[9], D_MODEL, HEAD_OUT)}
    detection_head_p = _lin_init(ks[10], D_MODEL, HEAD_OUT)
    return {"dga": dga,
            "proposal_head": proposal_head,
            "decoder": {"layer": dec_layer, "detection_head": detection_head_p}}


# ----------------------------- main ------------------------------------------
if __name__ == "__main__":
    key = jax.random.PRNGKey(0)
    k1, k2, k3, k4, k5, kp = jax.random.split(key, 6)
    B = 2
    # two feature levels (NCHW), matching nlevel=2
    src = (jax.random.normal(k1, (B, D_MODEL, 8, 8), jnp.float32),
           jax.random.normal(k2, (B, D_MODEL, 4, 4), jnp.float32))
    pos = (jax.random.normal(k3, (B, D_MODEL, 8, 8), jnp.float32),
           jax.random.normal(k4, (B, D_MODEL, 4, 4), jnp.float32))
    # score_mask flattens over its last two dims to L = 64 + 16 = 80
    score_mask = jax.random.uniform(k5, (B, 8, 10), jnp.float32)

    params = init_params(kp)
    fwd = jax.jit(seed_transformer_forward)
    hs, init_ref, inter_ref, coarse_memory, src_anchors, topk_idx = fwd(
        params, src, pos, score_mask)
    jax.block_until_ready((hs, init_ref, inter_ref, coarse_memory, src_anchors, topk_idx))

    assert hs.shape == (NUM_DEC_LAYERS, B, NUM_QUERIES, D_MODEL)
    assert init_ref.shape == (B, NUM_QUERIES, CODE_SIZE)
    assert inter_ref.shape == (NUM_DEC_LAYERS, B, NUM_QUERIES, CODE_SIZE)
    assert coarse_memory.shape == (B, 80, D_MODEL)
    assert src_anchors.shape == (B, 80, CODE_SIZE)
    assert topk_idx.shape == (B, NUM_QUERIES, 1)
    assert bool(jnp.all(jnp.isfinite(hs)))
    print("KERNEL_OK")
</pallas_src>

<mosaic_0001>
module attributes {stable_mosaic.version = 11 : i64} {
  func.func @_dga_fused_kernel(%arg0: i32, %arg1: memref<2x80x32xf32, #tpu.memory_space<vmem>>, %arg2: memref<2x80x32xf32, #tpu.memory_space<vmem>>, %arg3: memref<2x40x1xi32, #tpu.memory_space<vmem>>, %arg4: memref<2x1x40xi32, #tpu.memory_space<vmem>>, %arg5: memref<2x20x1xi32, #tpu.memory_space<vmem>>, %arg6: memref<2x1x20xi32, #tpu.memory_space<vmem>>, %arg7: memref<32x64xf32, #tpu.memory_space<vmem>>, %arg8: memref<1x64xf32, #tpu.memory_space<vmem>>, %arg9: memref<32x32xf32, #tpu.memory_space<vmem>>, %arg10: memref<1x32xf32, #tpu.memory_space<vmem>>, %arg11: memref<32x32xf32, #tpu.memory_space<vmem>>, %arg12: memref<1x32xf32, #tpu.memory_space<vmem>>, %arg13: memref<1x32xf32, #tpu.memory_space<vmem>>, %arg14: memref<1x32xf32, #tpu.memory_space<vmem>>, %arg15: memref<1x32xf32, #tpu.memory_space<vmem>>, %arg16: memref<1x32xf32, #tpu.memory_space<vmem>>, %arg17: memref<32x64xf32, #tpu.memory_space<vmem>>, %arg18: memref<1x64xf32, #tpu.memory_space<vmem>>, %arg19: memref<64x32xf32, #tpu.memory_space<vmem>>, %arg20: memref<1x32xf32, #tpu.memory_space<vmem>>, %arg21: memref<1x32xf32, #tpu.memory_space<vmem>>, %arg22: memref<1x32xf32, #tpu.memory_space<vmem>>, %arg23: memref<32x11xf32, #tpu.memory_space<vmem>>, %arg24: memref<1x11xf32, #tpu.memory_space<vmem>>, %arg25: memref<2x80x32xf32, #tpu.memory_space<vmem>>, %arg26: memref<2x80x11xf32, #tpu.memory_space<vmem>>) attributes {dimension_semantics = [#tpu.dimension_semantics<arbitrary>], iteration_bounds = array<i64: 1>, scalar_prefetch = 0 : i64, scratch_operands = 0 : i64, tpu.core_type = #tpu.core_type<tc>, window_params = [{pipeline_mode = #tpu.pipeline_mode<synchronous>, transform_indices = @transform_0, window_bounds = array<i64: 2, 80, 32>}, {pipeline_mode = #tpu.pipeline_mode<synchronous>, transform_indices = @transform_1, window_bounds = array<i64: 2, 80, 32>}, {pipeline_mode = #tpu.pipeline_mode<synchronous>, transform_indices = @transform_2, window_bounds = array<i64: 2, 40, 1>}, {pipeline_mode = #tpu.pipeline_mode<synchronous>, transform_indices = @transform_3, window_bounds = array<i64: 2, 1, 40>}, {pipeline_mode = #tpu.pipeline_mode<synchronous>, transform_indices = @transform_4, window_bounds = array<i64: 2, 20, 1>}, {pipeline_mode = #tpu.pipeline_mode<synchronous>, transform_indices = @transform_5, window_bounds = array<i64: 2, 1, 20>}, {pipeline_mode = #tpu.pipeline_mode<synchronous>, transform_indices = @transform_6, window_bounds = array<i64: 32, 64>}, {pipeline_mode = #tpu.pipeline_mode<synchronous>, transform_indices = @transform_7, window_bounds = array<i64: 1, 64>}, {pipeline_mode = #tpu.pipeline_mode<synchronous>, transform_indices = @transform_8, window_bounds = array<i64: 32, 32>}, {pipeline_mode = #tpu.pipeline_mode<synchronous>, transform_indices = @transform_9, window_bounds = array<i64: 1, 32>}, {pipeline_mode = #tpu.pipeline_mode<synchronous>, transform_indices = @transform_10, window_bounds = array<i64: 32, 32>}, {pipeline_mode = #tpu.pipeline_mode<synchronous>, transform_indices = @transform_11, window_bounds = array<i64: 1, 32>}, {pipeline_mode = #tpu.pipeline_mode<synchronous>, transform_indices = @transform_12, window_bounds = array<i64: 1, 32>}, {pipeline_mode = #tpu.pipeline_mode<synchronous>, transform_indices = @transform_13, window_bounds = array<i64: 1, 32>}, {pipeline_mode = #tpu.pipeline_mode<synchronous>, transform_indices = @transform_14, window_bounds = array<i64: 1, 32>}, {pipeline_mode = #tpu.pipeline_mode<synchronous>, transform_indices = @transform_15, window_bounds = array<i64: 1, 32>}, {pipeline_mode = #tpu.pipeline_mode<synchronous>, transform_indices = @transform_16, window_bounds = array<i64: 32, 64>}, {pipeline_mode = #tpu.pipeline_mode<synchronous>, transform_indices = @transform_17, window_bounds = array<i64: 1, 64>}, {pipeline_mode = #tpu.pipeline_mode<synchronous>, transform_indices = @transform_18, window_bounds = array<i64: 64, 32>}, {pipeline_mode = #tpu.pipeline_mode<synchronous>, transform_indices = @transform_19, window_bounds = array<i64: 1, 32>}, {pipeline_mode = #tpu.pipeline_mode<synchronous>, transform_indices = @transform_20, window_bounds = array<i64: 1, 32>}, {pipeline_mode = #tpu.pipeline_mode<synchronous>, transform_indices = @transform_21, window_bounds = array<i64: 1, 32>}, {pipeline_mode = #tpu.pipeline_mode<synchronous>, transform_indices = @transform_22, window_bounds = array<i64: 32, 11>}, {pipeline_mode = #tpu.pipeline_mode<synchronous>, transform_indices = @transform_23, window_bounds = array<i64: 1, 11>}, {pipeline_mode = #tpu.pipeline_mode<synchronous>, transform_indices = @transform_24, window_bounds = array<i64: 2, 80, 32>}, {pipeline_mode = #tpu.pipeline_mode<synchronous>, transform_indices = @transform_25, window_bounds = array<i64: 2, 80, 11>}]} {
    %c0 = arith.constant 0 : index
    %c0_0 = arith.constant 0 : index
    %c0_1 = arith.constant 0 : index
    %0 = vector.load %arg1[%c0, %c0_0, %c0_1] : memref<2x80x32xf32, #tpu.memory_space<vmem>>, vector<2x80x32xf32>
    %c0_2 = arith.constant 0 : index
    %c0_3 = arith.constant 0 : index
    %c0_4 = arith.constant 0 : index
    %1 = vector.load %arg2[%c0_2, %c0_3, %c0_4] : memref<2x80x32xf32, #tpu.memory_space<vmem>>, vector<2x80x32xf32>
    %c0_5 = arith.constant 0 : index
    %c0_6 = arith.constant 0 : index
    %c0_7 = arith.constant 0 : index
    %2 = vector.load %arg3[%c0_5, %c0_6, %c0_7] : memref<2x40x1xi32, #tpu.memory_space<vmem>>, vector<2x40x1xi32>
    %3 = tpu.iota {dimensions = array<i32: 2>} : vector<2x40x80xi32>
    %4 = vector.broadcast %2 : vector<2x40x1xi32> to vector<2x40x80xi32>
    %5 = arith.cmpi eq, %4, %3 : vector<2x40x80xi32>
    %6 = arith.extui %5 : vector<2x40x80xi1> to vector<2x40x80xi32>
    %7 = arith.sitofp %6 : vector<2x40x80xi32> to vector<2x40x80xf32>
    %c0_8 = arith.constant 0 : index
    %c0_9 = arith.constant 0 : index
    %c0_10 = arith.constant 0 : index
    %8 = vector.load %arg4[%c0_8, %c0_9, %c0_10] : memref<2x1x40xi32, #tpu.memory_space<vmem>>, vector<2x1x40xi32>
    %9 = tpu.iota {dimensions = array<i32: 1>} : vector<2x80x40xi32>
    %10 = vector.broadcast %8 : vector<2x1x40xi32> to vector<2x80x40xi32>
    %11 = arith.cmpi eq, %10, %9 : vector<2x80x40xi32>
    %12 = arith.extui %11 : vector<2x80x40xi1> to vector<2x80x40xi32>
    %13 = arith.sitofp %12 : vector<2x80x40xi32> to vector<2x80x40xf32>
    %c0_11 = arith.constant 0 : index
    %c0_12 = arith.constant 0 : index
    %c0_13 = arith.constant 0 : index
    %14 = vector.load %arg5[%c0_11, %c0_12, %c0_13] : memref<2x20x1xi32, #tpu.memory_space<vmem>>, vector<2x20x1xi32>
    %15 = tpu.iota {dimensions = array<i32: 2>} : vector<2x20x40xi32>
    %16 = vector.broadcast %14 : vector<2x20x1xi32> to vector<2x20x40xi32>
    %17 = arith.cmpi eq, %16, %15 : vector<2x20x40xi32>
    %18 = arith.extui %17 : vector<2x20x40xi1> to vector<2x20x40xi32>
    %19 = arith.sitofp %18 : vector<2x20x40xi32> to vector<2x20x40xf32>
    %c0_14 = arith.constant 0 : index
    %c0_15 = arith.constant 0 : index
    %c0_16 = arith.constant 0 : index
    %20 = vector.load %arg6[%c0_14, %c0_15, %c0_16] : memref<2x1x20xi32, #tpu.memory_space<vmem>>, vector<2x1x20xi32>
    %21 = tpu.iota {dimensions = array<i32: 1>} : vector<2x40x20xi32>
    %22 = vector.broadcast %20 : vector<2x1x20xi32> to vector<2x40x20xi32>
    %23 = arith.cmpi eq, %22, %21 : vector<2x40x20xi32>
    %24 = arith.extui %23 : vector<2x40x20xi1> to vector<2x40x20xi32>
    %25 = arith.sitofp %24 : vector<2x40x20xi32> to vector<2x40x20xf32>
    "tpu.trace_start"() <{level = 10 : i32, message = "bfl,bld->bfd"}> : () -> ()
    %cst = arith.constant dense<0.000000e+00> : vector<2x40x32xf32>
    %26 = tpu.matmul %7, %0, %cst {dimension_numbers = #tpu.dot_dimension_numbers<[2], [1], [1], [2], [0, 0, 0, 1, 1, 2], [0], [0]>} : vector<2x40x80xf32>, vector<2x80x32xf32>, vector<2x40x32xf32> -> vector<2x40x32xf32>
    %cst_17 = arith.constant dense<0.000000e+00> : vector<2x40x32xf32>
    %27 = tpu.matmul %7, %1, %cst_17 {dimension_numbers = #tpu.dot_dimension_numbers<[2], [1], [1], [2], [0, 0, 0, 1, 1, 2], [0], [0]>} : vector<2x40x80xf32>, vector<2x80x32xf32>, vector<2x40x32xf32> -> vector<2x40x32xf32>
    "tpu.trace_stop"() : () -> ()
    "tpu.trace_start"() <{level = 10 : i32, message = "bqf,bfd->bqd"}> : () -> ()
    %cst_18 = arith.constant dense<0.000000e+00> : vector<2x20x32xf32>
    %28 = tpu.matmul %19, %26, %cst_18 {dimension_numbers = #tpu.dot_dimension_numbers<[2], [1], [1], [2], [0, 0, 0, 1, 1, 2], [0], [0]>} : vector<2x20x40xf32>, vector<2x40x32xf32>, vector<2x20x32xf32> -> vector<2x20x32xf32>
    %cst_19 = arith.constant dense<0.000000e+00> : vector<2x20x32xf32>
    %29 = tpu.matmul %19, %27, %cst_19 {dimension_numbers = #tpu.dot_dimension_numbers<[2], [1], [1], [2], [0, 0, 0, 1, 1, 2], [0], [0]>} : vector<2x20x40xf32>, vector<2x40x32xf32>, vector<2x20x32xf32> -> vector<2x20x32xf32>
    "tpu.trace_stop"() : () -> ()
    %30 = arith.addf %28, %29 : vector<2x20x32xf32>
    %31 = vector.shape_cast %30 : vector<2x20x32xf32> to vector<40x32xf32>
    %32 = vector.shape_cast %28 : vector<2x20x32xf32> to vector<40x32xf32>
    %c0_20 = arith.constant 0 : index
    %c0_21 = arith.constant 0 : index
    %33 = vector.load %arg7[%c0_20, %c0_21] : memref<32x64xf32, #tpu.memory_space<vmem>>, vector<32x64xf32>
    %c0_22 = arith.constant 0 : index
    %c0_23 = arith.constant 0 : index
    %34 = vector.load %arg8[%c0_22, %c0_23] : memref<1x64xf32, #tpu.memory_space<vmem>>, vector<1x64xf32>
    %c0_24 = arith.constant 0 : index
    %c0_25 = arith.constant 0 : index
    %35 = vector.load %arg9[%c0_24, %c0_25] : memref<32x32xf32, #tpu.memory_space<vmem>>, vector<32x32xf32>
    %c0_26 = arith.constant 0 : index
    %c0_27 = arith.constant 0 : index
    %36 = vector.load %arg10[%c0_26, %c0_27] : memref<1x32xf32, #tpu.memory_space<vmem>>, vector<1x32xf32>
    %c0_28 = arith.constant 0 : index
    %c0_29 = arith.constant 0 : index
    %37 = vector.load %arg11[%c0_28, %c0_29] : memref<32x32xf32, #tpu.memory_space<vmem>>, vector<32x32xf32>
    %c0_30 = arith.constant 0 : index
    %c0_31 = arith.constant 0 : index
    %38 = vector.load %arg12[%c0_30, %c0_31] : memref<1x32xf32, #tpu.memory_space<vmem>>, vector<1x32xf32>
    %c0_32 = arith.constant 0 : index
    %c0_33 = arith.constant 0 : index
    %39 = vector.load %arg13[%c0_32, %c0_33] : memref<1x32xf32, #tpu.memory_space<vmem>>, vector<1x32xf32>
    %c0_34 = arith.constant 0 : index
    %c0_35 = arith.constant 0 : index
    %40 = vector.load %arg14[%c0_34, %c0_35] : memref<1x32xf32, #tpu.memory_space<vmem>>, vector<1x32xf32>
    %cst_36 = arith.constant dense<0.000000e+00> : vector<40x64xf32>
    %41 = tpu.matmul %31, %33, %cst_36 {dimension_numbers = #tpu.dot_dimension_numbers<[1], [0], [0], [1], [0, 0, 1, 1], [], []>} : vector<40x32xf32>, vector<32x64xf32>, vector<40x64xf32> -> vector<40x64xf32>
    %42 = vector.broadcast %34 : vector<1x64xf32> to vector<40x64xf32>
    %43 = arith.addf %41, %42 : vector<40x64xf32>
    %cst_37 = arith.constant dense<0.000000e+00> : vector<40x32xf32>
    %44 = tpu.matmul %32, %35, %cst_37 {dimension_numbers = #tpu.dot_dimension_numbers<[1], [0], [0], [1], [0, 0, 1, 1], [], []>} : vector<40x32xf32>, vector<32x32xf32>, vector<40x32xf32> -> vector<40x32xf32>
    %45 = vector.broadcast %36 : vector<1x32xf32> to vector<40x32xf32>
    %46 = arith.addf %44, %45 : vector<40x32xf32>
    %47 = vector.extract_strided_slice %43 {offsets = [0, 0], sizes = [40, 32], strides = [1, 1]} : vector<40x64xf32> to vector<40x32xf32>
    %48 = vector.shape_cast %47 : vector<40x32xf32> to vector<2x20x32xf32>
    %49 = vector.extract_strided_slice %43 {offsets = [0, 32], sizes = [40, 32], strides = [1, 1]} : vector<40x64xf32> to vector<40x32xf32>
    %50 = vector.shape_cast %49 : vector<40x32xf32> to vector<2x20x32xf32>
    %51 = vector.shape_cast %46 : vector<40x32xf32> to vector<2x20x32xf32>
    %52 = tpu.iota {dimensions = array<i32: 2>} : vector<1x1x32xi32>
    %cst_38 = arith.constant 0.000000e+00 : f32
    %53 = vector.broadcast %cst_38 : f32 to vector<2x20x32xf32>
    %c0_i32 = arith.constant 0 : i32
    %54 = vector.broadcast %c0_i32 : i32 to vector<1x1x32xi32>
    %55 = arith.cmpi sge, %52, %54 : vector<1x1x32xi32>
    %c8_i32 = arith.constant 8 : i32
    %56 = vector.broadcast %c8_i32 : i32 to vector<1x1x32xi32>
    %57 = arith.cmpi slt, %52, %56 : vector<1x1x32xi32>
    %58 = arith.andi %55, %57 : vector<1x1x32xi1>
    %59 = arith.extui %58 : vector<1x1x32xi1> to vector<1x1x32xi32>
    %60 = arith.sitofp %59 : vector<1x1x32xi32> to vector<1x1x32xf32>
    %61 = vector.broadcast %60 : vector<1x1x32xf32> to vector<2x20x32xf32>
    %62 = arith.mulf %48, %61 : vector<2x20x32xf32>
    "tpu.trace_start"() <{level = 10 : i32, message = "bld,bmd->blm"}> : () -> ()
    %cst_39 = arith.constant dense<0.000000e+00> : vector<2x20x20xf32>
    %63 = tpu.matmul %62, %50, %cst_39 {dimension_numbers = #tpu.dot_dimension_numbers<[2], [2], [1], [1], [0, 0, 0, 1, 1, 1], [0], [0]>} : vector<2x20x32xf32>, vector<2x20x32xf32>, vector<2x20x20xf32> -> vector<2x20x20xf32>
    "tpu.trace_stop"() : () -> ()
    %cst_40 = arith.constant 0.353553385 : f32
    %64 = vector.broadcast %cst_40 : f32 to vector<2x20x20xf32>
    %65 = arith.mulf %63, %64 : vector<2x20x20xf32>
    %cst_41 = arith.constant dense<0xFF800000> : vector<2x20xf32>
    %66 = vector.multi_reduction <maximumf>, %65, %cst_41 [2] : vector<2x20x20xf32> to vector<2x20xf32>
    %67 = vector.shape_cast %66 : vector<2x20xf32> to vector<2x20x1xf32>
    %68 = vector.broadcast %67 : vector<2x20x1xf32> to vector<2x20x20xf32>
    %69 = arith.subf %65, %68 : vector<2x20x20xf32>
    %70 = math.exp %69 : vector<2x20x20xf32>
    %cst_42 = arith.constant dense<0.000000e+00> : vector<2x20xf32>
    %71 = vector.multi_reduction <add>, %70, %cst_42 [2] : vector<2x20x20xf32> to vector<2x20xf32>
    %72 = vector.shape_cast %71 : vector<2x20xf32> to vector<2x20x1xf32>
    %73 = vector.broadcast %72 : vector<2x20x1xf32> to vector<2x20x20xf32>
    %74 = arith.divf %70, %73 : vector<2x20x20xf32>
    %75 = vector.broadcast %60 : vector<1x1x32xf32> to vector<2x20x32xf32>
    %76 = arith.mulf %51, %75 : vector<2x20x32xf32>
    "tpu.trace_start"() <{level = 10 : i32, message = "blm,bmd->bld"}> : () -> ()
    %cst_43 = arith.constant dense<0.000000e+00> : vector<2x20x32xf32>
    %77 = tpu.matmul %74, %76, %cst_43 {dimension_numbers = #tpu.dot_dimension_numbers<[2], [1], [1], [2], [0, 0, 0, 1, 1, 2], [0], [0]>} : vector<2x20x20xf32>, vector<2x20x32xf32>, vector<2x20x32xf32> -> vector<2x20x32xf32>
    "tpu.trace_stop"() : () -> ()
    %78 = arith.addf %53, %77 : vector<2x20x32xf32>
    %c8_i32_44 = arith.constant 8 : i32
    %79 = vector.broadcast %c8_i32_44 : i32 to vector<1x1x32xi32>
    %80 = arith.cmpi sge, %52, %79 : vector<1x1x32xi32>
    %c16_i32 = arith.constant 16 : i32
    %81 = vector.broadcast %c16_i32 : i32 to vector<1x1x32xi32>
    %82 = arith.cmpi slt, %52, %81 : vector<1x1x32xi32>
    %83 = arith.andi %80, %82 : vector<1x1x32xi1>
    %84 = arith.extui %83 : vector<1x1x32xi1> to vector<1x1x32xi32>
    %85 = arith.sitofp %84 : vector<1x1x32xi32> to vector<1x1x32xf32>
    %86 = vector.broadcast %85 : vector<1x1x32xf32> to vector<2x20x32xf32>
    %87 = arith.mulf %48, %86 : vector<2x20x32xf32>
    "tpu.trace_start"() <{level = 10 : i32, message = "bld,bmd->blm"}> : () -> ()
    %cst_45 = arith.constant dense<0.000000e+00> : vector<2x20x20xf32>
    %88 = tpu.matmul %87, %50, %cst_45 {dimension_numbers = #tpu.dot_dimension_numbers<[2], [2], [1], [1], [0, 0, 0, 1, 1, 1], [0], [0]>} : vector<2x20x32xf32>, vector<2x20x32xf32>, vector<2x20x20xf32> -> vector<2x20x20xf32>
    "tpu.trace_stop"() : () -> ()
    %cst_46 = arith.constant 0.353553385 : f32
    %89 = vector.broadcast %cst_46 : f32 to vector<2x20x20xf32>
    %90 = arith.mulf %88, %89 : vector<2x20x20xf32>
    %cst_47 = arith.constant dense<0xFF800000> : vector<2x20xf32>
    %91 = vector.multi_reduction <maximumf>, %90, %cst_47 [2] : vector<2x20x20xf32> to vector<2x20xf32>
    %92 = vector.shape_cast %91 : vector<2x20xf32> to vector<2x20x1xf32>
    %93 = vector.broadcast %92 : vector<2x20x1xf32> to vector<2x20x20xf32>
    %94 = arith.subf %90, %93 : vector<2x20x20xf32>
    %95 = math.exp %94 : vector<2x20x20xf32>
    %cst_48 = arith.constant dense<0.000000e+00> : vector<2x20xf32>
    %96 = vector.multi_reduction <add>, %95, %cst_48 [2] : vector<2x20x20xf32> to vector<2x20xf32>
    %97 = vector.shape_cast %96 : vector<2x20xf32> to vector<2x20x1xf32>
    %98 = vector.broadcast %97 : vector<2x20x1xf32> to vector<2x20x20xf32>
    %99 = arith.divf %95, %98 : vector<2x20x20xf32>
    %100 = vector.broadcast %85 : vector<1x1x32xf32> to vector<2x20x32xf32>
    %101 = arith.mulf %51, %100 : vector<2x20x32xf32>
    "tpu.trace_start"() <{level = 10 : i32, message = "blm,bmd->bld"}> : () -> ()
    %cst_49 = arith.constant dense<0.000000e+00> : vector<2x20x32xf32>
    %102 = tpu.matmul %99, %101, %cst_49 {dimension_numbers = #tpu.dot_dimension_numbers<[2], [1], [1], [2], [0, 0, 0, 1, 1, 2], [0], [0]>} : vector<2x20x20xf32>, vector<2x20x32xf32>, vector<2x20x32xf32> -> vector<2x20x32xf32>
    "tpu.trace_stop"() : () -> ()
    %103 = arith.addf %78, %102 : vector<2x20x32xf32>
    %c16_i32_50 = arith.constant 16 : i32
    %104 = vector.broadcast %c16_i32_50 : i32 to vector<1x1x32xi32>
    %105 = arith.cmpi sge, %52, %104 : vector<1x1x32xi32>
    %c24_i32 = arith.constant 24 : i32
    %106 = vector.broadcast %c24_i32 : i32 to vector<1x1x32xi32>
    %107 = arith.cmpi slt, %52, %106 : vector<1x1x32xi32>
    %108 = arith.andi %105, %107 : vector<1x1x32xi1>
    %109 = arith.extui %108 : vector<1x1x32xi1> to vector<1x1x32xi32>
    %110 = arith.sitofp %109 : vector<1x1x32xi32> to vector<1x1x32xf32>
    %111 = vector.broadcast %110 : vector<1x1x32xf32> to vector<2x20x32xf32>
    %112 = arith.mulf %48, %111 : vector<2x20x32xf32>
    "tpu.trace_start"() <{level = 10 : i32, message = "bld,bmd->blm"}> : () -> ()
    %cst_51 = arith.constant dense<0.000000e+00> : vector<2x20x20xf32>
    %113 = tpu.matmul %112, %50, %cst_51 {dimension_numbers = #tpu.dot_dimension_numbers<[2], [2], [1], [1], [0, 0, 0, 1, 1, 1], [0], [0]>} : vector<2x20x32xf32>, vector<2x20x32xf32>, vector<2x20x20xf32> -> vector<2x20x20xf32>
    "tpu.trace_stop"() : () -> ()
    %cst_52 = arith.constant 0.353553385 : f32
    %114 = vector.broadcast %cst_52 : f32 to vector<2x20x20xf32>
    %115 = arith.mulf %113, %114 : vector<2x20x20xf32>
    %cst_53 = arith.constant dense<0xFF800000> : vector<2x20xf32>
    %116 = vector.multi_reduction <maximumf>, %115, %cst_53 [2] : vector<2x20x20xf32> to vector<2x20xf32>
    %117 = vector.shape_cast %116 : vector<2x20xf32> to vector<2x20x1xf32>
    %118 = vector.broadcast %117 : vector<2x20x1xf32> to vector<2x20x20xf32>
    %119 = arith.subf %115, %118 : vector<2x20x20xf32>
    %120 = math.exp %119 : vector<2x20x20xf32>
    %cst_54 = arith.constant dense<0.000000e+00> : vector<2x20xf32>
    %121 = vector.multi_reduction <add>, %120, %cst_54 [2] : vector<2x20x20xf32> to vector<2x20xf32>
    %122 = vector.shape_cast %121 : vector<2x20xf32> to vector<2x20x1xf32>
    %123 = vector.broadcast %122 : vector<2x20x1xf32> to vector<2x20x20xf32>
    %124 = arith.divf %120, %123 : vector<2x20x20xf32>
    %125 = vector.broadcast %110 : vector<1x1x32xf32> to vector<2x20x32xf32>
    %126 = arith.mulf %51, %125 : vector<2x20x32xf32>
    "tpu.trace_start"() <{level = 10 : i32, message = "blm,bmd->bld"}> : () -> ()
    %cst_55 = arith.constant dense<0.000000e+00> : vector<2x20x32xf32>
    %127 = tpu.matmul %124, %126, %cst_55 {dimension_numbers = #tpu.dot_dimension_numbers<[2], [1], [1], [2], [0, 0, 0, 1, 1, 2], [0], [0]>} : vector<2x20x20xf32>, vector<2x20x32xf32>, vector<2x20x32xf32> -> vector<2x20x32xf32>
    "tpu.trace_stop"() : () -> ()
    %128 = arith.addf %103, %127 : vector<2x20x32xf32>
    %c24_i32_56 = arith.constant 24 : i32
    %129 = vector.broadcast %c24_i32_56 : i32 to vector<1x1x32xi32>
    %130 = arith.cmpi sge, %52, %129 : vector<1x1x32xi32>
    %c32_i32 = arith.constant 32 : i32
    %131 = vector.broadcast %c32_i32 : i32 to vector<1x1x32xi32>
    %132 = arith.cmpi slt, %52, %131 : vector<1x1x32xi32>
    %133 = arith.andi %130, %132 : vector<1x1x32xi1>
    %134 = arith.extui %133 : vector<1x1x32xi1> to vector<1x1x32xi32>
    %135 = arith.sitofp %134 : vector<1x1x32xi32> to vector<1x1x32xf32>
    %136 = vector.broadcast %135 : vector<1x1x32xf32> to vector<2x20x32xf32>
    %137 = arith.mulf %48, %136 : vector<2x20x32xf32>
    "tpu.trace_start"() <{level = 10 : i32, message = "bld,bmd->blm"}> : () -> ()
    %cst_57 = arith.constant dense<0.000000e+00> : vector<2x20x20xf32>
    %138 = tpu.matmul %137, %50, %cst_57 {dimension_numbers = #tpu.dot_dimension_numbers<[2], [2], [1], [1], [0, 0, 0, 1, 1, 1], [0], [0]>} : vector<2x20x32xf32>, vector<2x20x32xf32>, vector<2x20x20xf32> -> vector<2x20x20xf32>
    "tpu.trace_stop"() : () -> ()
    %cst_58 = arith.constant 0.353553385 : f32
    %139 = vector.broadcast %cst_58 : f32 to vector<2x20x20xf32>
    %140 = arith.mulf %138, %139 : vector<2x20x20xf32>
    %cst_59 = arith.constant dense<0xFF800000> : vector<2x20xf32>
    %141 = vector.multi_reduction <maximumf>, %140, %cst_59 [2] : vector<2x20x20xf32> to vector<2x20xf32>
    %142 = vector.shape_cast %141 : vector<2x20xf32> to vector<2x20x1xf32>
    %143 = vector.broadcast %142 : vector<2x20x1xf32> to vector<2x20x20xf32>
    %144 = arith.subf %140, %143 : vector<2x20x20xf32>
    %145 = math.exp %144 : vector<2x20x20xf32>
    %cst_60 = arith.constant dense<0.000000e+00> : vector<2x20xf32>
    %146 = vector.multi_reduction <add>, %145, %cst_60 [2] : vector<2x20x20xf32> to vector<2x20xf32>
    %147 = vector.shape_cast %146 : vector<2x20xf32> to vector<2x20x1xf32>
    %148 = vector.broadcast %147 : vector<2x20x1xf32> to vector<2x20x20xf32>
    %149 = arith.divf %145, %148 : vector<2x20x20xf32>
    %150 = vector.broadcast %135 : vector<1x1x32xf32> to vector<2x20x32xf32>
    %151 = arith.mulf %51, %150 : vector<2x20x32xf32>
    "tpu.trace_start"() <{level = 10 : i32, message = "blm,bmd->bld"}> : () -> ()
    %cst_61 = arith.constant dense<0.000000e+00> : vector<2x20x32xf32>
    %152 = tpu.matmul %149, %151, %cst_61 {dimension_numbers = #tpu.dot_dimension_numbers<[2], [1], [1], [2], [0, 0, 0, 1, 1, 2], [0], [0]>} : vector<2x20x20xf32>, vector<2x20x32xf32>, vector<2x20x32xf32> -> vector<2x20x32xf32>
    "tpu.trace_stop"() : () -> ()
    %153 = arith.addf %128, %152 : vector<2x20x32xf32>
    %154 = vector.shape_cast %153 : vector<2x20x32xf32> to vector<40x32xf32>
    %cst_62 = arith.constant dense<0.000000e+00> : vector<40x32xf32>
    %155 = tpu.matmul %154, %37, %cst_62 {dimension_numbers = #tpu.dot_dimension_numbers<[1], [0], [0], [1], [0, 0, 1, 1], [], []>} : vector<40x32xf32>, vector<32x32xf32>, vector<40x32xf32> -> vector<40x32xf32>
    %156 = arith.addf %32, %155 : vector<40x32xf32>
    %157 = vector.broadcast %38 : vector<1x32xf32> to vector<40x32xf32>
    %158 = arith.addf %156, %157 : vector<40x32xf32>
    %cst_63 = arith.constant dense<0.000000e+00> : vector<40xf32>
    %159 = vector.multi_reduction <add>, %158, %cst_63 [1] : vector<40x32xf32> to vector<40xf32>
    %160 = vector.shape_cast %159 : vector<40xf32> to vector<40x1xf32>
    %cst_64 = arith.constant 3.200000e+01 : f32
    %161 = vector.broadcast %cst_64 : f32 to vector<40x1xf32>
    %162 = arith.divf %160, %161 : vector<40x1xf32>
    %163 = vector.broadcast %162 : vector<40x1xf32> to vector<40x32xf32>
    %164 = arith.subf %158, %163 : vector<40x32xf32>
    %165 = arith.mulf %164, %164 : vector<40x32xf32>
    %cst_65 = arith.constant dense<0.000000e+00> : vector<40xf32>
    %166 = vector.multi_reduction <add>, %165, %cst_65 [1] : vector<40x32xf32> to vector<40xf32>
    %167 = vector.shape_cast %166 : vector<40xf32> to vector<40x1xf32>
    %cst_66 = arith.constant 3.200000e+01 : f32
    %168 = vector.broadcast %cst_66 : f32 to vector<40x1xf32>
    %169 = arith.divf %167, %168 : vector<40x1xf32>
    %170 = vector.broadcast %162 : vector<40x1xf32> to vector<40x32xf32>
    %171 = arith.subf %158, %170 : vector<40x32xf32>
    %cst_67 = arith.constant 9.99999974E-6 : f32
    %172 = vector.broadcast %cst_67 : f32 to vector<40x1xf32>
    %173 = arith.addf %169, %172 : vector<40x1xf32>
    %174 = math.rsqrt %173 : vector<40x1xf32>
    %175 = vector.broadcast %174 : vector<40x1xf32> to vector<40x32xf32>
    %176 = arith.mulf %171, %175 : vector<40x32xf32>
    %177 = vector.broadcast %39 : vector<1x32xf32> to vector<40x32xf32>
    %178 = arith.mulf %176, %177 : vector<40x32xf32>
    %179 = vector.broadcast %40 : vector<1x32xf32> to vector<40x32xf32>
    %180 = arith.addf %178, %179 : vector<40x32xf32>
    %181 = vector.shape_cast %180 : vector<40x32xf32> to vector<2x20x32xf32>
    %182 = arith.subf %181, %28 : vector<2x20x32xf32>
    "tpu.trace_start"() <{level = 10 : i32, message = "bfq,bqd->bfd"}> : () -> ()
    %cst_68 = arith.constant dense<0.000000e+00> : vector<2x40x32xf32>
    %183 = tpu.matmul %25, %182, %cst_68 {dimension_numbers = #tpu.dot_dimension_numbers<[2], [1], [1], [2], [0, 0, 0, 1, 1, 2], [0], [0]>} : vector<2x40x20xf32>, vector<2x20x32xf32>, vector<2x40x32xf32> -> vector<2x40x32xf32>
    "tpu.trace_stop"() : () -> ()
    %184 = arith.addf %26, %183 : vector<2x40x32xf32>
    %185 = vector.shape_cast %184 : vector<2x40x32xf32> to vector<80x32xf32>
    %c0_69 = arith.constant 0 : index
    %c0_70 = arith.constant 0 : index
    %186 = vector.load %arg15[%c0_69, %c0_70] : memref<1x32xf32, #tpu.memory_space<vmem>>, vector<1x32xf32>
    %c0_71 = arith.constant 0 : index
    %c0_72 = arith.constant 0 : index
    %187 = vector.load %arg16[%c0_71, %c0_72] : memref<1x32xf32, #tpu.memory_space<vmem>>, vector<1x32xf32>
    %cst_73 = arith.constant dense<0.000000e+00> : vector<80xf32>
    %188 = vector.multi_reduction <add>, %185, %cst_73 [1] : vector<80x32xf32> to vector<80xf32>
    %189 = vector.shape_cast %188 : vector<80xf32> to vector<80x1xf32>
    %cst_74 = arith.constant 3.200000e+01 : f32
    %190 = vector.broadcast %cst_74 : f32 to vector<80x1xf32>
    %191 = arith.divf %189, %190 : vector<80x1xf32>
    %192 = vector.broadcast %191 : vector<80x1xf32> to vector<80x32xf32>
    %193 = arith.subf %185, %192 : vector<80x32xf32>
    %194 = arith.mulf %193, %193 : vector<80x32xf32>
    %cst_75 = arith.constant dense<0.000000e+00> : vector<80xf32>
    %195 = vector.multi_reduction <add>, %194, %cst_75 [1] : vector<80x32xf32> to vector<80xf32>
    %196 = vector.shape_cast %195 : vector<80xf32> to vector<80x1xf32>
    %cst_76 = arith.constant 3.200000e+01 : f32
    %197 = vector.broadcast %cst_76 : f32 to vector<80x1xf32>
    %198 = arith.divf %196, %197 : vector<80x1xf32>
    %199 = vector.broadcast %191 : vector<80x1xf32> to vector<80x32xf32>
    %200 = arith.subf %185, %199 : vector<80x32xf32>
    %cst_77 = arith.constant 9.99999974E-6 : f32
    %201 = vector.broadcast %cst_77 : f32 to vector<80x1xf32>
    %202 = arith.addf %198, %201 : vector<80x1xf32>
    %203 = math.rsqrt %202 : vector<80x1xf32>
    %204 = vector.broadcast %203 : vector<80x1xf32> to vector<80x32xf32>
    %205 = arith.mulf %200, %204 : vector<80x32xf32>
    %206 = vector.broadcast %186 : vector<1x32xf32> to vector<80x32xf32>
    %207 = arith.mulf %205, %206 : vector<80x32xf32>
    %208 = vector.broadcast %187 : vector<1x32xf32> to vector<80x32xf32>
    %209 = arith.addf %207, %208 : vector<80x32xf32>
    %c0_78 = arith.constant 0 : index
    %c0_79 = arith.constant 0 : index
    %210 = vector.load %arg17[%c0_78, %c0_79] : memref<32x64xf32, #tpu.memory_space<vmem>>, vector<32x64xf32>
    %cst_80 = arith.constant dense<0.000000e+00> : vector<80x64xf32>
    %211 = tpu.matmul %209, %210, %cst_80 {dimension_numbers = #tpu.dot_dimension_numbers<[1], [0], [0], [1], [0, 0, 1, 1], [], []>} : vector<80x32xf32>, vector<32x64xf32>, vector<80x64xf32> -> vector<80x64xf32>
    %c0_81 = arith.constant 0 : index
    %c0_82 = arith.constant 0 : index
    %212 = vector.load %arg18[%c0_81, %c0_82] : memref<1x64xf32, #tpu.memory_space<vmem>>, vector<1x64xf32>
    %213 = vector.broadcast %212 : vector<1x64xf32> to vector<80x64xf32>
    %214 = arith.addf %211, %213 : vector<80x64xf32>
    %cst_83 = arith.constant 0.000000e+00 : f32
    %215 = vector.broadcast %cst_83 : f32 to vector<80x64xf32>
    %216 = arith.maximumf %214, %215 : vector<80x64xf32>
    %c0_84 = arith.constant 0 : index
    %c0_85 = arith.constant 0 : index
    %217 = vector.load %arg19[%c0_84, %c0_85] : memref<64x32xf32, #tpu.memory_space<vmem>>, vector<64x32xf32>
    %cst_86 = arith.constant dense<0.000000e+00> : vector<80x32xf32>
    %218 = tpu.matmul %216, %217, %cst_86 {dimension_numbers = #tpu.dot_dimension_numbers<[1], [0], [0], [1], [0, 0, 1, 1], [], []>} : vector<80x64xf32>, vector<64x32xf32>, vector<80x32xf32> -> vector<80x32xf32>
    %219 = arith.addf %209, %218 : vector<80x32xf32>
    %c0_87 = arith.constant 0 : index
    %c0_88 = arith.constant 0 : index
    %220 = vector.load %arg20[%c0_87, %c0_88] : memref<1x32xf32, #tpu.memory_space<vmem>>, vector<1x32xf32>
    %221 = vector.broadcast %220 : vector<1x32xf32> to vector<80x32xf32>
    %222 = arith.addf %219, %221 : vector<80x32xf32>
    %c0_89 = arith.constant 0 : index
    %c0_90 = arith.constant 0 : index
    %223 = vector.load %arg21[%c0_89, %c0_90] : memref<1x32xf32, #tpu.memory_space<vmem>>, vector<1x32xf32>
    %c0_91 = arith.constant 0 : index
    %c0_92 = arith.constant 0 : index
    %224 = vector.load %arg22[%c0_91, %c0_92] : memref<1x32xf32, #tpu.memory_space<vmem>>, vector<1x32xf32>
    %cst_93 = arith.constant dense<0.000000e+00> : vector<80xf32>
    %225 = vector.multi_reduction <add>, %222, %cst_93 [1] : vector<80x32xf32> to vector<80xf32>
    %226 = vector.shape_cast %225 : vector<80xf32> to vector<80x1xf32>
    %cst_94 = arith.constant 3.200000e+01 : f32
    %227 = vector.broadcast %cst_94 : f32 to vector<80x1xf32>
    %228 = arith.divf %226, %227 : vector<80x1xf32>
    %229 = vector.broadcast %228 : vector<80x1xf32> to vector<80x32xf32>
    %230 = arith.subf %222, %229 : vector<80x32xf32>
    %231 = arith.mulf %230, %230 : vector<80x32xf32>
    %cst_95 = arith.constant dense<0.000000e+00> : vector<80xf32>
    %232 = vector.multi_reduction <add>, %231, %cst_95 [1] : vector<80x32xf32> to vector<80xf32>
    %233 = vector.shape_cast %232 : vector<80xf32> to vector<80x1xf32>
    %cst_96 = arith.constant 3.200000e+01 : f32
    %234 = vector.broadcast %cst_96 : f32 to vector<80x1xf32>
    %235 = arith.divf %233, %234 : vector<80x1xf32>
    %236 = vector.broadcast %228 : vector<80x1xf32> to vector<80x32xf32>
    %237 = arith.subf %222, %236 : vector<80x32xf32>
    %cst_97 = arith.constant 9.99999974E-6 : f32
    %238 = vector.broadcast %cst_97 : f32 to vector<80x1xf32>
    %239 = arith.addf %235, %238 : vector<80x1xf32>
    %240 = math.rsqrt %239 : vector<80x1xf32>
    %241 = vector.broadcast %240 : vector<80x1xf32> to vector<80x32xf32>
    %242 = arith.mulf %237, %241 : vector<80x32xf32>
    %243 = vector.broadcast %223 : vector<1x32xf32> to vector<80x32xf32>
    %244 = arith.mulf %242, %243 : vector<80x32xf32>
    %245 = vector.broadcast %224 : vector<1x32xf32> to vector<80x32xf32>
    %246 = arith.addf %244, %245 : vector<80x32xf32>
    %247 = vector.shape_cast %246 : vector<80x32xf32> to vector<2x40x32xf32>
    %248 = arith.subf %247, %26 : vector<2x40x32xf32>
    "tpu.trace_start"() <{level = 10 : i32, message = "blf,bfd->bld"}> : () -> ()
    %cst_98 = arith.constant dense<0.000000e+00> : vector<2x80x32xf32>
    %249 = tpu.matmul %13, %248, %cst_98 {dimension_numbers = #tpu.dot_dimension_numbers<[2], [1], [1], [2], [0, 0, 0, 1, 1, 2], [0], [0]>} : vector<2x80x40xf32>, vector<2x40x32xf32>, vector<2x80x32xf32> -> vector<2x80x32xf32>
    "tpu.trace_stop"() : () -> ()
    %250 = arith.addf %0, %249 : vector<2x80x32xf32>
    %c0_99 = arith.constant 0 : index
    %c0_100 = arith.constant 0 : index
    %c0_101 = arith.constant 0 : index
    %251 = vector.load %arg25[%c0_99, %c0_100, %c0_101] : memref<2x80x32xf32, #tpu.memory_space<vmem>>, vector<2x80x32xf32>
    tpu.vector_store %arg25[%c0_99, %c0_100, %c0_101], %250 {strides = array<i32>} : memref<2x80x32xf32, #tpu.memory_space<vmem>>, vector<2x80x32xf32>,
    %252 = vector.shape_cast %250 : vector<2x80x32xf32> to vector<160x32xf32>
    %c0_102 = arith.constant 0 : index
    %c0_103 = arith.constant 0 : index
    %253 = vector.load %arg23[%c0_102, %c0_103] : memref<32x11xf32, #tpu.memory_space<vmem>>, vector<32x11xf32>
    %cst_104 = arith.constant dense<0.000000e+00> : vector<160x11xf32>
    %254 = tpu.matmul %252, %253, %cst_104 {dimension_numbers = #tpu.dot_dimension_numbers<[1], [0], [0], [1], [0, 0, 1, 1], [], []>} : vector<160x32xf32>, vector<32x11xf32>, vector<160x11xf32> -> vector<160x11xf32>
    %c0_105 = arith.constant 0 : index
    %c0_106 = arith.constant 0 : index
    %255 = vector.load %arg24[%c0_105, %c0_106] : memref<1x11xf32, #tpu.memory_space<vmem>>, vector<1x11xf32>
    %256 = vector.broadcast %255 : vector<1x11xf32> to vector<160x11xf32>
    %257 = arith.addf %254, %256 : vector<160x11xf32>
    %258 = vector.shape_cast %257 : vector<160x11xf32> to vector<2x80x11xf32>
    %c0_107 = arith.constant 0 : index
    %c0_108 = arith.constant 0 : index
    %c0_109 = arith.constant 0 : index
    %259 = vector.load %arg26[%c0_107, %c0_108, %c0_109] : memref<2x80x11xf32, #tpu.memory_space<vmem>>, vector<2x80x11xf32>
    tpu.vector_store %arg26[%c0_107, %c0_108, %c0_109], %258 {strides = array<i32>} : memref<2x80x11xf32, #tpu.memory_space<vmem>>, vector<2x80x11xf32>,
    return
  }
  func.func @transform_0(%arg0: i32) -> (i32, i32, i32) {
    %c0_i32 = arith.constant 0 : i32
    %c0_i32_0 = arith.constant 0 : i32
    %c0_i32_1 = arith.constant 0 : i32
    %c0_i32_2 = arith.constant 0 : i32
    return %c0_i32, %c0_i32_0, %c0_i32_1 : i32, i32, i32
  }
  func.func @transform_1(%arg0: i32) -> (i32, i32, i32) {
    %c0_i32 = arith.constant 0 : i32
    %c0_i32_0 = arith.constant 0 : i32
    %c0_i32_1 = arith.constant 0 : i32
    %c0_i32_2 = arith.constant 0 : i32
    return %c0_i32, %c0_i32_0, %c0_i32_1 : i32, i32, i32
  }
  func.func @transform_2(%arg0: i32) -> (i32, i32, i32) {
    %c0_i32 = arith.constant 0 : i32
    %c0_i32_0 = arith.constant 0 : i32
    %c0_i32_1 = arith.constant 0 : i32
    %c0_i32_2 = arith.constant 0 : i32
    return %c0_i32, %c0_i32_0, %c0_i32_1 : i32, i32, i32
  }
  func.func @transform_3(%arg0: i32) -> (i32, i32, i32) {
    %c0_i32 = arith.constant 0 : i32
    %c0_i32_0 = arith.constant 0 : i32
    %c0_i32_1 = arith.constant 0 : i32
    %c0_i32_2 = arith.constant 0 : i32
    return %c0_i32, %c0_i32_0, %c0_i32_1 : i32, i32, i32
  }
  func.func @transform_4(%arg0: i32) -> (i32, i32, i32) {
    %c0_i32 = arith.constant 0 : i32
    %c0_i32_0 = arith.constant 0 : i32
    %c0_i32_1 = arith.constant 0 : i32
    %c0_i32_2 = arith.constant 0 : i32
    return %c0_i32, %c0_i32_0, %c0_i32_1 : i32, i32, i32
  }
  func.func @transform_5(%arg0: i32) -> (i32, i32, i32) {
    %c0_i32 = arith.constant 0 : i32
    %c0_i32_0 = arith.constant 0 : i32
    %c0_i32_1 = arith.constant 0 : i32
    %c0_i32_2 = arith.constant 0 : i32
    return %c0_i32, %c0_i32_0, %c0_i32_1 : i32, i32, i32
  }
  func.func @transform_6(%arg0: i32) -> (i32, i32) {
    %c0_i32 = arith.constant 0 : i32
    %c0_i32_0 = arith.constant 0 : i32
    %c0_i32_1 = arith.constant 0 : i32
    return %c0_i32, %c0_i32_0 : i32, i32
  }
  func.func @transform_7(%arg0: i32) -> (i32, i32) {
    %c0_i32 = arith.constant 0 : i32
    %c0_i32_0 = arith.constant 0 : i32
    %c0_i32_1 = arith.constant 0 : i32
    return %c0_i32, %c0_i32_0 : i32, i32
  }
  func.func @transform_8(%arg0: i32) -> (i32, i32) {
    %c0_i32 = arith.constant 0 : i32
    %c0_i32_0 = arith.constant 0 : i32
    %c0_i32_1 = arith.constant 0 : i32
    return %c0_i32, %c0_i32_0 : i32, i32
  }
  func.func @transform_9(%arg0: i32) -> (i32, i32) {
    %c0_i32 = arith.constant 0 : i32
    %c0_i32_0 = arith.constant 0 : i32
    %c0_i32_1 = arith.constant 0 : i32
    return %c0_i32, %c0_i32_0 : i32, i32
  }
  func.func @transform_10(%arg0: i32) -> (i32, i32) {
    %c0_i32 = arith.constant 0 : i32
    %c0_i32_0 = arith.constant 0 : i32
    %c0_i32_1 = arith.constant 0 : i32
    return %c0_i32, %c0_i32_0 : i32, i32
  }
  func.func @transform_11(%arg0: i32) -> (i32, i32) {
    %c0_i32 = arith.constant 0 : i32
    %c0_i32_0 = arith.constant 0 : i32
    %c0_i32_1 = arith.constant 0 : i32
    return %c0_i32, %c0_i32_0 : i32, i32
  }
  func.func @transform_12(%arg0: i32) -> (i32, i32) {
    %c0_i32 = arith.constant 0 : i32
    %c0_i32_0 = arith.constant 0 : i32
    %c0_i32_1 = arith.constant 0 : i32
    return %c0_i32, %c0_i32_0 : i32, i32
  }
  func.func @transform_13(%arg0: i32) -> (i32, i32) {
    %c0_i32 = arith.constant 0 : i32
    %c0_i32_0 = arith.constant 0 : i32
    %c0_i32_1 = arith.constant 0 : i32
    return %c0_i32, %c0_i32_0 : i32, i32
  }
  func.func @transform_14(%arg0: i32) -> (i32, i32) {
    %c0_i32 = arith.constant 0 : i32
    %c0_i32_0 = arith.constant 0 : i32
    %c0_i32_1 = arith.constant 0 : i32
    return %c0_i32, %c0_i32_0 : i32, i32
  }
  func.func @transform_15(%arg0: i32) -> (i32, i32) {
    %c0_i32 = arith.constant 0 : i32
    %c0_i32_0 = arith.constant 0 : i32
    %c0_i32_1 = arith.constant 0 : i32
    return %c0_i32, %c0_i32_0 : i32, i32
  }
  func.func @transform_16(%arg0: i32) -> (i32, i32) {
    %c0_i32 = arith.constant 0 : i32
    %c0_i32_0 = arith.constant 0 : i32
    %c0_i32_1 = arith.constant 0 : i32
    return %c0_i32, %c0_i32_0 : i32, i32
  }
  func.func @transform_17(%arg0: i32) -> (i32, i32) {
    %c0_i32 = arith.constant 0 : i32
    %c0_i32_0 = arith.constant 0 : i32
    %c0_i32_1 = arith.constant 0 : i32
    return %c0_i32, %c0_i32_0 : i32, i32
  }
  func.func @transform_18(%arg0: i32) -> (i32, i32) {
    %c0_i32 = arith.constant 0 : i32
    %c0_i32_0 = arith.constant 0 : i32
    %c0_i32_1 = arith.constant 0 : i32
    return %c0_i32, %c0_i32_0 : i32, i32
  }
  func.func @transform_19(%arg0: i32) -> (i32, i32) {
    %c0_i32 = arith.constant 0 : i32
    %c0_i32_0 = arith.constant 0 : i32
    %c0_i32_1 = arith.constant 0 : i32
    return %c0_i32, %c0_i32_0 : i32, i32
  }
  func.func @transform_20(%arg0: i32) -> (i32, i32) {
    %c0_i32 = arith.constant 0 : i32
    %c0_i32_0 = arith.constant 0 : i32
    %c0_i32_1 = arith.constant 0 : i32
    return %c0_i32, %c0_i32_0 : i32, i32
  }
  func.func @transform_21(%arg0: i32) -> (i32, i32) {
    %c0_i32 = arith.constant 0 : i32
    %c0_i32_0 = arith.constant 0 : i32
    %c0_i32_1 = arith.constant 0 : i32
    return %c0_i32, %c0_i32_0 : i32, i32
  }
  func.func @transform_22(%arg0: i32) -> (i32, i32) {
    %c0_i32 = arith.constant 0 : i32
    %c0_i32_0 = arith.constant 0 : i32
    %c0_i32_1 = arith.constant 0 : i32
    return %c0_i32, %c0_i32_0 : i32, i32
  }
  func.func @transform_23(%arg0: i32) -> (i32, i32) {
    %c0_i32 = arith.constant 0 : i32
    %c0_i32_0 = arith.constant 0 : i32
    %c0_i32_1 = arith.constant 0 : i32
    return %c0_i32, %c0_i32_0 : i32, i32
  }
  func.func @transform_24(%arg0: i32) -> (i32, i32, i32) {
    %c0_i32 = arith.constant 0 : i32
    %c0_i32_0 = arith.constant 0 : i32
    %c0_i32_1 = arith.constant 0 : i32
    %c0_i32_2 = arith.constant 0 : i32
    return %c0_i32, %c0_i32_0, %c0_i32_1 : i32, i32, i32
  }
  func.func @transform_25(%arg0: i32) -> (i32, i32, i32) {
    %c0_i32 = arith.constant 0 : i32
    %c0_i32_0 = arith.constant 0 : i32
    %c0_i32_1 = arith.constant 0 : i32
    %c0_i32_2 = arith.constant 0 : i32
    return %c0_i32, %c0_i32_0, %c0_i32_1 : i32, i32, i32
  }
}

module attributes {stable_mosaic.version = 11 : i64} {
  func.func @_decoder_fused_kernel(%arg0: i32, %arg1: memref<2x8x10xf32, #tpu.memory_space<vmem>>, %arg2: memref<10x32xf32, #tpu.memory_space<vmem>>, %arg3: memref<1x32xf32, #tpu.memory_space<vmem>>, %arg4: memref<32x32xf32, #tpu.memory_space<vmem>>, %arg5: memref<1x32xf32, #tpu.memory_space<vmem>>, %arg6: memref<32x32xf32, #tpu.memory_space<vmem>>, %arg7: memref<1x32xf32, #tpu.memory_space<vmem>>, %arg8: memref<32x64xf32, #tpu.memory_space<vmem>>, %arg9: memref<1x64xf32, #tpu.memory_space<vmem>>, %arg10: memref<32x32xf32, #tpu.memory_space<vmem>>, %arg11: memref<1x32xf32, #tpu.memory_space<vmem>>, %arg12: memref<32x32xf32, #tpu.memory_space<vmem>>, %arg13: memref<1x32xf32, #tpu.memory_space<vmem>>, %arg14: memref<1x32xf32, #tpu.memory_space<vmem>>, %arg15: memref<1x32xf32, #tpu.memory_space<vmem>>, %arg16: memref<1x32xf32, #tpu.memory_space<vmem>>, %arg17: memref<1x32xf32, #tpu.memory_space<vmem>>, %arg18: memref<32x64xf32, #tpu.memory_space<vmem>>, %arg19: memref<1x64xf32, #tpu.memory_space<vmem>>, %arg20: memref<64x32xf32, #tpu.memory_space<vmem>>, %arg21: memref<1x32xf32, #tpu.memory_space<vmem>>, %arg22: memref<1x32xf32, #tpu.memory_space<vmem>>, %arg23: memref<1x32xf32, #tpu.memory_space<vmem>>, %arg24: memref<32x11xf32, #tpu.memory_space<vmem>>, %arg25: memref<1x11xf32, #tpu.memory_space<vmem>>, %arg26: memref<1x2x8x32xf32, #tpu.memory_space<vmem>>, %arg27: memref<1x2x8x7xf32, #tpu.memory_space<vmem>>, %arg28: memref<2x8x32xf32, #tpu.memory_space<vmem>>, %arg29: memref<2x8x10xf32, #tpu.memory_space<vmem>>) attributes {dimension_semantics = [#tpu.dimension_semantics<arbitrary>], iteration_bounds = array<i64: 2>, scalar_prefetch = 0 : i64, scratch_operands = 2 : i64, tpu.core_type = #tpu.core_type<tc>, window_params = [{pipeline_mode = #tpu.pipeline_mode<synchronous>, transform_indices = @transform_0, window_bounds = array<i64: 2, 8, 10>}, {pipeline_mode = #tpu.pipeline_mode<synchronous>, transform_indices = @transform_1, window_bounds = array<i64: 10, 32>}, {pipeline_mode = #tpu.pipeline_mode<synchronous>, transform_indices = @transform_2, window_bounds = array<i64: 1, 32>}, {pipeline_mode = #tpu.pipeline_mode<synchronous>, transform_indices = @transform_3, window_bounds = array<i64: 32, 32>}, {pipeline_mode = #tpu.pipeline_mode<synchronous>, transform_indices = @transform_4, window_bounds = array<i64: 1, 32>}, {pipeline_mode = #tpu.pipeline_mode<synchronous>, transform_indices = @transform_5, window_bounds = array<i64: 32, 32>}, {pipeline_mode = #tpu.pipeline_mode<synchronous>, transform_indices = @transform_6, window_bounds = array<i64: 1, 32>}, {pipeline_mode = #tpu.pipeline_mode<synchronous>, transform_indices = @transform_7, window_bounds = array<i64: 32, 64>}, {pipeline_mode = #tpu.pipeline_mode<synchronous>, transform_indices = @transform_8, window_bounds = array<i64: 1, 64>}, {pipeline_mode = #tpu.pipeline_mode<synchronous>, transform_indices = @transform_9, window_bounds = array<i64: 32, 32>}, {pipeline_mode = #tpu.pipeline_mode<synchronous>, transform_indices = @transform_10, window_bounds = array<i64: 1, 32>}, {pipeline_mode = #tpu.pipeline_mode<synchronous>, transform_indices = @transform_11, window_bounds = array<i64: 32, 32>}, {pipeline_mode = #tpu.pipeline_mode<synchronous>, transform_indices = @transform_12, window_bounds = array<i64: 1, 32>}, {pipeline_mode = #tpu.pipeline_mode<synchronous>, transform_indices = @transform_13, window_bounds = array<i64: 1, 32>}, {pipeline_mode = #tpu.pipeline_mode<synchronous>, transform_indices = @transform_14, window_bounds = array<i64: 1, 32>}, {pipeline_mode = #tpu.pipeline_mode<synchronous>, transform_indices = @transform_15, window_bounds = array<i64: 1, 32>}, {pipeline_mode = #tpu.pipeline_mode<synchronous>, transform_indices = @transform_16, window_bounds = array<i64: 1, 32>}, {pipeline_mode = #tpu.pipeline_mode<synchronous>, transform_indices = @transform_17, window_bounds = array<i64: 32, 64>}, {pipeline_mode = #tpu.pipeline_mode<synchronous>, transform_indices = @transform_18, window_bounds = array<i64: 1, 64>}, {pipeline_mode = #tpu.pipeline_mode<synchronous>, transform_indices = @transform_19, window_bounds = array<i64: 64, 32>}, {pipeline_mode = #tpu.pipeline_mode<synchronous>, transform_indices = @transform_20, window_bounds = array<i64: 1, 32>}, {pipeline_mode = #tpu.pipeline_mode<synchronous>, transform_indices = @transform_21, window_bounds = array<i64: 1, 32>}, {pipeline_mode = #tpu.pipeline_mode<synchronous>, transform_indices = @transform_22, window_bounds = array<i64: 1, 32>}, {pipeline_mode = #tpu.pipeline_mode<synchronous>, transform_indices = @transform_23, window_bounds = array<i64: 32, 11>}, {pipeline_mode = #tpu.pipeline_mode<synchronous>, transform_indices = @transform_24, window_bounds = array<i64: 1, 11>}, {transform_indices = @transform_25, window_bounds = array<i64: 1, 2, 8, 32>}, {transform_indices = @transform_26, window_bounds = array<i64: 1, 2, 8, 7>}]} {
    %c0_i32 = arith.constant 0 : i32
    %0 = arith.cmpi eq, %arg0, %c0_i32 : i32
    %1 = arith.extui %0 : i1 to i32
    %c0_i32_0 = arith.constant 0 : i32
    %2 = arith.cmpi ne, %1, %c0_i32_0 : i32
    scf.if %2 {
      %c0_123 = arith.constant 0 : index
      %c0_124 = arith.constant 0 : index
      %c0_125 = arith.constant 0 : index
      %274 = vector.load %arg1[%c0_123, %c0_124, %c0_125] : memref<2x8x10xf32, #tpu.memory_space<vmem>>, vector<2x8x10xf32>
      %c0_126 = arith.constant 0 : index
      %c0_127 = arith.constant 0 : index
      %c0_128 = arith.constant 0 : index
      %275 = vector.load %arg29[%c0_126, %c0_127, %c0_128] : memref<2x8x10xf32, #tpu.memory_space<vmem>>, vector<2x8x10xf32>
      tpu.vector_store %arg29[%c0_126, %c0_127, %c0_128], %274 {strides = array<i32>} : memref<2x8x10xf32, #tpu.memory_space<vmem>>, vector<2x8x10xf32>,
      %cst_129 = arith.constant 0.000000e+00 : f32
      %276 = vector.broadcast %cst_129 : f32 to vector<2x8x32xf32>
      %c0_130 = arith.constant 0 : index
      %c0_131 = arith.constant 0 : index
      %c0_132 = arith.constant 0 : index
      %277 = vector.load %arg28[%c0_130, %c0_131, %c0_132] : memref<2x8x32xf32, #tpu.memory_space<vmem>>, vector<2x8x32xf32>
      tpu.vector_store %arg28[%c0_130, %c0_131, %c0_132], %276 {strides = array<i32>} : memref<2x8x32xf32, #tpu.memory_space<vmem>>, vector<2x8x32xf32>,
    } else {
    }
    %c0 = arith.constant 0 : index
    %c0_1 = arith.constant 0 : index
    %c0_2 = arith.constant 0 : index
    %3 = vector.load %arg29[%c0, %c0_1, %c0_2] : memref<2x8x10xf32, #tpu.memory_space<vmem>>, vector<2x8x10xf32>
    %4 = vector.shape_cast %3 : vector<2x8x10xf32> to vector<16x10xf32>
    %c0_3 = arith.constant 0 : index
    %c0_4 = arith.constant 0 : index
    %5 = vector.load %arg2[%c0_3, %c0_4] : memref<10x32xf32, #tpu.memory_space<vmem>>, vector<10x32xf32>
    %cst = arith.constant dense<0.000000e+00> : vector<16x32xf32>
    %6 = tpu.matmul %4, %5, %cst {dimension_numbers = #tpu.dot_dimension_numbers<[1], [0], [0], [1], [0, 0, 1, 1], [], []>} : vector<16x10xf32>, vector<10x32xf32>, vector<16x32xf32> -> vector<16x32xf32>
    %c0_5 = arith.constant 0 : index
    %c0_6 = arith.constant 0 : index
    %7 = vector.load %arg3[%c0_5, %c0_6] : memref<1x32xf32, #tpu.memory_space<vmem>>, vector<1x32xf32>
    %8 = vector.broadcast %7 : vector<1x32xf32> to vector<16x32xf32>
    %9 = arith.addf %6, %8 : vector<16x32xf32>
    %cst_7 = arith.constant 0.000000e+00 : f32
    %10 = vector.broadcast %cst_7 : f32 to vector<16x32xf32>
    %11 = arith.maximumf %9, %10 : vector<16x32xf32>
    %c0_8 = arith.constant 0 : index
    %c0_9 = arith.constant 0 : index
    %12 = vector.load %arg4[%c0_8, %c0_9] : memref<32x32xf32, #tpu.memory_space<vmem>>, vector<32x32xf32>
    %cst_10 = arith.constant dense<0.000000e+00> : vector<16x32xf32>
    %13 = tpu.matmul %11, %12, %cst_10 {dimension_numbers = #tpu.dot_dimension_numbers<[1], [0], [0], [1], [0, 0, 1, 1], [], []>} : vector<16x32xf32>, vector<32x32xf32>, vector<16x32xf32> -> vector<16x32xf32>
    %c0_11 = arith.constant 0 : index
    %c0_12 = arith.constant 0 : index
    %14 = vector.load %arg5[%c0_11, %c0_12] : memref<1x32xf32, #tpu.memory_space<vmem>>, vector<1x32xf32>
    %15 = vector.broadcast %14 : vector<1x32xf32> to vector<16x32xf32>
    %16 = arith.addf %13, %15 : vector<16x32xf32>
    %cst_13 = arith.constant 0.000000e+00 : f32
    %17 = vector.broadcast %cst_13 : f32 to vector<16x32xf32>
    %18 = arith.maximumf %16, %17 : vector<16x32xf32>
    %c0_14 = arith.constant 0 : index
    %c0_15 = arith.constant 0 : index
    %19 = vector.load %arg6[%c0_14, %c0_15] : memref<32x32xf32, #tpu.memory_space<vmem>>, vector<32x32xf32>
    %cst_16 = arith.constant dense<0.000000e+00> : vector<16x32xf32>
    %20 = tpu.matmul %18, %19, %cst_16 {dimension_numbers = #tpu.dot_dimension_numbers<[1], [0], [0], [1], [0, 0, 1, 1], [], []>} : vector<16x32xf32>, vector<32x32xf32>, vector<16x32xf32> -> vector<16x32xf32>
    %c0_17 = arith.constant 0 : index
    %c0_18 = arith.constant 0 : index
    %21 = vector.load %arg7[%c0_17, %c0_18] : memref<1x32xf32, #tpu.memory_space<vmem>>, vector<1x32xf32>
    %22 = vector.broadcast %21 : vector<1x32xf32> to vector<16x32xf32>
    %23 = arith.addf %20, %22 : vector<16x32xf32>
    %c0_19 = arith.constant 0 : index
    %c0_20 = arith.constant 0 : index
    %c0_21 = arith.constant 0 : index
    %24 = vector.load %arg28[%c0_19, %c0_20, %c0_21] : memref<2x8x32xf32, #tpu.memory_space<vmem>>, vector<2x8x32xf32>
    %25 = vector.shape_cast %24 : vector<2x8x32xf32> to vector<16x32xf32>
    %c0_i32_22 = arith.constant 0 : i32
    %26 = arith.cmpi eq, %arg0, %c0_i32_22 : i32
    %27 = arith.extui %26 : i1 to i32
    %28 = arith.sitofp %27 : i32 to f32
    %29 = arith.addf %25, %23 : vector<16x32xf32>
    %30 = vector.broadcast %28 : f32 to vector<16x32xf32>
    %31 = arith.mulf %30, %23 : vector<16x32xf32>
    %cst_23 = arith.constant 1.000000e+00 : f32
    %32 = arith.subf %cst_23, %28 : f32
    %33 = vector.broadcast %32 : f32 to vector<16x32xf32>
    %34 = arith.mulf %33, %25 : vector<16x32xf32>
    %35 = arith.addf %31, %34 : vector<16x32xf32>
    %c0_24 = arith.constant 0 : index
    %c0_25 = arith.constant 0 : index
    %36 = vector.load %arg8[%c0_24, %c0_25] : memref<32x64xf32, #tpu.memory_space<vmem>>, vector<32x64xf32>
    %c0_26 = arith.constant 0 : index
    %c0_27 = arith.constant 0 : index
    %37 = vector.load %arg9[%c0_26, %c0_27] : memref<1x64xf32, #tpu.memory_space<vmem>>, vector<1x64xf32>
    %c0_28 = arith.constant 0 : index
    %c0_29 = arith.constant 0 : index
    %38 = vector.load %arg10[%c0_28, %c0_29] : memref<32x32xf32, #tpu.memory_space<vmem>>, vector<32x32xf32>
    %c0_30 = arith.constant 0 : index
    %c0_31 = arith.constant 0 : index
    %39 = vector.load %arg11[%c0_30, %c0_31] : memref<1x32xf32, #tpu.memory_space<vmem>>, vector<1x32xf32>
    %c0_32 = arith.constant 0 : index
    %c0_33 = arith.constant 0 : index
    %40 = vector.load %arg12[%c0_32, %c0_33] : memref<32x32xf32, #tpu.memory_space<vmem>>, vector<32x32xf32>
    %c0_34 = arith.constant 0 : index
    %c0_35 = arith.constant 0 : index
    %41 = vector.load %arg13[%c0_34, %c0_35] : memref<1x32xf32, #tpu.memory_space<vmem>>, vector<1x32xf32>
    %c0_36 = arith.constant 0 : index
    %c0_37 = arith.constant 0 : index
    %42 = vector.load %arg14[%c0_36, %c0_37] : memref<1x32xf32, #tpu.memory_space<vmem>>, vector<1x32xf32>
    %c0_38 = arith.constant 0 : index
    %c0_39 = arith.constant 0 : index
    %43 = vector.load %arg15[%c0_38, %c0_39] : memref<1x32xf32, #tpu.memory_space<vmem>>, vector<1x32xf32>
    %cst_40 = arith.constant dense<0.000000e+00> : vector<16x64xf32>
    %44 = tpu.matmul %29, %36, %cst_40 {dimension_numbers = #tpu.dot_dimension_numbers<[1], [0], [0], [1], [0, 0, 1, 1], [], []>} : vector<16x32xf32>, vector<32x64xf32>, vector<16x64xf32> -> vector<16x64xf32>
    %45 = vector.broadcast %37 : vector<1x64xf32> to vector<16x64xf32>
    %46 = arith.addf %44, %45 : vector<16x64xf32>
    %cst_41 = arith.constant dense<0.000000e+00> : vector<16x32xf32>
    %47 = tpu.matmul %35, %38, %cst_41 {dimension_numbers = #tpu.dot_dimension_numbers<[1], [0], [0], [1], [0, 0, 1, 1], [], []>} : vector<16x32xf32>, vector<32x32xf32>, vector<16x32xf32> -> vector<16x32xf32>
    %48 = vector.broadcast %39 : vector<1x32xf32> to vector<16x32xf32>
    %49 = arith.addf %47, %48 : vector<16x32xf32>
    %50 = vector.extract_strided_slice %46 {offsets = [0, 0], sizes = [16, 32], strides = [1, 1]} : vector<16x64xf32> to vector<16x32xf32>
    %51 = vector.shape_cast %50 : vector<16x32xf32> to vector<2x8x32xf32>
    %52 = vector.extract_strided_slice %46 {offsets = [0, 32], sizes = [16, 32], strides = [1, 1]} : vector<16x64xf32> to vector<16x32xf32>
    %53 = vector.shape_cast %52 : vector<16x32xf32> to vector<2x8x32xf32>
    %54 = vector.shape_cast %49 : vector<16x32xf32> to vector<2x8x32xf32>
    %55 = tpu.iota {dimensions = array<i32: 2>} : vector<1x1x32xi32>
    %cst_42 = arith.constant 0.000000e+00 : f32
    %56 = vector.broadcast %cst_42 : f32 to vector<2x8x32xf32>
    %c0_i32_43 = arith.constant 0 : i32
    %57 = vector.broadcast %c0_i32_43 : i32 to vector<1x1x32xi32>
    %58 = arith.cmpi sge, %55, %57 : vector<1x1x32xi32>
    %c8_i32 = arith.constant 8 : i32
    %59 = vector.broadcast %c8_i32 : i32 to vector<1x1x32xi32>
    %60 = arith.cmpi slt, %55, %59 : vector<1x1x32xi32>
    %61 = arith.andi %58, %60 : vector<1x1x32xi1>
    %62 = arith.extui %61 : vector<1x1x32xi1> to vector<1x1x32xi32>
    %63 = arith.sitofp %62 : vector<1x1x32xi32> to vector<1x1x32xf32>
    %64 = vector.broadcast %63 : vector<1x1x32xf32> to vector<2x8x32xf32>
    %65 = arith.mulf %51, %64 : vector<2x8x32xf32>
    "tpu.trace_start"() <{level = 10 : i32, message = "bld,bmd->blm"}> : () -> ()
    %cst_44 = arith.constant dense<0.000000e+00> : vector<2x8x8xf32>
    %66 = tpu.matmul %65, %53, %cst_44 {dimension_numbers = #tpu.dot_dimension_numbers<[2], [2], [1], [1], [0, 0, 0, 1, 1, 1], [0], [0]>} : vector<2x8x32xf32>, vector<2x8x32xf32>, vector<2x8x8xf32> -> vector<2x8x8xf32>
    "tpu.trace_stop"() : () -> ()
    %cst_45 = arith.constant 0.353553385 : f32
    %67 = vector.broadcast %cst_45 : f32 to vector<2x8x8xf32>
    %68 = arith.mulf %66, %67 : vector<2x8x8xf32>
    %cst_46 = arith.constant dense<0xFF800000> : vector<2x8xf32>
    %69 = vector.multi_reduction <maximumf>, %68, %cst_46 [2] : vector<2x8x8xf32> to vector<2x8xf32>
    %70 = vector.shape_cast %69 : vector<2x8xf32> to vector<2x8x1xf32>
    %71 = vector.broadcast %70 : vector<2x8x1xf32> to vector<2x8x8xf32>
    %72 = arith.subf %68, %71 : vector<2x8x8xf32>
    %73 = math.exp %72 : vector<2x8x8xf32>
    %cst_47 = arith.constant dense<0.000000e+00> : vector<2x8xf32>
    %74 = vector.multi_reduction <add>, %73, %cst_47 [2] : vector<2x8x8xf32> to vector<2x8xf32>
    %75 = vector.shape_cast %74 : vector<2x8xf32> to vector<2x8x1xf32>
    %76 = vector.broadcast %75 : vector<2x8x1xf32> to vector<2x8x8xf32>
    %77 = arith.divf %73, %76 : vector<2x8x8xf32>
    %78 = vector.broadcast %63 : vector<1x1x32xf32> to vector<2x8x32xf32>
    %79 = arith.mulf %54, %78 : vector<2x8x32xf32>
    "tpu.trace_start"() <{level = 10 : i32, message = "blm,bmd->bld"}> : () -> ()
    %cst_48 = arith.constant dense<0.000000e+00> : vector<2x8x32xf32>
    %80 = tpu.matmul %77, %79, %cst_48 {dimension_numbers = #tpu.dot_dimension_numbers<[2], [1], [1], [2], [0, 0, 0, 1, 1, 2], [0], [0]>} : vector<2x8x8xf32>, vector<2x8x32xf32>, vector<2x8x32xf32> -> vector<2x8x32xf32>
    "tpu.trace_stop"() : () -> ()
    %81 = arith.addf %56, %80 : vector<2x8x32xf32>
    %c8_i32_49 = arith.constant 8 : i32
    %82 = vector.broadcast %c8_i32_49 : i32 to vector<1x1x32xi32>
    %83 = arith.cmpi sge, %55, %82 : vector<1x1x32xi32>
    %c16_i32 = arith.constant 16 : i32
    %84 = vector.broadcast %c16_i32 : i32 to vector<1x1x32xi32>
    %85 = arith.cmpi slt, %55, %84 : vector<1x1x32xi32>
    %86 = arith.andi %83, %85 : vector<1x1x32xi1>
    %87 = arith.extui %86 : vector<1x1x32xi1> to vector<1x1x32xi32>
    %88 = arith.sitofp %87 : vector<1x1x32xi32> to vector<1x1x32xf32>
    %89 = vector.broadcast %88 : vector<1x1x32xf32> to vector<2x8x32xf32>
    %90 = arith.mulf %51, %89 : vector<2x8x32xf32>
    "tpu.trace_start"() <{level = 10 : i32, message = "bld,bmd->blm"}> : () -> ()
    %cst_50 = arith.constant dense<0.000000e+00> : vector<2x8x8xf32>
    %91 = tpu.matmul %90, %53, %cst_50 {dimension_numbers = #tpu.dot_dimension_numbers<[2], [2], [1], [1], [0, 0, 0, 1, 1, 1], [0], [0]>} : vector<2x8x32xf32>, vector<2x8x32xf32>, vector<2x8x8xf32> -> vector<2x8x8xf32>
    "tpu.trace_stop"() : () -> ()
    %cst_51 = arith.constant 0.353553385 : f32
    %92 = vector.broadcast %cst_51 : f32 to vector<2x8x8xf32>
    %93 = arith.mulf %91, %92 : vector<2x8x8xf32>
    %cst_52 = arith.constant dense<0xFF800000> : vector<2x8xf32>
    %94 = vector.multi_reduction <maximumf>, %93, %cst_52 [2] : vector<2x8x8xf32> to vector<2x8xf32>
    %95 = vector.shape_cast %94 : vector<2x8xf32> to vector<2x8x1xf32>
    %96 = vector.broadcast %95 : vector<2x8x1xf32> to vector<2x8x8xf32>
    %97 = arith.subf %93, %96 : vector<2x8x8xf32>
    %98 = math.exp %97 : vector<2x8x8xf32>
    %cst_53 = arith.constant dense<0.000000e+00> : vector<2x8xf32>
    %99 = vector.multi_reduction <add>, %98, %cst_53 [2] : vector<2x8x8xf32> to vector<2x8xf32>
    %100 = vector.shape_cast %99 : vector<2x8xf32> to vector<2x8x1xf32>
    %101 = vector.broadcast %100 : vector<2x8x1xf32> to vector<2x8x8xf32>
    %102 = arith.divf %98, %101 : vector<2x8x8xf32>
    %103 = vector.broadcast %88 : vector<1x1x32xf32> to vector<2x8x32xf32>
    %104 = arith.mulf %54, %103 : vector<2x8x32xf32>
    "tpu.trace_start"() <{level = 10 : i32, message = "blm,bmd->bld"}> : () -> ()
    %cst_54 = arith.constant dense<0.000000e+00> : vector<2x8x32xf32>
    %105 = tpu.matmul %102, %104, %cst_54 {dimension_numbers = #tpu.dot_dimension_numbers<[2], [1], [1], [2], [0, 0, 0, 1, 1, 2], [0], [0]>} : vector<2x8x8xf32>, vector<2x8x32xf32>, vector<2x8x32xf32> -> vector<2x8x32xf32>
    "tpu.trace_stop"() : () -> ()
    %106 = arith.addf %81, %105 : vector<2x8x32xf32>
    %c16_i32_55 = arith.constant 16 : i32
    %107 = vector.broadcast %c16_i32_55 : i32 to vector<1x1x32xi32>
    %108 = arith.cmpi sge, %55, %107 : vector<1x1x32xi32>
    %c24_i32 = arith.constant 24 : i32
    %109 = vector.broadcast %c24_i32 : i32 to vector<1x1x32xi32>
    %110 = arith.cmpi slt, %55, %109 : vector<1x1x32xi32>
    %111 = arith.andi %108, %110 : vector<1x1x32xi1>
    %112 = arith.extui %111 : vector<1x1x32xi1> to vector<1x1x32xi32>
    %113 = arith.sitofp %112 : vector<1x1x32xi32> to vector<1x1x32xf32>
    %114 = vector.broadcast %113 : vector<1x1x32xf32> to vector<2x8x32xf32>
    %115 = arith.mulf %51, %114 : vector<2x8x32xf32>
    "tpu.trace_start"() <{level = 10 : i32, message = "bld,bmd->blm"}> : () -> ()
    %cst_56 = arith.constant dense<0.000000e+00> : vector<2x8x8xf32>
    %116 = tpu.matmul %115, %53, %cst_56 {dimension_numbers = #tpu.dot_dimension_numbers<[2], [2], [1], [1], [0, 0, 0, 1, 1, 1], [0], [0]>} : vector<2x8x32xf32>, vector<2x8x32xf32>, vector<2x8x8xf32> -> vector<2x8x8xf32>
    "tpu.trace_stop"() : () -> ()
    %cst_57 = arith.constant 0.353553385 : f32
    %117 = vector.broadcast %cst_57 : f32 to vector<2x8x8xf32>
    %118 = arith.mulf %116, %117 : vector<2x8x8xf32>
    %cst_58 = arith.constant dense<0xFF800000> : vector<2x8xf32>
    %119 = vector.multi_reduction <maximumf>, %118, %cst_58 [2] : vector<2x8x8xf32> to vector<2x8xf32>
    %120 = vector.shape_cast %119 : vector<2x8xf32> to vector<2x8x1xf32>
    %121 = vector.broadcast %120 : vector<2x8x1xf32> to vector<2x8x8xf32>
    %122 = arith.subf %118, %121 : vector<2x8x8xf32>
    %123 = math.exp %122 : vector<2x8x8xf32>
    %cst_59 = arith.constant dense<0.000000e+00> : vector<2x8xf32>
    %124 = vector.multi_reduction <add>, %123, %cst_59 [2] : vector<2x8x8xf32> to vector<2x8xf32>
    %125 = vector.shape_cast %124 : vector<2x8xf32> to vector<2x8x1xf32>
    %126 = vector.broadcast %125 : vector<2x8x1xf32> to vector<2x8x8xf32>
    %127 = arith.divf %123, %126 : vector<2x8x8xf32>
    %128 = vector.broadcast %113 : vector<1x1x32xf32> to vector<2x8x32xf32>
    %129 = arith.mulf %54, %128 : vector<2x8x32xf32>
    "tpu.trace_start"() <{level = 10 : i32, message = "blm,bmd->bld"}> : () -> ()
    %cst_60 = arith.constant dense<0.000000e+00> : vector<2x8x32xf32>
    %130 = tpu.matmul %127, %129, %cst_60 {dimension_numbers = #tpu.dot_dimension_numbers<[2], [1], [1], [2], [0, 0, 0, 1, 1, 2], [0], [0]>} : vector<2x8x8xf32>, vector<2x8x32xf32>, vector<2x8x32xf32> -> vector<2x8x32xf32>
    "tpu.trace_stop"() : () -> ()
    %131 = arith.addf %106, %130 : vector<2x8x32xf32>
    %c24_i32_61 = arith.constant 24 : i32
    %132 = vector.broadcast %c24_i32_61 : i32 to vector<1x1x32xi32>
    %133 = arith.cmpi sge, %55, %132 : vector<1x1x32xi32>
    %c32_i32 = arith.constant 32 : i32
    %134 = vector.broadcast %c32_i32 : i32 to vector<1x1x32xi32>
    %135 = arith.cmpi slt, %55, %134 : vector<1x1x32xi32>
    %136 = arith.andi %133, %135 : vector<1x1x32xi1>
    %137 = arith.extui %136 : vector<1x1x32xi1> to vector<1x1x32xi32>
    %138 = arith.sitofp %137 : vector<1x1x32xi32> to vector<1x1x32xf32>
    %139 = vector.broadcast %138 : vector<1x1x32xf32> to vector<2x8x32xf32>
    %140 = arith.mulf %51, %139 : vector<2x8x32xf32>
    "tpu.trace_start"() <{level = 10 : i32, message = "bld,bmd->blm"}> : () -> ()
    %cst_62 = arith.constant dense<0.000000e+00> : vector<2x8x8xf32>
    %141 = tpu.matmul %140, %53, %cst_62 {dimension_numbers = #tpu.dot_dimension_numbers<[2], [2], [1], [1], [0, 0, 0, 1, 1, 1], [0], [0]>} : vector<2x8x32xf32>, vector<2x8x32xf32>, vector<2x8x8xf32> -> vector<2x8x8xf32>
    "tpu.trace_stop"() : () -> ()
    %cst_63 = arith.constant 0.353553385 : f32
    %142 = vector.broadcast %cst_63 : f32 to vector<2x8x8xf32>
    %143 = arith.mulf %141, %142 : vector<2x8x8xf32>
    %cst_64 = arith.constant dense<0xFF800000> : vector<2x8xf32>
    %144 = vector.multi_reduction <maximumf>, %143, %cst_64 [2] : vector<2x8x8xf32> to vector<2x8xf32>
    %145 = vector.shape_cast %144 : vector<2x8xf32> to vector<2x8x1xf32>
    %146 = vector.broadcast %145 : vector<2x8x1xf32> to vector<2x8x8xf32>
    %147 = arith.subf %143, %146 : vector<2x8x8xf32>
    %148 = math.exp %147 : vector<2x8x8xf32>
    %cst_65 = arith.constant dense<0.000000e+00> : vector<2x8xf32>
    %149 = vector.multi_reduction <add>, %148, %cst_65 [2] : vector<2x8x8xf32> to vector<2x8xf32>
    %150 = vector.shape_cast %149 : vector<2x8xf32> to vector<2x8x1xf32>
    %151 = vector.broadcast %150 : vector<2x8x1xf32> to vector<2x8x8xf32>
    %152 = arith.divf %148, %151 : vector<2x8x8xf32>
    %153 = vector.broadcast %138 : vector<1x1x32xf32> to vector<2x8x32xf32>
    %154 = arith.mulf %54, %153 : vector<2x8x32xf32>
    "tpu.trace_start"() <{level = 10 : i32, message = "blm,bmd->bld"}> : () -> ()
    %cst_66 = arith.constant dense<0.000000e+00> : vector<2x8x32xf32>
    %155 = tpu.matmul %152, %154, %cst_66 {dimension_numbers = #tpu.dot_dimension_numbers<[2], [1], [1], [2], [0, 0, 0, 1, 1, 2], [0], [0]>} : vector<2x8x8xf32>, vector<2x8x32xf32>, vector<2x8x32xf32> -> vector<2x8x32xf32>
    "tpu.trace_stop"() : () -> ()
    %156 = arith.addf %131, %155 : vector<2x8x32xf32>
    %157 = vector.shape_cast %156 : vector<2x8x32xf32> to vector<16x32xf32>
    %cst_67 = arith.constant dense<0.000000e+00> : vector<16x32xf32>
    %158 = tpu.matmul %157, %40, %cst_67 {dimension_numbers = #tpu.dot_dimension_numbers<[1], [0], [0], [1], [0, 0, 1, 1], [], []>} : vector<16x32xf32>, vector<32x32xf32>, vector<16x32xf32> -> vector<16x32xf32>
    %159 = arith.addf %35, %158 : vector<16x32xf32>
    %160 = vector.broadcast %41 : vector<1x32xf32> to vector<16x32xf32>
    %161 = arith.addf %159, %160 : vector<16x32xf32>
    %cst_68 = arith.constant dense<0.000000e+00> : vector<16xf32>
    %162 = vector.multi_reduction <add>, %161, %cst_68 [1] : vector<16x32xf32> to vector<16xf32>
    %163 = vector.shape_cast %162 : vector<16xf32> to vector<16x1xf32>
    %cst_69 = arith.constant 3.200000e+01 : f32
    %164 = vector.broadcast %cst_69 : f32 to vector<16x1xf32>
    %165 = arith.divf %163, %164 : vector<16x1xf32>
    %166 = vector.broadcast %165 : vector<16x1xf32> to vector<16x32xf32>
    %167 = arith.subf %161, %166 : vector<16x32xf32>
    %168 = arith.mulf %167, %167 : vector<16x32xf32>
    %cst_70 = arith.constant dense<0.000000e+00> : vector<16xf32>
    %169 = vector.multi_reduction <add>, %168, %cst_70 [1] : vector<16x32xf32> to vector<16xf32>
    %170 = vector.shape_cast %169 : vector<16xf32> to vector<16x1xf32>
    %cst_71 = arith.constant 3.200000e+01 : f32
    %171 = vector.broadcast %cst_71 : f32 to vector<16x1xf32>
    %172 = arith.divf %170, %171 : vector<16x1xf32>
    %173 = vector.broadcast %165 : vector<16x1xf32> to vector<16x32xf32>
    %174 = arith.subf %161, %173 : vector<16x32xf32>
    %cst_72 = arith.constant 9.99999974E-6 : f32
    %175 = vector.broadcast %cst_72 : f32 to vector<16x1xf32>
    %176 = arith.addf %172, %175 : vector<16x1xf32>
    %177 = math.rsqrt %176 : vector<16x1xf32>
    %178 = vector.broadcast %177 : vector<16x1xf32> to vector<16x32xf32>
    %179 = arith.mulf %174, %178 : vector<16x32xf32>
    %180 = vector.broadcast %42 : vector<1x32xf32> to vector<16x32xf32>
    %181 = arith.mulf %179, %180 : vector<16x32xf32>
    %182 = vector.broadcast %43 : vector<1x32xf32> to vector<16x32xf32>
    %183 = arith.addf %181, %182 : vector<16x32xf32>
    %c0_73 = arith.constant 0 : index
    %c0_74 = arith.constant 0 : index
    %184 = vector.load %arg16[%c0_73, %c0_74] : memref<1x32xf32, #tpu.memory_space<vmem>>, vector<1x32xf32>
    %c0_75 = arith.constant 0 : index
    %c0_76 = arith.constant 0 : index
    %185 = vector.load %arg17[%c0_75, %c0_76] : memref<1x32xf32, #tpu.memory_space<vmem>>, vector<1x32xf32>
    %cst_77 = arith.constant dense<0.000000e+00> : vector<16xf32>
    %186 = vector.multi_reduction <add>, %183, %cst_77 [1] : vector<16x32xf32> to vector<16xf32>
    %187 = vector.shape_cast %186 : vector<16xf32> to vector<16x1xf32>
    %cst_78 = arith.constant 3.200000e+01 : f32
    %188 = vector.broadcast %cst_78 : f32 to vector<16x1xf32>
    %189 = arith.divf %187, %188 : vector<16x1xf32>
    %190 = vector.broadcast %189 : vector<16x1xf32> to vector<16x32xf32>
    %191 = arith.subf %183, %190 : vector<16x32xf32>
    %192 = arith.mulf %191, %191 : vector<16x32xf32>
    %cst_79 = arith.constant dense<0.000000e+00> : vector<16xf32>
    %193 = vector.multi_reduction <add>, %192, %cst_79 [1] : vector<16x32xf32> to vector<16xf32>
    %194 = vector.shape_cast %193 : vector<16xf32> to vector<16x1xf32>
    %cst_80 = arith.constant 3.200000e+01 : f32
    %195 = vector.broadcast %cst_80 : f32 to vector<16x1xf32>
    %196 = arith.divf %194, %195 : vector<16x1xf32>
    %197 = vector.broadcast %189 : vector<16x1xf32> to vector<16x32xf32>
    %198 = arith.subf %183, %197 : vector<16x32xf32>
    %cst_81 = arith.constant 9.99999974E-6 : f32
    %199 = vector.broadcast %cst_81 : f32 to vector<16x1xf32>
    %200 = arith.addf %196, %199 : vector<16x1xf32>
    %201 = math.rsqrt %200 : vector<16x1xf32>
    %202 = vector.broadcast %201 : vector<16x1xf32> to vector<16x32xf32>
    %203 = arith.mulf %198, %202 : vector<16x32xf32>
    %204 = vector.broadcast %184 : vector<1x32xf32> to vector<16x32xf32>
    %205 = arith.mulf %203, %204 : vector<16x32xf32>
    %206 = vector.broadcast %185 : vector<1x32xf32> to vector<16x32xf32>
    %207 = arith.addf %205, %206 : vector<16x32xf32>
    %c0_82 = arith.constant 0 : index
    %c0_83 = arith.constant 0 : index
    %208 = vector.load %arg18[%c0_82, %c0_83] : memref<32x64xf32, #tpu.memory_space<vmem>>, vector<32x64xf32>
    %cst_84 = arith.constant dense<0.000000e+00> : vector<16x64xf32>
    %209 = tpu.matmul %207, %208, %cst_84 {dimension_numbers = #tpu.dot_dimension_numbers<[1], [0], [0], [1], [0, 0, 1, 1], [], []>} : vector<16x32xf32>, vector<32x64xf32>, vector<16x64xf32> -> vector<16x64xf32>
    %c0_85 = arith.constant 0 : index
    %c0_86 = arith.constant 0 : index
    %210 = vector.load %arg19[%c0_85, %c0_86] : memref<1x64xf32, #tpu.memory_space<vmem>>, vector<1x64xf32>
    %211 = vector.broadcast %210 : vector<1x64xf32> to vector<16x64xf32>
    %212 = arith.addf %209, %211 : vector<16x64xf32>
    %cst_87 = arith.constant 0.000000e+00 : f32
    %213 = vector.broadcast %cst_87 : f32 to vector<16x64xf32>
    %214 = arith.maximumf %212, %213 : vector<16x64xf32>
    %c0_88 = arith.constant 0 : index
    %c0_89 = arith.constant 0 : index
    %215 = vector.load %arg20[%c0_88, %c0_89] : memref<64x32xf32, #tpu.memory_space<vmem>>, vector<64x32xf32>
    %cst_90 = arith.constant dense<0.000000e+00> : vector<16x32xf32>
    %216 = tpu.matmul %214, %215, %cst_90 {dimension_numbers = #tpu.dot_dimension_numbers<[1], [0], [0], [1], [0, 0, 1, 1], [], []>} : vector<16x64xf32>, vector<64x32xf32>, vector<16x32xf32> -> vector<16x32xf32>
    %217 = arith.addf %207, %216 : vector<16x32xf32>
    %c0_91 = arith.constant 0 : index
    %c0_92 = arith.constant 0 : index
    %218 = vector.load %arg21[%c0_91, %c0_92] : memref<1x32xf32, #tpu.memory_space<vmem>>, vector<1x32xf32>
    %219 = vector.broadcast %218 : vector<1x32xf32> to vector<16x32xf32>
    %220 = arith.addf %217, %219 : vector<16x32xf32>
    %c0_93 = arith.constant 0 : index
    %c0_94 = arith.constant 0 : index
    %221 = vector.load %arg22[%c0_93, %c0_94] : memref<1x32xf32, #tpu.memory_space<vmem>>, vector<1x32xf32>
    %c0_95 = arith.constant 0 : index
    %c0_96 = arith.constant 0 : index
    %222 = vector.load %arg23[%c0_95, %c0_96] : memref<1x32xf32, #tpu.memory_space<vmem>>, vector<1x32xf32>
    %cst_97 = arith.constant dense<0.000000e+00> : vector<16xf32>
    %223 = vector.multi_reduction <add>, %220, %cst_97 [1] : vector<16x32xf32> to vector<16xf32>
    %224 = vector.shape_cast %223 : vector<16xf32> to vector<16x1xf32>
    %cst_98 = arith.constant 3.200000e+01 : f32
    %225 = vector.broadcast %cst_98 : f32 to vector<16x1xf32>
    %226 = arith.divf %224, %225 : vector<16x1xf32>
    %227 = vector.broadcast %226 : vector<16x1xf32> to vector<16x32xf32>
    %228 = arith.subf %220, %227 : vector<16x32xf32>
    %229 = arith.mulf %228, %228 : vector<16x32xf32>
    %cst_99 = arith.constant dense<0.000000e+00> : vector<16xf32>
    %230 = vector.multi_reduction <add>, %229, %cst_99 [1] : vector<16x32xf32> to vector<16xf32>
    %231 = vector.shape_cast %230 : vector<16xf32> to vector<16x1xf32>
    %cst_100 = arith.constant 3.200000e+01 : f32
    %232 = vector.broadcast %cst_100 : f32 to vector<16x1xf32>
    %233 = arith.divf %231, %232 : vector<16x1xf32>
    %234 = vector.broadcast %226 : vector<16x1xf32> to vector<16x32xf32>
    %235 = arith.subf %220, %234 : vector<16x32xf32>
    %cst_101 = arith.constant 9.99999974E-6 : f32
    %236 = vector.broadcast %cst_101 : f32 to vector<16x1xf32>
    %237 = arith.addf %233, %236 : vector<16x1xf32>
    %238 = math.rsqrt %237 : vector<16x1xf32>
    %239 = vector.broadcast %238 : vector<16x1xf32> to vector<16x32xf32>
    %240 = arith.mulf %235, %239 : vector<16x32xf32>
    %241 = vector.broadcast %221 : vector<1x32xf32> to vector<16x32xf32>
    %242 = arith.mulf %240, %241 : vector<16x32xf32>
    %243 = vector.broadcast %222 : vector<1x32xf32> to vector<16x32xf32>
    %244 = arith.addf %242, %243 : vector<16x32xf32>
    %c0_102 = arith.constant 0 : index
    %c0_103 = arith.constant 0 : index
    %245 = vector.load %arg24[%c0_102, %c0_103] : memref<32x11xf32, #tpu.memory_space<vmem>>, vector<32x11xf32>
    %cst_104 = arith.constant dense<0.000000e+00> : vector<16x11xf32>
    %246 = tpu.matmul %244, %245, %cst_104 {dimension_numbers = #tpu.dot_dimension_numbers<[1], [0], [0], [1], [0, 0, 1, 1], [], []>} : vector<16x32xf32>, vector<32x11xf32>, vector<16x11xf32> -> vector<16x11xf32>
    %c0_105 = arith.constant 0 : index
    %c0_106 = arith.constant 0 : index
    %247 = vector.load %arg25[%c0_105, %c0_106] : memref<1x11xf32, #tpu.memory_space<vmem>>, vector<1x11xf32>
    %248 = vector.broadcast %247 : vector<1x11xf32> to vector<16x11xf32>
    %249 = arith.addf %246, %248 : vector<16x11xf32>
    %250 = vector.extract_strided_slice %3 {offsets = [0, 0, 0], sizes = [2, 8, 7], strides = [1, 1, 1]} : vector<2x8x10xf32> to vector<2x8x7xf32>
    %251 = vector.extract_strided_slice %249 {offsets = [0, 3], sizes = [16, 7], strides = [1, 1]} : vector<16x11xf32> to vector<16x7xf32>
    %252 = vector.shape_cast %251 : vector<16x7xf32> to vector<2x8x7xf32>
    %253 = math.tanh %252 : vector<2x8x7xf32>
    %cst_107 = arith.constant 1.000000e-01 : f32
    %254 = vector.broadcast %cst_107 : f32 to vector<2x8x7xf32>
    %255 = arith.mulf %254, %253 : vector<2x8x7xf32>
    %256 = arith.addf %250, %255 : vector<2x8x7xf32>
    %257 = vector.extract_strided_slice %249 {offsets = [0, 0], sizes = [16, 3], strides = [1, 1]} : vector<16x11xf32> to vector<16x3xf32>
    %258 = vector.shape_cast %257 : vector<16x3xf32> to vector<2x8x3xf32>
    %259 = arith.negf %258 : vector<2x8x3xf32>
    %260 = math.exp %259 : vector<2x8x3xf32>
    %cst_108 = arith.constant 1.000000e+00 : f32
    %261 = vector.broadcast %cst_108 : f32 to vector<2x8x3xf32>
    %262 = arith.addf %261, %260 : vector<2x8x3xf32>
    %263 = arith.divf %261, %262 : vector<2x8x3xf32>
    %264 = vector.shape_cast %244 : vector<16x32xf32> to vector<2x8x32xf32>
    %c0_109 = arith.constant 0 : index
    %c0_110 = arith.constant 0 : index
    %c0_111 = arith.constant 0 : index
    %265 = vector.load %arg28[%c0_109, %c0_110, %c0_111] : memref<2x8x32xf32, #tpu.memory_space<vmem>>, vector<2x8x32xf32>
    tpu.vector_store %arg28[%c0_109, %c0_110, %c0_111], %264 {strides = array<i32>} : memref<2x8x32xf32, #tpu.memory_space<vmem>>, vector<2x8x32xf32>,
    %266 = tpu.concatenate %256, %263 in 2 : vector<2x8x7xf32>, vector<2x8x3xf32> -> vector<2x8x10xf32>
    %c0_112 = arith.constant 0 : index
    %c0_113 = arith.constant 0 : index
    %c0_114 = arith.constant 0 : index
    %267 = vector.load %arg29[%c0_112, %c0_113, %c0_114] : memref<2x8x10xf32, #tpu.memory_space<vmem>>, vector<2x8x10xf32>
    tpu.vector_store %arg29[%c0_112, %c0_113, %c0_114], %266 {strides = array<i32>} : memref<2x8x10xf32, #tpu.memory_space<vmem>>, vector<2x8x10xf32>,
    %c0_115 = arith.constant 0 : index
    %c0_116 = arith.constant 0 : index
    %c0_117 = arith.constant 0 : index
    %c0_118 = arith.constant 0 : index
    %268 = vector.load %arg26[%c0_115, %c0_116, %c0_117, %c0_118] : memref<1x2x8x32xf32, #tpu.memory_space<vmem>>, vector<1x2x8x32xf32>
    %269 = vector.shape_cast %268 : vector<1x2x8x32xf32> to vector<2x8x32xf32>
    %270 = vector.shape_cast %264 : vector<2x8x32xf32> to vector<1x2x8x32xf32>
    tpu.vector_store %arg26[%c0_115, %c0_116, %c0_117, %c0_118], %270 {strides = array<i32>} : memref<1x2x8x32xf32, #tpu.memory_space<vmem>>, vector<1x2x8x32xf32>,
    %c0_119 = arith.constant 0 : index
    %c0_120 = arith.constant 0 : index
    %c0_121 = arith.constant 0 : index
    %c0_122 = arith.constant 0 : index
    %271 = vector.load %arg27[%c0_119, %c0_120, %c0_121, %c0_122] : memref<1x2x8x7xf32, #tpu.memory_space<vmem>>, vector<1x2x8x7xf32>
    %272 = vector.shape_cast %271 : vector<1x2x8x7xf32> to vector<2x8x7xf32>
    %273 = vector.shape_cast %256 : vector<2x8x7xf32> to vector<1x2x8x7xf32>
    tpu.vector_store %arg27[%c0_119, %c0_120, %c0_121, %c0_122], %273 {strides = array<i32>} : memref<1x2x8x7xf32, #tpu.memory_space<vmem>>, vector<1x2x8x7xf32>,
    return
  }
  func.func @transform_0(%arg0: i32) -> (i32, i32, i32) {
    %c0_i32 = arith.constant 0 : i32
    %c0_i32_0 = arith.constant 0 : i32
    %c0_i32_1 = arith.constant 0 : i32
    %c0_i32_2 = arith.constant 0 : i32
    return %c0_i32, %c0_i32_0, %c0_i32_1 : i32, i32, i32
  }
  func.func @transform_1(%arg0: i32) -> (i32, i32) {
    %c0_i32 = arith.constant 0 : i32
    %c0_i32_0 = arith.constant 0 : i32
    %c0_i32_1 = arith.constant 0 : i32
    return %c0_i32, %c0_i32_0 : i32, i32
  }
  func.func @transform_2(%arg0: i32) -> (i32, i32) {
    %c0_i32 = arith.constant 0 : i32
    %c0_i32_0 = arith.constant 0 : i32
    %c0_i32_1 = arith.constant 0 : i32
    return %c0_i32, %c0_i32_0 : i32, i32
  }
  func.func @transform_3(%arg0: i32) -> (i32, i32) {
    %c0_i32 = arith.constant 0 : i32
    %c0_i32_0 = arith.constant 0 : i32
    %c0_i32_1 = arith.constant 0 : i32
    return %c0_i32, %c0_i32_0 : i32, i32
  }
  func.func @transform_4(%arg0: i32) -> (i32, i32) {
    %c0_i32 = arith.constant 0 : i32
    %c0_i32_0 = arith.constant 0 : i32
    %c0_i32_1 = arith.constant 0 : i32
    return %c0_i32, %c0_i32_0 : i32, i32
  }
  func.func @transform_5(%arg0: i32) -> (i32, i32) {
    %c0_i32 = arith.constant 0 : i32
    %c0_i32_0 = arith.constant 0 : i32
    %c0_i32_1 = arith.constant 0 : i32
    return %c0_i32, %c0_i32_0 : i32, i32
  }
  func.func @transform_6(%arg0: i32) -> (i32, i32) {
    %c0_i32 = arith.constant 0 : i32
    %c0_i32_0 = arith.constant 0 : i32
    %c0_i32_1 = arith.constant 0 : i32
    return %c0_i32, %c0_i32_0 : i32, i32
  }
  func.func @transform_7(%arg0: i32) -> (i32, i32) {
    %c0_i32 = arith.constant 0 : i32
    %c0_i32_0 = arith.constant 0 : i32
    %c0_i32_1 = arith.constant 0 : i32
    return %c0_i32, %c0_i32_0 : i32, i32
  }
  func.func @transform_8(%arg0: i32) -> (i32, i32) {
    %c0_i32 = arith.constant 0 : i32
    %c0_i32_0 = arith.constant 0 : i32
    %c0_i32_1 = arith.constant 0 : i32
    return %c0_i32, %c0_i32_0 : i32, i32
  }
  func.func @transform_9(%arg0: i32) -> (i32, i32) {
    %c0_i32 = arith.constant 0 : i32
    %c0_i32_0 = arith.constant 0 : i32
    %c0_i32_1 = arith.constant 0 : i32
    return %c0_i32, %c0_i32_0 : i32, i32
  }
  func.func @transform_10(%arg0: i32) -> (i32, i32) {
    %c0_i32 = arith.constant 0 : i32
    %c0_i32_0 = arith.constant 0 : i32
    %c0_i32_1 = arith.constant 0 : i32
    return %c0_i32, %c0_i32_0 : i32, i32
  }
  func.func @transform_11(%arg0: i32) -> (i32, i32) {
    %c0_i32 = arith.constant 0 : i32
    %c0_i32_0 = arith.constant 0 : i32
    %c0_i32_1 = arith.constant 0 : i32
    return %c0_i32, %c0_i32_0 : i32, i32
  }
  func.func @transform_12(%arg0: i32) -> (i32, i32) {
    %c0_i32 = arith.constant 0 : i32
    %c0_i32_0 = arith.constant 0 : i32
    %c0_i32_1 = arith.constant 0 : i32
    return %c0_i32, %c0_i32_0 : i32, i32
  }
  func.func @transform_13(%arg0: i32) -> (i32, i32) {
    %c0_i32 = arith.constant 0 : i32
    %c0_i32_0 = arith.constant 0 : i32
    %c0_i32_1 = arith.constant 0 : i32
    return %c0_i32, %c0_i32_0 : i32, i32
  }
  func.func @transform_14(%arg0: i32) -> (i32, i32) {
    %c0_i32 = arith.constant 0 : i32
    %c0_i32_0 = arith.constant 0 : i32
    %c0_i32_1 = arith.constant 0 : i32
    return %c0_i32, %c0_i32_0 : i32, i32
  }
  func.func @transform_15(%arg0: i32) -> (i32, i32) {
    %c0_i32 = arith.constant 0 : i32
    %c0_i32_0 = arith.constant 0 : i32
    %c0_i32_1 = arith.constant 0 : i32
    return %c0_i32, %c0_i32_0 : i32, i32
  }
  func.func @transform_16(%arg0: i32) -> (i32, i32) {
    %c0_i32 = arith.constant 0 : i32
    %c0_i32_0 = arith.constant 0 : i32
    %c0_i32_1 = arith.constant 0 : i32
    return %c0_i32, %c0_i32_0 : i32, i32
  }
  func.func @transform_17(%arg0: i32) -> (i32, i32) {
    %c0_i32 = arith.constant 0 : i32
    %c0_i32_0 = arith.constant 0 : i32
    %c0_i32_1 = arith.constant 0 : i32
    return %c0_i32, %c0_i32_0 : i32, i32
  }
  func.func @transform_18(%arg0: i32) -> (i32, i32) {
    %c0_i32 = arith.constant 0 : i32
    %c0_i32_0 = arith.constant 0 : i32
    %c0_i32_1 = arith.constant 0 : i32
    return %c0_i32, %c0_i32_0 : i32, i32
  }
  func.func @transform_19(%arg0: i32) -> (i32, i32) {
    %c0_i32 = arith.constant 0 : i32
    %c0_i32_0 = arith.constant 0 : i32
    %c0_i32_1 = arith.constant 0 : i32
    return %c0_i32, %c0_i32_0 : i32, i32
  }
  func.func @transform_20(%arg0: i32) -> (i32, i32) {
    %c0_i32 = arith.constant 0 : i32
    %c0_i32_0 = arith.constant 0 : i32
    %c0_i32_1 = arith.constant 0 : i32
    return %c0_i32, %c0_i32_0 : i32, i32
  }
  func.func @transform_21(%arg0: i32) -> (i32, i32) {
    %c0_i32 = arith.constant 0 : i32
    %c0_i32_0 = arith.constant 0 : i32
    %c0_i32_1 = arith.constant 0 : i32
    return %c0_i32, %c0_i32_0 : i32, i32
  }
  func.func @transform_22(%arg0: i32) -> (i32, i32) {
    %c0_i32 = arith.constant 0 : i32
    %c0_i32_0 = arith.constant 0 : i32
    %c0_i32_1 = arith.constant 0 : i32
    return %c0_i32, %c0_i32_0 : i32, i32
  }
  func.func @transform_23(%arg0: i32) -> (i32, i32) {
    %c0_i32 = arith.constant 0 : i32
    %c0_i32_0 = arith.constant 0 : i32
    %c0_i32_1 = arith.constant 0 : i32
    return %c0_i32, %c0_i32_0 : i32, i32
  }
  func.func @transform_24(%arg0: i32) -> (i32, i32) {
    %c0_i32 = arith.constant 0 : i32
    %c0_i32_0 = arith.constant 0 : i32
    %c0_i32_1 = arith.constant 0 : i32
    return %c0_i32, %c0_i32_0 : i32, i32
  }
  func.func @transform_25(%arg0: i32) -> (i32, i32, i32, i32) {
    %c0_i32 = arith.constant 0 : i32
    %c0_i32_0 = arith.constant 0 : i32
    %c0_i32_1 = arith.constant 0 : i32
    %c0_i32_2 = arith.constant 0 : i32
    return %arg0, %c0_i32, %c0_i32_0, %c0_i32_1 : i32, i32, i32, i32
  }
  func.func @transform_26(%arg0: i32) -> (i32, i32, i32, i32) {
    %c0_i32 = arith.constant 0 : i32
    %c0_i32_0 = arith.constant 0 : i32
    %c0_i32_1 = arith.constant 0 : i32
    %c0_i32_2 = arith.constant 0 : i32
    return %arg0, %c0_i32, %c0_i32_0, %c0_i32_1 : i32, i32, i32, i32
  }
}

</mosaic_0001>

<bundles_post_ra>
// kernel: seed_transformer_forward.2
= control target key start
LH: loop header
LB: loop body
LE: loop exit
PB: predicated region body
PF: predicated region fallthrough
CT: control target
= control target key end

     0   :  { %v7122_v0 = vmov 0   ;;  %v9398_v5 = vmov 0.0|0.0   ;;  %vm7124_vm0 = vmmov 0   ;;  %v9400_v6 = vmov 0.0   ;;  %s9364_s2 = inlined_call_operand.vmem [shape: s32[2,40,1], index: 2, kind: input, shape index: {}]   ;;  %s9365_s0 = inlined_call_operand.vmem [shape: f32[2,80,32], index: 0, kind: input, shape index: {}]   ;;  %s9366_s4 = inlined_call_operand.vmem [shape: s32[2,20,1], index: 4, kind: input, shape index: {}]   ;;  %s9367_s1 = inlined_call_operand.vmem [shape: f32[2,80,32], index: 1, kind: input, shape index: {}]   ;;  %s9368_s8 = inlined_call_operand.vmem [shape: f32[32,32], index: 8, kind: input, shape index: {}]   ;;  %s9369_s6 = inlined_call_operand.vmem [shape: f32[32,64], index: 6, kind: input, shape index: {}]   ;;  %s9370_s9 = inlined_call_operand.vmem [shape: f32[1,32], index: 9, kind: input, shape index: {}]   ;;  %s9371_s7 = inlined_call_operand.vmem [shape: f32[1,64], index: 7, kind: input, shape index: {}]   ;;  %s9372_s10 = inlined_call_operand.vmem [shape: f32[32,32], index: 10, kind: input, shape index: {}]   ;;  %s9373_s11 = inlined_call_operand.vmem [shape: f32[1,32], index: 11, kind: input, shape index: {}]   ;;  %s9374_s12 = inlined_call_operand.vmem [shape: f32[1,32], index: 12, kind: input, shape index: {}]   ;;  %s9375_s13 = inlined_call_operand.vmem [shape: f32[1,32], index: 13, kind: input, shape index: {}]   ;;  %s9376_s5 = inlined_call_operand.vmem [shape: s32[2,1,20], index: 5, kind: input, shape index: {}]   ;;  %s9377_s16 = inlined_call_operand.vmem [shape: f32[32,64], index: 16, kind: input, shape index: {}]   ;;  %s9378_s18 = inlined_call_operand.vmem [shape: f32[64,32], index: 18, kind: input, shape index: {}]   ;;  %s9379_s14 = inlined_call_operand.vmem [shape: f32[1,32], index: 14, kind: input, shape index: {}]   ;;  %s9380_s15 = inlined_call_operand.vmem [shape: f32[1,32], index: 15, kind: input, shape index: {}]   ;;  %s9381_s17 = inlined_call_operand.vmem [shape: f32[1,64], index: 17, kind: input, shape index: {}]   ;;  %s9382_s19 = inlined_call_operand.vmem [shape: f32[1,32], index: 19, kind: input, shape index: {}]   ;;  %s9383_s3 = inlined_call_operand.vmem [shape: s32[2,1,40], index: 3, kind: input, shape index: {}]   ;;  %s9384_s20 = inlined_call_operand.vmem [shape: f32[1,32], index: 20, kind: input, shape index: {}]   ;;  %s9385_s21 = inlined_call_operand.vmem [shape: f32[1,32], index: 21, kind: input, shape index: {}]   ;;  %s9386_s22 = inlined_call_operand.vmem [shape: f32[32,11], index: 22, kind: input, shape index: {}]   ;;  %s9387_s24 = inlined_call_operand.vmem [shape: f32[2,80,32], index: 24, kind: output, shape index: {0}]   ;;  %s9388_s23 = inlined_call_operand.vmem [shape: f32[1,11], index: 23, kind: input, shape index: {}]   ;;  %s9389_s25 = inlined_call_operand.vmem [shape: f32[2,80,11], index: 25, kind: output, shape index: {1}]  }
   0x1   :  { %9442 = sst [smem:[#allocation22_spill]] %s9364_s2  ;;  %6945 = vset.pattern.permute.xlu1 %v7122_v0  ;;  %6944 = vset.pattern.permute.xlu0 %v7122_v0  ;;  %v9397_v49 = vlaneseq  ;;  %vm354_vm1 = vcmask 654336   ;;  %vm745_vm13 = vcmask 326656  }
   0x2   :  { %9443 = sst [smem:[#allocation23_spill]] %s9365_s0  ;;  %6679 = vmatprep.subr.bf16.mxu0 %v9398_v5  ;;  %6694 = vmatprep.subr.bf16.mxu1 %v9398_v5 }
   0x3   :  { %9444 = sst [smem:[#allocation24_spill]] %s9366_s4  ;;  %5990 = vmatprep.mubr.msk.f32.mxu0 %vm7124_vm0, %v9400_v6  ;;  %6025 = vmatprep.mubr.msk.f32.mxu1 %vm7124_vm0, %v9400_v6  ;;  %v7384_v50 = vand.u32 127, %v9397_v49 }
   0x4   :  { %9445 = sst [smem:[#allocation25_spill]] %s9367_s1  ;;  %s9454_s26 = sld [smem:[#allocation24_spill]] }
   0x5   :  { %9446 = sst [smem:[#allocation26_spill]] %s9368_s8  ;;  %s9455_s8 = sld [smem:[#allocation25_spill]] }
   0x6   :  { %9447 = sst [smem:[#allocation27_spill]] %s9369_s6  ;;  %s9453_s6 = sld [smem:[#allocation23_spill]] }
   0x7   :  { %9448 = sst [smem:[#allocation28_spill]] %s9370_s9  ;;  %s9452_s9 = sld [smem:[#allocation22_spill]] }
   0x8   :  { %9449 = sst [smem:[#allocation29_spill]] %s9371_s7  ;;  %s9466_s28 = sld [smem:[#allocation26_spill]] }
   0x9   :  { %9450 = sst [smem:[#allocation30_spill]] %s9372_s10  ;;  %s9467_s1 = sld [smem:[#allocation27_spill]] }
   0xa   :  { %9451 = sst [smem:[#allocation31_spill]] %s9373_s11  ;;  %v273_v38 = vld [vmem:[%s9454_s26 + $0x8] sm:$0xff]  ;;  %v272_v39 = vld [vmem:[%s9454_s26] sm:$0xff]  ;;  %v275_v44 = vld [vmem:[%s9454_s26 + $0x18] sm:$0xff]  ;;  %s9478_s29 = sld [smem:[#allocation28_spill]] }
   0xb   :  { %v274_v45 = vld [vmem:[%s9454_s26 + $0x10] sm:$0xf]  ;;  %v277_v47 = vld [vmem:[%s9454_s26 + $0x28] sm:$0xf]  ;;  %v276_v48 = vld [vmem:[%s9454_s26 + $0x20] sm:$0xff]  ;;  %s9479_s30 = sld [smem:[#allocation29_spill]] }
   0xc   :  { %v79_v8 = vld [vmem:[%s9453_s6] sm:$0xff]  ;;  %v80_v9 = vld [vmem:[%s9453_s6 + $0x8] sm:$0xff]  ;;  %v81_v12 = vld [vmem:[%s9453_s6 + $0x10] sm:$0xff]  ;;  %s7126_s7 = smov 96   ;;  %s9498_s10 = sld [smem:[#allocation30_spill]] }
   0xd   :  { %v121_v1 = vld [vmem:[%s9452_s9 + $0x10] sm:$0xff]  ;;  %v119_v2 = vld [vmem:[%s9452_s9] sm:$0xff]  ;;  %v122_v3 = vld [vmem:[%s9452_s9 + $0x18] sm:$0xff]  ;;  %v6680_v11 = vpack.c.bf16 %v80_v9, %v79_v8  ;;  %s9499_s4 = sld [smem:[#allocation31_spill]] }
   0xe   :  { %138 = vperm.xlu1 %6945, %v121_v1   ;;  %132 = vperm.xlu0 %6944, %v119_v2   ;;  %v120_v4 = vld [vmem:[%s9452_s9 + $0x8] sm:$0xff]  ;;  %v123_v10 = vld [vmem:[%s9452_s9 + $0x20] sm:$0xff]  ;;  %v82_v13 = vld [vmem:[%s9453_s6 + $0x18] sm:$0xff] }
   0xf   :  { %v124_v7 = vld [vmem:[%s9452_s9 + $0x28] sm:$0xff]  ;;  %v89_v14 = vld [vmem:[%s9453_s6 + $0x50] sm:$0xff]  ;;  %v90_v15 = vld [vmem:[%s9453_s6 + $0x58] sm:$0xff]  ;;  %6681 = vmatpush3.bf16.msra.mxu0 %v6680_v11  ;;  %v6683_v16 = vpack.c.bf16 %v82_v13, %v81_v12 }
  0x10   :  { %v6695_v17 = vpack.c.bf16 %v90_v15, %v89_v14  ;;  %v91_v18 = vld [vmem:[%s9453_s6 + $0x60] sm:$0xff]  ;;  %v84_v20 = vld [vmem:[%s9453_s6 + $0x28] sm:$0xff]  ;;  %v126_v22 = vld [vmem:[%s9452_s9 + $0x38] sm:$0xff]  ;;  %6682 = vmatprep.subr.bf16.mxu0 %v9398_v5 }
  0x11   :  { %v83_v19 = vld [vmem:[%s9453_s6 + $0x20] sm:$0xff]  ;;  %v92_v21 = vld [vmem:[%s9453_s6 + $0x68] sm:$0xff]  ;;  %v125_v23 = vld [vmem:[%s9452_s9 + $0x30] sm:$0xff] }
  0x12   :  { %141 = vperm.xlu1 %6945, %v122_v3   ;;  %135 = vperm.xlu0 %6944, %v120_v4   ;;  %v6698_v24 = vpack.c.bf16 %v92_v21, %v91_v18  ;;  %v93_v25 = vld [vmem:[%s9453_s6 + $0x70] sm:$0xff]  ;;  %v94_v26 = vld [vmem:[%s9453_s6 + $0x78] sm:$0xff]  ;;  %v6686_v27 = vpack.c.bf16 %v84_v20, %v83_v19  ;;  %v128_v30 = vld [vmem:[%s9452_s9 + $0x48] sm:$0xff] }
  0x13   :  { %6696 = vmatpush3.bf16.msra.mxu1 %v6695_v17  ;;  %6684 = vmatpush3.bf16.msra.mxu0 %v6683_v16  ;;  %v85_v28 = vld [vmem:[%s9453_s6 + $0x30] sm:$0xff]  ;;  %v86_v29 = vld [vmem:[%s9453_s6 + $0x38] sm:$0xff]  ;;  %v127_v31 = vld [vmem:[%s9452_s9 + $0x40] sm:$0xff]  ;;  %v6701_v32 = vpack.c.bf16 %v94_v26, %v93_v25 }
  0x14   :  { %6697 = vmatprep.subr.bf16.mxu1 %v9398_v5  ;;  %6685 = vmatprep.subr.bf16.mxu0 %v9398_v5  ;;  %v95_v33 = vld [vmem:[%s9453_s6 + $0x80] sm:$0xff]  ;;  %v96_v34 = vld [vmem:[%s9453_s6 + $0x88] sm:$0xff]  ;;  %v6689_v35 = vpack.c.bf16 %v86_v29, %v85_v28  ;;  %v97_v41 = vld [vmem:[%s9453_s6 + $0x90] sm:$0xff] }
  0x15   :  { %v87_v36 = vld [vmem:[%s9453_s6 + $0x40] sm:$0xff]  ;;  %v88_v37 = vld [vmem:[%s9453_s6 + $0x48] sm:$0xff]  ;;  %v6704_v40 = vpack.c.bf16 %v96_v34, %v95_v33  ;;  %v98_v42 = vld [vmem:[%s9453_s6 + $0x98] sm:$0xff] }
  0x16   :  { %147 = vperm.xlu1 %6945, %v124_v7   ;;  %144 = vperm.xlu0 %6944, %v123_v10   ;;  %v6692_v43 = vpack.c.bf16 %v88_v37, %v87_v36  ;;  %v6707_v46 = vpack.c.bf16 %v98_v42, %v97_v41  ;;  %v99_v51 = vld [vmem:[%s9455_s8] sm:$0xff]  ;;  %v100_v52 = vld [vmem:[%s9455_s8 + $0x8] sm:$0xff]  ;;  %v101_v56 = vld [vmem:[%s9455_s8 + $0x10] sm:$0xff] }
  0x17   :  { %6699 = vmatpush3.bf16.msra.mxu1 %v6698_v24  ;;  %6687 = vmatpush3.bf16.msra.mxu0 %v6686_v27  ;;  %v6710_v55 = vpack.c.bf16 %v100_v52, %v99_v51  ;;  %v102_v57 = vld [vmem:[%s9455_s8 + $0x18] sm:$0xff]  ;;  %v103_v62 = vld [vmem:[%s9455_s8 + $0x20] sm:$0xff]  ;;  %v104_v63 = vld [vmem:[%s9455_s8 + $0x28] sm:$0xff] }
  0x18   :  { %6700 = vmatprep.subr.bf16.mxu1 %v9398_v5  ;;  %6688 = vmatprep.subr.bf16.mxu0 %v9398_v5  ;;  %v6713_v61 = vpack.c.bf16 %v102_v57, %v101_v56  ;;  %v109_v0 = vld [vmem:[%s9455_s8 + $0x50] sm:$0xff]  ;;  %v110_v1 = vld [vmem:[%s9455_s8 + $0x58] sm:$0xff]  ;;  %v6716_v8 = vpack.c.bf16 %v104_v63, %v103_v62  ;;  %v111_v12 = vld [vmem:[%s9455_s8 + $0x60] sm:$0xff] }
  0x19   :  { %v6725_v9 = vpack.c.bf16 %v110_v1, %v109_v0  ;;  %v105_v10 = vld [vmem:[%s9455_s8 + $0x30] sm:$0xff]  ;;  %v106_v11 = vld [vmem:[%s9455_s8 + $0x38] sm:$0xff]  ;;  %v112_v13 = vld [vmem:[%s9455_s8 + $0x68] sm:$0xff] }
  0x1a   :  { %153 = vperm.xlu1 %6945, %v126_v22   ;;  %150 = vperm.xlu0 %6944, %v125_v23   ;;  %v6719_v17 = vpack.c.bf16 %v106_v11, %v105_v10  ;;  %v6728_v18 = vpack.c.bf16 %v112_v13, %v111_v12  ;;  %v107_v19 = vld [vmem:[%s9455_s8 + $0x40] sm:$0xff]  ;;  %v108_v20 = vld [vmem:[%s9455_s8 + $0x48] sm:$0xff]  ;;  %v113_v21 = vld [vmem:[%s9455_s8 + $0x70] sm:$0xff] }
  0x1b   :  { %6702 = vmatpush3.bf16.msra.mxu1 %v6701_v32  ;;  %6690 = vmatpush3.bf16.msra.mxu0 %v6689_v35  ;;  %v114_v22 = vld [vmem:[%s9455_s8 + $0x78] sm:$0xff]  ;;  %v6722_v26 = vpack.c.bf16 %v108_v20, %v107_v19  ;;  %v115_v28 = vld [vmem:[%s9455_s8 + $0x80] sm:$0xff]  ;;  %v116_v29 = vld [vmem:[%s9455_s8 + $0x88] sm:$0xff] }
  0x1c   :  { %6703 = vmatprep.subr.bf16.mxu1 %v9398_v5  ;;  %6691 = vmatprep.subr.bf16.mxu0 %v9398_v5  ;;  %v6731_v27 = vpack.c.bf16 %v114_v22, %v113_v21  ;;  %v6734_v33 = vpack.c.bf16 %v116_v29, %v115_v28  ;;  %v117_v34 = vld [vmem:[%s9455_s8 + $0x90] sm:$0xff]  ;;  %v118_v35 = vld [vmem:[%s9455_s8 + $0x98] sm:$0xff] }
  0x1d   :  { %v6737_v37 = vpack.c.bf16 %v118_v35, %v117_v34 }
  0x1e   :  { %159 = vperm.xlu1 %6945, %v128_v30   ;;  %156 = vperm.xlu0 %6944, %v127_v31  }
  0x1f   :  { %6705 = vmatpush3.bf16.msra.mxu1 %v6704_v40  ;;  %6693 = vmatpush3.bf16.msra.mxu0 %v6692_v43 }
  0x20   :  { %6706 = vmatprep.subr.bf16.mxu1 %v9398_v5  ;;  %6709 = vmatprep.subr.bf16.mxu0 %v9398_v5 }
  0x22   :  { %282 = vperm.xlu1 %6945, %v273_v38   ;;  %279 = vperm.xlu0 %6944, %v272_v39  }
  0x23   :  { %6708 = vmatpush3.bf16.msra.mxu1 %v6707_v46 }
  0x24   :  { %6891 = vmatprep.subr.bf16.mxu1 %v9398_v5 }
  0x26   :  { %288 = vperm.xlu1 %6945, %v275_v44   ;;  %285 = vperm.xlu0 %6944, %v274_v45  }
  0x2a   :  { %294 = vperm.xlu1 %6945, %v277_v47   ;;  %291 = vperm.xlu0 %6944, %v276_v48  }
  0x8d   :  { %v139_v53 = vpop.permute.xlu1 %138  ;;  %v133_v54 = vpop.permute.xlu0 %132 }
  0x8e   :  { %vm161_vm2 = vcmp.eq.s32.totalorder %v133_v54, %v7384_v50  ;;  %vm163_vm3 = vcmp.eq.s32.totalorder %v139_v53, %v7384_v50 }
  0x8f   :  { %v7400_v58 = vsel %vm161_vm2, 1.0, %v9400_v6  ;;  %v7427_v3 = vsel %vm163_vm3, 1.0, %v9400_v6 }
  0x90   :  { %5991 = vmatmul.mubr.msk.f32.vlgmr.msra.gmra.mrb[0].mxu0 %vm354_vm1, %v7400_v58 }
  0x91   :  { %v142_v59 = vpop.permute.xlu1 %141  ;;  %v136_v60 = vpop.permute.xlu0 %135  ;;  %6711 = vmatpush3.bf16.msra.mxu0 %v6710_v55  ;;  %5993 = vmatprep.mubr.msk.f32.mxu0 %vm7124_vm0, %v9400_v6 }
  0x92   :  { %vm162_vm4 = vcmp.eq.s32.totalorder %v136_v60, %v7384_v50  ;;  %6712 = vmatprep.subr.bf16.mxu0 %v9398_v5  ;;  %vm164_vm6 = vcmp.eq.s32.totalorder %v142_v59, %v7384_v50 }
  0x93   :  { %v7422_v2 = vsel %vm162_vm4, 1.0, %v9400_v6  ;;  %v5391_v23 = vsel %vm164_vm6, 1.0, %v9400_v6  ;;  %vm1142_vm4 = vcmask 261120   ;;  %vm2388_vm6 = vcmp.lt.s32.totalorder %v7384_v50, 24 }
  0x94   :  { %5994 = vmatmul.mubr.msk.f32.gmra.mrb[2].mxu0 %vm354_vm1, %v7422_v2 }
  0x95   :  { %v148_v4 = vpop.permute.xlu1 %147  ;;  %v145_v7 = vpop.permute.xlu0 %144  ;;  %6714 = vmatpush3.bf16.msra.mxu0 %v6713_v61  ;;  %5996 = vmatprep.mubr.msk.f32.mxu0 %vm7124_vm0, %v9400_v6 }
  0x96   :  { %vm166_vm5 = vcmp.eq.s32.totalorder %v148_v4, %v7384_v50  ;;  %6715 = vmatprep.subr.bf16.mxu0 %v9398_v5  ;;  %vm165_vm8 = vcmp.eq.s32.totalorder %v145_v7, %v7384_v50 }
  0x97   :  { %v7446_v14 = vsel %vm166_vm5, 1.0, %v9400_v6  ;;  %v5392_v30 = vsel %vm165_vm8, 1.0, %v9400_v6  ;;  %vm2387_vm5 = vcmp.ge.s32.totalorder %v7384_v50, 16  ;;  %vm2880_vm8 = vcmp.lt.s32.totalorder %v7384_v50, 32 }
  0x98   :  { %5997 = vmatmul.mubr.msk.f32.gmra.mrb[4].mxu0 %vm354_vm1, %v7427_v3  ;;  %6026 = vmatmul.mubr.msk.f32.vlgmr.msra.gmra.mrb[0].mxu1 %vm354_vm1, %v7446_v14 }
  0x99   :  { %v154_v15 = vpop.permute.xlu1 %153  ;;  %v151_v16 = vpop.permute.xlu0 %150  ;;  %6717 = vmatpush3.bf16.msra.mxu0 %v6716_v8  ;;  %6896 = vmatpush3.bf16.msra.mxu1 %v6725_v9 }
  0x9a   :  { %vm167_vm7 = vcmp.eq.s32.totalorder %v151_v16, %v7384_v50  ;;  %5999 = vmatprep.mubr.msk.f32.mxu0 %vm7124_vm0, %v9400_v6  ;;  %6028 = vmatprep.mubr.msk.f32.mxu1 %vm7124_vm0, %v9400_v6  ;;  %vm168_vm9 = vcmp.eq.s32.totalorder %v154_v15, %v7384_v50 }
  0x9b   :  { %v7474_v24 = vsel %vm167_vm7, 1.0, %v9400_v6  ;;  %6718 = vmatprep.subr.bf16.mxu0 %v9398_v5  ;;  %6892 = vmatprep.subr.bf16.mxu1 %v9398_v5  ;;  %v5395_v31 = vsel %vm168_vm9, 1.0, %v9400_v6  ;;  %vm2879_vm7 = vcmp.ge.s32.totalorder %v7384_v50, 24  ;;  %vm1700_vm9 = vcmp.ge.s32.totalorder %v7384_v50, 8 }
  0x9c   :  { %6000 = vmatmul.mubr.msk.f32.gmra.mrb[6].mxu0 %vm354_vm1, %v5391_v23  ;;  %6029 = vmatmul.mubr.msk.f32.gmra.mrb[2].mxu1 %vm354_vm1, %v7474_v24 }
  0x9d   :  { %v157_v25 = vpop.permute.xlu0 %156  ;;  %6720 = vmatpush3.bf16.msra.mxu0 %v6719_v17  ;;  %6897 = vmatpush3.bf16.msra.mxu1 %v6728_v18  ;;  %v160_v32 = vpop.permute.xlu1 %159 }
  0x9e   :  { %6002 = vmatprep.mubr.msk.f32.mxu0 %vm7124_vm0, %v9400_v6  ;;  %6031 = vmatprep.mubr.msk.f32.mxu1 %vm7124_vm0, %v9400_v6  ;;  %vm169_vm10 = vcmp.eq.s32.totalorder %v157_v25, %v7384_v50  ;;  %vm170_vm11 = vcmp.eq.s32.totalorder %v160_v32, %v7384_v50 }
  0x9f   :  { %6721 = vmatprep.subr.bf16.mxu0 %v9398_v5  ;;  %6893 = vmatprep.subr.bf16.mxu1 %v9398_v5  ;;  %v5396_v36 = vsel %vm169_vm10, 1.0, %v9400_v6  ;;  %v5397_v38 = vsel %vm170_vm11, 1.0, %v9400_v6  ;;  %vm1701_vm10 = vcmp.lt.s32.totalorder %v7384_v50, 16  ;;  %vm1385_vm11 = vcmp.lt.s32.totalorder %v7384_v50, 8 }
  0xa0   :  { %6003 = vmatmul.mubr.msk.f32.gmra.mrb[8].mxu0 %vm354_vm1, %v5392_v30  ;;  %6032 = vmatmul.mubr.msk.f32.gmra.mrb[4].mxu1 %vm354_vm1, %v5395_v31 }
  0xa1   :  { %6723 = vmatpush3.bf16.msra.mxu0 %v6722_v26  ;;  %6898 = vmatpush3.bf16.msra.mxu1 %v6731_v27  ;;  %v280_v44 = vpop.permute.xlu0 %279  ;;  %v283_v51 = vpop.permute.xlu1 %282 }
  0xa2   :  { %6034 = vmatprep.mubr.msk.f32.mxu1 %vm7124_vm0, %v9400_v6  ;;  %6060 = vmatprep.mubr.msk.f32.mxu0 %vm7124_vm0, %v9400_v6  ;;  %vm296_vm12 = vcmp.eq.s32.totalorder %v280_v44, %v7384_v50  ;;  %vm297_vm14 = vcmp.eq.s32.totalorder %v283_v51, %v7384_v50  ;;  %v1121_v44 = vld [vmem:[%s9466_s28 + $0x10] sm:$0xff]  ;;  %v1114_v51 = vld [vmem:[%s9467_s1] sm:$0xff] }
  0xa3   :  { %6724 = vmatprep.subr.bf16.mxu0 %v9398_v5  ;;  %6894 = vmatprep.subr.bf16.mxu1 %v9398_v5  ;;  %v5420_v63 = vsel %vm296_vm12, 1.0, %v9400_v6  ;;  %v5421_v8 = vsel %vm297_vm14, 1.0, %v9400_v6  ;;  %vm2389_vm12 = vmand %vm2387_vm5, %vm2388_vm6  ;;  %vm1629_vm5 = vcmask 158720  }
  0xa4   :  { %6035 = vmatmul.mubr.msk.f32.gmra.mrb[6].mxu1 %vm354_vm1, %v5396_v36  ;;  %6061 = vmatmul.mubr.msk.f32.vlgmr.msra.gmra.mrb[10].mxu0 %vm354_vm1, %v7400_v58  ;;  %vm2881_vm14 = vmand %vm2879_vm7, %vm2880_vm8 }
  0xa5   :  { %6726 = vmatpush3.bf16.msra.mxu0 %v6725_v9  ;;  %6899 = vmatpush3.bf16.msra.mxu1 %v6734_v33  ;;  %v286_v58 = vpop.permute.xlu0 %285  ;;  %v289_v0 = vpop.permute.xlu1 %288 }
  0xa6   :  { %6037 = vmatprep.mubr.msk.f32.mxu1 %vm7124_vm0, %v9400_v6  ;;  %6063 = vmatprep.mubr.msk.f32.mxu0 %vm7124_vm0, %v9400_v6  ;;  %vm299_vm15 = vcmp.eq.s32.totalorder %v289_v0, %v7384_v50 }
  0xa7   :  { %6727 = vmatprep.subr.bf16.mxu0 %v9398_v5  ;;  %6895 = vmatprep.subr.bf16.mxu1 %v9398_v5  ;;  %v5423_v15 = vsel %vm299_vm15, 1.0, %v9400_v6  ;;  %vm1702_vm15 = vmand %vm1700_vm9, %vm1701_vm10 }
  0xa8   :  { %6038 = vmatmul.mubr.msk.f32.gmra.mrb[8].mxu1 %vm354_vm1, %v5397_v38  ;;  %6064 = vmatmul.mubr.msk.f32.gmra.mrb[12].mxu0 %vm354_vm1, %v7422_v2 }
  0xa9   :  { %6729 = vmatpush3.bf16.msra.mxu0 %v6728_v18  ;;  %6900 = vmatpush3.bf16.msra.mxu1 %v6737_v37  ;;  %v292_v9 = vpop.permute.xlu0 %291  ;;  %v295_v17 = vpop.permute.xlu1 %294 }
  0xaa   :  { %6066 = vmatprep.mubr.msk.f32.mxu0 %vm7124_vm0, %v9400_v6  ;;  %6101 = vmatprep.mubr.msk.f32.mxu1 %vm7124_vm0, %v9400_v6  ;;  %vm300_vm2 = vcmp.eq.s32.totalorder %v292_v9, %v7384_v50  ;;  %vm301_vm3 = vcmp.eq.s32.totalorder %v295_v17, %v7384_v50 }
  0xab   :  { %6730 = vmatprep.subr.bf16.mxu0 %v9398_v5  ;;  %6745 = vmatprep.subr.bf16.mxu1 %v9398_v5  ;;  %v5424_v22 = vsel %vm300_vm2, 1.0, %v9400_v6  ;;  %v5425_v29 = vsel %vm301_vm3, 1.0, %v9400_v6  ;;  %vm2004_vm2 = vcmask 1043456   ;;  %vm1622_vm3 = vcmask 162816  }
  0xac   :  { %6067 = vmatmul.mubr.msk.f32.gmra.mrb[14].mxu0 %vm354_vm1, %v7427_v3  ;;  %6102 = vmatmul.mubr.msk.f32.vlgmr.msra.gmra.mrb[10].mxu1 %vm354_vm1, %v5395_v31 }
  0xad   :  { %6732 = vmatpush3.bf16.msra.mxu0 %v6731_v27  ;;  %6069 = vmatprep.mubr.msk.f32.mxu0 %vm7124_vm0, %v9400_v6 }
  0xae   :  { %6104 = vmatprep.mubr.msk.f32.mxu1 %vm7124_vm0, %v9400_v6  ;;  %6733 = vmatprep.subr.bf16.mxu0 %v9398_v5 }
  0xb0   :  { %6070 = vmatmul.mubr.msk.f32.gmra.mrb[16].mxu0 %vm354_vm1, %v5391_v23  ;;  %6105 = vmatmul.mubr.msk.f32.gmra.mrb[12].mxu1 %vm354_vm1, %v5396_v36 }
  0xb1   :  { %6735 = vmatpush3.bf16.msra.mxu0 %v6734_v33  ;;  %6072 = vmatprep.mubr.msk.f32.mxu0 %vm7124_vm0, %v9400_v6 }
  0xb2   :  { %6107 = vmatprep.mubr.msk.f32.mxu1 %vm7124_vm0, %v9400_v6  ;;  %6736 = vmatprep.subr.bf16.mxu0 %v9398_v5 }
  0xb4   :  { %6073 = vmatmul.mubr.msk.f32.gmra.mrb[18].mxu0 %vm354_vm1, %v5392_v30  ;;  %6108 = vmatmul.mubr.msk.f32.gmra.mrb[14].mxu1 %vm354_vm1, %v5397_v38 }
  0xb5   :  { %6738 = vmatpush3.bf16.msra.mxu0 %v6737_v37  ;;  %6095 = vmatprep.mubr.msk.f32.mxu0 %vm7124_vm0, %v9400_v6 }
  0xb6   :  { %6739 = vmatprep.subr.bf16.mxu0 %v9398_v5  ;;  %6139 = vmatprep.mubr.msk.f32.mxu1 %vm7124_vm0, %v9400_v6 }
  0xb8   :  { %6096 = vmatmul.mubr.msk.f32.vlgmr.msra.gmra.mrb[20].mxu0 %vm354_vm1, %v7446_v14 }
  0xb9   :  { %6098 = vmatprep.mubr.msk.f32.mxu0 %vm7124_vm0, %v9400_v6 }
  0xbc   :  { %6099 = vmatmul.mubr.msk.f32.gmra.mrb[22].mxu0 %vm354_vm1, %v7474_v24  ;;  %vm298_vm1 = vcmp.eq.s32.totalorder %v286_v58, %v7384_v50 }
  0xbd   :  { %6120 = vmatprep.mubr.msk.f32.mxu0 %vm7124_vm0, %v9400_v6  ;;  %v5422_v16 = vsel %vm298_vm1, 1.0, %v9400_v6  ;;  %vm8000_vm1 = vmpackc.low %vm1142_vm4, %vm1142_vm4 }
 0x163   :  { %v7563_v39 = vpop.f32.mrb[0].mxu0 }
 0x164   :  { %9456 = vst [vmem:[#allocation2_spill] sm:$0xff] %v7563_v39  ;;  %v5992_v40 = vpop.f32.mrb[1].mxu0 }
 0x165   :  { %v1119_v40 = vld [vmem:[%s9466_s28] sm:$0xff] }
 0x167   :  { %v7565_v41 = vpop.f32.mrb[2].mxu0 }
 0x168   :  { %9457 = vst [vmem:[#allocation3_spill] sm:$0xff] %v7565_v41  ;;  %v6740_v42 = vpack.c.bf16 %v7565_v41, %v7563_v39  ;;  %v5995_v43 = vpop.f32.mrb[3].mxu0 }
 0x16a   :  { %6741 = vmatpush3.bf16.msra.mxu0 %v6740_v42  ;;  %v1120_v42 = vld [vmem:[%s9466_s28 + $0x8] sm:$0xff] }
 0x16b   :  { %v7569_v45 = vpop.f32.mrb[4].mxu0  ;;  %v7571_v46 = vpop.f32.mrb[0].mxu1  ;;  %6742 = vmatprep.subr.bf16.mxu0 %v9398_v5  ;;  %v6770_v43 = vpack.c.bf16 %v1120_v42, %v1119_v40 }
 0x16c   :  { %9458 = vst [vmem:[#allocation4_spill] sm:$0xff] %v7569_v45  ;;  %9459 = vst [vmem:[#allocation5_spill] sm:$0xff] %v7571_v46  ;;  %v5998_v47 = vpop.f32.mrb[5].mxu0  ;;  %v6027_v48 = vpop.f32.mrb[1].mxu1 }
 0x16d   :  { %v1122_v47 = vld [vmem:[%s9466_s28 + $0x18] sm:$0xff] }
 0x16e   :  { %v6773_v48 = vpack.c.bf16 %v1122_v47, %v1121_v44 }
 0x16f   :  { %v7574_v52 = vpop.f32.mrb[6].mxu0  ;;  %v7576_v53 = vpop.f32.mrb[2].mxu1 }
 0x170   :  { %9460 = vst [vmem:[#allocation6_spill] sm:$0xff] %v7574_v52  ;;  %9461 = vst [vmem:[#allocation7_spill] sm:$0xff] %v7576_v53  ;;  %v6743_v54 = vpack.c.bf16 %v7574_v52, %v7569_v45  ;;  %v6746_v55 = vpack.c.bf16 %v7576_v53, %v7571_v46  ;;  %v6001_v56 = vpop.f32.mrb[7].mxu0  ;;  %v6030_v57 = vpop.f32.mrb[3].mxu1 }
 0x171   :  { %v1116_v56 = vld [vmem:[%s9467_s1 + $0x10] sm:$0xff]  ;;  %v1117_v57 = vld [vmem:[%s9467_s1 + $0x18] sm:$0xff] }
 0x172   :  { %6744 = vmatpush3.bf16.msra.mxu0 %v6743_v54  ;;  %6747 = vmatpush3.bf16.msra.mxu1 %v6746_v55  ;;  %v1115_v54 = vld [vmem:[%s9467_s1 + $0x8] sm:$0xff]  ;;  %v6767_v58 = vpack.c.bf16 %v1117_v57, %v1116_v56  ;;  %v5476_v57 = vld [vmem:[%s9478_s29] ss:$0 sm:$0xff] }
 0x173   :  { %v7583_v59 = vpop.f32.mrb[8].mxu0  ;;  %v7585_v60 = vpop.f32.mrb[4].mxu1  ;;  %6118 = vmatprep.subr.mxu0 %v9400_v6  ;;  %6748 = vmatprep.subr.bf16.mxu1 %v9398_v5  ;;  %v6764_v55 = vpack.c.bf16 %v1115_v54, %v1114_v51 }
 0x174   :  { %9462 = vst [vmem:[#allocation8_spill] sm:$0xff] %v7583_v59  ;;  %9463 = vst [vmem:[#allocation9_spill] sm:$0xff] %v7585_v60  ;;  %v6004_v61 = vpop.f32.mrb[9].mxu0  ;;  %v6033_v62 = vpop.f32.mrb[5].mxu1 }
 0x176   :  { %6119 = vmatpush3.msra.mxu0 %v7583_v59 }
 0x177   :  { %v7592_v1 = vpop.f32.mrb[6].mxu1  ;;  %v631_v2 = vpop.f32.mrb[10].mxu0  ;;  %6121 = vmatmul.mubr.msk.f32.vlgmr.msra.gmra.mrb[24].mxu0 %vm745_vm13, %v5420_v63  ;;  %6751 = vmatprep.subr.bf16.mxu0 %v9398_v5 }
 0x178   :  { %9464 = vst [vmem:[#allocation10_spill] sm:$0xff] %v7592_v1  ;;  %v6749_v3 = vpack.c.bf16 %v7592_v1, %v7585_v60  ;;  %v6036_v4 = vpop.f32.mrb[7].mxu1  ;;  %v6062_v7 = vpop.f32.mrb[11].mxu0  ;;  %6123 = vmatprep.mubr.msk.f32.mxu0 %vm7124_vm0, %v9400_v6 }
 0x17a   :  { %6750 = vmatpush3.bf16.msra.mxu1 %v6749_v3 }
 0x17b   :  { %v7603_v10 = vpop.f32.mrb[8].mxu1  ;;  %v636_v11 = vpop.f32.mrb[12].mxu0  ;;  %6124 = vmatmul.mubr.msk.f32.gmra.mrb[26].mxu0 %vm745_vm13, %v5421_v8  ;;  %6137 = vmatprep.subr.mxu1 %v9400_v6 }
 0x17c   :  { %9465 = vst [vmem:[#allocation11_spill] sm:$0xff] %v7603_v10  ;;  %v6752_v12 = vpack.c.bf16 %v636_v11, %v631_v2  ;;  %v6039_v13 = vpop.f32.mrb[9].mxu1  ;;  %v6065_v14 = vpop.f32.mrb[13].mxu0  ;;  %6126 = vmatprep.mubr.msk.f32.mxu0 %vm7124_vm0, %v9400_v6 }
 0x17e   :  { %6138 = vmatpush3.msra.mxu1 %v7603_v10  ;;  %6753 = vmatpush3.bf16.msra.mxu0 %v6752_v12 }
 0x17f   :  { %v641_v18 = vpop.f32.mrb[14].mxu0  ;;  %v731_v19 = vpop.f32.mrb[10].mxu1  ;;  %6127 = vmatmul.mubr.msk.f32.gmra.mrb[28].mxu0 %vm745_vm13, %v5422_v16  ;;  %6140 = vmatmul.mubr.msk.f32.vlgmr.msra.gmra.mrb[16].mxu1 %vm745_vm13, %v5423_v15 }
 0x180   :  { %v6068_v20 = vpop.f32.mrb[15].mxu0  ;;  %v6103_v21 = vpop.f32.mrb[11].mxu1  ;;  %6142 = vmatprep.mubr.msk.f32.mxu1 %vm7124_vm0, %v9400_v6  ;;  %6754 = vmatprep.subr.bf16.mxu0 %v9398_v5 }
 0x181   :  { %6158 = vmatprep.mubr.msk.f32.mxu0 %vm7124_vm0, %v9400_v6  ;;  %6757 = vmatprep.subr.bf16.mxu1 %v9398_v5 }
 0x183   :  { %v646_v23 = vpop.f32.mrb[16].mxu0  ;;  %v736_v24 = vpop.f32.mrb[12].mxu1  ;;  %6143 = vmatmul.mubr.msk.f32.gmra.mrb[18].mxu1 %vm745_vm13, %v5424_v22 }
 0x184   :  { %v6755_v25 = vpack.c.bf16 %v646_v23, %v641_v18  ;;  %v6761_v26 = vpack.c.bf16 %v736_v24, %v731_v19  ;;  %v6071_v27 = vpop.f32.mrb[17].mxu0  ;;  %v6106_v28 = vpop.f32.mrb[13].mxu1  ;;  %6145 = vmatprep.mubr.msk.f32.mxu1 %vm7124_vm0, %v9400_v6 }
 0x186   :  { %6756 = vmatpush3.bf16.msra.mxu0 %v6755_v25 }
 0x187   :  { %v651_v30 = vpop.f32.mrb[18].mxu0  ;;  %v741_v31 = vpop.f32.mrb[14].mxu1  ;;  %6146 = vmatmul.mubr.msk.f32.gmra.mrb[20].mxu1 %vm745_vm13, %v5425_v29  ;;  %6156 = vmatprep.subr.mxu0 %v9400_v6 }
 0x188   :  { %v6074_v32 = vpop.f32.mrb[19].mxu0  ;;  %v6109_v33 = vpop.f32.mrb[15].mxu1  ;;  %6177 = vmatprep.mubr.msk.f32.mxu1 %vm7124_vm0, %v9400_v6 }
 0x18a   :  { %6157 = vmatpush3.msra.mxu0 %v651_v30 }
 0x18b   :  { %v721_v34 = vpop.f32.mrb[20].mxu0  ;;  %6159 = vmatmul.mubr.msk.f32.vlgmr.msra.gmra.mrb[30].mxu0 %vm745_vm13, %v5420_v63  ;;  %6763 = vmatprep.subr.bf16.mxu0 %v9398_v5 }
 0x18c   :  { %v6097_v35 = vpop.f32.mrb[21].mxu0  ;;  %6161 = vmatprep.mubr.msk.f32.mxu0 %vm7124_vm0, %v9400_v6  ;;  %6765 = vmatpush3.bf16.msra.mxu0 %v6764_v55 }
 0x18d   :  { %6766 = vmatprep.subr.bf16.mxu0 %v9398_v5 }
 0x18f   :  { %v726_v36 = vpop.f32.mrb[22].mxu0  ;;  %6162 = vmatmul.mubr.msk.f32.gmra.mrb[32].mxu0 %vm745_vm13, %v5421_v8 }
 0x190   :  { %v6758_v37 = vpack.c.bf16 %v726_v36, %v721_v34  ;;  %v6100_v38 = vpop.f32.mrb[23].mxu0  ;;  %6164 = vmatprep.mubr.msk.f32.mxu0 %vm7124_vm0, %v9400_v6  ;;  %6768 = vmatpush3.bf16.msra.mxu0 %v6767_v58  ;;  %v7766_v58 = vsel %vm1385_vm11, 1.0, %v9400_v6 }
 0x191   :  { %6775 = vmatprep.subr.bf16.mxu0 %v9398_v5 }
 0x192   :  { %6759 = vmatpush3.bf16.msra.mxu1 %v6758_v37 }
 0x193   :  { %6165 = vmatmul.mubr.msk.f32.gmra.mrb[34].mxu0 %vm745_vm13, %v5422_v16  ;;  %6760 = vmatprep.subr.bf16.mxu1 %v9398_v5 }
 0x194   :  { %6194 = vmatprep.mubr.msk.f32.mxu0 %vm7124_vm0, %v9400_v6 }
 0x196   :  { %6762 = vmatpush3.bf16.msra.mxu1 %v6761_v26 }
 0x197   :  { %6175 = vmatprep.subr.mxu1 %v9400_v6 }
 0x19a   :  { %6176 = vmatpush3.msra.mxu1 %v741_v31 }
 0x19b   :  { %6178 = vmatmul.mubr.msk.f32.vlgmr.msra.gmra.mrb[22].mxu1 %vm745_vm13, %v5423_v15  ;;  %6769 = vmatprep.subr.bf16.mxu1 %v9398_v5 }
 0x19c   :  { %6180 = vmatprep.mubr.msk.f32.mxu1 %vm7124_vm0, %v9400_v6  ;;  %6771 = vmatpush3.bf16.msra.mxu1 %v6770_v43 }
 0x19d   :  { %6772 = vmatprep.subr.bf16.mxu1 %v9398_v5 }
 0x19f   :  { %6181 = vmatmul.mubr.msk.f32.gmra.mrb[24].mxu1 %vm745_vm13, %v5424_v22 }
 0x1a0   :  { %6183 = vmatprep.mubr.msk.f32.mxu1 %vm7124_vm0, %v9400_v6  ;;  %6774 = vmatpush3.bf16.msra.mxu1 %v6773_v48 }
 0x1a1   :  { %6779 = vmatprep.subr.bf16.mxu1 %v9398_v5 }
 0x1a3   :  { %6184 = vmatmul.mubr.msk.f32.gmra.mrb[26].mxu1 %vm745_vm13, %v5425_v29 }
 0x1a4   :  { %6217 = vmatprep.mubr.msk.f32.mxu1 %vm7124_vm0, %v9400_v6 }
 0x24a   :  { %v7681_v61 = vpop.f32.mrb[24].mxu0 }
 0x24b   :  { %9468 = vst [vmem:[#allocation12_spill] sm:$0xff] %v7681_v61  ;;  %v7685_v62 = vcombine.high %v7681_v61, %v7681_v61  ;;  %v6122_v63 = vpop.f32.mrb[25].mxu0 }
 0x24c   :  { %v7769_v63 = vsel %vm2389_vm12, 1.0, %v9400_v6 }
 0x24d   :  { %9469 = vst [vmem:[#allocation13_spill] sm:$0xff] %v7685_v62  ;;  %v1249_v0 = vcombine.low %v7681_v61, %v7685_v62 }
 0x24e   :  { %v7689_v2 = vpop.f32.mrb[26].mxu0 }
 0x24f   :  { %9470 = vst [vmem:[#allocation14_spill] sm:$0xff] %v7689_v2  ;;  %v7693_v3 = vcombine.high %v7689_v2, %v7689_v2  ;;  %v6125_v4 = vpop.f32.mrb[27].mxu0  ;;  %6218 = vmatmul.mubr.msk.f32.vlgmr.msra.gmra.mrb[28].mxu1 %vm1142_vm4, %v1249_v0  ;;  %v7772_v0 = vsel %vm2881_vm14, 1.0, %v9400_v6 }
 0x250   :  { %6220 = vmatprep.mubr.msk.f32.mxu1 %vm7124_vm0, %v9400_v6 }
 0x251   :  { %9471 = vst [vmem:[#allocation15_spill] sm:$0xff] %v7693_v3  ;;  %v1250_v7 = vcombine.low %v7689_v2, %v7693_v3 }
 0x252   :  { %v7700_v8 = vpop.f32.mrb[28].mxu0  ;;  %v7702_v9 = vpop.f32.mrb[16].mxu1 }
 0x253   :  { %9472 = vst [vmem:[#allocation16_spill] sm:$0xff] %v7700_v8  ;;  %9473 = vst [vmem:[#allocation17_spill] sm:$0xff] %v7702_v9  ;;  %v6128_v11 = vpop.f32.mrb[29].mxu0  ;;  %v6141_v12 = vpop.f32.mrb[17].mxu1  ;;  %6221 = vmatmul.mubr.msk.f32.gmra.mrb[30].mxu1 %vm1142_vm4, %v1250_v7  ;;  %v1251_v13 = vcombine.low %v7700_v8, %v7702_v9  ;;  %v7713_v15 = vcombine.high %v7702_v9, %v7702_v9  ;;  %v7775_v7 = vsel %vm1702_vm15, 1.0, %v9400_v6 }
 0x254   :  { %6223 = vmatprep.mubr.msk.f32.mxu1 %vm7124_vm0, %v9400_v6  ;;  %v7779_v12 = vcombine.high %v7766_v58, %v7766_v58 }
 0x255   :  { %9475 = vst [vmem:[#allocation19_spill] sm:$0xff] %v7713_v15 }
 0x256   :  { %v7709_v14 = vpop.f32.mrb[18].mxu1 }
 0x257   :  { %9474 = vst [vmem:[#allocation18_spill] sm:$0xff] %v7709_v14  ;;  %v6144_v16 = vpop.f32.mrb[19].mxu1  ;;  %6224 = vmatmul.mubr.msk.f32.gmra.mrb[32].mxu1 %vm1142_vm4, %v1251_v13  ;;  %v1252_v17 = vcombine.low %v7713_v15, %v7709_v14  ;;  %v7724_v19 = vcombine.high %v7709_v14, %v7709_v14  ;;  %v7783_v13 = vcombine.high %v7769_v63, %v7769_v63 }
 0x258   :  { %6226 = vmatprep.mubr.msk.f32.mxu1 %vm7124_vm0, %v9400_v6  ;;  %v7787_v16 = vcombine.high %v7772_v0, %v7772_v0 }
 0x259   :  { %9477 = vst [vmem:[#allocation21_spill] sm:$0xff] %v7724_v19 }
 0x25a   :  { %v7720_v18 = vpop.f32.mrb[20].mxu1 }
 0x25b   :  { %9476 = vst [vmem:[#allocation20_spill] sm:$0xff] %v7720_v18  ;;  %v6147_v20 = vpop.f32.mrb[21].mxu1  ;;  %6227 = vmatmul.mubr.msk.f32.gmra.mrb[34].mxu1 %vm1142_vm4, %v1252_v17  ;;  %v1253_v21 = vcombine.low %v7724_v19, %v7720_v18 }
 0x25c   :  { %6229 = vmatprep.mubr.msk.f32.mxu1 %vm7124_vm0, %v9400_v6  ;;  %v7791_v20 = vcombine.high %v7775_v7, %v7775_v7 }
 0x25e   :  { %v990_v22 = vpop.f32.mrb[30].mxu0 }
 0x25f   :  { %v1084_v23 = vadd.f32 %v990_v22, %v7681_v61  ;;  %v6160_v24 = vpop.f32.mrb[31].mxu0  ;;  %6230 = vmatmul.mubr.msk.f32.gmra.mrb[36].mxu1 %vm1142_vm4, %v1253_v21 }
 0x260   :  { %6253 = vmatprep.mubr.msk.f32.mxu1 %vm7124_vm0, %v9400_v6 }
 0x261   :  { %v1096_v25 = vcombine.high %v1084_v23, %v1084_v23 }
 0x262   :  { %v995_v26 = vpop.f32.mrb[32].mxu0 }
 0x263   :  { %v1137_v27 = vcombine.low %v1084_v23, %v1096_v25  ;;  %v1085_v28 = vadd.f32 %v995_v26, %v7689_v2  ;;  %v6163_v29 = vpop.f32.mrb[33].mxu0 }
 0x265   :  { %v1097_v30 = vcombine.high %v1085_v28, %v1085_v28  ;;  %6195 = vmatmul.mubr.msk.f32.vlgmr.msra.gmra.mrb[36].mxu0 %vm1142_vm4, %v1137_v27 }
 0x266   :  { %v1000_v31 = vpop.f32.mrb[34].mxu0  ;;  %6197 = vmatprep.mubr.msk.f32.mxu0 %vm7124_vm0, %v9400_v6 }
 0x267   :  { %v1138_v32 = vcombine.low %v1085_v28, %v1097_v30  ;;  %v1086_v33 = vadd.f32 %v1000_v31, %v7700_v8  ;;  %v6166_v34 = vpop.f32.mrb[35].mxu0 }
 0x269   :  { %6198 = vmatmul.mubr.msk.f32.gmra.mrb[38].mxu0 %vm1142_vm4, %v1138_v32 }
 0x26a   :  { %6200 = vmatprep.mubr.msk.f32.mxu0 %vm7124_vm0, %v9400_v6 }
 0x26e   :  { %v1070_v35 = vpop.f32.mrb[22].mxu1 }
 0x26f   :  { %v1087_v36 = vadd.f32 %v1070_v35, %v7702_v9  ;;  %v6179_v37 = vpop.f32.mrb[23].mxu1 }
 0x271   :  { %v1139_v38 = vcombine.low %v1086_v33, %v1087_v36  ;;  %v1098_v42 = vcombine.high %v1087_v36, %v1087_v36 }
 0x272   :  { %v1075_v40 = vpop.f32.mrb[24].mxu1 }
 0x273   :  { %v1088_v43 = vadd.f32 %v1075_v40, %v7709_v14  ;;  %v6182_v44 = vpop.f32.mrb[25].mxu1  ;;  %6201 = vmatmul.mubr.msk.f32.gmra.mrb[40].mxu0 %vm1142_vm4, %v1139_v38 }
 0x274   :  { %6203 = vmatprep.mubr.msk.f32.mxu0 %vm7124_vm0, %v9400_v6 }
 0x275   :  { %v1140_v47 = vcombine.low %v1098_v42, %v1088_v43  ;;  %v1099_v51 = vcombine.high %v1088_v43, %v1088_v43 }
 0x276   :  { %v1080_v48 = vpop.f32.mrb[26].mxu1 }
 0x277   :  { %v1089_v54 = vadd.f32 %v1080_v48, %v7720_v18  ;;  %v6185_v55 = vpop.f32.mrb[27].mxu1  ;;  %6204 = vmatmul.mubr.msk.f32.gmra.mrb[42].mxu0 %vm1142_vm4, %v1140_v47 }
 0x278   :  { %6206 = vmatprep.mubr.msk.f32.mxu0 %vm7124_vm0, %v9400_v6 }
 0x279   :  { %v1141_v56 = vcombine.low %v1099_v51, %v1089_v54 }
 0x27b   :  { %6207 = vmatmul.mubr.msk.f32.gmra.mrb[44].mxu0 %vm1142_vm4, %v1141_v56 }
 0x27c   :  { %6238 = vmatprep.mubr.msk.f32.mxu0 %vm7124_vm0, %v9400_v6 }
 0x322   :  { %v1330_v4 = vpop.f32.mrb[28].mxu1 }
 0x323   :  { %v1331_v50 = vadd.f32 %v5476_v57, %v1330_v4  ;;  %v6219_v11 = vpop.f32.mrb[29].mxu1 }
 0x325   :  { %v1374_v17 = vcombine.high %v1331_v50, %v1331_v50  ;;  %v1690_v26 = vmul.f32 %v7766_v58, %v1331_v50  ;;  %v2663_v27 = vmul.f32 %v7769_v63, %v1331_v50  ;;  %v1976_v30 = vmul.f32 %v7775_v7, %v1331_v50 }
 0x326   :  { %v1335_v21 = vpop.f32.mrb[30].mxu1  ;;  %v3155_v32 = vmul.f32 %v7772_v0, %v1331_v50 }
 0x327   :  { %v1336_v22 = vadd.f32 %v5476_v57, %v1335_v21  ;;  %v6222_v23 = vpop.f32.mrb[31].mxu1  ;;  %v1691_v24 = vmul.f32 %v7779_v12, %v1374_v17  ;;  %v2664_v25 = vmul.f32 %v7783_v13, %v1374_v17  ;;  %v3156_v28 = vmul.f32 %v7787_v16, %v1374_v17 }
 0x328   :  { %v1977_v31 = vmul.f32 %v7791_v20, %v1374_v17 }
 0x329   :  { %v1375_v29 = vcombine.high %v1336_v22, %v1336_v22  ;;  %v1978_v34 = vmul.f32 %v7775_v7, %v1336_v22  ;;  %v1692_v35 = vmul.f32 %v7766_v58, %v1336_v22  ;;  %v2192_v36 = vcombine.low %v1690_v26, %v1691_v24 }
 0x32a   :  { %v1340_v33 = vpop.f32.mrb[32].mxu1  ;;  %v2678_v37 = vcombine.low %v2663_v27, %v2664_v25  ;;  %v2665_v47 = vmul.f32 %v7769_v63, %v1336_v22  ;;  %v3157_v48 = vmul.f32 %v7772_v0, %v1336_v22  ;;  %v3170_v54 = vcombine.low %v3155_v32, %v3156_v28 }
 0x32b   :  { %v7803_v38 = vadd.f32 %v5476_v57, %v1340_v33  ;;  %v6225_v40 = vpop.f32.mrb[33].mxu1  ;;  %v1979_v42 = vmul.f32 %v7791_v20, %v1375_v29  ;;  %v1693_v43 = vmul.f32 %v7779_v12, %v1375_v29  ;;  %v2666_v44 = vmul.f32 %v7783_v13, %v1375_v29 }
 0x32c   :  { %v3158_v51 = vmul.f32 %v7787_v16, %v1375_v29  ;;  %v1991_v56 = vcombine.low %v1976_v30, %v1977_v31 }
 0x32d   :  { %v1376_v55 = vcombine.high %v7803_v38, %v7803_v38  ;;  %v1992_v4 = vcombine.low %v1978_v34, %v1979_v42  ;;  %v2193_v50 = vcombine.low %v1692_v35, %v1693_v43  ;;  %v2679_v17 = vcombine.low %v2665_v47, %v2666_v44 }
 0x32e   :  { %v1345_v11 = vpop.f32.mrb[34].mxu1  ;;  %v3171_v21 = vcombine.low %v3157_v48, %v3158_v51 }
 0x32f   :  { %v1346_v23 = vadd.f32 %v5476_v57, %v1345_v11  ;;  %v6228_v24 = vpop.f32.mrb[35].mxu1  ;;  %v7813_v25 = vpack.c.bf16 %v1992_v4, %v1991_v56  ;;  %v7815_v26 = vpack.c.bf16 %v2193_v50, %v2192_v36  ;;  %v1981_v22 = vmul.f32 %v7775_v7, %v1376_v55  ;;  %v7842_v4 = vld [vmem:[%s9479_s30] ss:$0 sm:$0xff] }
 0x330   :  { %v7818_v27 = vpack.c.bf16 %v2679_v17, %v2678_v37  ;;  %v7820_v28 = vpack.c.bf16 %v3171_v21, %v3170_v54  ;;  %v1695_v34 = vmul.f32 %v7766_v58, %v1376_v55  ;;  %v2668_v35 = vmul.f32 %v7769_v63, %v1376_v55 }
 0x331   :  { %v1377_v29 = vcombine.high %v1346_v23, %v1346_v23  ;;  %v1982_v30 = vmul.f32 %v7791_v20, %v1346_v23  ;;  %v1696_v31 = vmul.f32 %v7779_v12, %v1346_v23  ;;  %v2669_v32 = vmul.f32 %v7783_v13, %v1346_v23 }
 0x332   :  { %v1350_v33 = vpop.f32.mrb[36].mxu1  ;;  %v3161_v36 = vmul.f32 %v7787_v16, %v1346_v23  ;;  %v3160_v48 = vmul.f32 %v7772_v0, %v1376_v55 }
 0x333   :  { %v7828_v40 = vadd.f32 %v5476_v57, %v1350_v33  ;;  %v6231_v37 = vpop.f32.mrb[37].mxu1  ;;  %v2092_v42 = vcombine.low %v1981_v22, %v1982_v30  ;;  %v1983_v43 = vmul.f32 %v7775_v7, %v1377_v29  ;;  %v2292_v44 = vcombine.low %v1695_v34, %v1696_v31 }
 0x334   :  { %v2778_v47 = vcombine.low %v2668_v35, %v2669_v32  ;;  %v1697_v54 = vmul.f32 %v7766_v58, %v1377_v29  ;;  %v2670_v50 = vmul.f32 %v7769_v63, %v1377_v29  ;;  %v3162_v55 = vmul.f32 %v7772_v0, %v1377_v29 }
 0x335   :  { %v1984_v51 = vmul.f32 %v7791_v20, %v7828_v40  ;;  %v1698_v56 = vmul.f32 %v7779_v12, %v7828_v40  ;;  %v2671_v57 = vmul.f32 %v7783_v13, %v7828_v40  ;;  %v3163_v11 = vmul.f32 %v7787_v16, %v7828_v40 }
 0x336   :  { %v3270_v17 = vcombine.low %v3160_v48, %v3161_v36 }
 0x337   :  { %v2093_v21 = vcombine.low %v1983_v43, %v1984_v51  ;;  %v2293_v23 = vcombine.low %v1697_v54, %v1698_v56  ;;  %v2779_v22 = vcombine.low %v2670_v50, %v2671_v57  ;;  %v3271_v30 = vcombine.low %v3162_v55, %v3163_v11 }
 0x338   :  { %v1219_v24 = vpop.f32.mrb[36].mxu0 }
 0x339   :  { %v1220_v31 = vadd.f32 %v7842_v4, %v1219_v24  ;;  %v6196_v32 = vpop.f32.mrb[37].mxu0  ;;  %v7849_v33 = vpack.c.bf16 %v2093_v21, %v2092_v42  ;;  %v7851_v34 = vpack.c.bf16 %v2293_v23, %v2292_v44  ;;  %v7853_v35 = vpack.c.bf16 %v2779_v22, %v2778_v47 }
 0x33a   :  { %v7855_v37 = vpack.c.bf16 %v3271_v30, %v3270_v17 }
 0x33b   :  { %v7858_v29 = vmul.f32 %v7766_v58, %v1220_v31  ;;  %v1359_v43 = vcombine.high %v1220_v31, %v1220_v31  ;;  %v7861_v48 = vmul.f32 %v7775_v7, %v1220_v31  ;;  %v7864_v51 = vmul.f32 %v7769_v63, %v1220_v31 }
 0x33c   :  { %v1224_v36 = vpop.f32.mrb[38].mxu0  ;;  %v7867_v42 = vmul.f32 %v7772_v0, %v1220_v31 }
 0x33d   :  { %v1225_v44 = vadd.f32 %v7842_v4, %v1224_v36  ;;  %v6199_v47 = vpop.f32.mrb[39].mxu0  ;;  %v1409_v54 = vcombine.low %v1220_v31, %v1359_v43  ;;  %v7871_v56 = vmul.f32 %v7779_v12, %v1359_v43  ;;  %v7874_v57 = vmul.f32 %v7791_v20, %v1359_v43 }
 0x33e   :  { %v7877_v50 = vmul.f32 %v7783_v13, %v1359_v43  ;;  %v7895_v30 = vmul.f32 %v7787_v16, %v1359_v43 }
 0x33f   :  { %v1360_v55 = vcombine.high %v1225_v44, %v1225_v44  ;;  %v7880_v11 = vmul.f32 %v7766_v58, %v1225_v44  ;;  %v7883_v17 = vmul.f32 %v7775_v7, %v1225_v44  ;;  %v7886_v21 = vmul.f32 %v7769_v63, %v1225_v44 }
 0x340   :  { %v7909_v24 = vmul.f32 %v7772_v0, %v1225_v44 }
 0x341   :  { %v1410_v31 = vcombine.low %v1225_v44, %v1360_v55  ;;  %v7898_v32 = vmul.f32 %v7779_v12, %v1360_v55  ;;  %v7901_v36 = vmul.f32 %v7791_v20, %v1360_v55  ;;  %v7904_v47 = vmul.f32 %v7783_v13, %v1360_v55 }
 0x342   :  { %v7912_v22 = vmul.f32 %v7787_v16, %v1360_v55 }
 0x343   :  { %v6946_v43 = vpack.i.bf16 %v1410_v31, %v1409_v54 }
 0x345   :  { %6947 = vrot.lane.b32.xlu0 %v6946_v43, %s7126_s7 }
 0x346   :  { %v1229_v44 = vpop.f32.mrb[40].mxu0 }
 0x347   :  { %v7924_v55 = vadd.f32 %v7842_v4, %v1229_v44  ;;  %v6202_v54 = vpop.f32.mrb[41].mxu0 }
 0x349   :  { %1415 = vrot.lane.b32.xlu1 %v7924_v55, %s7126_s7  ;;  %v1361_v31 = vcombine.high %v7924_v55, %v7924_v55 }
 0x34a   :  { %v1234_v49 = vpop.f32.mrb[42].mxu0 }
 0x34b   :  { %v1235_v6 = vadd.f32 %v7842_v4, %v1234_v49  ;;  %v6205_v5 = vpop.f32.mrb[43].mxu0  ;;  %v7932_v10 = vmul.f32 %v7766_v58, %v1361_v31  ;;  %v7935_v43 = vmul.f32 %v7775_v7, %v1361_v31  ;;  %v7938_v44 = vmul.f32 %v7769_v63, %v1361_v31 }
 0x34c   :  { %v7953_v46 = vmul.f32 %v7772_v0, %v1361_v31 }
 0x34d   :  { %v7941_v54 = vmul.f32 %v7779_v12, %v1235_v6  ;;  %v7944_v23 = vmul.f32 %v7791_v20, %v1235_v6  ;;  %v7947_v1 = vmul.f32 %v7783_v13, %v1235_v6  ;;  %v7950_v5 = vmul.f32 %v7787_v16, %v1235_v6 }
 0x34e   :  { %v1239_v49 = vpop.f32.mrb[44].mxu0  ;;  %v1362_v60 = vcombine.high %v1235_v6, %v1235_v6  ;;  %v1516_v53 = vcombine.low %v1361_v31, %v1235_v6 }
 0x34f   :  { %v1240_v59 = vadd.f32 %v7842_v4, %v1239_v49  ;;  %v6208_v52 = vpop.f32.mrb[45].mxu0  ;;  %v1514_v45 = vcombine.low %v7932_v10, %v7941_v54 }
 0x350   :  { %v7963_v18 = vmul.f32 %v7766_v58, %v1362_v60  ;;  %v7966_v6 = vmul.f32 %v7775_v7, %v1362_v60  ;;  %v7977_v49 = vmul.f32 %v7769_v63, %v1362_v60  ;;  %v7983_v41 = vmul.f32 %v7772_v0, %v1362_v60 }
 0x351   :  { %v7970_v4 = vcombine.high %v1240_v59, %v1240_v59  ;;  %v1517_v52 = vcombine.low %v1362_v60, %v1240_v59  ;;  %v1400_v10 = vmul.f32 %v7779_v12, %v1240_v59  ;;  %v7974_v54 = vmul.f32 %v7791_v20, %v1240_v59 }
 0x352   :  { %v7980_v39 = vmul.f32 %v7783_v13, %v1240_v59  ;;  %v7986_v19 = vmul.f32 %v7787_v16, %v1240_v59  ;;  %v9485_v20 = vcombine.low %v7880_v11, %v7898_v32  ;;  %v9486_v11 = vcombine.low %v7861_v48, %v7874_v57 }
 0x353   :  { %1522 = vrot.lane.b32.xlu1 %v7970_v4, %s7126_s7  ;;  %v6951_v31 = vpack.i.bf16 %v1517_v52, %v1516_v53  ;;  %v1515_v12 = vcombine.low %v7963_v18, %v1400_v10  ;;  %v9482_v52 = vmov 0.0   ;;  %v1980_v32 = vmul.f32 %v7775_v7, %v7803_v38 }
 0x354   :  { %v9487_v48 = vcombine.low %v7883_v17, %v7901_v36  ;;  %v8093_v57 = vcombine.high %v7828_v40, %v7828_v40  ;;  %v9488_v17 = vcombine.low %v7935_v43, %v7944_v23  ;;  %v1717_v40 = vmul.f32 %v7775_v7, %v7970_v4 }
 0x355   :  { %6952 = vrot.lane.b32.xlu0 %v6951_v31, %s7126_s7  ;;  %v9483_v31 = vmov 0.0|0.0  }
 0x356   :  { %v1985_v36 = vmul.f32 %v7775_v7, %v8093_v57 }
 0x3b7   :  { %v6948_v60 = vpop.permute.xlu0 %6947 }
 0x3b8   :  { %v6950_v59 = vunpack.i.h.bf16 %v6948_v60  ;;  %v6949_v16 = vunpack.i.l.bf16 %v6948_v60  ;;  %v9484_v60 = vcombine.low %v7858_v29, %v7871_v56  ;;  %v1396_v29 = vmul.f32 %v7766_v58, %v7924_v55 }
 0x3ba   :  { %v8004_v18 = vpack.c.bf16 %v6950_v59, %v6949_v16 }
 0x3bb   :  { %v8010_v10 = vpop.permute.xlu1 %1415 }
 0x3bc   :  { %6778 = vmatpush3.bf16.xpose.msk.msra.mxu0 %vm8000_vm1, %v8004_v18 }
 0x3bd   :  { %6236 = vmatprep.subr.mxu0 %v9482_v52 }
 0x3c4   :  { %6237 = vmatpush3.xpose.msk.msra.mxu0 %vm1142_vm4, %v8010_v10 }
 0x3c5   :  { %6783 = vmatprep.subr.bf16.mxu0 %v9483_v31  ;;  %v8045_v56 = vpop.permute.xlu1 %1522 }
 0x3c7   :  { %6239 = vmatmul.mubr.msk.f32.vlgmr.msra.gmra.mrb[46].mxu0 %vm1142_vm4, %v9484_v60  ;;  %v6953_v59 = vpop.permute.xlu0 %6952 }
 0x3c8   :  { %v6955_v16 = vunpack.i.h.bf16 %v6953_v59  ;;  %v6954_v13 = vunpack.i.l.bf16 %v6953_v59  ;;  %6786 = vmatpush3.bf16.xpose.msk.msra.mxu0 %vm8000_vm1, %v8004_v18  ;;  %6241 = vmatprep.mubr.msk.f32.mxu0 %vm7124_vm0, %v9482_v52 }
 0x3c9   :  { %6266 = vmatprep.subr.mxu0 %v9482_v52 }
 0x3ca   :  { %v8025_v14 = vpack.c.bf16 %v6955_v16, %v6954_v13 }
 0x3cb   :  { %6242 = vmatmul.mubr.msk.f32.gmra.mrb[48].mxu0 %vm1142_vm4, %v9485_v20 }
 0x3cc   :  { %6782 = vmatpush3.bf16.xpose.msk.msra.mxu1 %vm8000_vm1, %v8025_v14  ;;  %6244 = vmatprep.mubr.msk.f32.mxu0 %vm7124_vm0, %v9482_v52 }
 0x3cd   :  { %6251 = vmatprep.subr.mxu1 %v9482_v52 }
 0x3cf   :  { %6245 = vmatmul.mubr.msk.f32.gmra.mrb[50].mxu0 %vm1142_vm4, %v1396_v29 }
 0x3d0   :  { %6267 = vmatpush3.xpose.msk.msra.mxu0 %vm1142_vm4, %v8010_v10  ;;  %6268 = vmatprep.mubr.msk.f32.mxu0 %vm7124_vm0, %v9482_v52 }
 0x3d1   :  { %6791 = vmatprep.subr.bf16.mxu0 %v9483_v31 }
 0x3d3   :  { %6269 = vmatmul.mubr.msk.f32.vlgmr.msra.gmra.mrb[52].mxu0 %vm1142_vm4, %v9486_v11 }
 0x3d4   :  { %6252 = vmatpush3.xpose.msk.msra.mxu1 %vm1142_vm4, %v8045_v56  ;;  %6793 = vmatpush3.bf16.msra.mxu0 %v7813_v25  ;;  %v1401_v25 = vmul.f32 %v7766_v58, %v7970_v4 }
 0x3d5   :  { %6271 = vmatprep.mubr.msk.f32.mxu0 %vm7124_vm0, %v9482_v52  ;;  %6787 = vmatprep.subr.bf16.mxu1 %v9483_v31 }
 0x3d6   :  { %6296 = vmatprep.subr.mxu0 %v9482_v52 }
 0x3d7   :  { %6254 = vmatmul.mubr.msk.f32.vlgmr.msra.gmra.mrb[38].mxu1 %vm1142_vm4, %v1514_v45  ;;  %6272 = vmatmul.mubr.msk.f32.gmra.mrb[54].mxu0 %vm1142_vm4, %v9487_v48  ;;  %v1712_v45 = vmul.f32 %v7775_v7, %v7924_v55 }
 0x3d8   :  { %6790 = vmatpush3.bf16.xpose.msk.msra.mxu1 %vm8000_vm1, %v8025_v14  ;;  %6297 = vmatpush3.msk.msra.mxu0 %vm2004_vm2, %v1980_v32 }
 0x3d9   :  { %6256 = vmatprep.mubr.msk.f32.mxu1 %vm7124_vm0, %v9482_v52  ;;  %6274 = vmatprep.mubr.msk.f32.mxu0 %vm7124_vm0, %v9482_v52 }
 0x3da   :  { %6281 = vmatprep.subr.mxu1 %v9482_v52  ;;  %6797 = vmatprep.subr.bf16.mxu0 %v9483_v31 }
 0x3db   :  { %6257 = vmatmul.mubr.msk.f32.gmra.mrb[40].mxu1 %vm1142_vm4, %v1515_v12  ;;  %6275 = vmatmul.mubr.msk.f32.gmra.mrb[56].mxu0 %vm1142_vm4, %v1712_v45  ;;  %v9489_v12 = vcombine.low %v7966_v6, %v7974_v54 }
 0x3dc   :  { %6259 = vmatprep.mubr.msk.f32.mxu1 %vm7124_vm0, %v9482_v52  ;;  %6298 = vmatprep.mubr.msk.f32.mxu0 %vm7124_vm0, %v9482_v52 }
 0x3df   :  { %6260 = vmatmul.mubr.msk.f32.gmra.mrb[42].mxu1 %vm1142_vm4, %v1401_v25 }
 0x3e0   :  { %6282 = vmatpush3.xpose.msk.msra.mxu1 %vm1142_vm4, %v8045_v56  ;;  %6283 = vmatprep.mubr.msk.f32.mxu1 %vm7124_vm0, %v9482_v52 }
 0x3e1   :  { %6794 = vmatprep.subr.bf16.mxu1 %v9483_v31 }
 0x3e3   :  { %6284 = vmatmul.mubr.msk.f32.vlgmr.msra.gmra.mrb[44].mxu1 %vm1142_vm4, %v9488_v17 }
 0x3e4   :  { %6796 = vmatpush3.bf16.msra.mxu1 %v7849_v33  ;;  %6286 = vmatprep.mubr.msk.f32.mxu1 %vm7124_vm0, %v9482_v52 }
 0x3e5   :  { %6311 = vmatprep.subr.mxu1 %v9482_v52 }
 0x3e7   :  { %6287 = vmatmul.mubr.msk.f32.gmra.mrb[46].mxu1 %vm1142_vm4, %v9489_v12 }
 0x3e8   :  { %6312 = vmatpush3.msk.msra.mxu1 %vm2004_vm2, %v1985_v36  ;;  %6289 = vmatprep.mubr.msk.f32.mxu1 %vm7124_vm0, %v9482_v52 }
 0x3e9   :  { %6800 = vmatprep.subr.bf16.mxu1 %v9483_v31 }
 0x3eb   :  { %6290 = vmatmul.mubr.msk.f32.gmra.mrb[48].mxu1 %vm1142_vm4, %v1717_v40 }
 0x3ec   :  { %6313 = vmatprep.mubr.msk.f32.mxu1 %vm7124_vm0, %v9482_v52 }
 0x49a   :  { %v1495_v33 = vpop.f32.mrb[46].mxu0 }
 0x49b   :  { %v6240_v23 = vpop.f32.mrb[47].mxu0 }
 0x49c   :  { %v1616_v23 = vmul.f32 0.35355338, %v1495_v33 }
 0x49e   :  { %v1500_v43 = vpop.f32.mrb[48].mxu0 }
 0x49f   :  { %v6243_v6 = vpop.f32.mrb[49].mxu0 }
 0x4a2   :  { %v1505_v54 = vpop.f32.mrb[50].mxu0 }
 0x4a3   :  { %v6246_v20 = vpop.f32.mrb[51].mxu0  ;;  %v1618_v15 = vmul.f32 0.35355338, %v1505_v54 }
 0x4a6   :  { %v1797_v13 = vpop.f32.mrb[52].mxu0 }
 0x4a7   :  { %v1904_v60 = vmul.f32 0.35355338, %v1797_v13  ;;  %v6270_v59 = vpop.f32.mrb[53].mxu0 }
 0x4a8   :  { %v1617_v59 = vmul.f32 0.35355338, %v1500_v43 }
 0x4a9   :  { %v1910_v16 = vsel %vm1622_vm3, %v1904_v60, -inf }
 0x4aa   :  { %v1602_v7 = vpop.f32.mrb[38].mxu1  ;;  %1911 = vmax.xlane.f32.xlu0 %v1910_v16  ;;  %v1802_v29 = vpop.f32.mrb[54].mxu0  ;;  %v1623_v16 = vsel %vm1622_vm3, %v1616_v23, -inf }
 0x4ab   :  { %v1905_v11 = vmul.f32 0.35355338, %v1802_v29  ;;  %v6255_v32 = vpop.f32.mrb[39].mxu1  ;;  %v6273_v48 = vpop.f32.mrb[55].mxu0  ;;  %v8124_v9 = vmul.f32 0.35355338, %v1602_v7 }
 0x4ad   :  { %v1913_v45 = vsel %vm1622_vm3, %v1905_v11, -inf }
 0x4ae   :  { %v1607_v25 = vpop.f32.mrb[40].mxu1  ;;  %1914 = vmax.xlane.f32.xlu1 %v1913_v45  ;;  %v1807_v17 = vpop.f32.mrb[56].mxu0 }
 0x4af   :  { %v1906_v36 = vmul.f32 0.35355338, %v1807_v17  ;;  %v6258_v12 = vpop.f32.mrb[41].mxu1  ;;  %v6276_v40 = vpop.f32.mrb[57].mxu0  ;;  %v1626_v17 = vsel %vm1622_vm3, %v1617_v59, -inf }
 0x4b1   :  { %v1916_v6 = vsel %vm1629_vm5, %v1906_v36, -inf }
 0x4b2   :  { %v1612_v20 = vpop.f32.mrb[42].mxu1  ;;  %1917 = vmax.xlane.f32.xlu0 %v1916_v6  ;;  %v1630_v6 = vsel %vm1629_vm5, %v1618_v15, -inf }
 0x4b3   :  { %v6261_v13 = vpop.f32.mrb[43].mxu1 }
 0x4b6   :  { %v1890_v29 = vpop.f32.mrb[44].mxu1  ;;  %1624 = vmax.xlane.f32.xlu0 %v1623_v16 }
 0x4b7   :  { %v1907_v32 = vmul.f32 0.35355338, %v1890_v29  ;;  %v6285_v48 = vpop.f32.mrb[45].mxu1  ;;  %v8128_v29 = vmul.f32 0.35355338, %v1607_v25 }
 0x4b8   :  { %v8130_v48 = vmul.f32 0.35355338, %v1612_v20 }
 0x4b9   :  { %v1919_v45 = vsel %vm1622_vm3, %v1907_v32, -inf  ;;  %v1636_v7 = vsel %vm1622_vm3, %v8128_v29, -inf }
 0x4ba   :  { %v1895_v12 = vpop.f32.mrb[46].mxu1  ;;  %1920 = vmax.xlane.f32.xlu1 %v1919_v45  ;;  %1627 = vmax.xlane.f32.xlu0 %v1626_v17  ;;  %v1633_v17 = vsel %vm1622_vm3, %v8124_v9, -inf }
 0x4bb   :  { %v1908_v33 = vmul.f32 0.35355338, %v1895_v12  ;;  %v6288_v40 = vpop.f32.mrb[47].mxu1  ;;  %v1639_v12 = vsel %vm1629_vm5, %v8130_v48, -inf }
 0x4bd   :  { %v1922_v43 = vsel %vm1622_vm3, %v1908_v33, -inf }
 0x4be   :  { %v1900_v13 = vpop.f32.mrb[48].mxu1  ;;  %1923 = vmax.xlane.f32.xlu1 %v1922_v43  ;;  %1631 = vmax.xlane.f32.xlu0 %v1630_v6 }
 0x4bf   :  { %v1909_v16 = vmul.f32 0.35355338, %v1900_v13  ;;  %v6291_v54 = vpop.f32.mrb[49].mxu1 }
 0x4c1   :  { %v1925_v45 = vsel %vm1629_vm5, %v1909_v16, -inf }
 0x4c2   :  { %1926 = vmax.xlane.f32.xlu1 %v1925_v45  ;;  %1634 = vmax.xlane.f32.xlu0 %v1633_v17 }
 0x4c6   :  { %1637 = vmax.xlane.f32.xlu1 %v1636_v7  ;;  %1640 = vmax.xlane.f32.xlu0 %v1639_v12 }
 0x537   :  { %v1912_v40 = vpop.xlane.xlu0 %1911 }
 0x538   :  { %v1928_v25 = vsub.f32 %v1904_v60, %v1912_v40 }
 0x53a   :  { %v1934_v43 = vmul.f32 1.442695, %v1928_v25 }
 0x53b   :  { %v1915_v20 = vpop.xlane.xlu1 %1914 }
 0x53c   :  { %6956 = vpow2.f32 %v1934_v43  ;;  %v1929_v6 = vsub.f32 %v1905_v11, %v1915_v20 }
 0x53e   :  { %v1936_v13 = vmul.f32 1.442695, %v1929_v6 }
 0x53f   :  { %v1918_v54 = vpop.xlane.xlu0 %1917 }
 0x540   :  { %6958 = vpow2.f32 %v1936_v13  ;;  %v1930_v8 = vsub.f32 %v1906_v36, %v1918_v54 }
 0x542   :  { %v1938_v45 = vmul.f32 1.442695, %v1930_v8 }
 0x543   :  { %v1625_v17 = vpop.xlane.xlu0 %1624 }
 0x544   :  { %6960 = vpow2.f32 %v1938_v45  ;;  %v1642_v3 = vsub.f32 %v1616_v23, %v1625_v17 }
 0x546   :  { %v8139_v2 = vpop.eup %6956  ;;  %v1648_v62 = vmul.f32 1.442695, %v1642_v3 }
 0x547   :  { %v1921_v61 = vpop.xlane.xlu1 %1920  ;;  %v1628_v7 = vpop.xlane.xlu0 %1627  ;;  %v1946_v60 = vsel %vm1622_vm3, %v8139_v2, 0.0 }
 0x548   :  { %6962 = vpow2.f32 %v1648_v62  ;;  %v1931_v12 = vsub.f32 %v1907_v32, %v1921_v61  ;;  %v1643_v40 = vsub.f32 %v1617_v59, %v1628_v7  ;;  %1947 = vadd.xlane.f32.xlu1 %v1946_v60 }
 0x54a   :  { %v8143_v11 = vpop.eup %6958  ;;  %v1940_v25 = vmul.f32 1.442695, %v1931_v12  ;;  %v1650_v36 = vmul.f32 1.442695, %v1643_v40 }
 0x54b   :  { %v1924_v8 = vpop.xlane.xlu1 %1923  ;;  %v1632_v43 = vpop.xlane.xlu0 %1631  ;;  %v1949_v23 = vsel %vm1622_vm3, %v8143_v11, 0.0 }
 0x54c   :  { %6964 = vpow2.f32 %v1940_v25  ;;  %v1932_v3 = vsub.f32 %v1908_v33, %v1924_v8  ;;  %v1644_v20 = vsub.f32 %v1618_v15, %v1632_v43  ;;  %1950 = vadd.xlane.f32.xlu0 %v1949_v23 }
 0x54d   :  { %6966 = vpow2.f32 %v1650_v36 }
 0x54e   :  { %v8147_v6 = vpop.eup %6960  ;;  %v1942_v62 = vmul.f32 1.442695, %v1932_v3  ;;  %v1652_v61 = vmul.f32 1.442695, %v1644_v20 }
 0x54f   :  { %v1927_v59 = vpop.xlane.xlu1 %1926  ;;  %v1635_v32 = vpop.xlane.xlu0 %1634  ;;  %v1952_v13 = vsel %vm1629_vm5, %v8147_v6, 0.0 }
 0x550   :  { %6968 = vpow2.f32 %v1942_v62  ;;  %v1933_v54 = vsub.f32 %v1909_v16, %v1927_v59  ;;  %v1645_v45 = vsub.f32 %v8124_v9, %v1635_v32  ;;  %1953 = vadd.xlane.f32.xlu1 %v1952_v13 }
 0x551   :  { %6970 = vpow2.f32 %v1652_v61 }
 0x552   :  { %v8152_v17 = vpop.eup %6962  ;;  %v1944_v15 = vmul.f32 1.442695, %v1933_v54  ;;  %v1654_v33 = vmul.f32 1.442695, %v1645_v45 }
 0x553   :  { %v1638_v7 = vpop.xlane.xlu1 %1637  ;;  %v1641_v60 = vpop.xlane.xlu0 %1640  ;;  %v1660_v12 = vsel %vm1622_vm3, %v8152_v17, 0.0 }
 0x554   :  { %6972 = vpow2.f32 %v1944_v15  ;;  %v1646_v40 = vsub.f32 %v8128_v29, %v1638_v7  ;;  %v1647_v25 = vsub.f32 %v8130_v48, %v1641_v60  ;;  %1661 = vadd.xlane.f32.xlu0 %v1660_v12 }
 0x555   :  { %6974 = vpow2.f32 %v1654_v33 }
 0x556   :  { %v8158_v16 = vpop.eup %6964  ;;  %v1656_v9 = vmul.f32 1.442695, %v1646_v40  ;;  %v1658_v36 = vmul.f32 1.442695, %v1647_v25 }
 0x557   :  { %v8160_v8 = vpop.eup %6966  ;;  %v1955_v43 = vsel %vm1622_vm3, %v8158_v16, 0.0 }
 0x558   :  { %6976 = vpow2.f32 %v1656_v9  ;;  %1956 = vadd.xlane.f32.xlu1 %v1955_v43  ;;  %v1663_v23 = vsel %vm1622_vm3, %v8160_v8, 0.0 }
 0x559   :  { %6978 = vpow2.f32 %v1658_v36  ;;  %1664 = vadd.xlane.f32.xlu0 %v1663_v23 }
 0x55a   :  { %v8166_v29 = vpop.eup %6968 }
 0x55b   :  { %v8168_v48 = vpop.eup %6970  ;;  %v1958_v3 = vsel %vm1622_vm3, %v8166_v29, 0.0 }
 0x55c   :  { %1959 = vadd.xlane.f32.xlu1 %v1958_v3  ;;  %v1666_v20 = vsel %vm1629_vm5, %v8168_v48, 0.0 }
 0x55d   :  { %1667 = vadd.xlane.f32.xlu0 %v1666_v20 }
 0x55e   :  { %v8174_v62 = vpop.eup %6972 }
 0x55f   :  { %v8176_v61 = vpop.eup %6974  ;;  %v1961_v59 = vsel %vm1629_vm5, %v8174_v62, 0.0 }
 0x560   :  { %1962 = vadd.xlane.f32.xlu1 %v1961_v59  ;;  %v1669_v32 = vsel %vm1622_vm3, %v8176_v61, 0.0 }
 0x561   :  { %1670 = vadd.xlane.f32.xlu0 %v1669_v32 }
 0x562   :  { %v8182_v13 = vpop.eup %6976 }
 0x563   :  { %v8184_v54 = vpop.eup %6978  ;;  %v1672_v45 = vsel %vm1622_vm3, %v8182_v13, 0.0 }
 0x564   :  { %1673 = vadd.xlane.f32.xlu1 %v1672_v45  ;;  %v1675_v15 = vsel %vm1629_vm5, %v8184_v54, 0.0 }
 0x565   :  { %1676 = vadd.xlane.f32.xlu0 %v1675_v15 }
 0x5d5   :  { %v1948_v33 = vpop.xlane.xlu1 %1947 }
 0x5d6   :  { %6980 = vrcp.f32 %v1948_v33 }
 0x5d9   :  { %v1951_v7 = vpop.xlane.xlu0 %1950 }
 0x5da   :  { %6982 = vrcp.f32 %v1951_v7 }
 0x5dd   :  { %v1954_v60 = vpop.xlane.xlu1 %1953 }
 0x5de   :  { %6984 = vrcp.f32 %v1954_v60 }
 0x5e0   :  { %v6981_v12 = vpop.eup %6980 }
 0x5e1   :  { %v1965_v40 = vmul.f32 %v6981_v12, %v8139_v2  ;;  %v1662_v25 = vpop.xlane.xlu0 %1661  ;;  %v1694_v2 = vmul.f32 %v7766_v58, %v7803_v38 }
 0x5e2   :  { %6986 = vrcp.f32 %v1662_v25 }
 0x5e3   :  { %6299 = vmatmul.mubr.msk.f32.vlgmr.msra.gmra.mrb[58].mxu0 %vm1622_vm3, %v1965_v40 }
 0x5e4   :  { %v6983_v9 = vpop.eup %6982  ;;  %6799 = vmatpush3.bf16.msra.mxu0 %v7815_v26  ;;  %6301 = vmatprep.mubr.msk.f32.mxu0 %vm7124_vm0, %v9482_v52 }
 0x5e5   :  { %v1957_v36 = vpop.xlane.xlu1 %1956  ;;  %6326 = vmatprep.subr.mxu0 %v9482_v52  ;;  %v1967_v43 = vmul.f32 %v6983_v9, %v8143_v11  ;;  %v1699_v9 = vmul.f32 %v7766_v58, %v8093_v57  ;;  %v9490_v58 = vcombine.low %v7864_v51, %v7877_v50  ;;  %v2667_v51 = vmul.f32 %v7769_v63, %v7803_v38 }
 0x5e6   :  { %6988 = vrcp.f32 %v1957_v36  ;;  %v1665_v23 = vpop.xlane.xlu0 %1664  ;;  %v9491_v50 = vcombine.low %v7886_v21, %v7904_v47  ;;  %v2399_v21 = vmul.f32 %v7769_v63, %v7924_v55 }
 0x5e7   :  { %6990 = vrcp.f32 %v1665_v23  ;;  %6302 = vmatmul.mubr.msk.f32.gmra.mrb[60].mxu0 %vm1622_vm3, %v1967_v43  ;;  %v9493_v43 = vcombine.low %v7977_v49, %v7980_v39 }
 0x5e8   :  { %v6985_v3 = vpop.eup %6984  ;;  %6327 = vmatpush3.msk.msra.mxu0 %vm2004_vm2, %v1694_v2  ;;  %6304 = vmatprep.mubr.msk.f32.mxu0 %vm7124_vm0, %v9482_v52 }
 0x5e9   :  { %v1960_v26 = vpop.xlane.xlu1 %1959  ;;  %v1969_v20 = vmul.f32 %v6985_v3, %v8147_v6  ;;  %6803 = vmatprep.subr.bf16.mxu0 %v9483_v31 }
 0x5ea   :  { %6992 = vrcp.f32 %v1960_v26  ;;  %v1668_v11 = vpop.xlane.xlu0 %1667 }
 0x5eb   :  { %6994 = vrcp.f32 %v1668_v11  ;;  %6305 = vmatmul.mubr.msk.f32.gmra.mrb[62].mxu0 %vm1622_vm3, %v1969_v20 }
 0x5ec   :  { %v6987_v59 = vpop.eup %6986  ;;  %6328 = vmatprep.mubr.msk.f32.mxu0 %vm7124_vm0, %v9482_v52 }
 0x5ed   :  { %v1679_v32 = vmul.f32 %v6987_v59, %v8152_v17  ;;  %v1963_v45 = vpop.xlane.xlu1 %1962 }
 0x5ee   :  { %6996 = vrcp.f32 %v1963_v45  ;;  %v1671_v15 = vpop.xlane.xlu0 %1670 }
 0x5ef   :  { %6329 = vmatmul.mubr.msk.f32.vlgmr.msra.gmra.mrb[58].mxu0 %vm1622_vm3, %v1679_v32  ;;  %6998 = vrcp.f32 %v1671_v15 }
 0x5f0   :  { %v6989_v33 = vpop.eup %6988  ;;  %6806 = vmatpush3.bf16.xpose.msk.msra.mxu0 %vm8000_vm1, %v8004_v18  ;;  %6331 = vmatprep.mubr.msk.f32.mxu0 %vm7124_vm0, %v9482_v52 }
 0x5f1   :  { %v6991_v6 = vpop.eup %6990  ;;  %v1971_v7 = vmul.f32 %v6989_v33, %v8158_v16  ;;  %v1674_v60 = vpop.xlane.xlu1 %1673  ;;  %6356 = vmatprep.subr.mxu0 %v9482_v52 }
 0x5f2   :  { %v1681_v17 = vmul.f32 %v6991_v6, %v8160_v8  ;;  %7000 = vrcp.f32 %v1674_v60  ;;  %v1677_v25 = vpop.xlane.xlu0 %1676 }
 0x5f3   :  { %6314 = vmatmul.mubr.msk.f32.vlgmr.msra.gmra.mrb[50].mxu1 %vm1622_vm3, %v1971_v7  ;;  %7002 = vrcp.f32 %v1677_v25 }
 0x5f4   :  { %v6993_v12 = vpop.eup %6992  ;;  %6332 = vmatmul.mubr.msk.f32.gmra.mrb[60].mxu0 %vm1622_vm3, %v1681_v17  ;;  %6802 = vmatpush3.bf16.msra.mxu1 %v7851_v34 }
 0x5f5   :  { %v6995_v40 = vpop.eup %6994  ;;  %6316 = vmatprep.mubr.msk.f32.mxu1 %vm7124_vm0, %v9482_v52  ;;  %6334 = vmatprep.mubr.msk.f32.mxu0 %vm7124_vm0, %v9482_v52  ;;  %v1973_v16 = vmul.f32 %v6993_v12, %v8166_v29 }
 0x5f6   :  { %6341 = vmatprep.subr.mxu1 %v9482_v52  ;;  %v1683_v8 = vmul.f32 %v6995_v40, %v8168_v48 }
 0x5f7   :  { %6317 = vmatmul.mubr.msk.f32.gmra.mrb[52].mxu1 %vm1622_vm3, %v1973_v16 }
 0x5f8   :  { %v6997_v34 = vpop.eup %6996  ;;  %6335 = vmatmul.mubr.msk.f32.gmra.mrb[62].mxu0 %vm1622_vm3, %v1683_v8  ;;  %6342 = vmatpush3.msk.msra.mxu1 %vm2004_vm2, %v1699_v9 }
 0x5f9   :  { %6357 = vmatpush3.xpose.msk.msra.mxu0 %vm1142_vm4, %v8010_v10  ;;  %6319 = vmatprep.mubr.msk.f32.mxu1 %vm7124_vm0, %v9482_v52  ;;  %v1975_v29 = vmul.f32 %v6997_v34, %v8174_v62  ;;  %v6999_v48 = vpop.eup %6998 }
 0x5fa   :  { %6358 = vmatprep.mubr.msk.f32.mxu0 %vm7124_vm0, %v9482_v52  ;;  %6811 = vmatprep.subr.bf16.mxu0 %v9483_v31  ;;  %v1685_v62 = vmul.f32 %v6999_v48, %v8176_v61 }
 0x5fb   :  { %6320 = vmatmul.mubr.msk.f32.gmra.mrb[54].mxu1 %vm1622_vm3, %v1975_v29  ;;  %6807 = vmatprep.subr.bf16.mxu1 %v9483_v31 }
 0x5fc   :  { %6359 = vmatmul.mubr.msk.f32.vlgmr.msra.gmra.mrb[64].mxu0 %vm1142_vm4, %v9490_v58  ;;  %6343 = vmatprep.mubr.msk.f32.mxu1 %vm7124_vm0, %v9482_v52  ;;  %v7001_v36 = vpop.eup %7000 }
 0x5fd   :  { %6813 = vmatpush3.bf16.msra.mxu0 %v7818_v27  ;;  %6361 = vmatprep.mubr.msk.f32.mxu0 %vm7124_vm0, %v9482_v52  ;;  %v1687_v27 = vmul.f32 %v7001_v36, %v8182_v13  ;;  %v7003_v61 = vpop.eup %7002  ;;  %v9492_v13 = vcombine.low %v7938_v44, %v7947_v1  ;;  %v2404_v1 = vmul.f32 %v7769_v63, %v7970_v4 }
 0x5fe   :  { %6386 = vmatprep.subr.mxu0 %v9482_v52  ;;  %v1689_v47 = vmul.f32 %v7003_v61, %v8184_v54  ;;  %v2672_v54 = vmul.f32 %v7769_v63, %v8093_v57 }
 0x5ff   :  { %6344 = vmatmul.mubr.msk.f32.vlgmr.msra.gmra.mrb[50].mxu1 %vm1622_vm3, %v1685_v62 }
 0x600   :  { %6362 = vmatmul.mubr.msk.f32.gmra.mrb[66].mxu0 %vm1142_vm4, %v9491_v50  ;;  %6810 = vmatpush3.bf16.xpose.msk.msra.mxu1 %vm8000_vm1, %v8025_v14 }
 0x601   :  { %6387 = vmatpush3.msk.msra.mxu0 %vm2004_vm2, %v2667_v51  ;;  %6346 = vmatprep.mubr.msk.f32.mxu1 %vm7124_vm0, %v9482_v52 }
 0x602   :  { %6364 = vmatprep.mubr.msk.f32.mxu0 %vm7124_vm0, %v9482_v52  ;;  %6371 = vmatprep.subr.mxu1 %v9482_v52 }
 0x603   :  { %6347 = vmatmul.mubr.msk.f32.gmra.mrb[52].mxu1 %vm1622_vm3, %v1687_v27  ;;  %6817 = vmatprep.subr.bf16.mxu0 %v9483_v31 }
 0x604   :  { %6365 = vmatmul.mubr.msk.f32.gmra.mrb[68].mxu0 %vm1142_vm4, %v2399_v21  ;;  %6349 = vmatprep.mubr.msk.f32.mxu1 %vm7124_vm0, %v9482_v52 }
 0x605   :  { %6388 = vmatprep.mubr.msk.f32.mxu0 %vm7124_vm0, %v9482_v52 }
 0x607   :  { %6350 = vmatmul.mubr.msk.f32.gmra.mrb[54].mxu1 %vm1622_vm3, %v1689_v47 }
 0x608   :  { %6372 = vmatpush3.xpose.msk.msra.mxu1 %vm1142_vm4, %v8045_v56  ;;  %6373 = vmatprep.mubr.msk.f32.mxu1 %vm7124_vm0, %v9482_v52 }
 0x609   :  { %6814 = vmatprep.subr.bf16.mxu1 %v9483_v31 }
 0x60b   :  { %6374 = vmatmul.mubr.msk.f32.vlgmr.msra.gmra.mrb[56].mxu1 %vm1142_vm4, %v9492_v13 }
 0x60c   :  { %6816 = vmatpush3.bf16.msra.mxu1 %v7853_v35  ;;  %6376 = vmatprep.mubr.msk.f32.mxu1 %vm7124_vm0, %v9482_v52 }
 0x60d   :  { %6401 = vmatprep.subr.mxu1 %v9482_v52 }
 0x60f   :  { %6377 = vmatmul.mubr.msk.f32.gmra.mrb[58].mxu1 %vm1142_vm4, %v9493_v43 }
 0x610   :  { %6402 = vmatpush3.msk.msra.mxu1 %vm2004_vm2, %v2672_v54  ;;  %6379 = vmatprep.mubr.msk.f32.mxu1 %vm7124_vm0, %v9482_v52 }
 0x611   :  { %6821 = vmatprep.subr.bf16.mxu1 %v9483_v31 }
 0x613   :  { %6380 = vmatmul.mubr.msk.f32.gmra.mrb[60].mxu1 %vm1142_vm4, %v2404_v1 }
 0x614   :  { %6403 = vmatprep.mubr.msk.f32.mxu1 %vm7124_vm0, %v9482_v52 }
 0x6cf   :  { %v2484_v35 = vpop.f32.mrb[64].mxu0 }
 0x6d0   :  { %v2591_v44 = vmul.f32 0.35355338, %v2484_v35  ;;  %v6360_v39 = vpop.f32.mrb[65].mxu0 }
 0x6d2   :  { %v2597_v49 = vsel %vm1622_vm3, %v2591_v44, -inf }
 0x6d3   :  { %2598 = vmax.xlane.f32.xlu1 %v2597_v49  ;;  %v2489_v23 = vpop.f32.mrb[66].mxu0 }
 0x6d4   :  { %v2592_v2 = vmul.f32 0.35355338, %v2489_v23  ;;  %v6363_v3 = vpop.f32.mrb[67].mxu0 }
 0x6d6   :  { %v2600_v26 = vsel %vm1622_vm3, %v2592_v2, -inf }
 0x6d7   :  { %2601 = vmax.xlane.f32.xlu0 %v2600_v26  ;;  %v2494_v63 = vpop.f32.mrb[68].mxu0 }
 0x6d8   :  { %v2593_v20 = vmul.f32 0.35355338, %v2494_v63  ;;  %v6366_v11 = vpop.f32.mrb[69].mxu0 }
 0x6da   :  { %v2603_v59 = vsel %vm1629_vm5, %v2593_v20, -inf }
 0x6db   :  { %2604 = vmax.xlane.f32.xlu1 %v2603_v59 }
 0x6de   :  { %v2577_v32 = vpop.f32.mrb[56].mxu1 }
 0x6df   :  { %v2594_v45 = vmul.f32 0.35355338, %v2577_v32  ;;  %v6375_v15 = vpop.f32.mrb[57].mxu1 }
 0x6e1   :  { %v2606_v33 = vsel %vm1622_vm3, %v2594_v45, -inf }
 0x6e2   :  { %v2582_v6 = vpop.f32.mrb[58].mxu1  ;;  %2607 = vmax.xlane.f32.xlu0 %v2606_v33 }
 0x6e3   :  { %v2595_v7 = vmul.f32 0.35355338, %v2582_v6  ;;  %v6378_v60 = vpop.f32.mrb[59].mxu1 }
 0x6e5   :  { %v2609_v17 = vsel %vm1622_vm3, %v2595_v7, -inf }
 0x6e6   :  { %v2587_v12 = vpop.f32.mrb[60].mxu1  ;;  %2610 = vmax.xlane.f32.xlu1 %v2609_v17 }
 0x6e7   :  { %v2596_v40 = vmul.f32 0.35355338, %v2587_v12  ;;  %v6381_v25 = vpop.f32.mrb[61].mxu1 }
 0x6e9   :  { %v2612_v16 = vsel %vm1629_vm5, %v2596_v40, -inf }
 0x6ea   :  { %2613 = vmax.xlane.f32.xlu0 %v2612_v16 }
 0x760   :  { %v2599_v8 = vpop.xlane.xlu1 %2598 }
 0x761   :  { %v2615_v9 = vsub.f32 %v2591_v44, %v2599_v8  ;;  %v9494_v8 = vcombine.low %v7867_v42, %v7895_v30  ;;  %v9497_v30 = vcombine.low %v7983_v41, %v7986_v19 }
 0x763   :  { %v2621_v34 = vmul.f32 1.442695, %v2615_v9 }
 0x764   :  { %v2602_v29 = vpop.xlane.xlu0 %2601 }
 0x765   :  { %7004 = vpow2.f32 %v2621_v34  ;;  %v2616_v48 = vsub.f32 %v2592_v2, %v2602_v29  ;;  %v9495_v29 = vcombine.low %v7909_v24, %v7912_v22  ;;  %v9496_v24 = vcombine.low %v7953_v46, %v7950_v5 }
 0x766   :  { %v3164_v22 = vmul.f32 %v7772_v0, %v8093_v57  ;;  %v2896_v46 = vmul.f32 %v7772_v0, %v7970_v4 }
 0x767   :  { %v2623_v58 = vmul.f32 1.442695, %v2616_v48 }
 0x768   :  { %v2605_v62 = vpop.xlane.xlu1 %2604 }
 0x769   :  { %7006 = vpow2.f32 %v2623_v58  ;;  %v2617_v36 = vsub.f32 %v2593_v20, %v2605_v62 }
 0x76b   :  { %v2625_v51 = vmul.f32 1.442695, %v2617_v36 }
 0x76d   :  { %7008 = vpow2.f32 %v2625_v51 }
 0x76f   :  { %v7005_v50 = vpop.eup %7004  ;;  %v2608_v27 = vpop.xlane.xlu0 %2607 }
 0x770   :  { %v2618_v61 = vsub.f32 %v2594_v45, %v2608_v27  ;;  %v2633_v21 = vsel %vm1622_vm3, %v7005_v50, 0.0 }
 0x771   :  { %2634 = vadd.xlane.f32.xlu1 %v2633_v21 }
 0x772   :  { %v2627_v47 = vmul.f32 1.442695, %v2618_v61 }
 0x773   :  { %v7007_v13 = vpop.eup %7006  ;;  %v2611_v54 = vpop.xlane.xlu1 %2610 }
 0x774   :  { %7010 = vpow2.f32 %v2627_v47  ;;  %v2619_v43 = vsub.f32 %v2595_v7, %v2611_v54  ;;  %v2636_v1 = vsel %vm1622_vm3, %v7007_v13, 0.0 }
 0x775   :  { %2637 = vadd.xlane.f32.xlu0 %v2636_v1 }
 0x776   :  { %v2629_v35 = vmul.f32 1.442695, %v2619_v43 }
 0x777   :  { %v7009_v44 = vpop.eup %7008  ;;  %v2614_v39 = vpop.xlane.xlu0 %2613 }
 0x778   :  { %7012 = vpow2.f32 %v2629_v35  ;;  %v2620_v49 = vsub.f32 %v2596_v40, %v2614_v39  ;;  %v2639_v23 = vsel %vm1629_vm5, %v7009_v44, 0.0 }
 0x779   :  { %2640 = vadd.xlane.f32.xlu1 %v2639_v23 }
 0x77a   :  { %v2631_v2 = vmul.f32 1.442695, %v2620_v49 }
 0x77c   :  { %7014 = vpow2.f32 %v2631_v2 }
 0x77e   :  { %v7011_v3 = vpop.eup %7010 }
 0x77f   :  { %v2642_v26 = vsel %vm1622_vm3, %v7011_v3, 0.0 }
 0x780   :  { %2643 = vadd.xlane.f32.xlu0 %v2642_v26 }
 0x782   :  { %v7013_v63 = vpop.eup %7012 }
 0x783   :  { %v2645_v20 = vsel %vm1622_vm3, %v7013_v63, 0.0 }
 0x784   :  { %2646 = vadd.xlane.f32.xlu1 %v2645_v20 }
 0x786   :  { %v7015_v11 = vpop.eup %7014 }
 0x787   :  { %v2648_v59 = vsel %vm1629_vm5, %v7015_v11, 0.0 }
 0x788   :  { %2649 = vadd.xlane.f32.xlu0 %v2648_v59 }
 0x7fe   :  { %v2635_v32 = vpop.xlane.xlu1 %2634 }
 0x7ff   :  { %7016 = vrcp.f32 %v2635_v32 }
 0x802   :  { %v2638_v45 = vpop.xlane.xlu0 %2637 }
 0x803   :  { %7018 = vrcp.f32 %v2638_v45 }
 0x806   :  { %v2641_v15 = vpop.xlane.xlu1 %2640 }
 0x807   :  { %7020 = vrcp.f32 %v2641_v15 }
 0x809   :  { %v7017_v33 = vpop.eup %7016 }
 0x80a   :  { %v2652_v6 = vmul.f32 %v7017_v33, %v7005_v50 }
 0x80c   :  { %6389 = vmatmul.mubr.msk.f32.vlgmr.msra.gmra.mrb[58].mxu0 %vm1622_vm3, %v2652_v6 }
 0x80d   :  { %v7019_v7 = vpop.eup %7018  ;;  %6820 = vmatpush3.bf16.xpose.msk.msra.mxu0 %vm8000_vm1, %v8004_v18  ;;  %v2644_v60 = vpop.xlane.xlu0 %2643  ;;  %6391 = vmatprep.mubr.msk.f32.mxu0 %vm7124_vm0, %v9482_v52 }
 0x80e   :  { %7022 = vrcp.f32 %v2644_v60  ;;  %v2654_v17 = vmul.f32 %v7019_v7, %v7007_v13  ;;  %6416 = vmatprep.subr.mxu0 %v9482_v52 }
 0x810   :  { %6392 = vmatmul.mubr.msk.f32.gmra.mrb[60].mxu0 %vm1622_vm3, %v2654_v17 }
 0x811   :  { %v7021_v12 = vpop.eup %7020  ;;  %v2647_v40 = vpop.xlane.xlu1 %2646  ;;  %6394 = vmatprep.mubr.msk.f32.mxu0 %vm7124_vm0, %v9482_v52 }
 0x812   :  { %7024 = vrcp.f32 %v2647_v40  ;;  %v2656_v25 = vmul.f32 %v7021_v12, %v7009_v44 }
 0x814   :  { %6395 = vmatmul.mubr.msk.f32.gmra.mrb[62].mxu0 %vm1622_vm3, %v2656_v25 }
 0x815   :  { %6417 = vmatpush3.xpose.msk.msra.mxu0 %vm1142_vm4, %v8010_v10  ;;  %v2650_v18 = vpop.xlane.xlu0 %2649  ;;  %6418 = vmatprep.mubr.msk.f32.mxu0 %vm7124_vm0, %v9482_v52  ;;  %v3159_v10 = vmul.f32 %v7772_v0, %v7803_v38  ;;  %v2891_v38 = vmul.f32 %v7772_v0, %v7924_v55 }
 0x816   :  { %7026 = vrcp.f32 %v2650_v18  ;;  %6825 = vmatprep.subr.bf16.mxu0 %v9483_v31 }
 0x818   :  { %v7023_v16 = vpop.eup %7022  ;;  %6419 = vmatmul.mubr.msk.f32.vlgmr.msra.gmra.mrb[70].mxu0 %vm1142_vm4, %v9494_v8 }
 0x819   :  { %v2658_v9 = vmul.f32 %v7023_v16, %v7011_v3  ;;  %6827 = vmatpush3.bf16.msra.mxu0 %v7820_v28  ;;  %6421 = vmatprep.mubr.msk.f32.mxu0 %vm7124_vm0, %v9482_v52 }
 0x81a   :  { %6446 = vmatprep.subr.mxu0 %v9482_v52 }
 0x81b   :  { %6404 = vmatmul.mubr.msk.f32.vlgmr.msra.gmra.mrb[50].mxu1 %vm1622_vm3, %v2658_v9 }
 0x81c   :  { %v7025_v34 = vpop.eup %7024  ;;  %6422 = vmatmul.mubr.msk.f32.gmra.mrb[72].mxu0 %vm1142_vm4, %v9495_v29  ;;  %6824 = vmatpush3.bf16.xpose.msk.msra.mxu1 %vm8000_vm1, %v8025_v14 }
 0x81d   :  { %6447 = vmatpush3.msk.msra.mxu0 %vm2004_vm2, %v3159_v10  ;;  %6406 = vmatprep.mubr.msk.f32.mxu1 %vm7124_vm0, %v9482_v52  ;;  %v2660_v28 = vmul.f32 %v7025_v34, %v7013_v63 }
 0x81e   :  { %6424 = vmatprep.mubr.msk.f32.mxu0 %vm7124_vm0, %v9482_v52  ;;  %6431 = vmatprep.subr.mxu1 %v9482_v52 }
 0x81f   :  { %6407 = vmatmul.mubr.msk.f32.gmra.mrb[52].mxu1 %vm1622_vm3, %v2660_v28  ;;  %6831 = vmatprep.subr.bf16.mxu0 %v9483_v31 }
 0x820   :  { %v7027_v42 = vpop.eup %7026  ;;  %6425 = vmatmul.mubr.msk.f32.gmra.mrb[74].mxu0 %vm1142_vm4, %v2891_v38  ;;  %6409 = vmatprep.mubr.msk.f32.mxu1 %vm7124_vm0, %v9482_v52 }
 0x821   :  { %v2662_v14 = vmul.f32 %v7027_v42, %v7015_v11  ;;  %6448 = vmatprep.mubr.msk.f32.mxu0 %vm7124_vm0, %v9482_v52 }
 0x823   :  { %6410 = vmatmul.mubr.msk.f32.gmra.mrb[54].mxu1 %vm1622_vm3, %v2662_v14  ;;  %v1124_v14 = vld [vmem:[%s9498_s10] sm:$0xff] }
 0x824   :  { %6432 = vmatpush3.xpose.msk.msra.mxu1 %vm1142_vm4, %v8045_v56  ;;  %6433 = vmatprep.mubr.msk.f32.mxu1 %vm7124_vm0, %v9482_v52 }
 0x825   :  { %6828 = vmatprep.subr.bf16.mxu1 %v9483_v31 }
 0x827   :  { %6434 = vmatmul.mubr.msk.f32.vlgmr.msra.gmra.mrb[62].mxu1 %vm1142_vm4, %v9496_v24  ;;  %v1125_v24 = vld [vmem:[%s9498_s10 + $0x8] sm:$0xff] }
 0x828   :  { %6830 = vmatpush3.bf16.msra.mxu1 %v7855_v37  ;;  %6436 = vmatprep.mubr.msk.f32.mxu1 %vm7124_vm0, %v9482_v52 }
 0x829   :  { %6461 = vmatprep.subr.mxu1 %v9482_v52 }
 0x82b   :  { %6437 = vmatmul.mubr.msk.f32.gmra.mrb[64].mxu1 %vm1142_vm4, %v9497_v30  ;;  %v6832_v30 = vpack.c.bf16 %v1125_v24, %v1124_v14 }
 0x82c   :  { %6462 = vmatpush3.msk.msra.mxu1 %vm2004_vm2, %v3164_v22  ;;  %6439 = vmatprep.mubr.msk.f32.mxu1 %vm7124_vm0, %v9482_v52 }
 0x82d   :  { %6837 = vmatprep.subr.bf16.mxu1 %v9483_v31 }
 0x82f   :  { %6440 = vmatmul.mubr.msk.f32.gmra.mrb[66].mxu1 %vm1142_vm4, %v2896_v46 }
 0x830   :  { %6463 = vmatprep.mubr.msk.f32.mxu1 %vm7124_vm0, %v9482_v52 }
 0x8eb   :  { %v2976_v37 = vpop.f32.mrb[70].mxu0 }
 0x8ec   :  { %v3083_v55 = vmul.f32 0.35355338, %v2976_v37  ;;  %v6420_v41 = vpop.f32.mrb[71].mxu0 }
 0x8ee   :  { %v3089_v19 = vsel %vm1622_vm3, %v3083_v55, -inf }
 0x8ef   :  { %3090 = vmax.xlane.f32.xlu1 %v3089_v19  ;;  %v2981_v5 = vpop.f32.mrb[72].mxu0 }
 0x8f0   :  { %v3084_v53 = vmul.f32 0.35355338, %v2981_v5  ;;  %v6423_v56 = vpop.f32.mrb[73].mxu0 }
 0x8f2   :  { %v3092_v57 = vsel %vm1622_vm3, %v3084_v53, -inf }
 0x8f3   :  { %3093 = vmax.xlane.f32.xlu0 %v3092_v57  ;;  %v2986_v0 = vpop.f32.mrb[74].mxu0 }
 0x8f4   :  { %v3085_v4 = vmul.f32 0.35355338, %v2986_v0  ;;  %v6426_v48 = vpop.f32.mrb[75].mxu0 }
 0x8f6   :  { %v3095_v58 = vsel %vm1629_vm5, %v3085_v4, -inf }
 0x8f7   :  { %3096 = vmax.xlane.f32.xlu1 %v3095_v58 }
 0x8fa   :  { %v3069_v62 = vpop.f32.mrb[62].mxu1 }
 0x8fb   :  { %v3086_v36 = vmul.f32 0.35355338, %v3069_v62  ;;  %v6435_v51 = vpop.f32.mrb[63].mxu1 }
 0x8fc   :  { %v1127_v51 = vld [vmem:[%s9498_s10 + $0x18] sm:$0xff] }
 0x8fd   :  { %v3098_v50 = vsel %vm1622_vm3, %v3086_v36, -inf }
 0x8fe   :  { %v3074_v27 = vpop.f32.mrb[64].mxu1  ;;  %3099 = vmax.xlane.f32.xlu0 %v3098_v50 }
 0x8ff   :  { %v3087_v61 = vmul.f32 0.35355338, %v3074_v27  ;;  %v6438_v21 = vpop.f32.mrb[65].mxu1 }
 0x901   :  { %v3101_v47 = vsel %vm1622_vm3, %v3087_v61, -inf }
 0x902   :  { %v3079_v13 = vpop.f32.mrb[66].mxu1  ;;  %3102 = vmax.xlane.f32.xlu1 %v3101_v47 }
 0x903   :  { %v3088_v54 = vmul.f32 0.35355338, %v3079_v13  ;;  %v6441_v43 = vpop.f32.mrb[67].mxu1 }
 0x905   :  { %v3104_v1 = vsel %vm1629_vm5, %v3088_v54, -inf }
 0x906   :  { %3105 = vmax.xlane.f32.xlu0 %v3104_v1 }
 0x97c   :  { %v3091_v35 = vpop.xlane.xlu1 %3090 }
 0x97d   :  { %v3107_v44 = vsub.f32 %v3083_v55, %v3091_v35 }
 0x97f   :  { %v3113_v39 = vmul.f32 1.442695, %v3107_v44 }
 0x980   :  { %v3094_v49 = vpop.xlane.xlu0 %3093 }
 0x981   :  { %7028 = vpow2.f32 %v3113_v39  ;;  %v3108_v23 = vsub.f32 %v3084_v53, %v3094_v49 }
 0x983   :  { %v3115_v2 = vmul.f32 1.442695, %v3108_v23 }
 0x984   :  { %v3097_v3 = vpop.xlane.xlu1 %3096 }
 0x985   :  { %7030 = vpow2.f32 %v3115_v2  ;;  %v3109_v26 = vsub.f32 %v3085_v4, %v3097_v3 }
 0x987   :  { %v3117_v63 = vmul.f32 1.442695, %v3109_v26 }
 0x989   :  { %7032 = vpow2.f32 %v3117_v63 }
 0x98b   :  { %v7029_v20 = vpop.eup %7028  ;;  %v3100_v11 = vpop.xlane.xlu0 %3099 }
 0x98c   :  { %v3110_v59 = vsub.f32 %v3086_v36, %v3100_v11  ;;  %v3125_v32 = vsel %vm1622_vm3, %v7029_v20, 0.0  ;;  %v1126_v36 = vld [vmem:[%s9498_s10 + $0x10] sm:$0xff] }
 0x98d   :  { %3126 = vadd.xlane.f32.xlu1 %v3125_v32  ;;  %v6835_v50 = vpack.c.bf16 %v1127_v51, %v1126_v36  ;;  %v5571_v32 = vld [vmem:[%s9499_s4] ss:$0 sm:$0xff] }
 0x98e   :  { %v3119_v45 = vmul.f32 1.442695, %v3110_v59 }
 0x98f   :  { %v7031_v15 = vpop.eup %7030  ;;  %v3103_v33 = vpop.xlane.xlu1 %3102 }
 0x990   :  { %7034 = vpow2.f32 %v3119_v45  ;;  %v3111_v6 = vsub.f32 %v3087_v61, %v3103_v33  ;;  %v3128_v7 = vsel %vm1622_vm3, %v7031_v15, 0.0  ;;  %v9500_v33 = vld [vmem:[#allocation12_spill] sm:$0xff] }
 0x991   :  { %3129 = vadd.xlane.f32.xlu0 %v3128_v7 }
 0x992   :  { %v3121_v60 = vmul.f32 1.442695, %v3111_v6 }
 0x993   :  { %v7033_v17 = vpop.eup %7032  ;;  %v3106_v12 = vpop.xlane.xlu0 %3105 }
 0x994   :  { %7036 = vpow2.f32 %v3121_v60  ;;  %v3112_v40 = vsub.f32 %v3088_v54, %v3106_v12  ;;  %v3131_v25 = vsel %vm1629_vm5, %v7033_v17, 0.0  ;;  %v3517_v60 = vcombine.high %v5571_v32, %v5571_v32 }
 0x995   :  { %3132 = vadd.xlane.f32.xlu1 %v3131_v25 }
 0x996   :  { %v3123_v18 = vmul.f32 1.442695, %v3112_v40 }
 0x998   :  { %7038 = vpow2.f32 %v3123_v18 }
 0x99a   :  { %v7035_v16 = vpop.eup %7034 }
 0x99b   :  { %v3134_v8 = vsel %vm1622_vm3, %v7035_v16, 0.0 }
 0x99c   :  { %3135 = vadd.xlane.f32.xlu0 %v3134_v8 }
 0x99e   :  { %v7037_v9 = vpop.eup %7036 }
 0x99f   :  { %v3137_v10 = vsel %vm1622_vm3, %v7037_v9, 0.0 }
 0x9a0   :  { %3138 = vadd.xlane.f32.xlu1 %v3137_v10 }
 0x9a2   :  { %v7039_v34 = vpop.eup %7038 }
 0x9a3   :  { %v3140_v29 = vsel %vm1629_vm5, %v7039_v34, 0.0 }
 0x9a4   :  { %3141 = vadd.xlane.f32.xlu0 %v3140_v29 }
 0xa1a   :  { %v3127_v28 = vpop.xlane.xlu1 %3126 }
 0xa1b   :  { %7040 = vrcp.f32 %v3127_v28 }
 0xa1e   :  { %v3130_v38 = vpop.xlane.xlu0 %3129 }
 0xa1f   :  { %7042 = vrcp.f32 %v3130_v38 }
 0xa22   :  { %v3133_v42 = vpop.xlane.xlu1 %3132 }
 0xa23   :  { %7044 = vrcp.f32 %v3133_v42 }
 0xa25   :  { %v7041_v22 = vpop.eup %7040 }
 0xa26   :  { %v3144_v46 = vmul.f32 %v7041_v22, %v7029_v20 }
 0xa28   :  { %6449 = vmatmul.mubr.msk.f32.vlgmr.msra.gmra.mrb[58].mxu0 %vm1622_vm3, %v3144_v46 }
 0xa29   :  { %v7043_v37 = vpop.eup %7042  ;;  %v3136_v55 = vpop.xlane.xlu0 %3135  ;;  %6451 = vmatprep.mubr.msk.f32.mxu0 %vm7124_vm0, %v9482_v52  ;;  %6833 = vmatpush3.bf16.msra.mxu0 %v6832_v30 }
 0xa2a   :  { %7046 = vrcp.f32 %v3136_v55  ;;  %v3146_v41 = vmul.f32 %v7043_v37, %v7031_v15  ;;  %6834 = vmatprep.subr.bf16.mxu0 %v9483_v31  ;;  %v9504_v37 = vld [vmem:[#allocation16_spill] sm:$0xff] }
 0xa2c   :  { %6452 = vmatmul.mubr.msk.f32.gmra.mrb[60].mxu0 %vm1622_vm3, %v3146_v41 }
 0xa2d   :  { %v7045_v19 = vpop.eup %7044  ;;  %v3139_v5 = vpop.xlane.xlu1 %3138  ;;  %6454 = vmatprep.mubr.msk.f32.mxu0 %vm7124_vm0, %v9482_v52  ;;  %6836 = vmatpush3.bf16.msra.mxu0 %v6835_v50 }
 0xa2e   :  { %7048 = vrcp.f32 %v3139_v5  ;;  %v3148_v53 = vmul.f32 %v7045_v19, %v7033_v17  ;;  %6840 = vmatprep.subr.bf16.mxu0 %v9483_v31  ;;  %v9501_v17 = vld [vmem:[#allocation13_spill] sm:$0xff] }
 0xa2f   :  { %v9505_v19 = vld [vmem:[#allocation17_spill] sm:$0xff] }
 0xa30   :  { %6455 = vmatmul.mubr.msk.f32.gmra.mrb[62].mxu0 %vm1622_vm3, %v3148_v53 }
 0xa31   :  { %v3142_v56 = vpop.xlane.xlu0 %3141  ;;  %6480 = vmatprep.mubr.msk.f32.mxu0 %vm7124_vm0, %v9482_v52 }
 0xa32   :  { %7050 = vrcp.f32 %v3142_v56 }
 0xa34   :  { %v7047_v57 = vpop.eup %7046 }
 0xa35   :  { %v3150_v0 = vmul.f32 %v7047_v57, %v7035_v16  ;;  %v9502_v16 = vld [vmem:[#allocation14_spill] sm:$0xff] }
 0xa37   :  { %6464 = vmatmul.mubr.msk.f32.vlgmr.msra.gmra.mrb[50].mxu1 %vm1622_vm3, %v3150_v0  ;;  %v9506_v0 = vld [vmem:[#allocation19_spill] sm:$0xff] }
 0xa38   :  { %v7049_v4 = vpop.eup %7048  ;;  %6466 = vmatprep.mubr.msk.f32.mxu1 %vm7124_vm0, %v9482_v52 }
 0xa39   :  { %v3152_v48 = vmul.f32 %v7049_v4, %v7037_v9 }
 0xa3b   :  { %6467 = vmatmul.mubr.msk.f32.gmra.mrb[52].mxu1 %vm1622_vm3, %v3152_v48 }
 0xa3c   :  { %v7051_v58 = vpop.eup %7050  ;;  %6469 = vmatprep.mubr.msk.f32.mxu1 %vm7124_vm0, %v9482_v52 }
 0xa3d   :  { %v3154_v62 = vmul.f32 %v7051_v58, %v7039_v34  ;;  %v9503_v34 = vld [vmem:[#allocation15_spill] sm:$0xff] }
 0xa3f   :  { %6470 = vmatmul.mubr.msk.f32.gmra.mrb[54].mxu1 %vm1622_vm3, %v3154_v62  ;;  %v9507_v62 = vld [vmem:[#allocation18_spill] sm:$0xff] }
 0xa40   :  { %6501 = vmatprep.mubr.msk.f32.mxu1 %vm7124_vm0, %v9482_v52 }
 0xafb   :  { %v3251_v27 = vpop.f32.mrb[58].mxu0 }
 0xafc   :  { %v3377_v61 = vcombine.high %v3251_v27, %v3251_v27  ;;  %v6450_v21 = vpop.f32.mrb[59].mxu0 }
 0xafd   :  { %v9508_v21 = vld [vmem:[#allocation21_spill] sm:$0xff] }
 0xafe   :  { %v3381_v47 = vcombine.low %v3251_v27, %v3377_v61 }
 0xaff   :  { %v3256_v13 = vpop.f32.mrb[60].mxu0 }
 0xb00   :  { %v3378_v54 = vcombine.high %v3256_v13, %v3256_v13  ;;  %v6453_v43 = vpop.f32.mrb[61].mxu0  ;;  %6481 = vmatmul.mubr.msk.f32.vlgmr.msra.gmra.mrb[76].mxu0 %vm1142_vm4, %v3381_v47 }
 0xb01   :  { %6483 = vmatprep.mubr.msk.f32.mxu0 %vm7124_vm0, %v9482_v52 }
 0xb02   :  { %v3382_v1 = vcombine.low %v3256_v13, %v3378_v54 }
 0xb03   :  { %v3261_v35 = vpop.f32.mrb[62].mxu0 }
 0xb04   :  { %v6456_v44 = vpop.f32.mrb[63].mxu0  ;;  %6484 = vmatmul.mubr.msk.f32.gmra.mrb[78].mxu0 %vm1142_vm4, %v3382_v1  ;;  %v9509_v1 = vld [vmem:[#allocation20_spill] sm:$0xff] }
 0xb05   :  { %6486 = vmatprep.mubr.msk.f32.mxu0 %vm7124_vm0, %v9482_v52 }
 0xb0a   :  { %v3351_v31 = vpop.f32.mrb[50].mxu1 }
 0xb0b   :  { %v3383_v39 = vcombine.low %v3261_v35, %v3351_v31  ;;  %v6465_v49 = vpop.f32.mrb[51].mxu1  ;;  %v3379_v23 = vcombine.high %v3351_v31, %v3351_v31 }
 0xb0d   :  { %6487 = vmatmul.mubr.msk.f32.gmra.mrb[80].mxu0 %vm1142_vm4, %v3383_v39 }
 0xb0e   :  { %v3356_v2 = vpop.f32.mrb[52].mxu1  ;;  %6489 = vmatprep.mubr.msk.f32.mxu0 %vm7124_vm0, %v9482_v52 }
 0xb0f   :  { %v3384_v3 = vcombine.low %v3379_v23, %v3356_v2  ;;  %v6468_v26 = vpop.f32.mrb[53].mxu1  ;;  %v3380_v63 = vcombine.high %v3356_v2, %v3356_v2 }
 0xb11   :  { %6490 = vmatmul.mubr.msk.f32.gmra.mrb[82].mxu0 %vm1142_vm4, %v3384_v3  ;;  %v7127_v3 = vmov 839922192  }
 0xb12   :  { %v3361_v20 = vpop.f32.mrb[54].mxu1  ;;  %6492 = vmatprep.mubr.msk.f32.mxu0 %vm7124_vm0, %v9482_v52  ;;  %v3576_v26 = vunpack.c.l.s4 %v7127_v3 }
 0xb13   :  { %v3385_v11 = vcombine.low %v3380_v63, %v3361_v20  ;;  %v6471_v59 = vpop.f32.mrb[55].mxu1  ;;  %v7128_v63 = vmov 1985246804  }
 0xb14   :  { %v3583_v20 = vunpack.c.l.s4 %v7128_v63 }
 0xb15   :  { %6493 = vmatmul.mubr.msk.f32.gmra.mrb[84].mxu0 %vm1142_vm4, %v3385_v11  ;;  %v9510_v11 = vlaneseq }
 0xb16   :  { %6522 = vmatprep.mubr.msk.f32.mxu0 %vm7124_vm0, %v9482_v52 }
 0xb17   :  { %v8478_v59 = vshrl.u32 %v9510_v11, 7 }
 0xbd3   :  { %v3462_v45 = vpop.f32.mrb[76].mxu0 }
 0xbd4   :  { %v3491_v15 = vcombine.high %v3462_v45, %v3462_v45  ;;  %v3501_v6 = vadd.f32 %v3462_v45, %v9500_v33  ;;  %v6482_v7 = vpop.f32.mrb[77].mxu0  ;;  %v3577_v45 = vunpack.c.0.s8 %v3576_v26 }
 0xbd6   :  { %v3502_v12 = vadd.f32 %v3491_v15, %v9501_v17  ;;  %v3519_v25 = vadd.f32 %v5571_v32, %v3501_v6  ;;  %v3584_v15 = vunpack.c.0.s8 %v3583_v20  ;;  %v8481_v6 = vsub.s32 %v3577_v45, %v8478_v59 }
 0xbd7   :  { %v3467_v40 = vpop.f32.mrb[78].mxu0 }
 0xbd8   :  { %v3492_v18 = vcombine.high %v3467_v40, %v3467_v40  ;;  %v3503_v8 = vadd.f32 %v3467_v40, %v9502_v16  ;;  %v6485_v9 = vpop.f32.mrb[79].mxu0  ;;  %v3520_v10 = vadd.f32 %v3517_v60, %v3502_v12 }
 0xbda   :  { %v3504_v29 = vadd.f32 %v3492_v18, %v9503_v34  ;;  %v3539_v28 = vcombine.low %v3519_v25, %v3520_v10  ;;  %v3521_v38 = vadd.f32 %v5571_v32, %v3503_v8 }
 0xbdc   :  { %v3549_v42 = vsel %vm1142_vm4, %v3539_v28, 0.0  ;;  %v3522_v14 = vadd.f32 %v3517_v60, %v3504_v29 }
 0xbdd   :  { %3550 = vadd.xlane.f32.xlu1 %v3549_v42 }
 0xbde   :  { %v3540_v24 = vcombine.low %v3521_v38, %v3522_v14 }
 0xbe0   :  { %v3552_v22 = vsel %vm1142_vm4, %v3540_v24, 0.0  ;;  %v3472_v30 = vpop.f32.mrb[80].mxu0 }
 0xbe1   :  { %3553 = vadd.xlane.f32.xlu0 %v3552_v22  ;;  %v3493_v46 = vcombine.high %v3472_v30, %v3472_v30  ;;  %v3505_v55 = vadd.f32 %v3472_v30, %v9504_v37  ;;  %v6488_v41 = vpop.f32.mrb[81].mxu0 }
 0xbe3   :  { %v3506_v5 = vadd.f32 %v3493_v46, %v9505_v19  ;;  %v3523_v56 = vadd.f32 %v5571_v32, %v3505_v55 }
 0xbe4   :  { %v3477_v53 = vpop.f32.mrb[82].mxu0 }
 0xbe5   :  { %v3494_v57 = vcombine.high %v3477_v53, %v3477_v53  ;;  %v3507_v4 = vadd.f32 %v3477_v53, %v9506_v0  ;;  %v6491_v48 = vpop.f32.mrb[83].mxu0  ;;  %v3524_v58 = vadd.f32 %v3517_v60, %v3506_v5 }
 0xbe7   :  { %v3508_v36 = vadd.f32 %v3494_v57, %v9507_v62  ;;  %v3541_v51 = vcombine.low %v3523_v56, %v3524_v58  ;;  %v3525_v50 = vadd.f32 %v5571_v32, %v3507_v4 }
 0xbe8   :  { %v3482_v27 = vpop.f32.mrb[84].mxu0 }
 0xbe9   :  { %v3495_v61 = vcombine.high %v3482_v27, %v3482_v27  ;;  %v3509_v47 = vadd.f32 %v3482_v27, %v9508_v21  ;;  %v6494_v13 = vpop.f32.mrb[85].mxu0  ;;  %v3555_v54 = vsel %vm1142_vm4, %v3541_v51, 0.0  ;;  %v3526_v43 = vadd.f32 %v3517_v60, %v3508_v36 }
 0xbea   :  { %3556 = vadd.xlane.f32.xlu1 %v3555_v54 }
 0xbeb   :  { %v3510_v35 = vadd.f32 %v3495_v61, %v9509_v1  ;;  %v3542_v44 = vcombine.low %v3525_v50, %v3526_v43  ;;  %v3527_v31 = vadd.f32 %v5571_v32, %v3509_v47  ;;  %v8484_v32 = vsub.s32 %v3584_v15, %v8478_v59 }
 0xbed   :  { %v3558_v39 = vsel %vm1142_vm4, %v3542_v44, 0.0  ;;  %v3528_v49 = vadd.f32 %v3517_v60, %v3510_v35 }
 0xbee   :  { %3559 = vadd.xlane.f32.xlu0 %v3558_v39 }
 0xbef   :  { %v3543_v23 = vcombine.low %v3527_v31, %v3528_v49 }
 0xbf1   :  { %v3561_v2 = vsel %vm1142_vm4, %v3543_v23, 0.0 }
 0xbf2   :  { %3562 = vadd.xlane.f32.xlu1 %v3561_v2 }
 0xc6a   :  { %v3551_v7 = vpop.xlane.xlu1 %3550 }
 0xc6b   :  { %v3565_v60 = vmul.f32 0.03125, %v3551_v7 }
 0xc6d   :  { %v3581_v12 = vrot.slane %v3565_v60, %v8481_v6  ;;  %v3588_v40 = vrot.slane %v3565_v60, %v8484_v32 }
 0xc6e   :  { %v3554_v18 = vpop.xlane.xlu0 %3553 }
 0xc6f   :  { %v8488_v8 = vsub.f32 %v3519_v25, %v3581_v12  ;;  %v8490_v9 = vsub.f32 %v3520_v10, %v3588_v40  ;;  %v3566_v29 = vmul.f32 0.03125, %v3554_v18 }
 0xc71   :  { %v3595_v28 = vrot.slane %v3566_v29, %v8481_v6  ;;  %v3602_v42 = vrot.slane %v3566_v29, %v8484_v32  ;;  %v3665_v24 = vmul.f32 %v8488_v8, %v8488_v8  ;;  %v3666_v22 = vmul.f32 %v8490_v9, %v8490_v9 }
 0xc73   :  { %v8498_v30 = vsub.f32 %v3521_v38, %v3595_v28  ;;  %v8500_v46 = vsub.f32 %v3522_v14, %v3602_v42  ;;  %v3685_v55 = vcombine.low %v3665_v24, %v3666_v22  ;;  %v8544_v42 = vld [vmem:[%s9374_s12] ss:$0 sm:$0xff] }
 0xc75   :  { %v3695_v25 = vsel %vm1142_vm4, %v3685_v55, 0.0  ;;  %v3667_v10 = vmul.f32 %v8498_v30, %v8498_v30  ;;  %v3668_v41 = vmul.f32 %v8500_v46, %v8500_v46 }
 0xc76   :  { %3696 = vadd.xlane.f32.xlu0 %v3695_v25 }
 0xc77   :  { %v3557_v5 = vpop.xlane.xlu1 %3556  ;;  %v3686_v53 = vcombine.low %v3667_v10, %v3668_v41  ;;  %v8551_v41 = vld [vmem:[%s9375_s13] ss:$0 sm:$0xff] }
 0xc78   :  { %v3567_v57 = vmul.f32 0.03125, %v3557_v5  ;;  %v8555_v5 = vcombine.high %v8544_v42, %v8544_v42 }
 0xc79   :  { %v3698_v4 = vsel %vm1142_vm4, %v3686_v53, 0.0 }
 0xc7a   :  { %v3609_v38 = vrot.slane %v3567_v57, %v8481_v6  ;;  %v3616_v14 = vrot.slane %v3567_v57, %v8484_v32  ;;  %3699 = vadd.xlane.f32.xlu1 %v3698_v4 }
 0xc7b   :  { %v3560_v48 = vpop.xlane.xlu0 %3559 }
 0xc7c   :  { %v8510_v36 = vsub.f32 %v3523_v56, %v3609_v38  ;;  %v8512_v51 = vsub.f32 %v3524_v58, %v3616_v14  ;;  %v3568_v27 = vmul.f32 0.03125, %v3560_v48  ;;  %v8561_v48 = vcombine.high %v8551_v41, %v8551_v41 }
 0xc7e   :  { %v3623_v61 = vrot.slane %v3568_v27, %v8481_v6  ;;  %v3630_v47 = vrot.slane %v3568_v27, %v8484_v32  ;;  %v3669_v13 = vmul.f32 %v8510_v36, %v8510_v36  ;;  %v3670_v54 = vmul.f32 %v8512_v51, %v8512_v51 }
 0xc7f   :  { %v3563_v35 = vpop.xlane.xlu1 %3562 }
 0xc80   :  { %v8520_v44 = vsub.f32 %v3525_v50, %v3623_v61  ;;  %v8522_v39 = vsub.f32 %v3526_v43, %v3630_v47  ;;  %v3569_v56 = vmul.f32 0.03125, %v3563_v35  ;;  %v3687_v23 = vcombine.low %v3669_v13, %v3670_v54 }
 0xc82   :  { %v3637_v58 = vrot.slane %v3569_v56, %v8481_v6  ;;  %v3644_v2 = vrot.slane %v3569_v56, %v8484_v32  ;;  %v3701_v3 = vsel %vm1142_vm4, %v3687_v23, 0.0  ;;  %v3671_v26 = vmul.f32 %v8520_v44, %v8520_v44 }
 0xc83   :  { %3702 = vadd.xlane.f32.xlu0 %v3701_v3  ;;  %v3672_v63 = vmul.f32 %v8522_v39, %v8522_v39 }
 0xc84   :  { %v8531_v20 = vsub.f32 %v3527_v31, %v3637_v58  ;;  %v8533_v50 = vsub.f32 %v3528_v49, %v3644_v2 }
 0xc85   :  { %v3688_v43 = vcombine.low %v3671_v26, %v3672_v63 }
 0xc86   :  { %v3673_v11 = vmul.f32 %v8531_v20, %v8531_v20  ;;  %v3674_v45 = vmul.f32 %v8533_v50, %v8533_v50 }
 0xc87   :  { %v3704_v15 = vsel %vm1142_vm4, %v3688_v43, 0.0 }
 0xc88   :  { %3705 = vadd.xlane.f32.xlu1 %v3704_v15  ;;  %v3689_v7 = vcombine.low %v3673_v11, %v3674_v45 }
 0xc8a   :  { %v3707_v60 = vsel %vm1142_vm4, %v3689_v7, 0.0 }
 0xc8b   :  { %3708 = vadd.xlane.f32.xlu0 %v3707_v60 }
 0xd03   :  { %v3697_v12 = vpop.xlane.xlu0 %3696 }
 0xd04   :  { %v3710_v40 = vmul.f32 0.03125, %v3697_v12 }
 0xd06   :  { %v3715_v31 = vadd.f32 1e-05, %v3710_v40 }
 0xd07   :  { %v3700_v18 = vpop.xlane.xlu1 %3699 }
 0xd08   :  { %7052 = vrsqrt.f32 %v3715_v31  ;;  %v3711_v49 = vmul.f32 0.03125, %v3700_v18 }
 0xd0a   :  { %v3716_v29 = vadd.f32 1e-05, %v3711_v49 }
 0xd0c   :  { %7054 = vrsqrt.f32 %v3716_v29 }
 0xd10   :  { %v3703_v28 = vpop.xlane.xlu0 %3702 }
 0xd11   :  { %v3712_v24 = vmul.f32 0.03125, %v3703_v28 }
 0xd12   :  { %v7053_v22 = vpop.eup %7052 }
 0xd13   :  { %v3736_v55 = vrot.slane %v7053_v22, %v8481_v6  ;;  %v3743_v25 = vrot.slane %v7053_v22, %v8484_v32  ;;  %v3717_v10 = vadd.f32 1e-05, %v3712_v24 }
 0xd15   :  { %v3810_v53 = vmul.f32 %v3736_v55, %v8488_v8  ;;  %v3811_v57 = vmul.f32 %v3743_v25, %v8490_v9  ;;  %7056 = vrsqrt.f32 %v3717_v10  ;;  %v3706_v4 = vpop.xlane.xlu1 %3705 }
 0xd16   :  { %v7055_v38 = vpop.eup %7054  ;;  %v3713_v14 = vmul.f32 0.03125, %v3706_v4 }
 0xd17   :  { %v3750_v27 = vrot.slane %v7055_v38, %v8481_v6  ;;  %v3757_v61 = vrot.slane %v7055_v38, %v8484_v32  ;;  %v3828_v47 = vmul.f32 %v8544_v42, %v3810_v53  ;;  %v3829_v13 = vmul.f32 %v8555_v5, %v3811_v57 }
 0xd18   :  { %v3718_v54 = vadd.f32 1e-05, %v3713_v14  ;;  %v3709_v8 = vpop.xlane.xlu0 %3708 }
 0xd19   :  { %v3812_v9 = vmul.f32 %v3750_v27, %v8498_v30  ;;  %v3813_v35 = vmul.f32 %v3757_v61, %v8500_v46  ;;  %v3714_v56 = vmul.f32 0.03125, %v3709_v8  ;;  %v3846_v23 = vadd.f32 %v8551_v41, %v3828_v47 }
 0xd1a   :  { %7058 = vrsqrt.f32 %v3718_v54  ;;  %v3847_v58 = vadd.f32 %v8561_v48, %v3829_v13  ;;  %v8626_v61 = vadd.s32 24, %v8478_v59 }
 0xd1b   :  { %v3719_v2 = vadd.f32 1e-05, %v3714_v56  ;;  %v3830_v3 = vmul.f32 %v8544_v42, %v3812_v9  ;;  %v3831_v26 = vmul.f32 %v8555_v5, %v3813_v35  ;;  %v3856_v63 = vsub.f32 %v3846_v23, %v9500_v33  ;;  %v8584_v33 = vld [vmem:[%s9376_s5] ss:$0 sm:$0xff]  ;;  %v5427_v56 = vld [vmem:[%s9376_s5 + $0x1] ss:$0 sm:$0xff] }
 0xd1c   :  { %v3857_v46 = vsub.f32 %v3847_v58, %v9501_v17  ;;  %vm324_vm6 = vcmp.eq.s32.totalorder %v8584_v33, %v8478_v59  ;;  %v8590_v17 = vadd.s32 8, %v8478_v59  ;;  %vm327_vm9 = vcmp.eq.s32.totalorder %v8584_v33, %v8626_v61 }
 0xd1d   :  { %7060 = vrsqrt.f32 %v3719_v2  ;;  %v3848_v43 = vadd.f32 %v8551_v41, %v3830_v3  ;;  %v3849_v30 = vadd.f32 %v8561_v48, %v3831_v26  ;;  %v5428_v24 = vsel %vm324_vm6, 1.0, %v9482_v52 }
 0xd1e   :  { %v3871_v12 = vcombine.low %v3856_v63, %v3857_v46  ;;  %vm325_vm7 = vcmp.eq.s32.totalorder %v8584_v33, %v8590_v17  ;;  %vm329_vm11 = vcmp.eq.s32.totalorder %v5427_v56, %v8478_v59  ;;  %vm330_vm12 = vcmp.eq.s32.totalorder %v5427_v56, %v8590_v17  ;;  %v9511_v63 = vld [vmem:[#allocation2_spill] sm:$0xff] }
 0xd1f   :  { %v7057_v11 = vpop.eup %7056  ;;  %v3858_v45 = vsub.f32 %v3848_v43, %v9502_v16  ;;  %v3859_v15 = vsub.f32 %v3849_v30, %v9503_v34  ;;  %v5429_v14 = vsel %vm325_vm7, 1.0, %v9482_v52  ;;  %v5433_v58 = vsel %vm329_vm11, 1.0, %v9482_v52 }
 0xd20   :  { %v3764_v7 = vrot.slane %v7057_v11, %v8481_v6  ;;  %v3771_v60 = vrot.slane %v7057_v11, %v8484_v32  ;;  %vm332_vm15 = vcmp.eq.s32.totalorder %v5427_v56, %v8626_v61 }
 0xd21   :  { %v3872_v40 = vcombine.low %v3858_v45, %v3859_v15  ;;  %v5436_v2 = vsel %vm332_vm15, 1.0, %v9482_v52  ;;  %v9512_v45 = vld [vmem:[#allocation3_spill] sm:$0xff] }
 0xd22   :  { %v3814_v31 = vmul.f32 %v3764_v7, %v8510_v36  ;;  %v3815_v34 = vmul.f32 %v3771_v60, %v8512_v51  ;;  %v8604_v51 = vadd.s32 16, %v8478_v59 }
 0xd23   :  { %v6838_v18 = vpack.c.bf16 %v3872_v40, %v3871_v12  ;;  %v9513_v12 = vld [vmem:[#allocation4_spill] sm:$0xff] }
 0xd24   :  { %v7059_v16 = vpop.eup %7058  ;;  %v3832_v49 = vmul.f32 %v8544_v42, %v3814_v31  ;;  %v3833_v4 = vmul.f32 %v8555_v5, %v3815_v34  ;;  %vm326_vm8 = vcmp.eq.s32.totalorder %v8584_v33, %v8604_v51  ;;  %vm331_vm14 = vcmp.eq.s32.totalorder %v5427_v56, %v8604_v51  ;;  %v9514_v34 = vld [vmem:[#allocation6_spill] sm:$0xff] }
 0xd25   :  { %v3778_v29 = vrot.slane %v7059_v16, %v8481_v6  ;;  %v3785_v28 = vrot.slane %v7059_v16, %v8484_v32  ;;  %6839 = vmatpush3.bf16.msra.mxu1 %v6838_v18 }
 0xd26   :  { %6499 = vmatprep.subr.mxu1 %v9482_v52  ;;  %v3850_v36 = vadd.f32 %v8551_v41, %v3832_v49 }
 0xd27   :  { %v7061_v22 = vpop.eup %7060  ;;  %v3816_v55 = vmul.f32 %v3778_v29, %v8520_v44  ;;  %v3817_v25 = vmul.f32 %v3785_v28, %v8522_v39 }
 0xd28   :  { %v3792_v10 = vrot.slane %v7061_v22, %v8481_v6  ;;  %v3799_v53 = vrot.slane %v7061_v22, %v8484_v32  ;;  %v3860_v57 = vsub.f32 %v3850_v36, %v9504_v37  ;;  %v9515_v22 = vld [vmem:[#allocation8_spill] sm:$0xff] }
 0xd29   :  { %v3834_v38 = vmul.f32 %v8544_v42, %v3816_v55  ;;  %v3835_v44 = vmul.f32 %v8555_v5, %v3817_v25  ;;  %v9516_v25 = vld [vmem:[#allocation5_spill] sm:$0xff] }
 0xd2a   :  { %v3818_v39 = vmul.f32 %v3792_v10, %v8531_v20  ;;  %6500 = vmatpush3.msk.msra.mxu1 %vm2004_vm2, %v3860_v57  ;;  %v3819_v37 = vmul.f32 %v3799_v53, %v8533_v50  ;;  %v3851_v20 = vadd.f32 %v8561_v48, %v3833_v4  ;;  %v5430_v50 = vsel %vm326_vm8, 1.0, %v9482_v52 }
 0xd2b   :  { %6502 = vmatmul.mubr.msk.f32.vlgmr.msra.gmra.mrb[68].mxu1 %vm1622_vm3, %v5428_v24  ;;  %v3852_v6 = vadd.f32 %v8551_v41, %v3834_v38  ;;  %v3853_v27 = vadd.f32 %v8561_v48, %v3835_v44 }
 0xd2c   :  { %6504 = vmatprep.mubr.msk.f32.mxu1 %vm7124_vm0, %v9482_v52  ;;  %v3836_v32 = vmul.f32 %v8544_v42, %v3818_v39  ;;  %v3861_v42 = vsub.f32 %v3851_v20, %v9505_v19  ;;  %v3837_v9 = vmul.f32 %v8555_v5, %v3819_v37  ;;  %v9517_v39 = vld [vmem:[#allocation7_spill] sm:$0xff]  ;;  %v9518_v20 = vld [vmem:[#allocation9_spill] sm:$0xff] }
 0xd2d   :  { %v3862_v13 = vsub.f32 %v3852_v6, %v9506_v0  ;;  %v3863_v54 = vsub.f32 %v3853_v27, %v9507_v62  ;;  %v8641_v0 = vadd.s32 32, %v8478_v59  ;;  %v5431_v62 = vsel %vm327_vm9, 1.0, %v9482_v52 }
 0xd2e   :  { %v3854_v47 = vadd.f32 %v8551_v41, %v3836_v32 }
 0xd2f   :  { %6505 = vmatmul.mubr.msk.f32.gmra.mrb[70].mxu1 %vm1622_vm3, %v5429_v14  ;;  %v3987_v41 = vcombine.low %v3861_v42, %v3862_v13  ;;  %vm328_vm10 = vcmp.eq.s32.totalorder %v8584_v33, %v8641_v0  ;;  %vm333_vm1 = vcmp.eq.s32.totalorder %v5427_v56, %v8641_v0  ;;  %v9519_v42 = vld [vmem:[#allocation10_spill] sm:$0xff] }
 0xd30   :  { %6507 = vmatprep.mubr.msk.f32.mxu1 %vm7124_vm0, %v9482_v52  ;;  %v3864_v8 = vsub.f32 %v3854_v47, %v9508_v21  ;;  %v3855_v21 = vadd.f32 %v8561_v48, %v3837_v9  ;;  %v5432_v23 = vsel %vm328_vm10, 1.0, %v9482_v52  ;;  %v5434_v48 = vsel %vm330_vm12, 1.0, %v9482_v52 }
 0xd31   :  { %v5437_v3 = vsel %vm333_vm1, 1.0, %v9482_v52 }
 0xd32   :  { %v3988_v35 = vcombine.low %v3863_v54, %v3864_v8  ;;  %v3865_v5 = vsub.f32 %v3855_v21, %v9509_v1  ;;  %v5435_v1 = vsel %vm331_vm14, 1.0, %v9482_v52 }
 0xd33   :  { %6508 = vmatmul.mubr.msk.f32.gmra.mrb[72].mxu1 %vm1622_vm3, %v5430_v50 }
 0xd34   :  { %6510 = vmatprep.mubr.msk.f32.mxu1 %vm7124_vm0, %v9482_v52  ;;  %v6841_v19 = vpack.c.bf16 %v3988_v35, %v3987_v41  ;;  %v9520_v35 = vld [vmem:[#allocation11_spill] sm:$0xff] }
 0xd36   :  { %6842 = vmatpush3.bf16.msra.mxu0 %v6841_v19 }
 0xd37   :  { %6511 = vmatmul.mubr.msk.f32.gmra.mrb[74].mxu1 %vm1622_vm3, %v5431_v62  ;;  %6520 = vmatprep.subr.mxu0 %v9482_v52 }
 0xd38   :  { %6513 = vmatprep.mubr.msk.f32.mxu1 %vm7124_vm0, %v9482_v52 }
 0xd3a   :  { %6521 = vmatpush3.msk.msra.mxu0 %vm2004_vm2, %v3865_v5 }
 0xd3b   :  { %6514 = vmatmul.mubr.msk.f32.gmra.mrb[76].mxu1 %vm1622_vm3, %v5432_v23  ;;  %6523 = vmatmul.mubr.msk.f32.vlgmr.msra.gmra.mrb[86].mxu0 %vm1622_vm3, %v5433_v58 }
 0xd3c   :  { %6525 = vmatprep.mubr.msk.f32.mxu0 %vm7124_vm0, %v9482_v52 }
 0xd3f   :  { %6526 = vmatmul.mubr.msk.f32.gmra.mrb[88].mxu0 %vm1622_vm3, %v5434_v48 }
 0xd40   :  { %6528 = vmatprep.mubr.msk.f32.mxu0 %vm7124_vm0, %v9482_v52 }
 0xd43   :  { %6529 = vmatmul.mubr.msk.f32.gmra.mrb[90].mxu0 %vm1622_vm3, %v5435_v1 }
 0xd44   :  { %6531 = vmatprep.mubr.msk.f32.mxu0 %vm7124_vm0, %v9482_v52 }
 0xd47   :  { %6532 = vmatmul.mubr.msk.f32.gmra.mrb[92].mxu0 %vm1622_vm3, %v5436_v2 }
 0xd48   :  { %6534 = vmatprep.mubr.msk.f32.mxu0 %vm7124_vm0, %v9482_v52  ;;  %vm4446_vm0 = vcmask 523264  }
 0xd4b   :  { %6535 = vmatmul.mubr.msk.f32.gmra.mrb[94].mxu0 %vm1622_vm3, %v5437_v3 }
 0xdfe   :  { %v3958_v26 = vpop.f32.mrb[68].mxu1 }
 0xdff   :  { %v4098_v43 = vadd.f32 %v3958_v26, %v9511_v63  ;;  %v6503_v30 = vpop.f32.mrb[69].mxu1 }
 0xe01   :  { %v4110_v46 = vsel %vm1142_vm4, %v4098_v43, 0.0 }
 0xe02   :  { %4111 = vadd.xlane.f32.xlu1 %v4110_v46  ;;  %v3963_v11 = vpop.f32.mrb[70].mxu1 }
 0xe03   :  { %v4099_v15 = vadd.f32 %v3963_v11, %v9512_v45  ;;  %v6506_v7 = vpop.f32.mrb[71].mxu1 }
 0xe05   :  { %v4113_v60 = vsel %vm1142_vm4, %v4099_v15, 0.0 }
 0xe06   :  { %4114 = vadd.xlane.f32.xlu0 %v4113_v60  ;;  %v3968_v33 = vpop.f32.mrb[72].mxu1 }
 0xe07   :  { %v4100_v40 = vadd.f32 %v3968_v33, %v9513_v12  ;;  %v6509_v31 = vpop.f32.mrb[73].mxu1 }
 0xe09   :  { %v4116_v18 = vsel %vm1142_vm4, %v4100_v40, 0.0 }
 0xe0a   :  { %4117 = vadd.xlane.f32.xlu1 %v4116_v18  ;;  %v3973_v16 = vpop.f32.mrb[74].mxu1 }
 0xe0b   :  { %v4101_v49 = vadd.f32 %v3973_v16, %v9514_v34  ;;  %v6512_v29 = vpop.f32.mrb[75].mxu1 }
 0xe0d   :  { %v4119_v28 = vsel %vm1142_vm4, %v4101_v49, 0.0 }
 0xe0e   :  { %4120 = vadd.xlane.f32.xlu0 %v4119_v28  ;;  %v3978_v36 = vpop.f32.mrb[76].mxu1  ;;  %v4074_v24 = vpop.f32.mrb[86].mxu0 }
 0xe0f   :  { %v4102_v55 = vadd.f32 %v3978_v36, %v9515_v22  ;;  %v4103_v10 = vadd.f32 %v4074_v24, %v9516_v25  ;;  %v6524_v53 = vpop.f32.mrb[87].mxu0  ;;  %v6515_v57 = vpop.f32.mrb[77].mxu1 }
 0xe11   :  { %v4122_v4 = vsel %vm1142_vm4, %v4102_v55, 0.0  ;;  %v4125_v38 = vsel %vm1142_vm4, %v4103_v10, 0.0 }
 0xe12   :  { %4123 = vadd.xlane.f32.xlu1 %v4122_v4  ;;  %4126 = vadd.xlane.f32.xlu0 %v4125_v38  ;;  %v4079_v44 = vpop.f32.mrb[88].mxu0 }
 0xe13   :  { %v4104_v14 = vadd.f32 %v4079_v44, %v9517_v39  ;;  %v6527_v6 = vpop.f32.mrb[89].mxu0 }
 0xe15   :  { %v4128_v37 = vsel %vm1142_vm4, %v4104_v14, 0.0 }
 0xe16   :  { %4129 = vadd.xlane.f32.xlu1 %v4128_v37  ;;  %v4084_v32 = vpop.f32.mrb[90].mxu0 }
 0xe17   :  { %v4105_v27 = vadd.f32 %v4084_v32, %v9518_v20  ;;  %v6530_v47 = vpop.f32.mrb[91].mxu0 }
 0xe19   :  { %v4131_v13 = vsel %vm1142_vm4, %v4105_v27, 0.0 }
 0xe1a   :  { %4132 = vadd.xlane.f32.xlu0 %v4131_v13  ;;  %v4089_v50 = vpop.f32.mrb[92].mxu0 }
 0xe1b   :  { %v4106_v54 = vadd.f32 %v4089_v50, %v9519_v42  ;;  %v6533_v8 = vpop.f32.mrb[93].mxu0 }
 0xe1d   :  { %v4134_v9 = vsel %vm1142_vm4, %v4106_v54, 0.0 }
 0xe1e   :  { %4135 = vadd.xlane.f32.xlu1 %v4134_v9  ;;  %v4094_v41 = vpop.f32.mrb[94].mxu0 }
 0xe1f   :  { %v4107_v56 = vadd.f32 %v4094_v41, %v9520_v35  ;;  %v6536_v19 = vpop.f32.mrb[95].mxu0 }
 0xe21   :  { %v4137_v62 = vsel %vm1142_vm4, %v4107_v56, 0.0 }
 0xe22   :  { %4138 = vadd.xlane.f32.xlu0 %v4137_v62 }
 0xe8f   :  { %v4112_v21 = vpop.xlane.xlu1 %4111 }
 0xe90   :  { %v4140_v5 = vmul.f32 0.03125, %v4112_v21 }
 0xe92   :  { %v8704_v23 = vsub.f32 %v4098_v43, %v4140_v5 }
 0xe93   :  { %v4115_v58 = vpop.xlane.xlu0 %4114 }
 0xe94   :  { %v4141_v48 = vmul.f32 0.03125, %v4115_v58  ;;  %v4160_v1 = vmul.f32 %v8704_v23, %v8704_v23 }
 0xe96   :  { %v8708_v2 = vsub.f32 %v4099_v15, %v4141_v48  ;;  %v4170_v3 = vsel %vm1142_vm4, %v4160_v1, 0.0  ;;  %v4273_v1 = vld [vmem:[%s9377_s16 + $0x8] sm:$0xff] }
 0xe97   :  { %v4118_v26 = vpop.xlane.xlu1 %4117  ;;  %4171 = vadd.xlane.f32.xlu1 %v4170_v3 }
 0xe98   :  { %v4142_v30 = vmul.f32 0.03125, %v4118_v26  ;;  %v4161_v46 = vmul.f32 %v8708_v2, %v8708_v2  ;;  %v4275_v26 = vld [vmem:[%s9377_s16 + $0x18] sm:$0xff] }
 0xe9a   :  { %v8713_v11 = vsub.f32 %v4100_v40, %v4142_v30  ;;  %v4173_v43 = vsel %vm1142_vm4, %v4161_v46, 0.0  ;;  %v4438_v46 = vld [vmem:[%s9378_s18] sm:$0xff] }
 0xe9b   :  { %v4121_v7 = vpop.xlane.xlu0 %4120  ;;  %4174 = vadd.xlane.f32.xlu0 %v4173_v43  ;;  %v4439_v43 = vld [vmem:[%s9378_s18 + $0x8] sm:$0xff] }
 0xe9c   :  { %v4143_v60 = vmul.f32 0.03125, %v4121_v7  ;;  %v4162_v33 = vmul.f32 %v8713_v11, %v8713_v11  ;;  %v4440_v7 = vld [vmem:[%s9378_s18 + $0x10] sm:$0xff] }
 0xe9e   :  { %v8718_v15 = vsub.f32 %v4101_v49, %v4143_v60  ;;  %v4176_v31 = vsel %vm1142_vm4, %v4162_v33, 0.0  ;;  %v6851_v60 = vpack.c.bf16 %v4439_v43, %v4438_v46  ;;  %v4441_v33 = vld [vmem:[%s9378_s18 + $0x18] sm:$0xff] }
 0xe9f   :  { %v4124_v18 = vpop.xlane.xlu1 %4123  ;;  %v4127_v16 = vpop.xlane.xlu0 %4126  ;;  %4177 = vadd.xlane.f32.xlu1 %v4176_v31  ;;  %v6855_v31 = vpack.c.bf16 %v4441_v33, %v4440_v7 }
 0xea0   :  { %v4144_v29 = vmul.f32 0.03125, %v4124_v18  ;;  %v4145_v28 = vmul.f32 0.03125, %v4127_v16  ;;  %v4163_v40 = vmul.f32 %v8718_v15, %v8718_v15  ;;  %v4442_v18 = vld [vmem:[%s9378_s18 + $0x20] sm:$0xff]  ;;  %v4443_v16 = vld [vmem:[%s9378_s18 + $0x28] sm:$0xff]  ;;  %6852 = vmatprep.subr.bf16.mxu0 %v6851_v60 }
 0xea1   :  { %6854 = vmatpush3.bf16.msra.mxu0 %v6851_v60 }
 0xea2   :  { %v8723_v36 = vsub.f32 %v4102_v55, %v4144_v29  ;;  %v8725_v24 = vsub.f32 %v4103_v10, %v4145_v28  ;;  %v4179_v53 = vsel %vm1142_vm4, %v4163_v40, 0.0  ;;  %6856 = vmatprep.subr.bf16.mxu0 %v6855_v31  ;;  %v6859_v29 = vpack.c.bf16 %v4443_v16, %v4442_v18 }
 0xea3   :  { %v4130_v57 = vpop.xlane.xlu1 %4129  ;;  %4180 = vadd.xlane.f32.xlu0 %v4179_v53 }
 0xea4   :  { %v4146_v49 = vmul.f32 0.03125, %v4130_v57  ;;  %v4164_v4 = vmul.f32 %v8723_v36, %v8723_v36  ;;  %v4165_v38 = vmul.f32 %v8725_v24, %v8725_v24 }
 0xea5   :  { %6858 = vmatpush3.bf16.msra.mxu0 %v6855_v31 }
 0xea6   :  { %v8732_v44 = vsub.f32 %v4104_v14, %v4146_v49  ;;  %v4182_v6 = vsel %vm1142_vm4, %v4164_v4, 0.0  ;;  %v4185_v55 = vsel %vm1142_vm4, %v4165_v38, 0.0  ;;  %6860 = vmatprep.subr.bf16.mxu0 %v6859_v29 }
 0xea7   :  { %v4133_v37 = vpop.xlane.xlu0 %4132  ;;  %4183 = vadd.xlane.f32.xlu1 %v4182_v6  ;;  %4186 = vadd.xlane.f32.xlu0 %v4185_v55 }
 0xea8   :  { %v4147_v10 = vmul.f32 0.03125, %v4133_v37  ;;  %v4166_v32 = vmul.f32 %v8732_v44, %v8732_v44 }
 0xea9   :  { %6862 = vmatpush3.bf16.msra.mxu0 %v6859_v29 }
 0xeaa   :  { %v8738_v47 = vsub.f32 %v4105_v27, %v4147_v10  ;;  %v4188_v13 = vsel %vm1142_vm4, %v4166_v32, 0.0 }
 0xeab   :  { %4189 = vadd.xlane.f32.xlu1 %v4188_v13  ;;  %v4136_v50 = vpop.xlane.xlu1 %4135  ;;  %v8787_v13 = vld [vmem:[%s9379_s14] ss:$0 sm:$0xff] }
 0xeac   :  { %v4148_v8 = vmul.f32 0.03125, %v4136_v50  ;;  %v4167_v14 = vmul.f32 %v8738_v47, %v8738_v47 }
 0xeae   :  { %v8743_v9 = vsub.f32 %v4106_v54, %v4148_v8  ;;  %v4191_v41 = vsel %vm1142_vm4, %v4167_v14, 0.0  ;;  %v4272_v54 = vld [vmem:[%s9377_s16] sm:$0xff] }
 0xeaf   :  { %4192 = vadd.xlane.f32.xlu0 %v4191_v41  ;;  %v4139_v19 = vpop.xlane.xlu0 %4138  ;;  %v6843_v3 = vpack.c.bf16 %v4273_v1, %v4272_v54 }
 0xeb0   :  { %v4149_v62 = vmul.f32 0.03125, %v4139_v19  ;;  %v4168_v21 = vmul.f32 %v8743_v9, %v8743_v9  ;;  %v8793_v19 = vld [vmem:[%s9380_s15] ss:$0 sm:$0xff] }
 0xeb1   :  { %6844 = vmatprep.subr.bf16.mxu1 %v6843_v3 }
 0xeb2   :  { %v8748_v27 = vsub.f32 %v4107_v56, %v4149_v62  ;;  %v4194_v5 = vsel %vm1142_vm4, %v4168_v21, 0.0  ;;  %6846 = vmatpush3.bf16.msra.mxu1 %v6843_v3  ;;  %v4274_v56 = vld [vmem:[%s9377_s16 + $0x10] sm:$0xff] }
 0xeb3   :  { %4195 = vadd.xlane.f32.xlu1 %v4194_v5  ;;  %v6847_v30 = vpack.c.bf16 %v4275_v26, %v4274_v56 }
 0xeb4   :  { %v4169_v58 = vmul.f32 %v8748_v27, %v8748_v27 }
 0xeb5   :  { %6848 = vmatprep.subr.bf16.mxu1 %v6847_v30 }
 0xeb6   :  { %v4197_v48 = vsel %vm1142_vm4, %v4169_v58, 0.0  ;;  %6850 = vmatpush3.bf16.msra.mxu1 %v6847_v30 }
 0xeb7   :  { %4198 = vadd.xlane.f32.xlu0 %v4197_v48 }
 0xf24   :  { %v4172_v28 = vpop.xlane.xlu1 %4171 }
 0xf25   :  { %v4200_v40 = vmul.f32 0.03125, %v4172_v28 }
 0xf27   :  { %v4210_v53 = vadd.f32 1e-05, %v4200_v40 }
 0xf28   :  { %v4175_v57 = vpop.xlane.xlu0 %4174 }
 0xf29   :  { %7062 = vrsqrt.f32 %v4210_v53  ;;  %v4201_v49 = vmul.f32 0.03125, %v4175_v57 }
 0xf2b   :  { %v4211_v4 = vadd.f32 1e-05, %v4201_v49 }
 0xf2c   :  { %v4178_v38 = vpop.xlane.xlu1 %4177 }
 0xf2d   :  { %7064 = vrsqrt.f32 %v4211_v4  ;;  %v4202_v6 = vmul.f32 0.03125, %v4178_v38 }
 0xf2f   :  { %v4212_v55 = vadd.f32 1e-05, %v4202_v6 }
 0xf30   :  { %v4181_v37 = vpop.xlane.xlu0 %4180 }
 0xf31   :  { %7066 = vrsqrt.f32 %v4212_v55  ;;  %v4203_v10 = vmul.f32 0.03125, %v4181_v37 }
 0xf33   :  { %v7063_v32 = vpop.eup %7062  ;;  %v4213_v50 = vadd.f32 1e-05, %v4203_v10 }
 0xf34   :  { %v4184_v8 = vpop.xlane.xlu1 %4183  ;;  %v4187_v14 = vpop.xlane.xlu0 %4186  ;;  %v4230_v41 = vmul.f32 %v7063_v32, %v8704_v23 }
 0xf35   :  { %7068 = vrsqrt.f32 %v4213_v50  ;;  %v4204_v62 = vmul.f32 0.03125, %v4184_v8  ;;  %v4205_v21 = vmul.f32 0.03125, %v4187_v14 }
 0xf36   :  { %v4246_v5 = vmul.f32 %v8787_v13, %v4230_v41 }
 0xf37   :  { %v7065_v58 = vpop.eup %7064  ;;  %v4214_v48 = vadd.f32 1e-05, %v4204_v62  ;;  %v4215_v54 = vadd.f32 1e-05, %v4205_v21 }
 0xf38   :  { %v4231_v1 = vmul.f32 %v7065_v58, %v8708_v2  ;;  %v4190_v3 = vpop.xlane.xlu1 %4189  ;;  %v8798_v56 = vadd.f32 %v8793_v19, %v4246_v5 }
 0xf39   :  { %7070 = vrsqrt.f32 %v4214_v48  ;;  %v4206_v23 = vmul.f32 0.03125, %v4190_v3 }
 0xf3a   :  { %v4247_v26 = vmul.f32 %v8787_v13, %v4231_v1  ;;  %7072 = vrsqrt.f32 %v4215_v54  ;;  %6545 = vmatprep.mubr.msk.f32.mxu1 %vm1142_vm4, %v8798_v56 }
 0xf3b   :  { %v7067_v30 = vpop.eup %7066  ;;  %v4216_v46 = vadd.f32 1e-05, %v4206_v23 }
 0xf3c   :  { %v8804_v43 = vadd.f32 %v8793_v19, %v4247_v26  ;;  %v4193_v7 = vpop.xlane.xlu0 %4192  ;;  %v4232_v2 = vmul.f32 %v7067_v30, %v8713_v11  ;;  %v4445_v30 = vld [vmem:[%s9378_s18 + $0x38] sm:$0xff] }
 0xf3d   :  { %7074 = vrsqrt.f32 %v4216_v46  ;;  %v4207_v60 = vmul.f32 0.03125, %v4193_v7 }
 0xf3e   :  { %6546 = vmatmul.mubr.msk.f32.vlgmr.msra.gmra.mrb[78].mxu1 %vm1142_vm4, %v8804_v43  ;;  %v4248_v33 = vmul.f32 %v8787_v13, %v4232_v2 }
 0xf3f   :  { %v7069_v31 = vpop.eup %7068  ;;  %v4217_v18 = vadd.f32 1e-05, %v4207_v60 }
 0xf40   :  { %v4196_v16 = vpop.xlane.xlu1 %4195  ;;  %v8811_v29 = vadd.f32 %v8793_v19, %v4248_v33  ;;  %v4233_v28 = vmul.f32 %v7069_v31, %v8718_v15 }
 0xf41   :  { %7076 = vrsqrt.f32 %v4217_v18  ;;  %v4208_v40 = vmul.f32 0.03125, %v4196_v16 }
 0xf42   :  { %6548 = vmatprep.mubr.msk.f32.mxu1 %vm1142_vm4, %v8811_v29  ;;  %v4249_v11 = vmul.f32 %v8787_v13, %v4233_v28 }
 0xf43   :  { %v7071_v53 = vpop.eup %7070  ;;  %v4218_v57 = vadd.f32 1e-05, %v4208_v40 }
 0xf44   :  { %v7073_v49 = vpop.eup %7072  ;;  %v4199_v4 = vpop.xlane.xlu0 %4198  ;;  %v8818_v38 = vadd.f32 %v8793_v19, %v4249_v11  ;;  %v4234_v6 = vmul.f32 %v7071_v53, %v8723_v36 }
 0xf45   :  { %7078 = vrsqrt.f32 %v4218_v57  ;;  %v4209_v55 = vmul.f32 0.03125, %v4199_v4  ;;  %v4235_v15 = vmul.f32 %v7073_v49, %v8725_v24 }
 0xf46   :  { %6549 = vmatmul.mubr.msk.f32.gmra.mrb[80].mxu1 %vm1142_vm4, %v8818_v38  ;;  %v4250_v37 = vmul.f32 %v8787_v13, %v4234_v6 }
 0xf47   :  { %v7075_v10 = vpop.eup %7074  ;;  %v4219_v32 = vadd.f32 1e-05, %v4209_v55  ;;  %v4251_v50 = vmul.f32 %v8787_v13, %v4235_v15 }
 0xf48   :  { %v8827_v8 = vadd.f32 %v8793_v19, %v4250_v37  ;;  %v4236_v14 = vmul.f32 %v7075_v10, %v8732_v44 }
 0xf49   :  { %7080 = vrsqrt.f32 %v4219_v32  ;;  %v8831_v36 = vadd.f32 %v8793_v19, %v4251_v50 }
 0xf4a   :  { %6551 = vmatprep.mubr.msk.f32.mxu1 %vm1142_vm4, %v8827_v8  ;;  %v4252_v24 = vmul.f32 %v8787_v13, %v4236_v14 }
 0xf4b   :  { %v7077_v41 = vpop.eup %7076  ;;  %6552 = vmatmul.mubr.msk.f32.gmra.mrb[82].mxu1 %vm1142_vm4, %v8831_v36 }
 0xf4c   :  { %v8839_v62 = vadd.f32 %v8793_v19, %v4252_v24  ;;  %v4237_v21 = vmul.f32 %v7077_v41, %v8738_v47 }
 0xf4e   :  { %6554 = vmatprep.mubr.msk.f32.mxu1 %vm1142_vm4, %v8839_v62  ;;  %v4253_v44 = vmul.f32 %v8787_v13, %v4237_v21 }
 0xf4f   :  { %v7079_v5 = vpop.eup %7078 }
 0xf50   :  { %v8846_v58 = vadd.f32 %v8793_v19, %v4253_v44  ;;  %v4238_v48 = vmul.f32 %v7079_v5, %v8743_v9  ;;  %v4444_v9 = vld [vmem:[%s9378_s18 + $0x30] sm:$0xff] }
 0xf52   :  { %6555 = vmatmul.mubr.msk.f32.gmra.mrb[84].mxu1 %vm1142_vm4, %v8846_v58  ;;  %v4254_v54 = vmul.f32 %v8787_v13, %v4238_v48 }
 0xf53   :  { %v7081_v1 = vpop.eup %7080 }
 0xf54   :  { %v8853_v3 = vadd.f32 %v8793_v19, %v4254_v54  ;;  %v4239_v47 = vmul.f32 %v7081_v1, %v8748_v27  ;;  %v6863_v27 = vpack.c.bf16 %v4445_v30, %v4444_v9  ;;  %v5609_v1 = vld [vmem:[%s9382_s19] ss:$0 sm:$0xff] }
 0xf56   :  { %6557 = vmatprep.mubr.msk.f32.mxu1 %vm1142_vm4, %v8853_v3  ;;  %v4255_v23 = vmul.f32 %v8787_v13, %v4239_v47  ;;  %6864 = vmatprep.subr.bf16.mxu0 %v6863_v27  ;;  %v5588_v13 = vld [vmem:[%s9381_s17] ss:$0 sm:$0xff] }
 0xf57   :  { %6866 = vmatpush3.bf16.msra.mxu0 %v6863_v27 }
 0xf58   :  { %v8860_v26 = vadd.f32 %v8793_v19, %v4255_v23 }
 0xf5a   :  { %6558 = vmatmul.mubr.msk.f32.gmra.mrb[86].mxu1 %vm1142_vm4, %v8860_v26 }
0x1011   :  { %v6547_v19 = vpop.f32.mrb[78].mxu1 }
0x1012   :  { %v4385_v46 = vadd.f32 %v6547_v19, %v5588_v13  ;;  %v4379_v7 = vpop.f32.mrb[79].mxu1 }
0x1013   :  { %v4380_v2 = vadd.f32 %v5588_v13, %v4379_v7 }
0x1014   :  { %v4429_v33 = vmax.f32 %v4385_v46, 0.0 }
0x1015   :  { %v4428_v60 = vmax.f32 %v4380_v2, 0.0 }
0x1017   :  { %6576 = vmatprep.mubr.msk.f32.mxu0 %vm4446_vm0, %v4428_v60 }
0x1018   :  { %6577 = vmatmul.mubr.msk.f32.vlgmr.msra.gmra.mrb[96].mxu0 %vm4446_vm0, %v4429_v33 }
0x1019   :  { %v6550_v31 = vpop.f32.mrb[80].mxu1 }
0x101a   :  { %v4395_v18 = vadd.f32 %v6550_v31, %v5588_v13  ;;  %v4389_v16 = vpop.f32.mrb[81].mxu1 }
0x101b   :  { %v4390_v28 = vadd.f32 %v5588_v13, %v4389_v16 }
0x101c   :  { %v4431_v11 = vmax.f32 %v4395_v18, 0.0 }
0x101d   :  { %v4430_v40 = vmax.f32 %v4390_v28, 0.0 }
0x101e   :  { %v6553_v53 = vpop.f32.mrb[82].mxu1 }
0x101f   :  { %v4405_v57 = vadd.f32 %v6553_v53, %v5588_v13  ;;  %v4399_v49 = vpop.f32.mrb[83].mxu1  ;;  %6579 = vmatprep.mubr.msk.f32.mxu0 %vm4446_vm0, %v4430_v40 }
0x1020   :  { %v4400_v4 = vadd.f32 %v5588_v13, %v4399_v49  ;;  %6580 = vmatmul.mubr.msk.f32.gmra.mrb[98].mxu0 %vm4446_vm0, %v4431_v11 }
0x1021   :  { %v4433_v55 = vmax.f32 %v4405_v57, 0.0 }
0x1022   :  { %v4432_v6 = vmax.f32 %v4400_v4, 0.0 }
0x1024   :  { %6582 = vmatprep.mubr.msk.f32.mxu0 %vm4446_vm0, %v4432_v6 }
0x1025   :  { %v6556_v15 = vpop.f32.mrb[84].mxu1  ;;  %6583 = vmatmul.mubr.msk.f32.gmra.mrb[100].mxu0 %vm4446_vm0, %v4433_v55 }
0x1026   :  { %v4415_v37 = vadd.f32 %v6556_v15, %v5588_v13  ;;  %v4409_v10 = vpop.f32.mrb[85].mxu1 }
0x1027   :  { %v4410_v32 = vadd.f32 %v5588_v13, %v4409_v10 }
0x1028   :  { %v4435_v14 = vmax.f32 %v4415_v37, 0.0 }
0x1029   :  { %v4434_v50 = vmax.f32 %v4410_v32, 0.0 }
0x102b   :  { %6585 = vmatprep.mubr.msk.f32.mxu0 %vm4446_vm0, %v4434_v50 }
0x102c   :  { %6586 = vmatmul.mubr.msk.f32.gmra.mrb[102].mxu0 %vm4446_vm0, %v4435_v14 }
0x102d   :  { %v6559_v24 = vpop.f32.mrb[86].mxu1 }
0x102e   :  { %v4425_v41 = vadd.f32 %v6559_v24, %v5588_v13  ;;  %v4419_v21 = vpop.f32.mrb[87].mxu1 }
0x102f   :  { %v4420_v44 = vadd.f32 %v5588_v13, %v4419_v21 }
0x1030   :  { %v4437_v48 = vmax.f32 %v4425_v41, 0.0 }
0x1031   :  { %v4436_v5 = vmax.f32 %v4420_v44, 0.0 }
0x1033   :  { %6588 = vmatprep.mubr.msk.f32.mxu0 %vm4446_vm0, %v4436_v5 }
0x1034   :  { %6589 = vmatmul.mubr.msk.f32.gmra.mrb[104].mxu0 %vm4446_vm0, %v4437_v48 }
0x10eb   :  { %v6578_v54 = vpop.f32.mrb[96].mxu0 }
0x10ec   :  { %v4593_v47 = vadd.f32 %v6578_v54, %v8804_v43  ;;  %v4543_v23 = vpop.f32.mrb[97].mxu0 }
0x10ed   :  { %v4592_v9 = vadd.f32 %v4543_v23, %v8798_v56 }
0x10ee   :  { %v4610_v30 = vadd.f32 %v5609_v1, %v4593_v47 }
0x10ef   :  { %v4609_v27 = vadd.f32 %v5609_v1, %v4592_v9 }
0x10f0   :  { %v4624_v13 = vsel %vm1142_vm4, %v4610_v30, 0.0 }
0x10f1   :  { %4625 = vadd.xlane.f32.xlu0 %v4624_v13  ;;  %v4621_v19 = vsel %vm1142_vm4, %v4609_v27, 0.0 }
0x10f2   :  { %4622 = vadd.xlane.f32.xlu1 %v4621_v19 }
0x10f3   :  { %v6581_v46 = vpop.f32.mrb[98].mxu0 }
0x10f4   :  { %v4595_v7 = vadd.f32 %v6581_v46, %v8818_v38  ;;  %v4553_v2 = vpop.f32.mrb[99].mxu0 }
0x10f5   :  { %v4594_v60 = vadd.f32 %v4553_v2, %v8811_v29 }
0x10f6   :  { %v4612_v33 = vadd.f32 %v5609_v1, %v4595_v7 }
0x10f7   :  { %v4611_v31 = vadd.f32 %v5609_v1, %v4594_v60 }
0x10f8   :  { %v6584_v43 = vpop.f32.mrb[100].mxu0  ;;  %v4630_v18 = vsel %vm1142_vm4, %v4612_v33, 0.0 }
0x10f9   :  { %v4597_v56 = vadd.f32 %v6584_v43, %v8831_v36  ;;  %4631 = vadd.xlane.f32.xlu0 %v4630_v18  ;;  %v4563_v16 = vpop.f32.mrb[101].mxu0  ;;  %v4627_v28 = vsel %vm1142_vm4, %v4611_v31, 0.0 }
0x10fa   :  { %v4596_v40 = vadd.f32 %v4563_v16, %v8827_v8  ;;  %4628 = vadd.xlane.f32.xlu1 %v4627_v28 }
0x10fb   :  { %v4614_v11 = vadd.f32 %v5609_v1, %v4597_v56 }
0x10fc   :  { %v4613_v53 = vadd.f32 %v5609_v1, %v4596_v40 }
0x10fd   :  { %v4636_v38 = vsel %vm1142_vm4, %v4614_v11, 0.0 }
0x10fe   :  { %4637 = vadd.xlane.f32.xlu0 %v4636_v38  ;;  %v4633_v29 = vsel %vm1142_vm4, %v4613_v53, 0.0 }
0x10ff   :  { %4634 = vadd.xlane.f32.xlu1 %v4633_v29  ;;  %v6587_v57 = vpop.f32.mrb[102].mxu0 }
0x1100   :  { %v4599_v49 = vadd.f32 %v6587_v57, %v8846_v58  ;;  %v4573_v4 = vpop.f32.mrb[103].mxu0 }
0x1101   :  { %v4598_v36 = vadd.f32 %v4573_v4, %v8839_v62 }
0x1102   :  { %v4616_v6 = vadd.f32 %v5609_v1, %v4599_v49 }
0x1103   :  { %v4615_v55 = vadd.f32 %v5609_v1, %v4598_v36 }
0x1104   :  { %v4642_v15 = vsel %vm1142_vm4, %v4616_v6, 0.0 }
0x1105   :  { %4643 = vadd.xlane.f32.xlu0 %v4642_v15  ;;  %v4639_v8 = vsel %vm1142_vm4, %v4615_v55, 0.0 }
0x1106   :  { %4640 = vadd.xlane.f32.xlu1 %v4639_v8 }
0x1107   :  { %v6590_v37 = vpop.f32.mrb[104].mxu0 }
0x1108   :  { %v4601_v10 = vadd.f32 %v6590_v37, %v8860_v26  ;;  %v4583_v32 = vpop.f32.mrb[105].mxu0 }
0x1109   :  { %v4600_v50 = vadd.f32 %v4583_v32, %v8853_v3 }
0x110a   :  { %v4618_v14 = vadd.f32 %v5609_v1, %v4601_v10 }
0x110b   :  { %v4617_v24 = vadd.f32 %v5609_v1, %v4600_v50 }
0x110c   :  { %v4648_v58 = vsel %vm1142_vm4, %v4618_v14, 0.0 }
0x110d   :  { %4649 = vadd.xlane.f32.xlu0 %v4648_v58  ;;  %v4645_v62 = vsel %vm1142_vm4, %v4617_v24, 0.0 }
0x110e   :  { %4646 = vadd.xlane.f32.xlu1 %v4645_v62 }
0x117e   :  { %v4626_v41 = vpop.xlane.xlu0 %4625 }
0x117f   :  { %v4652_v21 = vmul.f32 0.03125, %v4626_v41  ;;  %v4623_v44 = vpop.xlane.xlu1 %4622 }
0x1180   :  { %v4651_v5 = vmul.f32 0.03125, %v4623_v44 }
0x1181   :  { %v8906_v48 = vsub.f32 %v4610_v30, %v4652_v21 }
0x1182   :  { %v8908_v54 = vsub.f32 %v4609_v27, %v4651_v5 }
0x1183   :  { %v4672_v26 = vmul.f32 %v8906_v48, %v8906_v48 }
0x1184   :  { %v4671_v3 = vmul.f32 %v8908_v54, %v8908_v54 }
0x1185   :  { %v4684_v1 = vsel %vm1142_vm4, %v4672_v26, 0.0  ;;  %v8959_v26 = vld [vmem:[%s9383_s3] ss:$0 sm:$0xff] }
0x1186   :  { %v4632_v47 = vpop.xlane.xlu0 %4631  ;;  %4685 = vadd.xlane.f32.xlu0 %v4684_v1  ;;  %v4681_v23 = vsel %vm1142_vm4, %v4671_v3, 0.0  ;;  %vm212_vm2 = vcmp.eq.s32.totalorder %v8959_v26, %v8478_v59  ;;  %vm213_vm5 = vcmp.eq.s32.totalorder %v8959_v26, %v8590_v17  ;;  %vm214_vm6 = vcmp.eq.s32.totalorder %v8959_v26, %v8604_v51 }
0x1187   :  { %v4654_v9 = vmul.f32 0.03125, %v4632_v47  ;;  %v4629_v13 = vpop.xlane.xlu1 %4628  ;;  %4682 = vadd.xlane.f32.xlu1 %v4681_v23  ;;  %vm215_vm7 = vcmp.eq.s32.totalorder %v8959_v26, %v8626_v61  ;;  %vm216_vm8 = vcmp.eq.s32.totalorder %v8959_v26, %v8641_v0 }
0x1188   :  { %v4653_v19 = vmul.f32 0.03125, %v4629_v13 }
0x1189   :  { %v8916_v30 = vsub.f32 %v4612_v33, %v4654_v9 }
0x118a   :  { %v8918_v27 = vsub.f32 %v4611_v31, %v4653_v19 }
0x118b   :  { %v4638_v46 = vpop.xlane.xlu0 %4637  ;;  %v4674_v7 = vmul.f32 %v8916_v30, %v8916_v30 }
0x118c   :  { %v4656_v2 = vmul.f32 0.03125, %v4638_v46  ;;  %v4635_v60 = vpop.xlane.xlu1 %4634  ;;  %v4673_v43 = vmul.f32 %v8918_v27, %v8918_v27 }
0x118d   :  { %v4655_v18 = vmul.f32 0.03125, %v4635_v60  ;;  %v4690_v56 = vsel %vm1142_vm4, %v4674_v7, 0.0 }
0x118e   :  { %v8925_v16 = vsub.f32 %v4614_v11, %v4656_v2  ;;  %4691 = vadd.xlane.f32.xlu0 %v4690_v56  ;;  %v4687_v33 = vsel %vm1142_vm4, %v4673_v43, 0.0 }
0x118f   :  { %v8928_v28 = vsub.f32 %v4613_v53, %v4655_v18  ;;  %4688 = vadd.xlane.f32.xlu1 %v4687_v33 }
0x1190   :  { %v4676_v31 = vmul.f32 %v8925_v16, %v8925_v16 }
0x1191   :  { %v4675_v40 = vmul.f32 %v8928_v28, %v8928_v28 }
0x1192   :  { %v4644_v38 = vpop.xlane.xlu0 %4643  ;;  %v4696_v29 = vsel %vm1142_vm4, %v4676_v31, 0.0 }
0x1193   :  { %v4658_v57 = vmul.f32 0.03125, %v4644_v38  ;;  %v4641_v49 = vpop.xlane.xlu1 %4640  ;;  %4697 = vadd.xlane.f32.xlu0 %v4696_v29  ;;  %v4693_v11 = vsel %vm1142_vm4, %v4675_v40, 0.0  ;;  %v8977_v29 = vld [vmem:[%s9384_s20] ss:$0 sm:$0xff] }
0x1194   :  { %v4657_v4 = vmul.f32 0.03125, %v4641_v49  ;;  %4694 = vadd.xlane.f32.xlu1 %v4693_v11 }
0x1195   :  { %v8936_v36 = vsub.f32 %v4616_v6, %v4658_v57 }
0x1196   :  { %v8938_v53 = vsub.f32 %v4615_v55, %v4657_v4 }
0x1197   :  { %v4678_v15 = vmul.f32 %v8936_v36, %v8936_v36 }
0x1198   :  { %v4677_v8 = vmul.f32 %v8938_v53, %v8938_v53 }
0x1199   :  { %v4702_v37 = vsel %vm1142_vm4, %v4678_v15, 0.0  ;;  %v8983_v15 = vld [vmem:[%s9385_s21] ss:$0 sm:$0xff] }
0x119a   :  { %4703 = vadd.xlane.f32.xlu0 %v4702_v37  ;;  %v4650_v10 = vpop.xlane.xlu0 %4649  ;;  %v4699_v32 = vsel %vm1142_vm4, %v4677_v8, 0.0 }
0x119b   :  { %v4660_v50 = vmul.f32 0.03125, %v4650_v10  ;;  %4700 = vadd.xlane.f32.xlu1 %v4699_v32  ;;  %v4647_v58 = vpop.xlane.xlu1 %4646 }
0x119c   :  { %v4659_v62 = vmul.f32 0.03125, %v4647_v58 }
0x119d   :  { %v8946_v6 = vsub.f32 %v4618_v14, %v4660_v50  ;;  %v5400_v14 = vsel %vm212_vm2, 1.0, %v9482_v52 }
0x119e   :  { %v8948_v55 = vsub.f32 %v4617_v24, %v4659_v62  ;;  %6601 = vmatprep.mubr.msk.f32.mxu1 %vm745_vm13, %v5400_v14  ;;  %v8968_v24 = vld [vmem:[%s9383_s3 + $0x1] ss:$0 sm:$0xff] }
0x119f   :  { %v4680_v41 = vmul.f32 %v8946_v6, %v8946_v6  ;;  %vm222_vm3 = vcmp.eq.s32.totalorder %v8968_v24, %v8478_v59  ;;  %vm223_vm15 = vcmp.eq.s32.totalorder %v8968_v24, %v8590_v17  ;;  %vm224_vm1 = vcmp.eq.s32.totalorder %v8968_v24, %v8604_v51 }
0x11a0   :  { %v4679_v21 = vmul.f32 %v8948_v55, %v8948_v55  ;;  %v5410_v3 = vsel %vm222_vm3, 1.0, %v9482_v52  ;;  %vm225_vm0 = vcmp.eq.s32.totalorder %v8968_v24, %v8626_v61  ;;  %vm226_vm2 = vcmp.eq.s32.totalorder %v8968_v24, %v8641_v0 }
0x11a1   :  { %v4708_v44 = vsel %vm1142_vm4, %v4680_v41, 0.0  ;;  %6626 = vmatprep.mubr.msk.f32.mxu0 %vm745_vm13, %v5410_v3  ;;  %v5413_v17 = vsel %vm225_vm0, 1.0, %v9482_v52  ;;  %v5414_v51 = vsel %vm226_vm2, 1.0, %v9482_v52 }
0x11a2   :  { %4709 = vadd.xlane.f32.xlu0 %v4708_v44  ;;  %v4705_v5 = vsel %vm1142_vm4, %v4679_v21, 0.0 }
0x11a3   :  { %4706 = vadd.xlane.f32.xlu1 %v4705_v5 }
0x1213   :  { %v4686_v1 = vpop.xlane.xlu0 %4685 }
0x1214   :  { %v4712_v47 = vmul.f32 0.03125, %v4686_v1  ;;  %v4683_v23 = vpop.xlane.xlu1 %4682 }
0x1215   :  { %v4711_v9 = vmul.f32 0.03125, %v4683_v23 }
0x1216   :  { %v4722_v13 = vadd.f32 1e-05, %v4712_v47 }
0x1217   :  { %v4721_v19 = vadd.f32 1e-05, %v4711_v9 }
0x1218   :  { %7082 = vrsqrt.f32 %v4722_v13 }
0x1219   :  { %7084 = vrsqrt.f32 %v4721_v19 }
0x121b   :  { %v4692_v46 = vpop.xlane.xlu0 %4691 }
0x121c   :  { %v4714_v7 = vmul.f32 0.03125, %v4692_v46  ;;  %v4689_v2 = vpop.xlane.xlu1 %4688 }
0x121d   :  { %v4713_v60 = vmul.f32 0.03125, %v4689_v2 }
0x121e   :  { %v4724_v43 = vadd.f32 1e-05, %v4714_v7 }
0x121f   :  { %v4723_v18 = vadd.f32 1e-05, %v4713_v60 }
0x1220   :  { %7086 = vrsqrt.f32 %v4724_v43  ;;  %v4698_v56 = vpop.xlane.xlu0 %4697 }
0x1221   :  { %7088 = vrsqrt.f32 %v4723_v18  ;;  %v4716_v33 = vmul.f32 0.03125, %v4698_v56  ;;  %v4695_v31 = vpop.xlane.xlu1 %4694 }
0x1222   :  { %v7083_v40 = vpop.eup %7082  ;;  %v4715_v38 = vmul.f32 0.03125, %v4695_v31 }
0x1223   :  { %v7085_v57 = vpop.eup %7084  ;;  %v4726_v49 = vadd.f32 1e-05, %v4716_v33  ;;  %v4742_v11 = vmul.f32 %v7083_v40, %v8906_v48 }
0x1224   :  { %v4725_v4 = vadd.f32 1e-05, %v4715_v38  ;;  %v4741_v8 = vmul.f32 %v7085_v57, %v8908_v54 }
0x1225   :  { %7090 = vrsqrt.f32 %v4726_v49  ;;  %v4758_v37 = vmul.f32 %v8977_v29, %v4742_v11 }
0x1226   :  { %7092 = vrsqrt.f32 %v4725_v4  ;;  %v4757_v10 = vmul.f32 %v8977_v29, %v4741_v8  ;;  %v5125_v4 = vld [vmem:[%s9386_s22 + $0x10] sm:$0xff]  ;;  %v5126_v8 = vld [vmem:[%s9386_s22 + $0x18] sm:$0xff] }
0x1227   :  { %v4704_v32 = vpop.xlane.xlu0 %4703  ;;  %v4774_v50 = vadd.f32 %v8983_v15, %v4758_v37 }
0x1228   :  { %v4718_v58 = vmul.f32 0.03125, %v4704_v32  ;;  %v4701_v62 = vpop.xlane.xlu1 %4700  ;;  %v4773_v48 = vadd.f32 %v8983_v15, %v4757_v10  ;;  %v5401_v10 = vsel %vm213_vm5, 1.0, %v9482_v52  ;;  %v5402_v32 = vsel %vm214_vm6, 1.0, %v9482_v52 }
0x1229   :  { %v4717_v41 = vmul.f32 0.03125, %v4701_v62  ;;  %v4784_v21 = vsub.f32 %v4774_v50, %v9512_v45 }
0x122a   :  { %v7087_v44 = vpop.eup %7086  ;;  %v4728_v5 = vadd.f32 1e-05, %v4718_v58  ;;  %v4783_v54 = vsub.f32 %v4773_v48, %v9511_v63  ;;  %v9033_v58 = vadd.s32 48, %v8478_v59 }
0x122b   :  { %v7089_v14 = vpop.eup %7088  ;;  %v4727_v3 = vadd.f32 1e-05, %v4717_v41  ;;  %v4744_v1 = vmul.f32 %v7087_v44, %v8916_v30  ;;  %v6887_v41 = vpack.c.bf16 %v5126_v8, %v5125_v4  ;;  %v5403_v44 = vsel %vm215_vm7, 1.0, %v9482_v52  ;;  %v7107_v8 = vld [vmem:[%s9453_s6 + $0x20] sm:$0xff] }
0x122c   :  { %7094 = vrsqrt.f32 %v4728_v5  ;;  %v6867_v47 = vpack.c.bf16 %v4784_v21, %v4783_v54  ;;  %v4743_v23 = vmul.f32 %v7089_v14, %v8918_v27  ;;  %v5404_v5 = vsel %vm216_vm8, 1.0, %v9482_v52 }
0x122d   :  { %7096 = vrsqrt.f32 %v4727_v3  ;;  %v4760_v9 = vmul.f32 %v8977_v29, %v4744_v1  ;;  %vm218_vm10 = vcmp.eq.s32.totalorder %v8959_v26, %v9033_v58  ;;  %vm228_vm5 = vcmp.eq.s32.totalorder %v8968_v24, %v9033_v58  ;;  %v7109_v58 = vld [vmem:[%s9453_s6 + $0x30] sm:$0xff] }
0x122e   :  { %6868 = vmatprep.subr.bf16.mxu1 %v6867_v47  ;;  %v4759_v13 = vmul.f32 %v8977_v29, %v4743_v23  ;;  %v5416_v0 = vsel %vm228_vm5, 1.0, %v9482_v52 }
0x122f   :  { %v7091_v19 = vpop.eup %7090  ;;  %v4710_v45 = vpop.xlane.xlu0 %4709  ;;  %6870 = vmatpush3.bf16.msra.mxu1 %v6867_v47  ;;  %v4776_v46 = vadd.f32 %v8983_v15, %v4760_v9  ;;  %v202_v47 = vadd.s32 64, %v8478_v59 }
0x1230   :  { %v7093_v63 = vpop.eup %7092  ;;  %v4720_v7 = vmul.f32 0.03125, %v4710_v45  ;;  %v4707_v2 = vpop.xlane.xlu1 %4706  ;;  %v4775_v30 = vadd.f32 %v8983_v15, %v4759_v13  ;;  %v4746_v33 = vmul.f32 %v7091_v19, %v8925_v16 }
0x1231   :  { %v4719_v60 = vmul.f32 0.03125, %v4707_v2  ;;  %v4786_v43 = vsub.f32 %v4776_v46, %v9514_v34  ;;  %v4745_v27 = vmul.f32 %v7093_v63, %v8928_v28  ;;  %v5124_v34 = vld [vmem:[%s9386_s22 + $0x8] sm:$0xff]  ;;  %vm220_vm12 = vcmp.eq.s32.totalorder %v8959_v26, %v202_v47 }
0x1232   :  { %v4730_v18 = vadd.f32 1e-05, %v4720_v7  ;;  %v4785_v56 = vsub.f32 %v4775_v30, %v9513_v12  ;;  %v5123_v12 = vld [vmem:[%s9386_s22] sm:$0xff]  ;;  %v4762_v28 = vmul.f32 %v8977_v29, %v4746_v33  ;;  %vm230_vm7 = vcmp.eq.s32.totalorder %v8968_v24, %v202_v47 }
0x1233   :  { %v4729_v31 = vadd.f32 1e-05, %v4719_v60  ;;  %v4761_v40 = vmul.f32 %v8977_v29, %v4745_v27  ;;  %v6883_v50 = vpack.c.bf16 %v5124_v34, %v5123_v12  ;;  %v7105_v34 = vld [vmem:[%s9453_s6 + $0x10] sm:$0xff] }
0x1234   :  { %7098 = vrsqrt.f32 %v4730_v18  ;;  %v6871_v38 = vpack.c.bf16 %v4786_v43, %v4785_v56  ;;  %v4778_v62 = vadd.f32 %v8983_v15, %v4762_v28  ;;  %v7102_v56 = vld [vmem:[%s9453_s6 + $0x8] sm:$0xff] }
0x1235   :  { %7100 = vrsqrt.f32 %v4729_v31  ;;  %v4777_v57 = vadd.f32 %v8983_v15, %v4761_v40  ;;  %v7103_v40 = vld [vmem:[%s9453_s6] sm:$0xff] }
0x1236   :  { %v7095_v16 = vpop.eup %7094  ;;  %6872 = vmatprep.subr.bf16.mxu1 %v6871_v38  ;;  %v4788_v14 = vsub.f32 %v4778_v62, %v9516_v25 }
0x1237   :  { %v7097_v49 = vpop.eup %7096  ;;  %6874 = vmatpush3.bf16.msra.mxu1 %v6871_v38  ;;  %v4787_v11 = vsub.f32 %v4777_v57, %v9515_v22  ;;  %v9030_v22 = vadd.s32 40, %v8478_v59  ;;  %v4748_v48 = vmul.f32 %v7095_v16, %v8936_v36  ;;  %v9048_v36 = vadd.s32 56, %v8478_v59  ;;  %v7104_v38 = vld [vmem:[%s9453_s6 + $0x18] sm:$0xff] }
0x1238   :  { %v4747_v37 = vmul.f32 %v7097_v49, %v8938_v53  ;;  %v7106_v49 = vld [vmem:[%s9453_s6 + $0x28] sm:$0xff] }
0x1239   :  { %6599 = vmatprep.subr.mxu1 %v4787_v11  ;;  %vm217_vm9 = vcmp.eq.s32.totalorder %v8959_v26, %v9030_v22  ;;  %v4764_v1 = vmul.f32 %v8977_v29, %v4748_v48  ;;  %vm219_vm11 = vcmp.eq.s32.totalorder %v8959_v26, %v9048_v36  ;;  %vm227_vm3 = vcmp.eq.s32.totalorder %v8968_v24, %v9030_v22  ;;  %v7110_v48 = vld [vmem:[%s9453_s6 + $0x48] sm:$0xff] }
0x123a   :  { %v4763_v53 = vmul.f32 %v8977_v29, %v4747_v37  ;;  %v5405_v25 = vsel %vm217_vm9, 1.0, %v9482_v52  ;;  %v5407_v7 = vsel %vm219_vm11, 1.0, %v9482_v52  ;;  %v5415_v61 = vsel %vm227_vm3, 1.0, %v9482_v52 }
0x123b   :  { %6600 = vmatpush3.msra.mxu1 %v4787_v11  ;;  %v4780_v45 = vadd.f32 %v8983_v15, %v4764_v1  ;;  %vm229_vm6 = vcmp.eq.s32.totalorder %v8968_v24, %v9048_v36  ;;  %v7113_v1 = vld [vmem:[%s9453_s6 + $0x50] sm:$0xff] }
0x123c   :  { %v4779_v21 = vadd.f32 %v8983_v15, %v4763_v53  ;;  %6602 = vmatmul.mubr.msk.f32.vlgmr.msra.gmra.mrb[88].mxu1 %vm745_vm13, %v5401_v10  ;;  %6884 = vmatprep.subr.bf16.mxu1 %v6883_v50 }
0x123d   :  { %6604 = vmatprep.mubr.msk.f32.mxu1 %vm745_vm13, %v5402_v32  ;;  %6886 = vmatpush3.bf16.msra.mxu1 %v6883_v50  ;;  %v4790_v2 = vsub.f32 %v4780_v45, %v9518_v20  ;;  %v5411_v20 = vsel %vm223_vm15, 1.0, %v9482_v52  ;;  %v7108_v32 = vld [vmem:[%s9453_s6 + $0x38] sm:$0xff] }
0x123e   :  { %v7099_v54 = vpop.eup %7098  ;;  %v4789_v3 = vsub.f32 %v4779_v21, %v9517_v39  ;;  %6888 = vmatprep.subr.bf16.mxu1 %v6887_v41  ;;  %v5406_v39 = vsel %vm218_vm10, 1.0, %v9482_v52 }
0x123f   :  { %v7101_v23 = vpop.eup %7100  ;;  %v4750_v9 = vmul.f32 %v7099_v54, %v8946_v6  ;;  %v203_v6 = vadd.s32 72, %v8478_v59  ;;  %v5408_v59 = vsel %vm220_vm12, 1.0, %v9482_v52  ;;  %v7112_v54 = vld [vmem:[%s9453_s6 + $0x58] sm:$0xff] }
0x1240   :  { %v4749_v13 = vmul.f32 %v7101_v23, %v8948_v55  ;;  %v6875_v19 = vpack.c.bf16 %v4789_v3, %v4788_v14  ;;  %6605 = vmatmul.mubr.msk.f32.gmra.mrb[90].mxu1 %vm745_vm13, %v5403_v44  ;;  %v7111_v44 = vld [vmem:[%s9453_s6 + $0x40] sm:$0xff] }
0x1241   :  { %6607 = vmatprep.mubr.msk.f32.mxu1 %vm745_vm13, %v5404_v5  ;;  %6890 = vmatpush3.bf16.msra.mxu1 %v6887_v41  ;;  %v4766_v46 = vmul.f32 %v8977_v29, %v4750_v9  ;;  %vm221_vm14 = vcmp.eq.s32.totalorder %v8959_v26, %v203_v6  ;;  %v5418_v26 = vsel %vm230_vm7, 1.0, %v9482_v52  ;;  %vm231_vm8 = vcmp.eq.s32.totalorder %v8968_v24, %v203_v6  ;;  %v7114_v9 = vld [vmem:[%s9453_s6 + $0x68] sm:$0xff] }
0x1242   :  { %6876 = vmatprep.subr.bf16.mxu0 %v6875_v19  ;;  %v4765_v55 = vmul.f32 %v8977_v29, %v4749_v13  ;;  %v5409_v43 = vsel %vm221_vm14, 1.0, %v9482_v52 }
0x1243   :  { %6878 = vmatpush3.bf16.msra.mxu0 %v6875_v19  ;;  %v4782_v60 = vadd.f32 %v8983_v15, %v4766_v46 }
0x1244   :  { %v4781_v63 = vadd.f32 %v8983_v15, %v4765_v55  ;;  %6608 = vmatmul.mubr.msk.f32.gmra.mrb[92].mxu1 %vm745_vm13, %v5405_v25  ;;  %v5419_v15 = vsel %vm231_vm8, 1.0, %v9482_v52  ;;  %v7115_v25 = vld [vmem:[%s9453_s6 + $0x60] sm:$0xff]  ;;  %v7116_v55 = vld [vmem:[%s9453_s6 + $0x78] sm:$0xff] }
0x1245   :  { %6610 = vmatprep.mubr.msk.f32.mxu1 %vm745_vm13, %v5406_v39  ;;  %v4792_v27 = vsub.f32 %v4782_v60, %v9520_v35  ;;  %v5417_v35 = vsel %vm229_vm6, 1.0, %v9482_v52 }
0x1246   :  { %v4791_v30 = vsub.f32 %v4781_v63, %v9519_v42  ;;  %v5412_v42 = vsel %vm224_vm1, 1.0, %v9482_v52  ;;  %v7117_v63 = vld [vmem:[%s9453_s6 + $0x70] sm:$0xff] }
0x1248   :  { %v6879_v29 = vpack.c.bf16 %v4791_v30, %v4790_v2  ;;  %6611 = vmatmul.mubr.msk.f32.gmra.mrb[94].mxu1 %vm745_vm13, %v5407_v7  ;;  %v7118_v2 = vld [vmem:[%s9453_s6 + $0x88] sm:$0xff] }
0x1249   :  { %6613 = vmatprep.mubr.msk.f32.mxu1 %vm745_vm13, %v5408_v59 }
0x124a   :  { %6880 = vmatprep.subr.bf16.mxu0 %v6879_v29 }
0x124b   :  { %6882 = vmatpush3.bf16.msra.mxu0 %v6879_v29  ;;  %v7119_v29 = vld [vmem:[%s9453_s6 + $0x80] sm:$0xff] }
0x124c   :  { %6624 = vmatprep.subr.mxu0 %v4792_v27  ;;  %6614 = vmatmul.mubr.msk.f32.gmra.mrb[96].mxu1 %vm745_vm13, %v5409_v43 }
0x124f   :  { %6625 = vmatpush3.msra.mxu0 %v4792_v27 }
0x1250   :  { %6627 = vmatmul.mubr.msk.f32.vlgmr.msra.gmra.mrb[106].mxu0 %vm745_vm13, %v5411_v20  ;;  %v7120_v20 = vld [vmem:[%s9453_s6 + $0x98] sm:$0xff] }
0x1251   :  { %6629 = vmatprep.mubr.msk.f32.mxu0 %vm745_vm13, %v5412_v42 }
0x1254   :  { %6630 = vmatmul.mubr.msk.f32.gmra.mrb[108].mxu0 %vm745_vm13, %v5413_v17 }
0x1255   :  { %6632 = vmatprep.mubr.msk.f32.mxu0 %vm745_vm13, %v5414_v51  ;;  %v7121_v51 = vld [vmem:[%s9453_s6 + $0x90] sm:$0xff] }
0x1258   :  { %6633 = vmatmul.mubr.msk.f32.gmra.mrb[110].mxu0 %vm745_vm13, %v5415_v61 }
0x1259   :  { %6635 = vmatprep.mubr.msk.f32.mxu0 %vm745_vm13, %v5416_v0  ;;  %v5632_v0 = vld [vmem:[%s9388_s23] ss:$0 sm:$0xff] }
0x125c   :  { %6636 = vmatmul.mubr.msk.f32.gmra.mrb[112].mxu0 %vm745_vm13, %v5417_v35 }
0x125d   :  { %6638 = vmatprep.mubr.msk.f32.mxu0 %vm745_vm13, %v5418_v26 }
0x1260   :  { %6639 = vmatmul.mubr.msk.f32.gmra.mrb[114].mxu0 %vm745_vm13, %v5419_v15  ;;  %vm5359_vm13 = vcmask 89088  }
0x130f   :  { %v6603_v18 = vpop.f32.mrb[88].mxu1 }
0x1310   :  { %v5084_v33 = vadd.f32 %v7102_v56, %v6603_v18  ;;  %v4889_v31 = vpop.f32.mrb[89].mxu1 }
0x1311   :  { %v5083_v24 = vadd.f32 %v7103_v40, %v4889_v31 }
0x1312   :  { %5104 = vst.msk [vmem:[%s9387_s24 + $0x8] sm:$0xff] %vm1142_vm4, %v5084_v33 }
0x1313   :  { %5103 = vst.msk [vmem:[%s9387_s24] sm:$0xff] %vm1142_vm4, %v5083_v24  ;;  %v6606_v52 = vpop.f32.mrb[90].mxu1  ;;  %6649 = vmatprep.mubr.msk.f32.mxu1 %vm1142_vm4, %v5083_v24 }
0x1314   :  { %v5086_v57 = vadd.f32 %v7104_v38, %v6606_v52  ;;  %v4899_v12 = vpop.f32.mrb[91].mxu1  ;;  %6650 = vmatmul.mubr.msk.f32.vlgmr.msra.gmra.mrb[98].mxu1 %vm1142_vm4, %v5084_v33 }
0x1315   :  { %v5085_v16 = vadd.f32 %v7105_v34, %v4899_v12 }
0x1316   :  { %5106 = vst.msk [vmem:[%s9387_s24 + $0x18] sm:$0xff] %vm1142_vm4, %v5086_v57 }
0x1317   :  { %5105 = vst.msk [vmem:[%s9387_s24 + $0x10] sm:$0xff] %vm1142_vm4, %v5085_v16  ;;  %v6609_v28 = vpop.f32.mrb[92].mxu1  ;;  %6652 = vmatprep.mubr.msk.f32.mxu1 %vm1142_vm4, %v5085_v16 }
0x1318   :  { %v5088_v11 = vadd.f32 %v7106_v49, %v6609_v28  ;;  %v4909_v4 = vpop.f32.mrb[93].mxu1  ;;  %6653 = vmatmul.mubr.msk.f32.gmra.mrb[100].mxu1 %vm1142_vm4, %v5086_v57 }
0x1319   :  { %v5087_v37 = vadd.f32 %v7107_v8, %v4909_v4 }
0x131a   :  { %5108 = vst.msk [vmem:[%s9387_s24 + $0x28] sm:$0xff] %vm1142_vm4, %v5088_v11 }
0x131b   :  { %5107 = vst.msk [vmem:[%s9387_s24 + $0x20] sm:$0xff] %vm1142_vm4, %v5087_v37  ;;  %v6612_v10 = vpop.f32.mrb[94].mxu1  ;;  %6655 = vmatprep.mubr.msk.f32.mxu1 %vm1142_vm4, %v5087_v37 }
0x131c   :  { %v5090_v50 = vadd.f32 %v7108_v32, %v6612_v10  ;;  %v4919_v22 = vpop.f32.mrb[95].mxu1  ;;  %6656 = vmatmul.mubr.msk.f32.gmra.mrb[102].mxu1 %vm1142_vm4, %v5088_v11 }
0x131d   :  { %v5089_v53 = vadd.f32 %v7109_v58, %v4919_v22 }
0x131e   :  { %5110 = vst.msk [vmem:[%s9387_s24 + $0x38] sm:$0xff] %vm1142_vm4, %v5090_v50 }
0x131f   :  { %5109 = vst.msk [vmem:[%s9387_s24 + $0x30] sm:$0xff] %vm1142_vm4, %v5089_v53  ;;  %v6615_v62 = vpop.f32.mrb[96].mxu1  ;;  %6658 = vmatprep.mubr.msk.f32.mxu1 %vm1142_vm4, %v5089_v53 }
0x1320   :  { %v5092_v41 = vadd.f32 %v7110_v48, %v6615_v62  ;;  %v4929_v21 = vpop.f32.mrb[97].mxu1  ;;  %6659 = vmatmul.mubr.msk.f32.gmra.mrb[104].mxu1 %vm1142_vm4, %v5090_v50 }
0x1321   :  { %v5091_v5 = vadd.f32 %v7111_v44, %v4929_v21 }
0x1322   :  { %5112 = vst.msk [vmem:[%s9387_s24 + $0x48] sm:$0xff] %vm1142_vm4, %v5092_v41 }
0x1323   :  { %5111 = vst.msk [vmem:[%s9387_s24 + $0x40] sm:$0xff] %vm1142_vm4, %v5091_v5  ;;  %v6628_v36 = vpop.f32.mrb[106].mxu0  ;;  %6661 = vmatprep.mubr.msk.f32.mxu1 %vm1142_vm4, %v5091_v5 }
0x1324   :  { %v5094_v14 = vadd.f32 %v7112_v54, %v6628_v36  ;;  %v5034_v3 = vpop.f32.mrb[107].mxu0  ;;  %6662 = vmatmul.mubr.msk.f32.gmra.mrb[106].mxu1 %vm1142_vm4, %v5092_v41 }
0x1325   :  { %v5093_v47 = vadd.f32 %v7113_v1, %v5034_v3 }
0x1326   :  { %5114 = vst.msk [vmem:[%s9387_s24 + $0x58] sm:$0xff] %vm1142_vm4, %v5094_v14 }
0x1327   :  { %5113 = vst.msk [vmem:[%s9387_s24 + $0x50] sm:$0xff] %vm1142_vm4, %v5093_v47  ;;  %v6631_v23 = vpop.f32.mrb[108].mxu0  ;;  %6664 = vmatprep.mubr.msk.f32.mxu1 %vm1142_vm4, %v5093_v47 }
0x1328   :  { %v5096_v13 = vadd.f32 %v7114_v9, %v6631_v23  ;;  %v5044_v19 = vpop.f32.mrb[109].mxu0  ;;  %6665 = vmatmul.mubr.msk.f32.gmra.mrb[108].mxu1 %vm1142_vm4, %v5094_v14 }
0x1329   :  { %v5095_v39 = vadd.f32 %v7115_v25, %v5044_v19 }
0x132a   :  { %5116 = vst.msk [vmem:[%s9387_s24 + $0x68] sm:$0xff] %vm1142_vm4, %v5096_v13 }
0x132b   :  { %5115 = vst.msk [vmem:[%s9387_s24 + $0x60] sm:$0xff] %vm1142_vm4, %v5095_v39  ;;  %v6634_v6 = vpop.f32.mrb[110].mxu0  ;;  %6667 = vmatprep.mubr.msk.f32.mxu1 %vm1142_vm4, %v5095_v39 }
0x132c   :  { %v5098_v45 = vadd.f32 %v7116_v55, %v6634_v6  ;;  %v5054_v46 = vpop.f32.mrb[111].mxu0  ;;  %6668 = vmatmul.mubr.msk.f32.gmra.mrb[110].mxu1 %vm1142_vm4, %v5096_v13 }
0x132d   :  { %v5097_v7 = vadd.f32 %v7117_v63, %v5054_v46 }
0x132e   :  { %5118 = vst.msk [vmem:[%s9387_s24 + $0x78] sm:$0xff] %vm1142_vm4, %v5098_v45 }
0x132f   :  { %5117 = vst.msk [vmem:[%s9387_s24 + $0x70] sm:$0xff] %vm1142_vm4, %v5097_v7  ;;  %v6637_v59 = vpop.f32.mrb[112].mxu0  ;;  %6670 = vmatprep.mubr.msk.f32.mxu1 %vm1142_vm4, %v5097_v7 }
0x1330   :  { %v5100_v30 = vadd.f32 %v7118_v2, %v6637_v59  ;;  %v5064_v60 = vpop.f32.mrb[113].mxu0  ;;  %6671 = vmatmul.mubr.msk.f32.gmra.mrb[112].mxu1 %vm1142_vm4, %v5098_v45 }
0x1331   :  { %v5099_v43 = vadd.f32 %v7119_v29, %v5064_v60 }
0x1332   :  { %5120 = vst.msk [vmem:[%s9387_s24 + $0x88] sm:$0xff] %vm1142_vm4, %v5100_v30 }
0x1333   :  { %5119 = vst.msk [vmem:[%s9387_s24 + $0x80] sm:$0xff] %vm1142_vm4, %v5099_v43  ;;  %v6640_v27 = vpop.f32.mrb[114].mxu0  ;;  %6673 = vmatprep.mubr.msk.f32.mxu1 %vm1142_vm4, %v5099_v43 }
0x1334   :  { %v5102_v42 = vadd.f32 %v7120_v20, %v6640_v27  ;;  %v5074_v17 = vpop.f32.mrb[115].mxu0  ;;  %6674 = vmatmul.mubr.msk.f32.gmra.mrb[114].mxu1 %vm1142_vm4, %v5100_v30 }
0x1335   :  { %v5101_v61 = vadd.f32 %v7121_v51, %v5074_v17 }
0x1336   :  { %5122 = vst.msk [vmem:[%s9387_s24 + $0x98] sm:$0xff] %vm1142_vm4, %v5102_v42 }
0x1337   :  { %5121 = vst.msk [vmem:[%s9387_s24 + $0x90] sm:$0xff] %vm1142_vm4, %v5101_v61  ;;  %6676 = vmatprep.mubr.msk.f32.mxu1 %vm1142_vm4, %v5101_v61 }
0x1338   :  { %6677 = vmatmul.mubr.msk.f32.gmra.mrb[116].mxu1 %vm1142_vm4, %v5102_v42 }
0x13e7   :  { %v6651_v35 = vpop.f32.mrb[98].mxu1 }
0x13e8   :  { %v5266_v26 = vadd.f32 %v6651_v35, %v5632_v0  ;;  %v5260_v15 = vpop.f32.mrb[99].mxu1 }
0x13e9   :  { %v5261_v18 = vadd.f32 %v5632_v0, %v5260_v15 }
0x13ea   :  { %5361 = vst.msk [vmem:[%s9389_s25 + $0x8] sm:$0xff] %vm5359_vm13, %v5266_v26 }
0x13eb   :  { %5360 = vst.msk [vmem:[%s9389_s25] sm:$0xff] %vm5359_vm13, %v5261_v18  ;;  %v6654_v56 = vpop.f32.mrb[100].mxu1 }
0x13ec   :  { %v5276_v33 = vadd.f32 %v6654_v56, %v5632_v0  ;;  %v5270_v31 = vpop.f32.mrb[101].mxu1 }
0x13ed   :  { %v5271_v40 = vadd.f32 %v5632_v0, %v5270_v31 }
0x13ee   :  { %5363 = vst.msk [vmem:[%s9389_s25 + $0x18] sm:$0xff] %vm5359_vm13, %v5276_v33 }
0x13ef   :  { %5362 = vst.msk [vmem:[%s9389_s25 + $0x10] sm:$0xff] %vm5359_vm13, %v5271_v40  ;;  %v6657_v24 = vpop.f32.mrb[102].mxu1 }
0x13f0   :  { %v5286_v52 = vadd.f32 %v6657_v24, %v5632_v0  ;;  %v5280_v38 = vpop.f32.mrb[103].mxu1 }
0x13f1   :  { %v5281_v57 = vadd.f32 %v5632_v0, %v5280_v38 }
0x13f2   :  { %5365 = vst.msk [vmem:[%s9389_s25 + $0x28] sm:$0xff] %vm5359_vm13, %v5286_v52 }
0x13f3   :  { %5364 = vst.msk [vmem:[%s9389_s25 + $0x20] sm:$0xff] %vm5359_vm13, %v5281_v57  ;;  %v6660_v12 = vpop.f32.mrb[104].mxu1 }
0x13f4   :  { %v5296_v34 = vadd.f32 %v6660_v12, %v5632_v0  ;;  %v5290_v16 = vpop.f32.mrb[105].mxu1 }
0x13f5   :  { %v5291_v28 = vadd.f32 %v5632_v0, %v5290_v16 }
0x13f6   :  { %5367 = vst.msk [vmem:[%s9389_s25 + $0x38] sm:$0xff] %vm5359_vm13, %v5296_v34 }
0x13f7   :  { %5366 = vst.msk [vmem:[%s9389_s25 + $0x30] sm:$0xff] %vm5359_vm13, %v5291_v28  ;;  %v6663_v49 = vpop.f32.mrb[106].mxu1 }
0x13f8   :  { %v5306_v11 = vadd.f32 %v6663_v49, %v5632_v0  ;;  %v5300_v4 = vpop.f32.mrb[107].mxu1 }
0x13f9   :  { %v5301_v8 = vadd.f32 %v5632_v0, %v5300_v4 }
0x13fa   :  { %5369 = vst.msk [vmem:[%s9389_s25 + $0x48] sm:$0xff] %vm5359_vm13, %v5306_v11 }
0x13fb   :  { %5368 = vst.msk [vmem:[%s9389_s25 + $0x40] sm:$0xff] %vm5359_vm13, %v5301_v8  ;;  %v6666_v37 = vpop.f32.mrb[108].mxu1 }
0x13fc   :  { %v5316_v10 = vadd.f32 %v6666_v37, %v5632_v0  ;;  %v5310_v32 = vpop.f32.mrb[109].mxu1 }
0x13fd   :  { %v5311_v50 = vadd.f32 %v5632_v0, %v5310_v32 }
0x13fe   :  { %5371 = vst.msk [vmem:[%s9389_s25 + $0x58] sm:$0xff] %vm5359_vm13, %v5316_v10 }
0x13ff   :  { %5370 = vst.msk [vmem:[%s9389_s25 + $0x50] sm:$0xff] %vm5359_vm13, %v5311_v50  ;;  %v6669_v22 = vpop.f32.mrb[110].mxu1 }
0x1400   :  { %v5326_v58 = vadd.f32 %v6669_v22, %v5632_v0  ;;  %v5320_v53 = vpop.f32.mrb[111].mxu1 }
0x1401   :  { %v5321_v62 = vadd.f32 %v5632_v0, %v5320_v53 }
0x1402   :  { %5373 = vst.msk [vmem:[%s9389_s25 + $0x68] sm:$0xff] %vm5359_vm13, %v5326_v58 }
0x1403   :  { %5372 = vst.msk [vmem:[%s9389_s25 + $0x60] sm:$0xff] %vm5359_vm13, %v5321_v62  ;;  %v6672_v48 = vpop.f32.mrb[112].mxu1 }
0x1404   :  { %v5336_v41 = vadd.f32 %v6672_v48, %v5632_v0  ;;  %v5330_v21 = vpop.f32.mrb[113].mxu1 }
0x1405   :  { %v5331_v44 = vadd.f32 %v5632_v0, %v5330_v21 }
0x1406   :  { %5375 = vst.msk [vmem:[%s9389_s25 + $0x78] sm:$0xff] %vm5359_vm13, %v5336_v41 }
0x1407   :  { %5374 = vst.msk [vmem:[%s9389_s25 + $0x70] sm:$0xff] %vm5359_vm13, %v5331_v44  ;;  %v6675_v5 = vpop.f32.mrb[114].mxu1 }
0x1408   :  { %v5346_v36 = vadd.f32 %v6675_v5, %v5632_v0  ;;  %v5340_v54 = vpop.f32.mrb[115].mxu1 }
0x1409   :  { %v5341_v14 = vadd.f32 %v5632_v0, %v5340_v54 }
0x140a   :  { %5377 = vst.msk [vmem:[%s9389_s25 + $0x88] sm:$0xff] %vm5359_vm13, %v5346_v36 }
0x140b   :  { %5376 = vst.msk [vmem:[%s9389_s25 + $0x80] sm:$0xff] %vm5359_vm13, %v5341_v14  ;;  %v6678_v3 = vpop.f32.mrb[116].mxu1 }
0x140c   :  { %v5356_v1 = vadd.f32 %v6678_v3, %v5632_v0  ;;  %v5350_v47 = vpop.f32.mrb[117].mxu1 }
0x140d   :  { %v5351_v23 = vadd.f32 %v5632_v0, %v5350_v47 }
0x140e   :  { %5379 = vst.msk [vmem:[%s9389_s25 + $0x98] sm:$0xff] %vm5359_vm13, %v5356_v1 }
0x140f   :  { %5378 = vst.msk [vmem:[%s9389_s25 + $0x90] sm:$0xff] %vm5359_vm13, %v5351_v23 }

// kernel: mul.41
= control target key start
LH: loop header
LB: loop body
LE: loop exit
PB: predicated region body
PF: predicated region fallthrough
CT: control target
= control target key end

     0   :  { %s20_s0 = inlined_call_operand.<no memory space> [shape: f32[], index: 0, kind: input, shape index: {}]   ;;  %s21_s1 = inlined_call_operand.vmem [shape: f32[1,16,2], index: 1, kind: output, shape index: {}]  }
   0x1   :  { %v2_v0 = vstv %s20_s0 }
   0x2   :  { %3 = vst [vmem:[%s21_s1] sm:$0x3] %v2_v0 }

// kernel: seed_transformer_forward.3
= control target key start
LH: loop header
LB: loop body
LE: loop exit
PB: predicated region body
PF: predicated region fallthrough
CT: control target
= control target key end

     0   :  { %s4470_s0 = inlined_call_operand.vmem [shape: f32[2,8,10], index: 0, kind: input, shape index: {}]   ;;  %s4471_s1 = inlined_call_operand.vmem [shape: f32[10,32], index: 1, kind: input, shape index: {}]   ;;  %s4472_s2 = inlined_call_operand.vmem [shape: f32[1,32], index: 2, kind: input, shape index: {}]   ;;  %s4473_s3 = inlined_call_operand.vmem [shape: f32[32,32], index: 3, kind: input, shape index: {}]   ;;  %s4474_s4 = inlined_call_operand.vmem [shape: f32[1,32], index: 4, kind: input, shape index: {}]   ;;  %s4475_s5 = inlined_call_operand.vmem [shape: f32[32,32], index: 5, kind: input, shape index: {}]   ;;  %s4476_s6 = inlined_call_operand.vmem [shape: f32[1,32], index: 6, kind: input, shape index: {}]   ;;  %s4477_s7 = inlined_call_operand.vmem [shape: f32[32,64], index: 7, kind: input, shape index: {}]   ;;  %s4478_s8 = inlined_call_operand.vmem [shape: f32[1,64], index: 8, kind: input, shape index: {}]   ;;  %s4479_s9 = inlined_call_operand.vmem [shape: f32[32,32], index: 9, kind: input, shape index: {}]   ;;  %s4480_s10 = inlined_call_operand.vmem [shape: f32[1,32], index: 10, kind: input, shape index: {}]   ;;  %s4481_s11 = inlined_call_operand.vmem [shape: f32[32,32], index: 11, kind: input, shape index: {}]   ;;  %s4482_s12 = inlined_call_operand.vmem [shape: f32[1,32], index: 12, kind: input, shape index: {}]   ;;  %s4483_s13 = inlined_call_operand.vmem [shape: f32[1,32], index: 13, kind: input, shape index: {}]   ;;  %s4484_s14 = inlined_call_operand.vmem [shape: f32[1,32], index: 14, kind: input, shape index: {}]   ;;  %s4485_s15 = inlined_call_operand.vmem [shape: f32[1,32], index: 15, kind: input, shape index: {}]   ;;  %s4486_s16 = inlined_call_operand.vmem [shape: f32[1,32], index: 16, kind: input, shape index: {}]   ;;  %s4487_s17 = inlined_call_operand.vmem [shape: f32[32,64], index: 17, kind: input, shape index: {}]   ;;  %s4488_s18 = inlined_call_operand.vmem [shape: f32[1,64], index: 18, kind: input, shape index: {}]   ;;  %s4489_s19 = inlined_call_operand.vmem [shape: f32[64,32], index: 19, kind: input, shape index: {}]   ;;  %s4490_s20 = inlined_call_operand.vmem [shape: f32[1,32], index: 20, kind: input, shape index: {}]   ;;  %s4491_s21 = inlined_call_operand.vmem [shape: f32[1,32], index: 21, kind: input, shape index: {}]   ;;  %s4492_s22 = inlined_call_operand.vmem [shape: f32[1,32], index: 22, kind: input, shape index: {}]   ;;  %s4493_s23 = inlined_call_operand.vmem [shape: f32[32,11], index: 23, kind: input, shape index: {}]   ;;  %s4494_s24 = inlined_call_operand.vmem [shape: f32[1,11], index: 24, kind: input, shape index: {}]   ;;  %s4495_s25 = inlined_call_operand.hbm [shape: f32[2,2,8,32], index: 25, kind: output, shape index: {0}]   ;;  %s4496_s26 = inlined_call_operand.vmem [shape: f32[2,2,8,7], index: 26, kind: output, shape index: {1}]  }
   0x1   :  { %4515 = sst [smem:[#allocation13_spill]] %s4470_s0 }
   0x2   :  { %4516 = sst [smem:[#allocation14_spill]] %s4471_s1 }
   0x3   :  { %4517 = sst [smem:[#allocation15_spill]] %s4472_s2 }
   0x4   :  { %4518 = sst [smem:[#allocation16_spill]] %s4473_s3 }
   0x5   :  { %4519 = sst [smem:[#allocation17_spill]] %s4474_s4 }
   0x6   :  { %4520 = sst [smem:[#allocation18_spill]] %s4475_s5 }
   0x7   :  { %4521 = sst [smem:[#allocation19_spill]] %s4476_s6 }
   0x8   :  { %4522 = sst [smem:[#allocation20_spill]] %s4477_s7 }
   0x9   :  { %4523 = sst [smem:[#allocation21_spill]] %s4478_s8 }
   0xa   :  { %4524 = sst [smem:[#allocation22_spill]] %s4479_s9 }
   0xb   :  { %4525 = sst [smem:[#allocation23_spill]] %s4480_s10 }
   0xc   :  { %4526 = sst [smem:[#allocation24_spill]] %s4495_s25 }
   0xd   :  { %4527 = sst [smem:[#allocation25_spill]] %s4496_s26 }
   0xe   :  { %32 = vsyncpa [#allocation5], 0 }
   0xf   :  { %34 = vsyncpa [#allocation5 + $0x1], 0  ;;  %s4009_s27 = smov 0   ;;  %s4011_s3 = smov 0  }
  0x10   :  { %s4013_s7 = smov 0   ;;  %s4015_s28 = smov 0  }
  0x11 LB: > { %4528 = sst [smem:[#allocation7_spill]] %s3850_s27  ;;  %s4030_s8 = sadd.s32 4294967295, %s3862_s28   ;;  %s3862_s28 = sphi %s4015_s28, %s4554_s28   ;;  %s3858_s7 = sphi %s4013_s7, %s4556_s7   ;;  %s3854_s3 = sphi %s4011_s3, %s4558_s3   ;;  %s3850_s27 = sphi %s4009_s27, %s4557_s27  }
  0x12   : > { %4529 = sst [smem:[#allocation8_spill]] %s3858_s7  ;;  %s3255_s4 = sadd.s32 4294967294, %s3862_s28  }
  0x13   : > { %4530 = sst [smem:[#allocation9_spill]] %s3862_s28  ;;  %s4034_s29 = sadd.s32 1, %s3862_s28  }
  0x14   : > { %4531 = sst [smem:[#allocation10_spill]] %s4034_s29  ;;  %s572_s0 = sadd.s32 1, %s3858_s7 }
  0x15   : > { %s569_s9 = ssub.s32 %s3862_s28, %s4034_s29  ;;  %p582_p0 = scmp.ne.s32.totalorder %s3858_s7, %s3854_s3 }
  0x16   : > { %p570_p1 = scmp.eq.s32.totalorder %s569_s9, 0  ;;  %p583_p2 = scmp.eq.s32.totalorder %s4030_s8, 1 }
  0x17   : > { %p588_p3 = scmp.ne.s32.totalorder %s3854_s3, %s3850_s27  ;;  %p589_p4 = scmp.eq.s32.totalorder %s3255_s4, 1 }
  0x18   : > { %s4045_s30 = scalar_select %p570_p1, %s3858_s7, %s572_s0  }
  0x19   : > { %p4047_p5 = por %p583_p2, %p582_p0  ;;  %p4051_p6 = por %p589_p4, %p588_p3 }
  0x1a   : > { %4532 = sst [smem:[#allocation11_spill]] %s4045_s30  ;;  %p3257_p7 = scmp.ge.s32.totalorder %s3862_s28, 1 }
  0x1b   : > { %s4534_s5 = scalar_select %p4051_p6, 1, 0 }
  0x1c   : > { %p708_p8 = scmp.lt.s32.totalorder %s3862_s28, 3 }
  0x1d   : > { %4535 = sst [smem:[#allocation12_spill]] %s4534_s5 }
  0x1e   : > { %p709_p9 = pnand %p3257_p7, %p708_p8 }
  0x1f   : > { %s4510_s10 = sand.u32 (!%p709_p9), 1, %s3854_s3   ;;  %p778_p10 = scmp.lt.s32.totalorder (!%p709_p9), %s4030_s8, 1 }
  0x20   : > { %712 = sbr.rel (%p709_p9) target bundleno = 4834 (0x12e2), region = 120  ;;  %s3258_s6 = sshll.u32 (!%p709_p9), %s4510_s10, 4 }
  0x21   : > { %p783_p11 = scmp.eq.s32.totalorder (!%p709_p9), %s4030_s8, 0  ;;  %s4536_s26 = sld [smem:[#allocation25_spill]] (!%p709_p9) }
  0x22   : > { %s4068_s7 = scalar_lea.vmem (!%p709_p9), [#allocation4], %s3258_s6  ;;  %p3261_p12 = scmp.ne.s32.totalorder (!%p709_p9), %s4030_s8, 0 }
  0x27   : > { %s779_s1 = scalar_select %p778_p10, %s4030_s8, 1 }
  0x28   : > { %786 = sbr.rel (%p3261_p12) target bundleno = 49 (0x31), region = 124  ;;  %s4537_s27 = sld [smem:[#allocation13_spill]] (!%p3261_p12)  ;;  %vm789_vm0 = vcmask (!%p3261_p12), 80896   ;;  %vm792_vm1 = vcmask (!%p3261_p12), 261120   ;;  %v3864_v2 = vmov (!%p3261_p12), 0.0  }
  0x29   : > { %s3331_s4 = sshll.u32 %s779_s1, 4  ;;  %793 = vst.msk [vmem:[#allocation2] sm:$0xff] (!%p3261_p12), %vm792_vm1, %v3864_v2  ;;  %794 = vst.msk [vmem:[#allocation2 + $0x8] sm:$0xff] (!%p3261_p12), %vm792_vm1, %v3864_v2 }
  0x2a   : > { %s4066_s30 = scalar_lea.vmem %s4536_s26, %s3331_s4 }
  0x2e   : > { %s4538_s25 = smov (!%p3261_p12), %s4537_s27  ;;  %v787_v0 = vld [vmem:[%s4537_s27] sm:$0xff] (!%p3261_p12) }
  0x2f   : > { %v788_v1 = vld [vmem:[%s4538_s25 + $0x8] sm:$0xff]  ;;  %790 = vst.msk [vmem:[#allocation3] sm:$0xff] %vm789_vm0, %v787_v0 }
  0x30   : > { %791 = vst.msk [vmem:[#allocation3 + $0x8] sm:$0xff] %vm789_vm0, %v788_v1 }
  0x31 PF: > { %s4539_s4 = sld [smem:[#allocation14_spill]]  ;;  %vm813_vm2 = vcmask 1041408   ;;  %vm3865_vm3 = vmmov 1   ;;  %vm806_vm5 = vcmask 80896   ;;  %s4540_s29 = sld [smem:[#allocation16_spill]]  ;;  %vm905_vm6 = vcmask 261120  }
  0x32   : > { %vm3605_vm4 = vmpackc.low %vm813_vm2, %vm3865_vm3  ;;  %s4541_s5 = sld [smem:[#allocation18_spill]]  ;;  %s4542_s25 = sld [smem:[#allocation15_spill]]  ;;  %v1081_v48 = vld [vmem:[#allocation2] sm:$0xff]  ;;  %v1082_v50 = vld [vmem:[#allocation2 + $0x8] sm:$0xff]  ;;  %v3866_v63 = vmov 0.0   ;;  %v1287_v0 = vlaneseq  ;;  %vm3867_vm7 = vmmov 0  }
  0x33   : > { %s4543_s10 = sld [smem:[#allocation20_spill]]  ;;  %s4544_s26 = sld [smem:[#allocation17_spill]]  ;;  %vm1454_vm2 = vcmask 64512   ;;  %vm2884_vm3 = vcmask 523264  }
  0x34   : > { %s1083_s28 = scalar_select %p783_p11, 1, 0  ;;  %v1288_v1 = vand.u32 127, %v1287_v0 }
  0x35   : > { %s4546_s0 = sld [smem:[#allocation19_spill]]  ;;  %s4547_s9 = sld [smem:[#allocation21_spill]] }
  0x36   : > { %s1084_s6 = scvt.s32.f32 %s1083_s28  ;;  %vm1950_vm8 = vcmp.ge.s32.totalorder %v1288_v1, 16  ;;  %vm1951_vm9 = vcmp.lt.s32.totalorder %v1288_v1, 24  ;;  %vm2277_vm10 = vcmp.ge.s32.totalorder %v1288_v1, 24  ;;  %vm2278_vm11 = vcmp.lt.s32.totalorder %v1288_v1, 32  ;;  %s3869_s1 = smov 125  }
  0x37   : > { %v797_v3 = vld [vmem:[%s4539_s4] sm:$0xff]  ;;  %v798_v4 = vld [vmem:[%s4539_s4 + $0x8] sm:$0x3]  ;;  %v796_v10 = vld [vmem:[#allocation3 + $0x8] sm:$0xff]  ;;  %vm1290_vm14 = vcmp.lt.s32.totalorder %v1288_v1, 8  ;;  %vm1479_vm15 = vcmp.ge.s32.totalorder %v1288_v1, 8 }
  0x38   : > { %v795_v5 = vld [vmem:[#allocation3] sm:$0xff]  ;;  %v3604_v6 = vpack.c.bf16 %v798_v4, %v797_v3  ;;  %v894_v7 = vld [vmem:[%s4540_s29] sm:$0xff]  ;;  %v895_v8 = vld [vmem:[%s4540_s29 + $0x8] sm:$0xff]  ;;  %v1087_v51 = vstv %s1084_s6  ;;  %vm1480_vm0 = vcmp.lt.s32.totalorder %v1288_v1, 16  ;;  %s3332_s4 = sshll.u32 %s4030_s8, 8  ;;  %s3177_s27 = sshll.u32 %s4068_s7, 4  ;;  %s4421_s27 = int_to_ptr.vmem [resolvable:$true] %s3177_s27 }
  0x39   : > { %3425 = vmatprep.mubr.msk.f32.mxu0 %vm806_vm5, %v795_v5  ;;  %v3610_v9 = vpack.c.bf16 %v895_v8, %v894_v7  ;;  %v896_v11 = vld [vmem:[%s4540_s29 + $0x10] sm:$0xff]  ;;  %v897_v12 = vld [vmem:[%s4540_s29 + $0x18] sm:$0xff]  ;;  %v989_v14 = vld [vmem:[%s4541_s5] sm:$0xff]  ;;  %s4550_s28 = sand.u32 1, %s3854_s3   ;;  %s3870_s8 = smov [#allocation4]  }
  0x3a   : > { %3606 = vmatprep.subr.msk.bf16.mxu0 %vm3605_vm4, %v3604_v6  ;;  %v3614_v13 = vpack.c.bf16 %v897_v12, %v896_v11  ;;  %v990_v15 = vld [vmem:[%s4541_s5 + $0x8] sm:$0xff]  ;;  %v3262_v17 = vld [vmem:[%s4542_s25] ss:$0 sm:$0xff]  ;;  %v991_v24 = vld [vmem:[%s4541_s5 + $0x10] sm:$0xff]  ;;  %s4545_s25 = sld [smem:[#allocation22_spill]] }
  0x3b   : > { %3609 = vmatpush3.bf16.msk.msra.mxu0 %vm3605_vm4, %v3604_v6  ;;  %3611 = vmatprep.subr.bf16.mxu1 %v3610_v9  ;;  %v3618_v16 = vpack.c.bf16 %v990_v15, %v989_v14  ;;  %v992_v25 = vld [vmem:[%s4541_s5 + $0x18] sm:$0xff]  ;;  %v1096_v27 = vld [vmem:[%s4543_s10] sm:$0xff]  ;;  %v1097_v28 = vld [vmem:[%s4543_s10 + $0x8] sm:$0xff]  ;;  %v3278_v15 = vsel %vm1290_vm14, 1.0, %v3866_v63  ;;  %s4549_s5 = sld [smem:[#allocation24_spill]] }
  0x3c   : > { %3613 = vmatpush3.bf16.msra.mxu1 %v3610_v9  ;;  %v3622_v26 = vpack.c.bf16 %v992_v25, %v991_v24  ;;  %v3626_v29 = vpack.c.bf16 %v1097_v28, %v1096_v27  ;;  %v3266_v30 = vld [vmem:[%s4544_s26] ss:$0 sm:$0xff]  ;;  %v1098_v40 = vld [vmem:[%s4543_s10 + $0x10] sm:$0xff]  ;;  %v1099_v41 = vld [vmem:[%s4543_s10 + $0x18] sm:$0xff]  ;;  %s1090_s26 = ssub.f32 1.0, %s1084_s6  ;;  %s4548_s6 = sld [smem:[#allocation23_spill]] }
  0x3d   : > { %3615 = vmatprep.subr.bf16.mxu1 %v3614_v13  ;;  %3619 = vmatprep.subr.bf16.mxu0 %v3618_v16  ;;  %v3630_v42 = vpack.c.bf16 %v1099_v41, %v1098_v40  ;;  %v3269_v46 = vld [vmem:[%s4546_s0] ss:$0 sm:$0xff]  ;;  %vm1952_vm12 = vmand %vm1950_vm8, %vm1951_vm9 }
  0x3e   : > { %3426 = vmatmul.mubr.msk.f32.vlgmr.msra.gmra.mrb[0].mxu0 %vm806_vm5, %v796_v10  ;;  %v1091_v47 = vstv %s1090_s26  ;;  %v3272_v2 = vld [vmem:[%s4547_s9] ss:$0 sm:$0xff]  ;;  %vm2279_vm13 = vmand %vm2277_vm10, %vm2278_vm11  ;;  %v3292_v5 = vsel %vm1952_vm12, 1.0, %v3866_v63  ;;  %s3868_s26 = smov 96  }
  0x3f   : > { %3621 = vmatpush3.bf16.msra.mxu0 %v3618_v16  ;;  %v1092_v55 = vmul.f32 %v1091_v47, %v1081_v48  ;;  %v1093_v57 = vmul.f32 %v1091_v47, %v1082_v50  ;;  %v3299_v10 = vsel %vm2279_vm13, 1.0, %v3866_v63  ;;  %vm1481_vm1 = vmand %vm1479_vm15, %vm1480_vm0 }
  0x40   : > { %3617 = vmatpush3.bf16.msra.mxu1 %v3614_v13  ;;  %3623 = vmatprep.subr.bf16.mxu0 %v3622_v26  ;;  %v1101_v37 = vld [vmem:[%s4545_s25] sm:$0xff]  ;;  %v1102_v38 = vld [vmem:[%s4545_s25 + $0x8] sm:$0xff]  ;;  %v1103_v43 = vld [vmem:[%s4545_s25 + $0x10] sm:$0xff]  ;;  %v3283_v27 = vsel %vm1481_vm1, 1.0, %v3866_v63 }
  0x41   : > { %3627 = vmatprep.subr.bf16.mxu1 %v3626_v29  ;;  %v3634_v39 = vpack.c.bf16 %v1102_v38, %v1101_v37  ;;  %v1104_v44 = vld [vmem:[%s4545_s25 + $0x18] sm:$0xff]  ;;  %s4418_s9 = scalar_lea.hbm %s4549_s5, %s3332_s4 }
  0x42   : > { %v3638_v45 = vpack.c.bf16 %v1104_v44, %v1103_v43  ;;  %v3275_v4 = vld [vmem:[%s4548_s6] ss:$0 sm:$0xff]  ;;  %s4425_s6 = scalar_lea.sflag [#allocation5], %s4550_s28 }
  0x43   : > { %3625 = vmatpush3.bf16.msra.mxu0 %v3622_v26 }
  0x44   : > { %3635 = vmatprep.subr.bf16.mxu0 %v3634_v39 }
 0x111   : > { %v3427_v18 = vpop.f32.mrb[0].mxu0 }
 0x112   : > { %v889_v19 = vadd.f32 %v3427_v18, %v3262_v17  ;;  %v883_v20 = vpop.f32.mrb[1].mxu0 }
 0x113   : > { %v884_v21 = vadd.f32 %v3262_v17, %v883_v20 }
 0x114   : > { %v893_v23 = vmax.f32 %v889_v19, 0.0 }
 0x115   : > { %v892_v22 = vmax.f32 %v884_v21, 0.0 }
 0x117   : > { %3436 = vmatprep.mubr.msk.f32.mxu1 %vm905_vm6, %v892_v22 }
 0x118   : > { %3437 = vmatmul.mubr.msk.f32.vlgmr.msra.gmra.mrb[0].mxu1 %vm905_vm6, %v893_v23 }
 0x119   : > { %3629 = vmatpush3.bf16.msra.mxu1 %v3626_v29 }
 0x11a   : > { %3631 = vmatprep.subr.bf16.mxu1 %v3630_v42 }
 0x11d   : > { %3633 = vmatpush3.bf16.msra.mxu1 %v3630_v42 }
 0x11e   : > { %3472 = vmatprep.subr.mxu1 %v3866_v63 }
 0x1eb   : > { %v3438_v31 = vpop.f32.mrb[0].mxu1 }
 0x1ec   : > { %v984_v32 = vadd.f32 %v3438_v31, %v3266_v30  ;;  %v978_v33 = vpop.f32.mrb[1].mxu1 }
 0x1ed   : > { %v979_v34 = vadd.f32 %v3266_v30, %v978_v33 }
 0x1ee   : > { %v988_v36 = vmax.f32 %v984_v32, 0.0 }
 0x1ef   : > { %v987_v35 = vmax.f32 %v979_v34, 0.0 }
 0x1f1   : > { %3447 = vmatprep.mubr.msk.f32.mxu0 %vm905_vm6, %v987_v35 }
 0x1f2   : > { %3448 = vmatmul.mubr.msk.f32.vlgmr.msra.gmra.mrb[2].mxu0 %vm905_vm6, %v988_v36 }
 0x1f3   : > { %3637 = vmatpush3.bf16.msra.mxu0 %v3634_v39 }
 0x1f4   : > { %3639 = vmatprep.subr.bf16.mxu0 %v3638_v45 }
 0x1f7   : > { %3641 = vmatpush3.bf16.msra.mxu0 %v3638_v45 }
 0x1f8   : > { %3477 = vmatprep.subr.mxu0 %v3866_v63 }
 0x2c5   : > { %v3449_v49 = vpop.f32.mrb[2].mxu0 }
 0x2c6   : > { %v1078_v52 = vadd.f32 %v3449_v49, %v3269_v46  ;;  %v1072_v53 = vpop.f32.mrb[3].mxu0 }
 0x2c7   : > { %v1073_v54 = vadd.f32 %v3269_v46, %v1072_v53 }
 0x2c8   : > { %v1089_v56 = vmul.f32 %v1087_v51, %v1078_v52  ;;  %v1086_v60 = vadd.f32 %v1082_v50, %v1078_v52 }
 0x2c9   : > { %v1085_v58 = vadd.f32 %v1081_v48, %v1073_v54  ;;  %v1088_v59 = vmul.f32 %v1087_v51, %v1073_v54 }
 0x2ca   : > { %v4151_v62 = vadd.f32 %v1093_v57, %v1089_v56 }
 0x2cb   : > { %v4148_v61 = vadd.f32 %v1092_v55, %v1088_v59  ;;  %3458 = vmatprep.mubr.msk.f32.mxu1 %vm905_vm6, %v1085_v58 }
 0x2cc   : > { %3459 = vmatmul.mubr.msk.f32.vlgmr.msra.gmra.mrb[2].mxu1 %vm905_vm6, %v1086_v60 }
 0x2cd   : > { %3469 = vmatprep.mubr.msk.f32.mxu0 %vm905_vm6, %v4148_v61  ;;  %3474 = vmatprep.mubr.msk.f32.mxu1 %vm3867_vm7, %v3866_v63 }
 0x2ce   : > { %3470 = vmatmul.mubr.msk.f32.vlgmr.msra.gmra.mrb[4].mxu0 %vm905_vm6, %v4151_v62 }
 0x2cf   : > { %3479 = vmatprep.mubr.msk.f32.mxu0 %vm3867_vm7, %v3866_v63 }
 0x39f   : > { %v3460_v3 = vpop.f32.mrb[2].mxu1 }
 0x3a0   : > { %v1197_v6 = vadd.f32 %v3460_v3, %v3272_v2  ;;  %v1191_v7 = vpop.f32.mrb[3].mxu1 }
 0x3a1   : > { %v1192_v8 = vadd.f32 %v3272_v2, %v1191_v7  ;;  %v3471_v9 = vpop.f32.mrb[4].mxu0 }
 0x3a2   : > { %v1284_v11 = vadd.f32 %v3471_v9, %v3275_v4  ;;  %v1278_v12 = vpop.f32.mrb[5].mxu0  ;;  %v4172_v13 = vmul.f32 %v3292_v5, %v1197_v6  ;;  %v4189_v23 = vmul.f32 %v3299_v10, %v1197_v6  ;;  %v1295_v29 = vmul.f32 %v3278_v15, %v1197_v6 }
 0x3a3   : > { %v1279_v14 = vadd.f32 %v3275_v4, %v1278_v12  ;;  %1297 = vrot.lane.b32.xlu0 %v1192_v8, %s3868_s26  ;;  %v4175_v16 = vmul.f32 %v3292_v5, %v1192_v8  ;;  %v4181_v19 = vmul.f32 %v3299_v10, %v1192_v8  ;;  %v1294_v26 = vmul.f32 %v3278_v15, %v1192_v8 }
 0x3a4   : > { %v4177_v17 = vmul.f32 %v3278_v15, %v1284_v11  ;;  %v4179_v18 = vmul.f32 %v3292_v5, %v1284_v11  ;;  %v4191_v24 = vmul.f32 %v3299_v10, %v1284_v11  ;;  %v1484_v30 = vmul.f32 %v3283_v27, %v1192_v8 }
 0x3a5   : > { %v4183_v20 = vmul.f32 %v3278_v15, %v1279_v14  ;;  %v4185_v21 = vmul.f32 %v3292_v5, %v1279_v14  ;;  %v4187_v22 = vmul.f32 %v3299_v10, %v1279_v14  ;;  %v1656_v31 = vmul.f32 %v3283_v27, %v1279_v14 }
 0x3a6   : > { %v1485_v32 = vmul.f32 %v3283_v27, %v1197_v6  ;;  %v1657_v33 = vmul.f32 %v3283_v27, %v1284_v11 }
 0x3a7   : > { %1375 = vrot.lane.b32.xlu0 %v1197_v6, %s3868_s26  ;;  %s3800_s26 = scalar_lea.vmem %s4421_s27, 256 }
 0x3a8   : > { %p3801_p13 = scmp.ne.s32.totalorder %s4421_s27, %s3800_s26 }
 0x3aa   : > { %p3802_p0 = pnand %p3801_p13, %p4047_p5 }
 0x3ac   : > { %p3803_p1 = pneg %p3802_p0 }
 0x415   : > { %v4193_v25 = vpop.permute.xlu0 %1297 }
 0x416   : > { %3473 = vmatpush3.xpose.msk.msra.mxu1 %vm905_vm6, %v4193_v25 }
 0x417   : > { %3482 = vmatprep.subr.mxu1 %v3866_v63 }
 0x419   : > { %v4199_v28 = vpop.permute.xlu0 %1375  ;;  %3475 = vmatmul.mubr.msk.f32.vlgmr.msra.gmra.mrb[4].mxu1 %vm905_vm6, %v1294_v26 }
 0x41a   : > { %3478 = vmatpush3.xpose.msk.msra.mxu0 %vm905_vm6, %v4199_v28  ;;  %3483 = vmatpush3.xpose.msk.msra.mxu1 %vm905_vm6, %v4193_v25 }
 0x41b   : > { %3484 = vmatprep.mubr.msk.f32.mxu1 %vm3867_vm7, %v3866_v63  ;;  %3487 = vmatprep.subr.mxu0 %v3866_v63 }
 0x41c   : > { %3492 = vmatprep.subr.mxu1 %v3866_v63 }
 0x41d   : > { %3480 = vmatmul.mubr.msk.f32.vlgmr.msra.gmra.mrb[6].mxu0 %vm905_vm6, %v1295_v29  ;;  %3485 = vmatmul.mubr.msk.f32.vlgmr.msra.gmra.mrb[6].mxu1 %vm905_vm6, %v1484_v30 }
 0x41e   : > { %3488 = vmatpush3.xpose.msk.msra.mxu0 %vm905_vm6, %v4199_v28  ;;  %3493 = vmatpush3.msra.mxu1 %v1656_v31 }
 0x41f   : > { %3489 = vmatprep.mubr.msk.f32.mxu0 %vm3867_vm7, %v3866_v63  ;;  %3497 = vmatprep.subr.mxu0 %v3866_v63 }
 0x420   : > { %3494 = vmatprep.mubr.msk.f32.mxu1 %vm3867_vm7, %v3866_v63  ;;  %3502 = vmatprep.subr.mxu1 %v3866_v63 }
 0x421   : > { %3490 = vmatmul.mubr.msk.f32.vlgmr.msra.gmra.mrb[8].mxu0 %vm905_vm6, %v1485_v32 }
 0x422   : > { %3498 = vmatpush3.msra.mxu0 %v1657_v33  ;;  %3499 = vmatprep.mubr.msk.f32.mxu0 %vm3867_vm7, %v3866_v63 }
 0x423   : > { %3507 = vmatprep.subr.mxu0 %v3866_v63 }
 0x4ec   : > { %v1370_v34 = vpop.f32.mrb[4].mxu1 }
 0x4ed   : > { %v1452_v35 = vmul.f32 0.35355338, %v1370_v34  ;;  %v3476_v36 = vpop.f32.mrb[5].mxu1 }
 0x4ef   : > { %v1455_v37 = vsel %vm1454_vm2, %v1452_v35, -inf }
 0x4f0   : > { %v1448_v38 = vpop.f32.mrb[6].mxu0  ;;  %1456 = vmax.xlane.f32.xlu0 %v1455_v37  ;;  %v1555_v39 = vpop.f32.mrb[6].mxu1 }
 0x4f1   : > { %v1632_v40 = vmul.f32 0.35355338, %v1555_v39  ;;  %v3481_v41 = vpop.f32.mrb[7].mxu0  ;;  %v3486_v42 = vpop.f32.mrb[7].mxu1  ;;  %v1453_v47 = vmul.f32 0.35355338, %v1448_v38 }
 0x4f3   : > { %v1634_v43 = vsel %vm1454_vm2, %v1632_v40, -inf  ;;  %v1458_v49 = vsel %vm1454_vm2, %v1453_v47, -inf }
 0x4f4   : > { %v1628_v44 = vpop.f32.mrb[8].mxu0  ;;  %1635 = vmax.xlane.f32.xlu1 %v1634_v43 }
 0x4f5   : > { %v1633_v45 = vmul.f32 0.35355338, %v1628_v44  ;;  %v3491_v46 = vpop.f32.mrb[9].mxu0 }
 0x4f7   : > { %v1637_v48 = vsel %vm1454_vm2, %v1633_v45, -inf }
 0x4f8   : > { %1638 = vmax.xlane.f32.xlu1 %v1637_v48 }
 0x4fc   : > { %1459 = vmax.xlane.f32.xlu1 %v1458_v49 }
 0x57d   : > { %v1457_v50 = vpop.xlane.xlu0 %1456 }
 0x57e   : > { %v1461_v53 = vsub.f32 %v1452_v35, %v1457_v50 }
 0x580   : > { %v1463_v57 = vmul.f32 1.442695, %v1461_v53 }
 0x581   : > { %v1636_v51 = vpop.xlane.xlu1 %1635 }
 0x582   : > { %v1640_v52 = vsub.f32 %v1632_v40, %v1636_v51 }
 0x584   : > { %v1642_v54 = vmul.f32 1.442695, %v1640_v52 }
 0x585   : > { %v1639_v55 = vpop.xlane.xlu1 %1638 }
 0x586   : > { %3742 = vpow2.f32 %v1642_v54  ;;  %v1641_v56 = vsub.f32 %v1633_v45, %v1639_v55 }
 0x588   : > { %v1644_v58 = vmul.f32 1.442695, %v1641_v56 }
 0x589   : > { %v1460_v59 = vpop.xlane.xlu1 %1459 }
 0x58a   : > { %3744 = vpow2.f32 %v1644_v58  ;;  %v1462_v60 = vsub.f32 %v1453_v47, %v1460_v59 }
 0x58b   : > { %3746 = vpow2.f32 %v1463_v57 }
 0x58c   : > { %v1465_v0 = vmul.f32 1.442695, %v1462_v60 }
 0x58e   : > { %3748 = vpow2.f32 %v1465_v0 }
 0x590   : > { %v3743_v1 = vpop.eup %3742 }
 0x591   : > { %v1646_v2 = vsel %vm1454_vm2, %v3743_v1, 0.0 }
 0x592   : > { %1647 = vadd.xlane.f32.xlu1 %v1646_v2  ;;  %v1107_v2 = vld [vmem:[%s4481_s11 + $0x8] sm:$0xff] }
 0x594   : > { %v3745_v3 = vpop.eup %3744 }
 0x595   : > { %v1649_v4 = vsel %vm1454_vm2, %v3745_v3, 0.0  ;;  %v3747_v5 = vpop.eup %3746 }
 0x596   : > { %1650 = vadd.xlane.f32.xlu1 %v1649_v4  ;;  %v1467_v6 = vsel %vm1454_vm2, %v3747_v5, 0.0 }
 0x598   : > { %v3749_v7 = vpop.eup %3748 }
 0x599   : > { %v1470_v8 = vsel %vm1454_vm2, %v3749_v7, 0.0 }
 0x59a   : > { %1468 = vadd.xlane.f32.xlu1 %v1467_v6 }
 0x59e   : > { %1471 = vadd.xlane.f32.xlu1 %v1470_v8 }
 0x61f   : > { %v1648_v9 = vpop.xlane.xlu1 %1647 }
 0x620   : > { %3750 = vrcp.f32 %v1648_v9 }
 0x623   : > { %v1651_v10 = vpop.xlane.xlu1 %1650 }
 0x624   : > { %3752 = vrcp.f32 %v1651_v10  ;;  %v1108_v10 = vld [vmem:[%s4481_s11 + $0x10] sm:$0xff] }
 0x627   : > { %v1469_v11 = vpop.xlane.xlu1 %1468 }
 0x628   : > { %3754 = vrcp.f32 %v1469_v11  ;;  %v1109_v11 = vld [vmem:[%s4481_s11 + $0x18] sm:$0xff] }
 0x62a   : > { %v3751_v12 = vpop.eup %3750 }
 0x62b   : > { %v1653_v14 = vmul.f32 %v3751_v12, %v3743_v1  ;;  %v1472_v15 = vpop.xlane.xlu1 %1471  ;;  %v1106_v1 = vld [vmem:[%s4481_s11] sm:$0xff]  ;;  %v3646_v12 = vpack.c.bf16 %v1109_v11, %v1108_v10  ;;  %v2879_v10 = vld [vmem:[%s4489_s19 + $0x18] sm:$0xff] }
 0x62c   : > { %3756 = vrcp.f32 %v1472_v15 }
 0x62d   : > { %3495 = vmatmul.mubr.msk.f32.vlgmr.msra.gmra.mrb[8].mxu1 %vm1454_vm2, %v1653_v14 }
 0x62e   : > { %v3753_v26 = vpop.eup %3752  ;;  %3503 = vmatpush3.msra.mxu1 %v4183_v20  ;;  %3504 = vmatprep.mubr.msk.f32.mxu1 %vm3867_vm7, %v3866_v63 }
 0x62f   : > { %v1655_v27 = vmul.f32 %v3753_v26, %v3745_v3  ;;  %3512 = vmatprep.subr.mxu1 %v3866_v63  ;;  %v3642_v3 = vpack.c.bf16 %v1107_v2, %v1106_v1  ;;  %v2783_v1 = vld [vmem:[%s4487_s17 + $0x8] sm:$0xff]  ;;  %v2784_v2 = vld [vmem:[%s4487_s17 + $0x10] sm:$0xff] }
 0x631   : > { %3500 = vmatmul.mubr.msk.f32.vlgmr.msra.gmra.mrb[10].mxu0 %vm1454_vm2, %v1655_v27 }
 0x632   : > { %v3755_v29 = vpop.eup %3754  ;;  %3508 = vmatpush3.msra.mxu0 %v4177_v17  ;;  %3509 = vmatprep.mubr.msk.f32.mxu0 %vm3867_vm7, %v3866_v63 }
 0x633   : > { %v1474_v30 = vmul.f32 %v3755_v29, %v3747_v5  ;;  %3517 = vmatprep.subr.mxu0 %v3866_v63 }
 0x635   : > { %3505 = vmatmul.mubr.msk.f32.vlgmr.msra.gmra.mrb[8].mxu1 %vm1454_vm2, %v1474_v30  ;;  %v3308_v30 = vld [vmem:[%s4482_s12] ss:$0 sm:$0xff] }
 0x636   : > { %v3757_v20 = vpop.eup %3756  ;;  %3513 = vmatpush3.xpose.msk.msra.mxu1 %vm905_vm6, %v4193_v25  ;;  %3514 = vmatprep.mubr.msk.f32.mxu1 %vm3867_vm7, %v3866_v63 }
 0x637   : > { %v1476_v31 = vmul.f32 %v3757_v20, %v3749_v7  ;;  %3522 = vmatprep.subr.mxu1 %v3866_v63 }
 0x639   : > { %3510 = vmatmul.mubr.msk.f32.vlgmr.msra.gmra.mrb[10].mxu0 %vm1454_vm2, %v1476_v31  ;;  %3515 = vmatmul.mubr.msk.f32.vlgmr.msra.gmra.mrb[10].mxu1 %vm905_vm6, %v4175_v16 }
 0x63a   : > { %3518 = vmatpush3.xpose.msk.msra.mxu0 %vm905_vm6, %v4199_v28  ;;  %3523 = vmatpush3.msra.mxu1 %v4185_v21 }
 0x63b   : > { %3519 = vmatprep.mubr.msk.f32.mxu0 %vm3867_vm7, %v3866_v63  ;;  %3527 = vmatprep.subr.mxu0 %v3866_v63 }
 0x63c   : > { %3524 = vmatprep.mubr.msk.f32.mxu1 %vm3867_vm7, %v3866_v63  ;;  %3532 = vmatprep.subr.mxu1 %v3866_v63 }
 0x63d   : > { %3520 = vmatmul.mubr.msk.f32.vlgmr.msra.gmra.mrb[12].mxu0 %vm905_vm6, %v4172_v13 }
 0x63e   : > { %3528 = vmatpush3.msra.mxu0 %v4179_v18  ;;  %3529 = vmatprep.mubr.msk.f32.mxu0 %vm3867_vm7, %v3866_v63 }
 0x63f   : > { %3537 = vmatprep.subr.mxu0 %v3866_v63 }
 0x70c   : > { %v2026_v16 = vpop.f32.mrb[10].mxu1 }
 0x70d   : > { %v2103_v17 = vmul.f32 0.35355338, %v2026_v16  ;;  %v3516_v21 = vpop.f32.mrb[11].mxu1 }
 0x70f   : > { %v2105_v32 = vsel %vm1454_vm2, %v2103_v17, -inf }
 0x710   : > { %v2099_v33 = vpop.f32.mrb[12].mxu0  ;;  %2106 = vmax.xlane.f32.xlu1 %v2105_v32 }
 0x711   : > { %v2104_v34 = vmul.f32 0.35355338, %v2099_v33  ;;  %v3521_v35 = vpop.f32.mrb[13].mxu0 }
 0x713   : > { %v2108_v36 = vsel %vm1454_vm2, %v2104_v34, -inf }
 0x714   : > { %2109 = vmax.xlane.f32.xlu1 %v2108_v36 }
 0x79d   : > { %v2107_v13 = vpop.xlane.xlu1 %2106 }
 0x79e   : > { %v2111_v37 = vsub.f32 %v2103_v17, %v2107_v13 }
 0x7a0   : > { %v2113_v18 = vmul.f32 1.442695, %v2111_v37 }
 0x7a1   : > { %v2110_v38 = vpop.xlane.xlu1 %2109 }
 0x7a2   : > { %3758 = vpow2.f32 %v2113_v18  ;;  %v2112_v39 = vsub.f32 %v2104_v34, %v2110_v38 }
 0x7a4   : > { %v2115_v40 = vmul.f32 1.442695, %v2112_v39 }
 0x7a6   : > { %3760 = vpow2.f32 %v2115_v40 }
 0x7ac   : > { %v3759_v41 = vpop.eup %3758 }
 0x7ad   : > { %v2117_v42 = vsel %vm1454_vm2, %v3759_v41, 0.0 }
 0x7ae   : > { %2118 = vadd.xlane.f32.xlu1 %v2117_v42 }
 0x7b0   : > { %v3761_v43 = vpop.eup %3760 }
 0x7b1   : > { %v2120_v44 = vsel %vm1454_vm2, %v3761_v43, 0.0 }
 0x7b2   : > { %2121 = vadd.xlane.f32.xlu0 %v2120_v44 }
 0x83b   : > { %v2119_v45 = vpop.xlane.xlu1 %2118 }
 0x83c   : > { %3762 = vrcp.f32 %v2119_v45 }
 0x83f   : > { %v2122_v46 = vpop.xlane.xlu0 %2121 }
 0x840   : > { %3764 = vrcp.f32 %v2122_v46 }
 0x846   : > { %v3763_v47 = vpop.eup %3762 }
 0x847   : > { %v2124_v48 = vmul.f32 %v3763_v47, %v3759_v41  ;;  %v3309_v47 = vld [vmem:[%s4483_s13] ss:$0 sm:$0xff] }
 0x849   : > { %3525 = vmatmul.mubr.msk.f32.vlgmr.msra.gmra.mrb[8].mxu1 %vm1454_vm2, %v2124_v48 }
 0x84a   : > { %v3765_v49 = vpop.eup %3764  ;;  %3533 = vmatpush3.xpose.msk.msra.mxu1 %vm905_vm6, %v4193_v25  ;;  %3534 = vmatprep.mubr.msk.f32.mxu1 %vm3867_vm7, %v3866_v63 }
 0x84b   : > { %v2126_v50 = vmul.f32 %v3765_v49, %v3761_v43  ;;  %3542 = vmatprep.subr.mxu1 %v3866_v63 }
 0x84d   : > { %3530 = vmatmul.mubr.msk.f32.vlgmr.msra.gmra.mrb[10].mxu0 %vm1454_vm2, %v2126_v50  ;;  %3535 = vmatmul.mubr.msk.f32.vlgmr.msra.gmra.mrb[12].mxu1 %vm905_vm6, %v4181_v19  ;;  %v3310_v50 = vld [vmem:[%s4484_s14] ss:$0 sm:$0xff] }
 0x84e   : > { %3538 = vmatpush3.xpose.msk.msra.mxu0 %vm905_vm6, %v4199_v28  ;;  %3543 = vmatpush3.msra.mxu1 %v4187_v22 }
 0x84f   : > { %3539 = vmatprep.mubr.msk.f32.mxu0 %vm3867_vm7, %v3866_v63  ;;  %3547 = vmatprep.subr.mxu0 %v3866_v63 }
 0x850   : > { %3544 = vmatprep.mubr.msk.f32.mxu1 %vm3867_vm7, %v3866_v63  ;;  %3643 = vmatprep.subr.bf16.mxu1 %v3642_v3 }
 0x851   : > { %3540 = vmatmul.mubr.msk.f32.vlgmr.msra.gmra.mrb[14].mxu0 %vm905_vm6, %v4189_v23 }
 0x852   : > { %3548 = vmatpush3.msra.mxu0 %v4191_v24  ;;  %3549 = vmatprep.mubr.msk.f32.mxu0 %vm3867_vm7, %v3866_v63 }
 0x920   : > { %v2353_v19 = vpop.f32.mrb[12].mxu1 }
 0x921   : > { %v2430_v25 = vmul.f32 0.35355338, %v2353_v19  ;;  %v3536_v28 = vpop.f32.mrb[13].mxu1 }
 0x923   : > { %v2432_v22 = vsel %vm1454_vm2, %v2430_v25, -inf }
 0x924   : > { %v2426_v51 = vpop.f32.mrb[14].mxu0  ;;  %2433 = vmax.xlane.f32.xlu1 %v2432_v22 }
 0x925   : > { %v2431_v52 = vmul.f32 0.35355338, %v2426_v51  ;;  %v3541_v53 = vpop.f32.mrb[15].mxu0 }
 0x927   : > { %v2435_v54 = vsel %vm1454_vm2, %v2431_v52, -inf }
 0x928   : > { %2436 = vmax.xlane.f32.xlu0 %v2435_v54 }
 0x9b1   : > { %v2434_v55 = vpop.xlane.xlu1 %2433 }
 0x9b2   : > { %v2438_v56 = vsub.f32 %v2430_v25, %v2434_v55 }
 0x9b4   : > { %v2440_v23 = vmul.f32 1.442695, %v2438_v56 }
 0x9b5   : > { %v2437_v57 = vpop.xlane.xlu0 %2436 }
 0x9b6   : > { %3766 = vpow2.f32 %v2440_v23  ;;  %v2439_v24 = vsub.f32 %v2431_v52, %v2437_v57 }
 0x9b8   : > { %v2442_v58 = vmul.f32 1.442695, %v2439_v24 }
 0x9ba   : > { %3768 = vpow2.f32 %v2442_v58 }
 0x9c0   : > { %v3767_v63 = vpop.eup %3766 }
 0x9c1   : > { %v2444_v59 = vsel %vm1454_vm2, %v3767_v63, 0.0 }
 0x9c2   : > { %2445 = vadd.xlane.f32.xlu1 %v2444_v59 }
 0x9c4   : > { %v3769_v60 = vpop.eup %3768 }
 0x9c5   : > { %v2447_v0 = vsel %vm1454_vm2, %v3769_v60, 0.0 }
 0x9c6   : > { %2448 = vadd.xlane.f32.xlu0 %v2447_v0  ;;  %v2782_v0 = vld [vmem:[%s4487_s17] sm:$0xff] }
 0xa4f   : > { %v2446_v4 = vpop.xlane.xlu1 %2445 }
 0xa50   : > { %3770 = vrcp.f32 %v2446_v4  ;;  %v2785_v4 = vld [vmem:[%s4487_s17 + $0x18] sm:$0xff] }
 0xa53   : > { %v2449_v5 = vpop.xlane.xlu0 %2448 }
 0xa54   : > { %3772 = vrcp.f32 %v2449_v5  ;;  %v3654_v5 = vpack.c.bf16 %v2785_v4, %v2784_v2 }
 0xa5a   : > { %v3771_v6 = vpop.eup %3770 }
 0xa5b   : > { %v2451_v7 = vmul.f32 %v3771_v6, %v3767_v63  ;;  %v2876_v6 = vld [vmem:[%s4489_s19] sm:$0xff] }
 0xa5d   : > { %3545 = vmatmul.mubr.msk.f32.vlgmr.msra.gmra.mrb[8].mxu1 %vm1454_vm2, %v2451_v7  ;;  %v2877_v7 = vld [vmem:[%s4489_s19 + $0x8] sm:$0xff] }
 0xa5e   : > { %v3773_v8 = vpop.eup %3772  ;;  %3645 = vmatpush3.bf16.msra.mxu1 %v3642_v3  ;;  %v3650_v3 = vpack.c.bf16 %v2783_v1, %v2782_v0  ;;  %v3024_v0 = vld [vmem:[%s4493_s23 + $0x18] sm:$0xff] }
 0xa5f   : > { %v2453_v9 = vmul.f32 %v3773_v8, %v3769_v60  ;;  %3647 = vmatprep.subr.bf16.mxu1 %v3646_v12  ;;  %v2878_v8 = vld [vmem:[%s4489_s19 + $0x10] sm:$0xff] }
 0xa60   : > { %3651 = vmatprep.subr.bf16.mxu0 %v3650_v3  ;;  %v3662_v11 = vpack.c.bf16 %v2879_v10, %v2878_v8 }
 0xa61   : > { %3550 = vmatmul.mubr.msk.f32.vlgmr.msra.gmra.mrb[10].mxu0 %vm1454_vm2, %v2453_v9  ;;  %v3658_v9 = vpack.c.bf16 %v2877_v7, %v2876_v6 }
 0xa62   : > { %3649 = vmatpush3.bf16.msra.mxu1 %v3646_v12  ;;  %3653 = vmatpush3.bf16.msra.mxu0 %v3650_v3  ;;  %v2880_v12 = vld [vmem:[%s4489_s19 + $0x20] sm:$0xff] }
 0xa63   : > { %3655 = vmatprep.subr.bf16.mxu0 %v3654_v5  ;;  %3659 = vmatprep.subr.bf16.mxu1 %v3658_v9 }
 0xa66   : > { %3657 = vmatpush3.bf16.msra.mxu0 %v3654_v5 }
 0xb30   : > { %v2525_v14 = vpop.f32.mrb[8].mxu1 }
 0xb31   : > { %v3546_v15 = vpop.f32.mrb[9].mxu1  ;;  %3560 = vmatprep.mubr.msk.f32.mxu1 %vm905_vm6, %v2525_v14  ;;  %v2881_v14 = vld [vmem:[%s4489_s19 + $0x28] sm:$0xff] }
 0xb32   : > { %v3666_v15 = vpack.c.bf16 %v2881_v14, %v2880_v12  ;;  %v3320_v12 = vld [vmem:[%s4492_s22] ss:$0 sm:$0xff] }
 0xb34   : > { %v2598_v26 = vpop.f32.mrb[10].mxu0 }
 0xb35   : > { %v3551_v27 = vpop.f32.mrb[11].mxu0  ;;  %3561 = vmatmul.mubr.msk.f32.vlgmr.msra.gmra.mrb[14].mxu1 %vm905_vm6, %v2598_v26 }
 0xb36   : > { %3661 = vmatpush3.bf16.msra.mxu1 %v3658_v9  ;;  %v3319_v9 = vld [vmem:[%s4491_s21] ss:$0 sm:$0xff] }
 0xb37   : > { %3663 = vmatprep.subr.bf16.mxu1 %v3662_v11 }
 0xb3a   : > { %3665 = vmatpush3.bf16.msra.mxu1 %v3662_v11 }
 0xb3b   : > { %3667 = vmatprep.subr.bf16.mxu1 %v3666_v15 }
 0xb3e   : > { %3669 = vmatpush3.bf16.msra.mxu1 %v3666_v15 }
 0xc08   : > { %v3562_v29 = vpop.f32.mrb[14].mxu1 }
 0xc09   : > { %v2686_v20 = vadd.f32 %v3562_v29, %v4151_v62  ;;  %v2676_v31 = vpop.f32.mrb[15].mxu1 }
 0xc0a   : > { %v2685_v16 = vadd.f32 %v2676_v31, %v4148_v61 }
 0xc0b   : > { %v2694_v17 = vadd.f32 %v3308_v30, %v2686_v20 }
 0xc0c   : > { %v2693_v21 = vadd.f32 %v3308_v30, %v2685_v16 }
 0xc0d   : > { %v2698_v32 = vsel %vm905_vm6, %v2694_v17, 0.0 }
 0xc0e   : > { %2699 = vadd.xlane.f32.xlu0 %v2698_v32  ;;  %v2695_v33 = vsel %vm905_vm6, %v2693_v21, 0.0 }
 0xc0f   : > { %2696 = vadd.xlane.f32.xlu1 %v2695_v33 }
 0xc9b   : > { %v2700_v34 = vpop.xlane.xlu0 %2699 }
 0xc9c   : > { %v2703_v35 = vmul.f32 0.03125, %v2700_v34  ;;  %v2697_v36 = vpop.xlane.xlu1 %2696  ;;  %v3312_v34 = vld [vmem:[%s4486_s16] ss:$0 sm:$0xff] }
 0xc9d   : > { %v2702_v13 = vmul.f32 0.03125, %v2697_v36 }
 0xc9e   : > { %v2705_v37 = vsub.f32 %v2694_v17, %v2703_v35  ;;  %v3311_v17 = vld [vmem:[%s4485_s15] ss:$0 sm:$0xff] }
 0xc9f   : > { %v2704_v18 = vsub.f32 %v2693_v21, %v2702_v13 }
 0xca0   : > { %v2707_v38 = vmul.f32 %v2705_v37, %v2705_v37 }
 0xca1   : > { %v2706_v39 = vmul.f32 %v2704_v18, %v2704_v18 }
 0xca2   : > { %v2711_v62 = vsel %vm905_vm6, %v2707_v38, 0.0  ;;  %v2883_v38 = vld [vmem:[%s4489_s19 + $0x38] sm:$0xff] }
 0xca3   : > { %2712 = vadd.xlane.f32.xlu0 %v2711_v62  ;;  %v2708_v61 = vsel %vm905_vm6, %v2706_v39, 0.0  ;;  %v3313_v62 = vld [vmem:[%s4488_s18] ss:$0 sm:$0xff] }
 0xca4   : > { %2709 = vadd.xlane.f32.xlu1 %v2708_v61 }
 0xd30   : > { %v2713_v40 = vpop.xlane.xlu0 %2712 }
 0xd31   : > { %v2715_v41 = vmul.f32 0.03125, %v2713_v40  ;;  %v2710_v42 = vpop.xlane.xlu1 %2709 }
 0xd32   : > { %v2714_v43 = vmul.f32 0.03125, %v2710_v42 }
 0xd33   : > { %v2717_v44 = vadd.f32 1e-05, %v2715_v41 }
 0xd34   : > { %v2716_v45 = vadd.f32 1e-05, %v2714_v43 }
 0xd35   : > { %3774 = vrsqrt.f32 %v2717_v44 }
 0xd36   : > { %3776 = vrsqrt.f32 %v2716_v45 }
 0xd3f   : > { %v3775_v46 = vpop.eup %3774 }
 0xd40   : > { %v3777_v48 = vpop.eup %3776  ;;  %v2721_v49 = vmul.f32 %v3775_v46, %v2705_v37  ;;  %v3318_v46 = vld [vmem:[%s4490_s20] ss:$0 sm:$0xff] }
 0xd41   : > { %v2720_v19 = vmul.f32 %v3777_v48, %v2704_v18  ;;  %v2882_v18 = vld [vmem:[%s4489_s19 + $0x30] sm:$0xff] }
 0xd42   : > { %v2729_v25 = vmul.f32 %v3309_v47, %v2721_v49  ;;  %v3670_v39 = vpack.c.bf16 %v2883_v38, %v2882_v18 }
 0xd43   : > { %v2728_v28 = vmul.f32 %v3309_v47, %v2720_v19 }
 0xd44   : > { %v2737_v22 = vadd.f32 %v3310_v50, %v2729_v25  ;;  %3671 = vmatprep.subr.bf16.mxu1 %v3670_v39 }
 0xd45   : > { %v2736_v51 = vadd.f32 %v3310_v50, %v2728_v28  ;;  %3673 = vmatpush3.bf16.msra.mxu1 %v3670_v39 }
 0xd46   : > { %v2743_v52 = vsel %vm905_vm6, %v2737_v22, 0.0 }
 0xd47   : > { %2744 = vadd.xlane.f32.xlu0 %v2743_v52  ;;  %v2740_v53 = vsel %vm905_vm6, %v2736_v51, 0.0 }
 0xd48   : > { %2741 = vadd.xlane.f32.xlu1 %v2740_v53 }
 0xdd4   : > { %v2745_v54 = vpop.xlane.xlu0 %2744 }
 0xdd5   : > { %v2747_v55 = vmul.f32 0.03125, %v2745_v54  ;;  %v2742_v56 = vpop.xlane.xlu1 %2741 }
 0xdd6   : > { %v2746_v23 = vmul.f32 0.03125, %v2742_v56 }
 0xdd7   : > { %v2749_v57 = vsub.f32 %v2737_v22, %v2747_v55 }
 0xdd8   : > { %v2748_v24 = vsub.f32 %v2736_v51, %v2746_v23 }
 0xdd9   : > { %v2751_v58 = vmul.f32 %v2749_v57, %v2749_v57 }
 0xdda   : > { %v2750_v63 = vmul.f32 %v2748_v24, %v2748_v24 }
 0xddb   : > { %v2755_v59 = vsel %vm905_vm6, %v2751_v58, 0.0  ;;  %v3021_v58 = vld [vmem:[%s4493_s23] sm:$0xff] }
 0xddc   : > { %2756 = vadd.xlane.f32.xlu0 %v2755_v59  ;;  %v2752_v60 = vsel %vm905_vm6, %v2750_v63, 0.0  ;;  %v3022_v63 = vld [vmem:[%s4493_s23 + $0x8] sm:$0xff]  ;;  %v3023_v59 = vld [vmem:[%s4493_s23 + $0x10] sm:$0xff] }
 0xddd   : > { %2753 = vadd.xlane.f32.xlu1 %v2752_v60  ;;  %v3674_v60 = vpack.c.bf16 %v3022_v63, %v3021_v58  ;;  %v3678_v1 = vpack.c.bf16 %v3024_v0, %v3023_v59 }
 0xddf   : > { %3675 = vmatprep.subr.bf16.mxu0 %v3674_v60 }
 0xe69   : > { %v2757_v26 = vpop.xlane.xlu0 %2756 }
 0xe6a   : > { %v2759_v27 = vmul.f32 0.03125, %v2757_v26  ;;  %v2754_v29 = vpop.xlane.xlu1 %2753 }
 0xe6b   : > { %v2758_v30 = vmul.f32 0.03125, %v2754_v29 }
 0xe6c   : > { %v2761_v20 = vadd.f32 1e-05, %v2759_v27 }
 0xe6d   : > { %v2760_v31 = vadd.f32 1e-05, %v2758_v30  ;;  %v3321_v30 = vld [vmem:[%s4494_s24] ss:$0 sm:$0xff] }
 0xe6e   : > { %3778 = vrsqrt.f32 %v2761_v20 }
 0xe6f   : > { %3780 = vrsqrt.f32 %v2760_v31 }
 0xe78   : > { %v3779_v16 = vpop.eup %3778 }
 0xe79   : > { %v3781_v21 = vpop.eup %3780  ;;  %v2765_v32 = vmul.f32 %v3779_v16, %v2749_v57 }
 0xe7a   : > { %v2764_v33 = vmul.f32 %v3781_v21, %v2748_v24 }
 0xe7b   : > { %v2773_v35 = vmul.f32 %v3311_v17, %v2765_v32 }
 0xe7c   : > { %v2772_v36 = vmul.f32 %v3311_v17, %v2764_v33 }
 0xe7d   : > { %v2781_v37 = vadd.f32 %v3312_v34, %v2773_v35 }
 0xe7e   : > { %v2780_v13 = vadd.f32 %v3312_v34, %v2772_v36 }
 0xe80   : > { %3571 = vmatprep.mubr.msk.f32.mxu0 %vm905_vm6, %v2780_v13 }
 0xe81   : > { %3572 = vmatmul.mubr.msk.f32.vlgmr.msra.gmra.mrb[16].mxu0 %vm905_vm6, %v2781_v37 }
 0xe82   : > { %3677 = vmatpush3.bf16.msra.mxu0 %v3674_v60 }
 0xe83   : > { %3679 = vmatprep.subr.bf16.mxu0 %v3678_v1 }
 0xe86   : > { %3681 = vmatpush3.bf16.msra.mxu0 %v3678_v1 }
 0xf54   : > { %v3573_v61 = vpop.f32.mrb[16].mxu0 }
 0xf55   : > { %v2871_v40 = vadd.f32 %v3573_v61, %v3313_v62  ;;  %v2865_v41 = vpop.f32.mrb[17].mxu0 }
 0xf56   : > { %v2866_v42 = vadd.f32 %v3313_v62, %v2865_v41 }
 0xf57   : > { %v2875_v44 = vmax.f32 %v2871_v40, 0.0 }
 0xf58   : > { %v2874_v43 = vmax.f32 %v2866_v42, 0.0 }
 0xf5a   : > { %3590 = vmatprep.mubr.msk.f32.mxu1 %vm2884_vm3, %v2874_v43 }
 0xf5b   : > { %3591 = vmatmul.mubr.msk.f32.vlgmr.msra.gmra.mrb[16].mxu1 %vm2884_vm3, %v2875_v44 }
0x102e   : > { %v3592_v45 = vpop.f32.mrb[16].mxu1 }
0x102f   : > { %v2967_v47 = vadd.f32 %v3592_v45, %v2781_v37  ;;  %v2957_v48 = vpop.f32.mrb[17].mxu1 }
0x1030   : > { %v2966_v49 = vadd.f32 %v2957_v48, %v2780_v13 }
0x1031   : > { %v2976_v50 = vadd.f32 %v3318_v46, %v2967_v47 }
0x1032   : > { %v2975_v19 = vadd.f32 %v3318_v46, %v2966_v49 }
0x1033   : > { %v2982_v25 = vsel %vm905_vm6, %v2976_v50, 0.0 }
0x1034   : > { %2983 = vadd.xlane.f32.xlu0 %v2982_v25  ;;  %v2979_v28 = vsel %vm905_vm6, %v2975_v19, 0.0 }
0x1035   : > { %2980 = vadd.xlane.f32.xlu1 %v2979_v28 }
0x10c1   : > { %v2984_v22 = vpop.xlane.xlu0 %2983 }
0x10c2   : > { %v2986_v51 = vmul.f32 0.03125, %v2984_v22  ;;  %v2981_v52 = vpop.xlane.xlu1 %2980 }
0x10c3   : > { %v2985_v53 = vmul.f32 0.03125, %v2981_v52 }
0x10c4   : > { %v2988_v54 = vsub.f32 %v2976_v50, %v2986_v51 }
0x10c5   : > { %v2987_v55 = vsub.f32 %v2975_v19, %v2985_v53 }
0x10c6   : > { %v2990_v56 = vmul.f32 %v2988_v54, %v2988_v54 }
0x10c7   : > { %v2989_v23 = vmul.f32 %v2987_v55, %v2987_v55 }
0x10c8   : > { %v2994_v57 = vsel %vm905_vm6, %v2990_v56, 0.0 }
0x10c9   : > { %2995 = vadd.xlane.f32.xlu0 %v2994_v57  ;;  %v2991_v24 = vsel %vm905_vm6, %v2989_v23, 0.0 }
0x10ca   : > { %2992 = vadd.xlane.f32.xlu1 %v2991_v24 }
0x1156   : > { %v2996_v2 = vpop.xlane.xlu0 %2995 }
0x1157   : > { %v2998_v3 = vmul.f32 0.03125, %v2996_v2  ;;  %v2993_v4 = vpop.xlane.xlu1 %2992 }
0x1158   : > { %v2997_v5 = vmul.f32 0.03125, %v2993_v4 }
0x1159   : > { %v3000_v6 = vadd.f32 1e-05, %v2998_v3 }
0x115a   : > { %v2999_v7 = vadd.f32 1e-05, %v2997_v5 }
0x115b   : > { %3782 = vrsqrt.f32 %v3000_v6 }
0x115c   : > { %3784 = vrsqrt.f32 %v2999_v7 }
0x1165   : > { %v3783_v8 = vpop.eup %3782 }
0x1166   : > { %v3785_v10 = vpop.eup %3784  ;;  %v3004_v11 = vmul.f32 %v3783_v8, %v2988_v54 }
0x1167   : > { %v3003_v14 = vmul.f32 %v3785_v10, %v2987_v55 }
0x1168   : > { %v3012_v15 = vmul.f32 %v3319_v9, %v3004_v11 }
0x1169   : > { %v3011_v26 = vmul.f32 %v3319_v9, %v3003_v14 }
0x116a   : > { %v3020_v27 = vadd.f32 %v3320_v12, %v3012_v15 }
0x116b   : > { %v3019_v29 = vadd.f32 %v3320_v12, %v3011_v26 }
0x116c   : > { %3140 = vst.msk [vmem:[#allocation2 + $0x8] sm:$0xff] %vm905_vm6, %v3020_v27  ;;  %3155 = vst.msk [vmem:[%s4068_s7 + $0x8] sm:$0xff] %vm905_vm6, %v3020_v27 }
0x116d   : > { %3601 = vmatprep.mubr.msk.f32.mxu0 %vm905_vm6, %v3019_v29  ;;  %3139 = vst.msk [vmem:[#allocation2] sm:$0xff] %vm905_vm6, %v3019_v29  ;;  %3154 = vst.msk [vmem:[%s4068_s7] sm:$0xff] %vm905_vm6, %v3019_v29 }
0x116e   : > { %3602 = vmatmul.mubr.msk.f32.vlgmr.msra.gmra.mrb[18].mxu0 %vm905_vm6, %v3020_v27 }
0x1241   : > { %v3603_v20 = vpop.f32.mrb[18].mxu0 }
0x1242   : > { %v3110_v31 = vadd.f32 %v3603_v20, %v3321_v30  ;;  %v3104_v16 = vpop.f32.mrb[19].mxu0 }
0x1243   : > { %v3105_v17 = vadd.f32 %v3321_v30, %v3104_v16 }
0x1244   : > { %3786 = vtanh.f32 %v3110_v31  ;;  %v3325_v21 = vmul.f32 -1.442695, %v3110_v31 }
0x1245   : > { %3788 = vtanh.f32 %v3105_v17  ;;  %v3324_v32 = vmul.f32 -1.442695, %v3105_v17 }
0x1246   : > { %3790 = vpow2.f32 %v3325_v21 }
0x1247   : > { %3792 = vpow2.f32 %v3324_v32 }
0x124e   : > { %v3787_v33 = vpop.eup %3786 }
0x124f   : > { %v3789_v34 = vpop.eup %3788  ;;  %v3116_v35 = vmul.f32 0.1, %v3787_v33 }
0x1250   : > { %v3791_v36 = vpop.eup %3790  ;;  %v3115_v13 = vmul.f32 0.1, %v3789_v34 }
0x1251   : > { %v3793_v37 = vpop.eup %3792  ;;  %3121 = vrot.lane.b32.xlu0 %v3116_v35, %s3869_s1  ;;  %v3134_v38 = vadd.f32 1.0, %v3791_v36 }
0x1252   : > { %v3133_v18 = vadd.f32 1.0, %v3793_v37  ;;  %3119 = vrot.lane.b32.xlu1 %v3115_v13, %s3869_s1  ;;  %s3804_s1 = sshll.u32 %s3870_s8, 4  ;;  %s3805_s1 = int_to_ptr.vmem [resolvable:$false] %s3804_s1 }
0x1253   : > { %s3806_s0 = scalar_lea.vmem %s3805_s1, 512  ;;  %p3807_p2 = scmp.lt.s32.totalorder %s4421_s27, %s3805_s1 }
0x1254   : > { %3794 = vrcp.f32 %v3133_v18  ;;  %p3808_p3 = scmp.lt.s32.totalorder %s3806_s0, %s3800_s26 }
0x1255   : > { %3796 = vrcp.f32 %v3134_v38 }
0x1256   : > { %p3809_p4 = por %p3808_p3, %p3807_p2 }
0x1258   : > { %p3810_p7 = pnand %p3809_p4, %p3803_p1 }
0x125a   : > { %3813 = shalt.err (!%p3810_p7)
}
0x125b   : > { %s3814_s7 = scalar_lea.hbm %s4418_s9, 256  ;;  %s3818_s28 = scalar_lea.hbm %s4549_s5, 512 }
0x125c   : > { %p3815_p8 = scmp.ne.s32.totalorder %s4418_s9, %s3814_s7  ;;  %p3819_p11 = scmp.lt.u32.totalorder %s4418_s9, %s4549_s5 }
0x125d   : > { %p3820_p12 = scmp.lt.u32.totalorder %s3818_s28, %s3814_s7  ;;  %p3822_p0 = scmp.lt.u32.totalorder %s3814_s7, %s4418_s9 }
0x125e   : > { %p3816_p9 = pnand %p3815_p8, %p4047_p5 }
0x125f   : > { %p3821_p13 = por %p3820_p12, %p3819_p11 }
0x1260   : > { %p3817_p10 = pneg %p3816_p9 }
0x1261   : > { %p3823_p1 = por %p3822_p0, %p3821_p13 }
0x1263   : > { %p3824_p2 = pnand %p3823_p1, %p3817_p10 }
0x1265   : > { %3827 = shalt.err (!%p3824_p2)
}
0x1266   : > { %s3871_s26 = smov 128   ;;  %s3872_s0 = smov 8   ;;  %v3795_v39 = vpop.eup %3794  ;;  %vm3149_vm4 = vcmask 56320   ;;  %v3798_v40 = vld [vmem:[#allocation3 + $0x8] sm:$0xff]  ;;  %v3799_v43 = vld [vmem:[#allocation3] sm:$0xff] }
0x1267   : > { %3694 = dma.vmem_to_hbm [thread:$0]  (%p4047_p5), %s4421_s27, 256, %s4418_s9, %s4425_s6, %s3871_s26, %s3871_s26, %s3872_s0   ;;  %v3797_v62 = vpop.eup %3796 }
0x1268   : > { %s3873_s4 = smov 7  }
0x1269   : > { %3143 = vrot.lane.b32.xlu1 %v3795_v39, %s3873_s4 }
0x126d   : > { %3145 = vrot.lane.b32.xlu1 %v3797_v62, %s3873_s4 }
0x12c3   : > { %v3122_v61 = vpop.permute.xlu0 %3121 }
0x12c4   : > { %v3126_v41 = vadd.f32 %v3798_v40, %v3122_v61  ;;  %v3120_v42 = vpop.permute.xlu1 %3119 }
0x12c5   : > { %v3125_v44 = vadd.f32 %v3799_v43, %v3120_v42 }
0x12c6   : > { %3157 = vst.msk [vmem:[%s4066_s30 + $0x8] sm:$0xff] %vm3149_vm4, %v3126_v41 }
0x12c7   : > { %3156 = vst.msk [vmem:[%s4066_s30] sm:$0xff] %vm3149_vm4, %v3125_v44 }
0x12db   : > { %v3144_v45 = vpop.permute.xlu1 %3143 }
0x12dc   : > { %v3150_v46 = vsel %vm3149_vm4, %v3125_v44, %v3144_v45 }
0x12dd   : > { %3152 = vst.msk [vmem:[#allocation3] sm:$0xff] %vm806_vm5, %v3150_v46 }
0x12df   : > { %v3146_v47 = vpop.permute.xlu1 %3145 }
0x12e0   : > { %v3151_v48 = vsel %vm3149_vm4, %v3126_v41, %v3146_v47 }
0x12e1   : > { %3153 = vst.msk [vmem:[#allocation3 + $0x8] sm:$0xff] %vm806_vm5, %v3151_v48 }
0x12e2 PF: > { %s4551_s2 = sld [smem:[#allocation9_spill]]  ;;  %s4552_s9 = sld [smem:[#allocation7_spill]] }
0x12e8   : > { %p3700_p5 = scmp.ge.s32.totalorder %s4551_s2, 2  ;;  %s3195_s6 = sand.u32 1, %s4552_s9  }
0x12e9   : > { %s3196_s7 = scalar_lea.sflag [#allocation5], %s3195_s6 }
0x12ea   : > { %p3697_p3 = pnand %p3700_p5, %p4051_p6 }
0x12ec   : > { %3845 = dma.done.wait (!%p3697_p3), %s3196_s7, 256  }
0x12ed   : > { %3847 = vsyncadd (!%p3697_p3), %s3196_s7, 4294967040  ;;  %s4554_s28 = sld [smem:[#allocation10_spill]]  ;;  %s4555_s30 = sld [smem:[#allocation8_spill]] }
0x12ee   : > { %s4556_s7 = sld [smem:[#allocation11_spill]]  ;;  %s4557_s27 = smov %s3854_s3 }
0x12f3   : > { %p37_p4 = scmp.ge.s32.totalorder %s4554_s28, 4   ;;  %s4558_s3 = smov %s4555_s30 }
0x12f5   :  { %39 = sbr.rel (!%p37_p4) target bundleno = 17 (0x11), region = 168 }
0x12fc   :  { %3209 = vsyncpa [#allocation5], 1 }
0x12fd   :  { %3211 = vsyncpa [#allocation5 + $0x1], 1 }

</bundles_post_ra>
